<compile_context>
chip_gen: v5e
topology: v5e:2x2
jax: 0.10.0
libtpu: 0.0.40
codegen_flags: <defaults>
</compile_context>

<pallas_src>
import functools

import jax
import jax.numpy as jnp
from jax import lax
from jax.experimental import pallas as pl
from jax.experimental.pallas import tpu as pltpu

EPS = 1e-20


def _caps_kernel(x_ref, wbd_ref, wbdt_ref, o_ref, *, num_iters, ic, oc, idim,
                 odim):
    # x_ref:   (IC, ID, TB)                 lane-dense batch tile
    # wbd_ref: (ICOC*ID, ICOC*OD)           block-diagonal weights
    # wbdt_ref:(ICOC*OD, ICOC*ID)           per-block transposed weights
    # o_ref:   (OC, OD, TB)
    icoc = ic * oc
    p_in = icoc * idim
    p_out = icoc * odim
    tb = x_ref.shape[-1]

    # input = input / (input.sum(-1, keepdim=True) + eps)  -- exact div, once.
    x = x_ref[...].astype(jnp.float32)                      # (IC, ID, TB)
    x = x / (jnp.sum(x, axis=1, keepdims=True) + EPS)

    # Loop-invariant broadcast of x over output capsules, merged into a
    # lane-dense 2-D slab (major-dim merge only -> layout no-op).
    xb = jnp.broadcast_to(x[:, None, :, :], (ic, oc, idim, tb)).reshape(
        p_in, tb)                                           # (ICOC*ID, TB)

    wbd = wbd_ref[...]                                      # (P_in, P_out)
    wbdt = wbdt_ref[...]                                    # (P_out, P_in)

    # h init: 1/OD everywhere, flattened to (ICOC*OD, TB).
    h = jnp.full((p_out, tb), 1.0 / float(odim), dtype=jnp.float32)

    # NNMF SbS iteration, mathematically identical to the reference:
    #   hw = h*W ; hw /= sum_od(hw)+eps ; h_raw = sum_id(hw * x)
    # with h factored out of the inner sum and both contractions on the MXU:
    #   s = Wbd @ h ; xr = x/(s+eps) ; u = Wbd^T @ xr ; h_raw = h*u
    def body(_, h):
        s = jnp.dot(wbd, h, preferred_element_type=jnp.float32)    # (P_in, TB)
        xr = xb * pl.reciprocal(s + EPS, approx=True)               # (P_in, TB)
        u = jnp.dot(wbdt, xr, preferred_element_type=jnp.float32)   # (P_out,TB)
        hr = (h * u).reshape(icoc, odim, tb)
        hn = hr * pl.reciprocal(
            jnp.sum(hr, axis=1, keepdims=True) + EPS, approx=True)
        return hn.reshape(p_out, tb)

    h = lax.fori_loop(0, num_iters, body, h)

    # reconstruct = (h.unsqueeze(-2) * W).sum(-1)  -> same structure as `s`.
    recon = jnp.dot(wbd, h, preferred_element_type=jnp.float32)     # (P_in,TB)
    # alpha = (reconstruct * x.unsqueeze(-2)).sum(-1)
    alpha = jnp.sum((recon * xb).reshape(icoc, idim, tb), axis=1,
                    keepdims=True)                                   # (ICOC,1,TB)
    # output = (h * alpha).sum over input_caps  (major-axis reduction)
    hw = h.reshape(icoc, odim, tb) * alpha
    out = jnp.sum(hw.reshape(ic, oc, odim, tb), axis=0)              # (OC,OD,TB)
    # final L1 normalization over OD -- exact division (tiny tensor).
    out = out / (jnp.sum(out, axis=1, keepdims=True) + EPS)
    o_ref[...] = out.astype(o_ref.dtype)


def caps_layer_forward(x, weights, number_of_iterations=5, batch_tile=128):
    """x: (B, IC, ID) f32, weights: (IC, OC, ID, OD) f32 -> (B, OC, OD) f32."""
    b, ic, idim = x.shape
    ic_w, oc, idim_w, odim = weights.shape
    assert ic == ic_w and idim == idim_w
    icoc = ic * oc
    p_in = icoc * idim
    p_out = icoc * odim

    tb = batch_tile                       # 128 keeps full lane density
    bp = ((b + tb - 1) // tb) * tb        # pad batch to a multiple of TB
    grid = (bp // tb,)                    # B>=2*TB -> >=2 steps (both v7x TCs)

    # Lane-dense layout plumbing (outside the kernel): batch goes last.
    x_t = jnp.transpose(x, (1, 2, 0))                         # (IC, ID, B)
    if bp != b:
        x_t = jnp.pad(x_t, ((0, 0), (0, 0), (0, bp - b)))     # zeros are benign

    # Wrapper-side block-diagonal weight construction (loop-invariant, tiny):
    #   Wbd[p*ID+i, q*OD+o] = delta(p,q) * W[p][i,o]   with p=(ic,oc) flattened.
    w3 = weights.astype(jnp.float32).reshape(icoc, idim, odim)
    eye = jnp.eye(icoc, dtype=jnp.float32)
    wbd = (eye[:, None, :, None] * w3[:, :, None, :]).reshape(p_in, p_out)
    wbdt = wbd.T                           # per-block transpose == global .T

    kernel = functools.partial(_caps_kernel, num_iters=number_of_iterations,
                               ic=ic, oc=oc, idim=idim, odim=odim)

    cost = pl.CostEstimate(
        flops=int((2 * number_of_iterations + 1) * 2 * p_in * p_out * bp
                  + number_of_iterations * 8 * p_in * bp),
        transcendentals=int(number_of_iterations * (p_in + icoc) * bp),
        bytes_accessed=int(x.size * 4 + (wbd.size + wbdt.size) * 4 * grid[0]
                           + bp * oc * odim * 4),
    )

    out_t = pl.pallas_call(
        kernel,
        out_shape=jax.ShapeDtypeStruct((oc, odim, bp), x.dtype),
        grid_spec=pltpu.PrefetchScalarGridSpec(
            num_scalar_prefetch=0,
            grid=grid,
            in_specs=[
                pl.BlockSpec((ic, idim, tb), lambda i: (0, 0, i)),
                pl.BlockSpec((p_in, p_out), lambda i: (0, 0)),
                pl.BlockSpec((p_out, p_in), lambda i: (0, 0)),
            ],
            out_specs=pl.BlockSpec((oc, odim, tb), lambda i: (0, 0, i)),
        ),
        compiler_params=pltpu.CompilerParams(
            dimension_semantics=("parallel",),
            vmem_limit_bytes=24 * 1024 * 1024,
        ),
        cost_estimate=cost,
    )(x_t, wbd, wbdt)

    out = jnp.transpose(out_t, (2, 0, 1))                     # (Bp, OC, OD)
    return out[:b]


def init_weights(key, input_caps, input_dim, output_caps, output_dim,
                 threshold=1e-5):
    """Mirror of CapsLayer.__init__ + norm_weights (deterministic)."""
    w = jax.random.uniform(key, (input_caps, output_caps, input_dim, output_dim),
                           dtype=jnp.float32, minval=0.0, maxval=1.0)
    w = w / (jnp.sum(w, axis=1, keepdims=True) + EPS)
    w = jnp.maximum(w, threshold)
    w = w / (jnp.sum(w, axis=1, keepdims=True) + EPS)
    return w


def caps_layer_reference(x, weights, number_of_iterations=5):
    """Pure-JAX reference of the PyTorch forward (exact divisions)."""
    x = x / (jnp.sum(x, axis=-1, keepdims=True) + EPS)
    b = x.shape[0]
    ic, oc, idim, odim = weights.shape
    h = jnp.full((b, ic, oc, odim), 1.0 / float(odim), dtype=x.dtype)
    for _ in range(number_of_iterations):
        hw = h[:, :, :, None, :] * weights[None]
        hw = hw / (jnp.sum(hw, axis=-1, keepdims=True) + EPS)
        hw = jnp.sum(hw * x[:, :, None, :, None], axis=-2)
        h = hw / (jnp.sum(hw, axis=-1, keepdims=True) + EPS)
    recon = jnp.sum(h[:, :, :, None, :] * weights[None], axis=-1)
    alpha = jnp.sum(recon * x[:, :, None, :], axis=-1)
    out = jnp.sum(h * alpha[..., None], axis=-3)
    out = out / (jnp.sum(out, axis=-1, keepdims=True) + EPS)
    return out


# TODO(synk): only the forward pass is implemented; the custom autograd
# backward of FunctionalNNMFSbSBP is not translated.

if __name__ == "__main__":
    # Small shapes consistent with the module's forward:
    # input (B, input_caps, input_dim), output (B, output_caps, output_dim).
    # B=256 gives two 128-wide lane-dense batch tiles (2 grid steps).
    B, INPUT_CAPS, INPUT_DIM = 256, 8, 16
    OUTPUT_CAPS, OUTPUT_DIM = 4, 16
    NUM_ITERS = 5

    key = jax.random.PRNGKey(0)
    k_w, k_x = jax.random.split(key)

    weights = init_weights(k_w, INPUT_CAPS, INPUT_DIM, OUTPUT_CAPS, OUTPUT_DIM)
    # Non-negative inputs (NNMF assumes non-negativity), deterministic.
    x = jax.random.uniform(k_x, (B, INPUT_CAPS, INPUT_DIM),
                           dtype=jnp.float32, minval=0.0, maxval=1.0)

    out = jax.block_until_ready(caps_layer_forward(x, weights, NUM_ITERS))
    ref = jax.block_until_ready(caps_layer_reference(x, weights, NUM_ITERS))

    assert out.shape == (B, OUTPUT_CAPS, OUTPUT_DIM)
    # Tolerance covers the in-loop EUP approx reciprocals and the MXU's
    # multi-pass decomposition of the f32 block-diagonal matmuls.
    assert float(jnp.max(jnp.abs(out - ref))) < 1e-2

    print("KERNEL_OK")
</pallas_src>

<mosaic_0001>
module attributes {stable_mosaic.version = 11 : i64} {
  func.func @_caps_kernel(%arg0: i32, %arg1: memref<8x16x128xf32, #tpu.memory_space<vmem>>, %arg2: memref<512x512xf32, #tpu.memory_space<vmem>>, %arg3: memref<512x512xf32, #tpu.memory_space<vmem>>, %arg4: memref<4x16x128xf32, #tpu.memory_space<vmem>>) attributes {dimension_semantics = [#tpu.dimension_semantics<parallel>], iteration_bounds = array<i64: 2>, scalar_prefetch = 0 : i64, scratch_operands = 0 : i64, tpu.core_type = #tpu.core_type<tc>, window_params = [{transform_indices = @transform_0, window_bounds = array<i64: 8, 16, 128>}, {pipeline_mode = #tpu.pipeline_mode<synchronous>, transform_indices = @transform_1, window_bounds = array<i64: 512, 512>}, {pipeline_mode = #tpu.pipeline_mode<synchronous>, transform_indices = @transform_2, window_bounds = array<i64: 512, 512>}, {transform_indices = @transform_3, window_bounds = array<i64: 4, 16, 128>}]} {
    %c0 = arith.constant 0 : index
    %c0_0 = arith.constant 0 : index
    %c0_1 = arith.constant 0 : index
    %0 = vector.load %arg1[%c0, %c0_0, %c0_1] : memref<8x16x128xf32, #tpu.memory_space<vmem>>, vector<8x16x128xf32>
    %cst = arith.constant dense<0.000000e+00> : vector<8x128xf32>
    %1 = vector.multi_reduction <add>, %0, %cst [1] : vector<8x16x128xf32> to vector<8x128xf32>
    %2 = vector.shape_cast %1 : vector<8x128xf32> to vector<8x1x128xf32>
    %cst_2 = arith.constant 9.99999968E-21 : f32
    %3 = vector.broadcast %cst_2 : f32 to vector<8x1x128xf32>
    %4 = arith.addf %2, %3 : vector<8x1x128xf32>
    %5 = vector.broadcast %4 : vector<8x1x128xf32> to vector<8x16x128xf32>
    %6 = arith.divf %0, %5 : vector<8x16x128xf32>
    %7 = vector.shape_cast %6 : vector<8x16x128xf32> to vector<8x1x16x128xf32>
    %8 = vector.shape_cast %7 : vector<8x1x16x128xf32> to vector<8x1x16x128xf32>
    %9 = vector.broadcast %8 : vector<8x1x16x128xf32> to vector<8x4x16x128xf32>
    %10 = vector.shape_cast %9 : vector<8x4x16x128xf32> to vector<512x128xf32>
    %c0_3 = arith.constant 0 : index
    %c0_4 = arith.constant 0 : index
    %11 = vector.load %arg2[%c0_3, %c0_4] : memref<512x512xf32, #tpu.memory_space<vmem>>, vector<512x512xf32>
    %c0_5 = arith.constant 0 : index
    %c0_6 = arith.constant 0 : index
    %12 = vector.load %arg3[%c0_5, %c0_6] : memref<512x512xf32, #tpu.memory_space<vmem>>, vector<512x512xf32>
    %cst_7 = arith.constant 6.250000e-02 : f32
    %13 = vector.broadcast %cst_7 : f32 to vector<512x128xf32>
    %c0_i32 = arith.constant 0 : i32
    %c5_i32 = arith.constant 5 : i32
    %14 = arith.addi %c0_i32, %c5_i32 : i32
    %c1_i32 = arith.constant 1 : i32
    %15 = scf.for %arg5 = %c0_i32 to %14 step %c1_i32 iter_args(%arg6 = %13) -> (vector<512x128xf32>)  : i32 {
      %cst_16 = arith.constant dense<0.000000e+00> : vector<512x128xf32>
      %33 = tpu.matmul %11, %arg6, %cst_16 {dimension_numbers = #tpu.dot_dimension_numbers<[1], [0], [0], [1], [0, 0, 1, 1], [], []>} : vector<512x512xf32>, vector<512x128xf32>, vector<512x128xf32> -> vector<512x128xf32>
      %cst_17 = arith.constant 9.99999968E-21 : f32
      %34 = vector.broadcast %cst_17 : f32 to vector<512x128xf32>
      %35 = arith.addf %33, %34 : vector<512x128xf32>
      %36 = tpu.reciprocal %35 {approx = true} : vector<512x128xf32> -> vector<512x128xf32>
      %37 = arith.mulf %10, %36 : vector<512x128xf32>
      %cst_18 = arith.constant dense<0.000000e+00> : vector<512x128xf32>
      %38 = tpu.matmul %12, %37, %cst_18 {dimension_numbers = #tpu.dot_dimension_numbers<[1], [0], [0], [1], [0, 0, 1, 1], [], []>} : vector<512x512xf32>, vector<512x128xf32>, vector<512x128xf32> -> vector<512x128xf32>
      %39 = arith.mulf %arg6, %38 : vector<512x128xf32>
      %40 = vector.shape_cast %39 : vector<512x128xf32> to vector<32x16x128xf32>
      %cst_19 = arith.constant dense<0.000000e+00> : vector<32x128xf32>
      %41 = vector.multi_reduction <add>, %40, %cst_19 [1] : vector<32x16x128xf32> to vector<32x128xf32>
      %42 = vector.shape_cast %41 : vector<32x128xf32> to vector<32x1x128xf32>
      %cst_20 = arith.constant 9.99999968E-21 : f32
      %43 = vector.broadcast %cst_20 : f32 to vector<32x1x128xf32>
      %44 = arith.addf %42, %43 : vector<32x1x128xf32>
      %45 = tpu.reciprocal %44 {approx = true} : vector<32x1x128xf32> -> vector<32x1x128xf32>
      %46 = vector.broadcast %45 : vector<32x1x128xf32> to vector<32x16x128xf32>
      %47 = arith.mulf %40, %46 : vector<32x16x128xf32>
      %48 = vector.shape_cast %47 : vector<32x16x128xf32> to vector<512x128xf32>
      scf.yield %48 : vector<512x128xf32>
    }
    %cst_8 = arith.constant dense<0.000000e+00> : vector<512x128xf32>
    %16 = tpu.matmul %11, %15, %cst_8 {dimension_numbers = #tpu.dot_dimension_numbers<[1], [0], [0], [1], [0, 0, 1, 1], [], []>} : vector<512x512xf32>, vector<512x128xf32>, vector<512x128xf32> -> vector<512x128xf32>
    %17 = arith.mulf %16, %10 : vector<512x128xf32>
    %18 = vector.shape_cast %17 : vector<512x128xf32> to vector<32x16x128xf32>
    %cst_9 = arith.constant dense<0.000000e+00> : vector<32x128xf32>
    %19 = vector.multi_reduction <add>, %18, %cst_9 [1] : vector<32x16x128xf32> to vector<32x128xf32>
    %20 = vector.shape_cast %19 : vector<32x128xf32> to vector<32x1x128xf32>
    %21 = vector.shape_cast %15 : vector<512x128xf32> to vector<32x16x128xf32>
    %22 = vector.broadcast %20 : vector<32x1x128xf32> to vector<32x16x128xf32>
    %23 = arith.mulf %21, %22 : vector<32x16x128xf32>
    %24 = vector.shape_cast %23 : vector<32x16x128xf32> to vector<8x4x16x128xf32>
    %cst_10 = arith.constant dense<0.000000e+00> : vector<4x16x128xf32>
    %25 = vector.multi_reduction <add>, %24, %cst_10 [0] : vector<8x4x16x128xf32> to vector<4x16x128xf32>
    %cst_11 = arith.constant dense<0.000000e+00> : vector<4x128xf32>
    %26 = vector.multi_reduction <add>, %25, %cst_11 [1] : vector<4x16x128xf32> to vector<4x128xf32>
    %27 = vector.shape_cast %26 : vector<4x128xf32> to vector<4x1x128xf32>
    %cst_12 = arith.constant 9.99999968E-21 : f32
    %28 = vector.broadcast %cst_12 : f32 to vector<4x1x128xf32>
    %29 = arith.addf %27, %28 : vector<4x1x128xf32>
    %30 = vector.broadcast %29 : vector<4x1x128xf32> to vector<4x16x128xf32>
    %31 = arith.divf %25, %30 : vector<4x16x128xf32>
    %c0_13 = arith.constant 0 : index
    %c0_14 = arith.constant 0 : index
    %c0_15 = arith.constant 0 : index
    %32 = vector.load %arg4[%c0_13, %c0_14, %c0_15] : memref<4x16x128xf32, #tpu.memory_space<vmem>>, vector<4x16x128xf32>
    tpu.vector_store %arg4[%c0_13, %c0_14, %c0_15], %31 {strides = array<i32>} : memref<4x16x128xf32, #tpu.memory_space<vmem>>, vector<4x16x128xf32>,
    return
  }
  func.func @transform_0(%arg0: i32) -> (i32, i32, i32) {
    %c0_i32 = arith.constant 0 : i32
    %c0_i32_0 = arith.constant 0 : i32
    %c0_i32_1 = arith.constant 0 : i32
    return %c0_i32, %c0_i32_0, %arg0 : i32, i32, i32
  }
  func.func @transform_1(%arg0: i32) -> (i32, i32) {
    %c0_i32 = arith.constant 0 : i32
    %c0_i32_0 = arith.constant 0 : i32
    %c0_i32_1 = arith.constant 0 : i32
    return %c0_i32, %c0_i32_0 : i32, i32
  }
  func.func @transform_2(%arg0: i32) -> (i32, i32) {
    %c0_i32 = arith.constant 0 : i32
    %c0_i32_0 = arith.constant 0 : i32
    %c0_i32_1 = arith.constant 0 : i32
    return %c0_i32, %c0_i32_0 : i32, i32
  }
  func.func @transform_3(%arg0: i32) -> (i32, i32, i32) {
    %c0_i32 = arith.constant 0 : i32
    %c0_i32_0 = arith.constant 0 : i32
    %c0_i32_1 = arith.constant 0 : i32
    return %c0_i32, %c0_i32_0, %arg0 : i32, i32, i32
  }
}

</mosaic_0001>

<bundles_post_ra>
// kernel: tpu_custom_call.1
= control target key start
LH: loop header
LB: loop body
LE: loop exit
PB: predicated region body
PF: predicated region fallthrough
CT: control target
= control target key end

     0   :  { %8 = vsyncpa [#allocation3], 0  ;;  %s10275_s0 = inlined_call_operand.hbm [shape: f32[8,16,256], index: 0, kind: input, shape index: {}]   ;;  %s10276_s1 = inlined_call_operand.hbm [shape: f32[512,512], index: 1, kind: input, shape index: {}]   ;;  %s10277_s2 = inlined_call_operand.hbm [shape: f32[512,512], index: 2, kind: input, shape index: {}]   ;;  %s10278_s3 = inlined_call_operand.hbm [shape: f32[4,16,256], index: 3, kind: output, shape index: {}]  }
   0x1   :  { %10 = vsyncpa [#allocation3 + $0x1], 0 }
   0x2   :  { %11 = vsyncpa [#allocation6], 0 }
   0x3   :  { %12 = vsyncpa [#allocation4], 0 }
   0x4   :  { %14 = vsyncpa [#allocation4 + $0x1], 0  ;;  %s6420_s12 = smov 0   ;;  %s6422_s13 = smov 0  }
   0x5   :  { %s6424_s14 = smov 0   ;;  %s6426_s15 = smov 0  }
   0x6 LB: > { %s6441_s16 = sadd.s32 4294967295, %s6128_s15   ;;  %s4881_s17 = sadd.s32 4294967294, %s6128_s15   ;;  %s6128_s15 = sphi %s6426_s15, %s12202_s15   ;;  %s6124_s14 = sphi %s6424_s14, %s12201_s14   ;;  %s6120_s13 = sphi %s6422_s13, %s12200_s13   ;;  %s6116_s12 = sphi %s6420_s12, %s12199_s12  }
   0x7   : > { %p40_p0 = scmp.ne.s32.totalorder %s6120_s13, %s6116_s12  ;;  %p41_p1 = scmp.eq.s32.totalorder %s6441_s16, 0 }
   0x8   : > { %p106_p2 = scmp.eq.s32.totalorder %s6441_s16, 1  ;;  %p112_p3 = scmp.eq.s32.totalorder %s4881_s17, 1 }
   0x9   : > { %p6450_p4 = por %p41_p1, %p40_p0  ;;  %p4882_p5 = scmp.ge.s32.totalorder %s6128_s15, 1 }
   0xa   : > { %p6455_p6 = por %p112_p3, %p40_p0  ;;  %p119_p7 = scmp.lt.s32.totalorder %s6128_s15, 3 }
   0xb   : > { %s130_s22 = sshll.u32 %s10276_s1, 4  ;;  %s6390_s24 = smov [#allocation5]   ;;  %s131_s22 = int_to_ptr.hbm [resolvable:$true] %s130_s22 }
   0xc   : > { %p6463_p8 = pnand %p4882_p5, %p119_p7  ;;  %s132_s25 = sshll.u32 %s6390_s24, 4  ;;  %s133_s25 = int_to_ptr.vmem [resolvable:$true] %s132_s25 }
   0xd   : > { %s144_s28 = sshll.u32 %s10277_s2, 4  ;;  %s6391_s29 = smov 512   ;;  %s145_s28 = int_to_ptr.hbm [resolvable:$true] %s144_s28 }
   0xe   : > { %p4909_p9 = pneg %p6463_p8  ;;  %s6392_s30 = smov 32  }
   0xf   : > { %s6393_s4 = smov [#allocation7]   ;;  %s6476_s6 = sadd.s32 1, %s6128_s15  }
  0x10   : > { %p4910_p10 = pnand %p4909_p9, %p41_p1  ;;  %s146_s5 = sshll.u32 %s6393_s4, 4  ;;  %s147_s5 = int_to_ptr.vmem [resolvable:$true] %s146_s5 }
  0x11   : > { %s27_s7 = sadd.s32 1, %s6124_s14  ;;  %s24_s8 = ssub.s32 %s6128_s15, %s6476_s6 }
  0x12   : > { %4912 = dma.hbm_to_vmem [thread:$0]  (!%p4910_p10), %s131_s22, 32768, %s133_s25, [#allocation6], %s6391_s29, %s6391_s29, %s6392_s30  }
  0x13   : > { %4915 = dma.hbm_to_vmem [thread:$0]  (!%p4910_p10), %s145_s28, 32768, %s147_s5, [#allocation6], %s6391_s29, %s6391_s29, %s6392_s30  }
  0x14   : > { %p34_p12 = scmp.ne.s32.totalorder %s6124_s14, %s6120_s13  ;;  %p25_p13 = scmp.eq.s32.totalorder %s24_s8, 0 }
  0x15   : > { %p35_p0 = scmp.eq.s32.totalorder %s6128_s15, 0  ;;  %p4926_p5 = scmp.lt.s32.totalorder %s6128_s15, 2 }
  0x16   : > { %p6486_p3 = por %p106_p2, %p34_p12  ;;  %s160_s11 = sand.u32 1, %s6124_s14  }
  0x17   : > { %s6492_s10 = scalar_select %p25_p13, %s6124_s14, %s27_s7  }
  0x18   : > { %p36_p7 = por %p35_p0, %p34_p12  ;;  %s4886_s17 = sshll.u32 %s160_s11, 7 }
  0x19   : > { %s4887_s20 = sshll.u32 %s6128_s15, 3  ;;  %s164_s25 = scalar_lea.vmem [#allocation2], %s4886_s17 }
  0x1a   : > { %s168_s24 = scalar_lea.hbm %s10275_s0, %s4887_s20  ;;  %s171_s26 = sshll.u32 %s164_s25, 4  ;;  %s172_s26 = int_to_ptr.vmem [resolvable:$true] %s171_s26 }
  0x1b   : > { %s169_s27 = sshll.u32 %s168_s24, 4  ;;  %p6499_p2 = pnand %p4926_p5, %p36_p7  ;;  %s170_s27 = int_to_ptr.hbm [resolvable:$true] %s169_s27 }
  0x1c   : > { %s161_s29 = scalar_lea.sflag [#allocation3], %s160_s11  ;;  %s5768_s30 = sshra.s32 %s170_s27, 4  ;;  %s5769_s30 = int_to_ptr.hbm [resolvable:$true] %s5768_s30 }
  0x1d   : > { %s5770_s4 = scalar_lea.hbm %s5769_s30, 128  ;;  %p5772_p10 = pneg %p6499_p2 }
  0x1e   : > { %p5771_p9 = scmp.ne.s32.totalorder %s5769_s30, %s5770_s4  ;;  %s5775_s8 = scalar_lea.hbm %s10275_s0, 256 }
  0x1f   : > { %p5776_p0 = scmp.lt.s32.totalorder %s5769_s30, %s10275_s0  ;;  %p5777_p5 = scmp.lt.s32.totalorder %s5775_s8, %s5770_s4 }
  0x20   : > { %p5773_p12 = pnand %p5772_p10, %p5771_p9 }
  0x21   : > { %p5778_p7 = por %p5777_p5, %p5776_p0 }
  0x22   : > { %p5774_p13 = pneg %p5773_p12 }
  0x24   : > { %p5779_p11 = pnand %p5778_p7, %p5774_p13 }
  0x26   : > { %5782 = shalt.err (!%p5779_p11)
}
  0x27   : > { %s6394_s11 = smov 256   ;;  %s6395_s21 = smov 128  }
  0x28   : > { %s6396_s22 = smov 8   ;;  %183 = sbr.rel (%p6463_p8) target bundleno = 2711 (0xa97), region = 32 }
  0x29   : > { %4919 = dma.hbm_to_vmem [thread:$0]  (!%p6499_p2), %s170_s27, 2048, %s172_s26, %s161_s29, %s6394_s11, %s6395_s21, %s6396_s22  }
  0x2d   : > { %s6516_s24 = sand.u32 1, %s6120_s13  }
  0x2e   : > { %s4889_s25 = sshll.u32 %s6516_s24, 7  ;;  %s186_s30 = scalar_lea.sflag [#allocation3], %s6516_s24 }
  0x2f   : > { %s189_s4 = scalar_lea.vmem [#allocation2], %s4889_s25 }
  0x30   : > { %6103 = dma.done.wait (%p6450_p4), %s186_s30, 2048  }
  0x31   : > { %6105 = vsyncadd (%p6450_p4), %s186_s30, 4294965248 }
  0x32   : > { %6107 = dma.done.wait (%p41_p1), [#allocation6], 65536  }
  0x33   : > { %6109 = vsyncadd (%p41_p1), [#allocation6], 4294901760  ;;  %s4892_s23 = sshll.u32 %s6516_s24, 6  ;;  %v6529_v0 = vld [vmem:[%s189_s4] sm:$0xff]  ;;  %v6531_v1 = vld [vmem:[%s189_s4 + $0x8] sm:$0xff]  ;;  %s7980_s26 = smov 0  }
  0x34   : > { %v6533_v2 = vld [vmem:[%s189_s4 + $0x10] sm:$0xff]  ;;  %v6535_v3 = vld [vmem:[%s189_s4 + $0x18] sm:$0xff]  ;;  %v6537_v4 = vld [vmem:[%s189_s4 + $0x20] sm:$0xff]  ;;  %v239_v6 = vadd.f32 %v6531_v1, %v6529_v0  ;;  %s7850_s18 = scalar_lea.vmem [#allocation8], %s4892_s23 }
  0x35   : > { %v6539_v5 = vld [vmem:[%s189_s4 + $0x28] sm:$0xff]  ;;  %v6543_v7 = vld [vmem:[%s189_s4 + $0x30] sm:$0xff]  ;;  %v6545_v8 = vld [vmem:[%s189_s4 + $0x38] sm:$0xff]  ;;  %v246_v10 = vadd.f32 %v6535_v3, %v6533_v2 }
  0x36   : > { %v6547_v9 = vld [vmem:[%s189_s4 + $0x40] sm:$0xff]  ;;  %v253_v11 = vadd.f32 %v6539_v5, %v6537_v4  ;;  %v6553_v12 = vld [vmem:[%s189_s4 + $0x48] sm:$0xff]  ;;  %v6555_v13 = vld [vmem:[%s189_s4 + $0x50] sm:$0xff]  ;;  %v240_v15 = vrot.slane %v239_v6, 4  ;;  %v260_v16 = vadd.f32 %v6545_v8, %v6543_v7 }
  0x37   : > { %v6557_v14 = vld [vmem:[%s189_s4 + $0x58] sm:$0xff]  ;;  %v6561_v17 = vld [vmem:[%s189_s4 + $0x60] sm:$0xff]  ;;  %v6563_v18 = vld [vmem:[%s189_s4 + $0x68] sm:$0xff]  ;;  %v247_v20 = vrot.slane %v246_v10, 4  ;;  %v267_v22 = vadd.f32 %v6553_v12, %v6547_v9 }
  0x38   : > { %v6565_v19 = vld [vmem:[%s189_s4 + $0x70] sm:$0xff]  ;;  %v254_v21 = vrot.slane %v253_v11, 4  ;;  %v274_v23 = vadd.f32 %v6557_v14, %v6555_v13  ;;  %v6571_v24 = vld [vmem:[%s189_s4 + $0x78] sm:$0xff]  ;;  %v241_v25 = vadd.f32 %v240_v15, %v239_v6  ;;  %v261_v26 = vrot.slane %v260_v16, 4 }
  0x39   : > { %v281_v27 = vadd.f32 %v6563_v18, %v6561_v17  ;;  %v248_v28 = vadd.f32 %v247_v20, %v246_v10  ;;  %v268_v30 = vrot.slane %v267_v22, 4  ;;  %v288_v35 = vadd.f32 %v6571_v24, %v6565_v19 }
  0x3a   : > { %v255_v29 = vadd.f32 %v254_v21, %v253_v11  ;;  %v275_v31 = vrot.slane %v274_v23, 4  ;;  %v242_v32 = vrot.slane %v241_v25, 2  ;;  %v262_v33 = vadd.f32 %v261_v26, %v260_v16 }
  0x3b   : > { %v282_v34 = vrot.slane %v281_v27, 4  ;;  %v249_v36 = vrot.slane %v248_v28, 2  ;;  %v269_v38 = vadd.f32 %v268_v30, %v267_v22  ;;  %v289_v43 = vrot.slane %v288_v35, 4 }
  0x3c   : > { %v256_v37 = vrot.slane %v255_v29, 2  ;;  %v276_v39 = vadd.f32 %v275_v31, %v274_v23  ;;  %v243_v40 = vadd.f32 %v242_v32, %v241_v25  ;;  %v263_v41 = vrot.slane %v262_v33, 2 }
  0x3d   : > { %v283_v42 = vadd.f32 %v282_v34, %v281_v27  ;;  %v250_v44 = vadd.f32 %v249_v36, %v248_v28  ;;  %v270_v46 = vrot.slane %v269_v38, 2  ;;  %v290_v51 = vadd.f32 %v289_v43, %v288_v35 }
  0x3e   : > { %v257_v45 = vadd.f32 %v256_v37, %v255_v29  ;;  %v277_v47 = vrot.slane %v276_v39, 2  ;;  %v244_v48 = vrot.slane %v243_v40, 1  ;;  %v264_v49 = vadd.f32 %v263_v41, %v262_v33 }
  0x3f   : > { %v284_v50 = vrot.slane %v283_v42, 2  ;;  %v251_v52 = vrot.slane %v250_v44, 1  ;;  %v271_v54 = vadd.f32 %v270_v46, %v269_v38  ;;  %v291_v59 = vrot.slane %v290_v51, 2 }
  0x40   : > { %v258_v53 = vrot.slane %v257_v45, 1  ;;  %v278_v55 = vadd.f32 %v277_v47, %v276_v39  ;;  %v245_v56 = vadd.f32 %v244_v48, %v243_v40  ;;  %v265_v57 = vrot.slane %v264_v49, 1  ;;  %v6615_v48 = vld [vmem:[#allocation5] sm:$0xff] }
  0x41   : > { %v285_v58 = vadd.f32 %v284_v50, %v283_v42  ;;  %v252_v60 = vadd.f32 %v251_v52, %v250_v44  ;;  %v272_v62 = vrot.slane %v271_v54, 1  ;;  %v292_v11 = vadd.f32 %v291_v59, %v290_v51  ;;  %10453 = vst [vmem:[#allocation12_spill] sm:$0xff] %v6615_v48 }
  0x42   : > { %v259_v61 = vadd.f32 %v258_v53, %v257_v45  ;;  %v279_v63 = vrot.slane %v278_v55, 1  ;;  %v266_v6 = vadd.f32 %v265_v57, %v264_v49  ;;  %v295_v15 = vadd.f32 1e-20, %v245_v56  ;;  %v6617_v49 = vld [vmem:[#allocation5 + $0x8] sm:$0xff]  ;;  %v6631_v56 = vld [vmem:[#allocation5 + $0x20] sm:$0xff] }
  0x43   : > { %v286_v10 = vrot.slane %v285_v58, 1  ;;  %v273_v16 = vadd.f32 %v272_v62, %v271_v54  ;;  %v296_v21 = vadd.f32 1e-20, %v252_v60  ;;  %v293_v23 = vrot.slane %v292_v11, 1  ;;  %10454 = vst [vmem:[#allocation13_spill] sm:$0xff] %v6617_v49  ;;  %v6627_v54 = vld [vmem:[#allocation5 + $0x10] sm:$0xff] }
  0x44   : > { %v280_v20 = vadd.f32 %v279_v63, %v278_v55  ;;  %v297_v25 = vadd.f32 1e-20, %v259_v61  ;;  %5492 = vrcp.f32 %v295_v15  ;;  %v312_v26 = vand.u32 2147483647, %v295_v15  ;;  %10457 = vst [vmem:[#allocation14_spill] sm:$0xff] %v6627_v54  ;;  %v6629_v55 = vld [vmem:[#allocation5 + $0x18] sm:$0xff] }
  0x45   : > { %v287_v22 = vadd.f32 %v286_v10, %v285_v58  ;;  %v294_v27 = vadd.f32 %v293_v23, %v292_v11  ;;  %v6577_v28 = vadd.f32 1e-20, %v266_v6  ;;  %v314_v29 = vand.u32 2147483648, %v295_v15  ;;  %10458 = vst [vmem:[#allocation15_spill] sm:$0xff] %v6629_v55  ;;  %v6645_v62 = vld [vmem:[#allocation5 + $0x28] sm:$0xff]  ;;  %v6647_v63 = vld [vmem:[#allocation5 + $0x30] sm:$0xff] }
  0x46   : > { %5494 = vrcp.f32 %v296_v21  ;;  %v6579_v30 = vadd.f32 1e-20, %v273_v16  ;;  %v6581_v31 = vadd.f32 1e-20, %v280_v20  ;;  %v328_v32 = vand.u32 2147483647, %v296_v21 }
  0x47   : > { %v6583_v33 = vadd.f32 1e-20, %v287_v22  ;;  %vm308_vm0 = vweird.f32 %v295_v15  ;;  %v330_v34 = vand.u32 2147483648, %v296_v21  ;;  %5496 = vrcp.f32 %v297_v25  ;;  %10459 = vst [vmem:[#allocation16_spill] sm:$0xff] %v6631_v56  ;;  %v6654_v16 = vld [vmem:[#allocation5 + $0x40] sm:$0xff]  ;;  %v6656_v20 = vld [vmem:[#allocation5 + $0x48] sm:$0xff] }
  0x48   : > { %vm6585_vm1 = vcmp.eq.f32.partialorder %v312_v26, 8.507059e+37  ;;  %vm324_vm2 = vweird.f32 %v296_v21  ;;  %v344_v36 = vand.u32 2147483647, %v297_v25  ;;  %v346_v37 = vand.u32 2147483648, %v297_v25  ;;  %10462 = vst [vmem:[#allocation17_spill] sm:$0xff] %v6645_v62  ;;  %v6856_v23 = vld [vmem:[#allocation5 + $0x148] sm:$0xff] }
  0x49   : > { %v6591_v39 = vadd.f32 1e-20, %v294_v27  ;;  %v6593_v40 = vor.u32 1.1754944e-38, %v314_v29  ;;  %5498 = vrcp.f32 %v6577_v28  ;;  %v362_v41 = vand.u32 2147483648, %v6577_v28  ;;  %10463 = vst [vmem:[#allocation18_spill] sm:$0xff] %v6647_v63  ;;  %v6673_v29 = vld [vmem:[#allocation5 + $0x50] sm:$0xff] }
  0x4a   : > { %v6589_v38 = vpop.eup %5492  ;;  %vm6599_vm4 = vcmp.eq.f32.partialorder %v328_v32, 8.507059e+37  ;;  %vm340_vm5 = vweird.f32 %v297_v25  ;;  %v6610_v46 = vor.u32 1.1754944e-38, %v330_v34  ;;  %vm356_vm7 = vweird.f32 %v6577_v28  ;;  %10465 = vst [vmem:[#allocation20_spill] sm:$0xff] %v6654_v16  ;;  %v6675_v32 = vld [vmem:[#allocation5 + $0x58] sm:$0xff] }
  0x4b   : > { %v304_v42 = vmul.f32 %v6589_v38, %v295_v15  ;;  %vm309_vm3 = vweird.f32 %v6589_v38  ;;  %v360_v47 = vand.u32 2147483647, %v6577_v28  ;;  %5500 = vrcp.f32 %v6579_v30  ;;  %v6652_v15 = vld [vmem:[#allocation5 + $0x38] sm:$0xff]  ;;  %10466 = vst [vmem:[#allocation21_spill] sm:$0xff] %v6656_v20 }
  0x4c   : > { %v6603_v44 = vpop.eup %5494  ;;  %vm6606_vm6 = vmor %vm308_vm0, %vm309_vm3  ;;  %vm6621_vm9 = vcmp.eq.f32.partialorder %v344_v36, 8.507059e+37  ;;  %v6625_v53 = vor.u32 1.1754944e-38, %v346_v37  ;;  %v6640_v59 = vor.u32 1.1754944e-38, %v362_v41  ;;  %v376_v60 = vand.u32 2147483647, %v6579_v30  ;;  %10464 = vst [vmem:[#allocation19_spill] sm:$0xff] %v6652_v15 }
  0x4d   : > { %v305_v50 = vsub.f32 1.0, %v304_v42  ;;  %v320_v51 = vmul.f32 %v6603_v44, %v296_v21  ;;  %vm325_vm8 = vweird.f32 %v6603_v44  ;;  %v6633_v57 = vpop.eup %5496  ;;  %v378_v61 = vand.u32 2147483648, %v6579_v30  ;;  %10471 = vst [vmem:[#allocation22_spill] sm:$0xff] %v6673_v29  ;;  %v6681_v41 = vld [vmem:[#allocation5 + $0x60] sm:$0xff]  ;;  %v6683_v42 = vld [vmem:[#allocation5 + $0x68] sm:$0xff] }
  0x4e   : > { %vm6636_vm10 = vmor %vm324_vm2, %vm325_vm8  ;;  %5502 = vrcp.f32 %v6581_v31  ;;  %v336_v11 = vmul.f32 %v6633_v57, %v297_v25  ;;  %vm341_vm11 = vweird.f32 %v6633_v57  ;;  %vm6665_vm13 = vcmp.eq.f32.partialorder %v360_v47, 8.507059e+37  ;;  %10472 = vst [vmem:[#allocation23_spill] sm:$0xff] %v6675_v32  ;;  %v6685_v47 = vld [vmem:[#allocation5 + $0x70] sm:$0xff] }
  0x4f   : > { %v306_v6 = vmul.f32 %v6589_v38, %v305_v50  ;;  %v321_v10 = vsub.f32 1.0, %v320_v51  ;;  %v6658_v21 = vpop.eup %5498  ;;  %vm6661_vm12 = vmor %vm340_vm5, %vm341_vm11  ;;  %vm372_vm14 = vweird.f32 %v6579_v30  ;;  %vm388_vm15 = vweird.f32 %v6581_v31  ;;  %10473 = vst [vmem:[#allocation24_spill] sm:$0xff] %v6681_v41  ;;  %v6701_v41 = vld [vmem:[#allocation5 + $0x80] sm:$0xff] }
  0x50   : > { %v392_v26 = vand.u32 2147483647, %v6581_v31  ;;  %v394_v27 = vand.u32 2147483648, %v6581_v31  ;;  %v337_v36 = vsub.f32 1.0, %v336_v11  ;;  %v352_v37 = vmul.f32 %v6658_v21, %v6577_v28  ;;  %10474 = vst [vmem:[#allocation25_spill] sm:$0xff] %v6683_v42  ;;  %v6699_v11 = vld [vmem:[#allocation5 + $0x78] sm:$0xff] }
  0x51   : > { %v307_v25 = vadd.f32 %v6589_v38, %v306_v6  ;;  %v322_v34 = vmul.f32 %v6603_v44, %v321_v10  ;;  %10475 = vst [vmem:[#allocation26_spill] sm:$0xff] %v6685_v47  ;;  %v6687_v50 = vpop.eup %5500  ;;  %vm357_vm0 = vweird.f32 %v6658_v21  ;;  %vm6690_vm2 = vcmp.eq.f32.partialorder %v376_v60, 8.507059e+37  ;;  %v6703_v42 = vld [vmem:[#allocation5 + $0x88] sm:$0xff]  ;;  %v6908_v28 = vld [vmem:[#allocation5 + $0x1b8] sm:$0xff] }
  0x52   : > { %v6694_v6 = vor.u32 1.1754944e-38, %v378_v61  ;;  %v6696_v10 = vor.u32 1.1754944e-38, %v394_v27  ;;  %5504 = vrcp.f32 %v6583_v33  ;;  %10478 = vst [vmem:[#allocation27_spill] sm:$0xff] %v6699_v11  ;;  %v338_v20 = vmul.f32 %v6633_v57, %v337_v36  ;;  %vm6712_vm3 = vmor %vm356_vm7, %vm357_vm0  ;;  %v6716_v11 = vld [vmem:[#allocation5 + $0x90] sm:$0xff] }
  0x53   : > { %10479 = vst [vmem:[#allocation28_spill] sm:$0xff] %v6701_v41  ;;  %v311_v47 = vsel %vm6606_vm6, %v6589_v38, %v307_v25  ;;  %v323_v60 = vadd.f32 %v6603_v44, %v322_v34  ;;  %v353_v61 = vsub.f32 1.0, %v352_v37  ;;  %v6718_v41 = vld [vmem:[#allocation5 + $0x98] sm:$0xff]  ;;  %v368_v45 = vmul.f32 %v6687_v50, %v6579_v30  ;;  %v6733_v25 = vld [vmem:[#allocation5 + $0xa0] sm:$0xff]  ;;  %v6735_v34 = vld [vmem:[#allocation5 + $0xa8] sm:$0xff] }
  0x54   : > { %10480 = vst [vmem:[#allocation29_spill] sm:$0xff] %v6703_v42  ;;  %v6720_v42 = vpop.eup %5502  ;;  %v316_v38 = vsel %vm6585_vm1, %v6593_v40, %v311_v47  ;;  %vm373_vm5 = vweird.f32 %v6687_v50  ;;  %vm6728_vm6 = vcmp.eq.f32.partialorder %v392_v26, 8.507059e+37  ;;  %vm404_vm7 = vweird.f32 %v6583_v33  ;;  %v6737_v36 = vld [vmem:[#allocation5 + $0xb0] sm:$0xff] }
  0x55   : > { %10483 = vst [vmem:[#allocation30_spill] sm:$0xff] %v6716_v11  ;;  %v6740_v35 = vmul.f32 %v316_v38, %v6529_v0  ;;  %v6743_v40 = vmul.f32 %v316_v38, %v6531_v1  ;;  %v327_v26 = vsel %vm6636_vm10, %v6603_v44, %v323_v60  ;;  %v339_v37 = vadd.f32 %v6633_v57, %v338_v20  ;;  %vm6751_vm1 = vmor %vm372_vm14, %vm373_vm5  ;;  %v6765_v20 = vld [vmem:[#allocation5 + $0xc8] sm:$0xff]  ;;  %v6767_v30 = vld [vmem:[#allocation5 + $0xd0] sm:$0xff] }
  0x56   : > { %10484 = vst [vmem:[#allocation31_spill] sm:$0xff] %v6718_v41  ;;  %v332_v0 = vsel %vm6599_vm4, %v6610_v46, %v327_v26  ;;  %v354_v1 = vmul.f32 %v6658_v21, %v353_v61  ;;  %v369_v58 = vsub.f32 1.0, %v368_v45  ;;  %v384_v44 = vmul.f32 %v6720_v42, %v6581_v31  ;;  %v6769_v60 = vld [vmem:[#allocation5 + $0xd8] sm:$0xff]  ;;  %v6781_v46 = vld [vmem:[#allocation5 + $0xe0] sm:$0xff]  ;;  %v6783_v61 = vld [vmem:[#allocation5 + $0xe8] sm:$0xff] }
  0x57   : > { %10487 = vst [vmem:[#allocation32_spill] sm:$0xff] %v6733_v25  ;;  %v6757_v25 = vld [vmem:[#allocation5 + $0xc0] sm:$0xff]  ;;  %v6772_v38 = vmul.f32 %v332_v0, %v6533_v2  ;;  %v343_v43 = vsel %vm6661_vm12, %v6633_v57, %v339_v37  ;;  %vm389_vm4 = vweird.f32 %v6720_v42  ;;  %v6785_v45 = vld [vmem:[#allocation5 + $0xf0] sm:$0xff]  ;;  %v6800_v37 = vld [vmem:[#allocation5 + $0xf8] sm:$0xff]  ;;  %5506 = vrcp.f32 %v6591_v39 }
  0x58   : > { %10488 = vst [vmem:[#allocation33_spill] sm:$0xff] %v6735_v34  ;;  %v6755_v34 = vld [vmem:[#allocation5 + $0xb8] sm:$0xff]  ;;  %v6787_v26 = vpop.eup %5504  ;;  %v348_v2 = vsel %vm6621_vm9, %v6625_v53, %v343_v43  ;;  %v385_v22 = vsub.f32 1.0, %v384_v44  ;;  %vm6796_vm8 = vmor %vm388_vm15, %vm389_vm4  ;;  %v6813_v31 = vld [vmem:[#allocation5 + $0x108] sm:$0xff]  ;;  %vm420_vm12 = vweird.f32 %v6591_v39  ;;  %v7954_v41 = vmov 0.0625  }
  0x59   : > { %10489 = vst [vmem:[#allocation34_spill] sm:$0xff] %v6737_v36  ;;  %v6808_v52 = vmul.f32 %v348_v2, %v6539_v5  ;;  %v400_v53 = vmul.f32 %v6787_v26, %v6583_v33  ;;  %vm405_vm9 = vweird.f32 %v6787_v26  ;;  %v6870_v47 = vld [vmem:[#allocation5 + $0x170] sm:$0xff]  ;;  %v6895_v57 = vld [vmem:[#allocation5 + $0x1a0] sm:$0xff]  ;;  %v7002_v43 = vld [vmem:[#allocation5 + $0x2c8] sm:$0xff]  ;;  %v7952_v36 = vmov 0.0625  }
  0x5a   : > { %10490 = vst [vmem:[#allocation35_spill] sm:$0xff] %v6740_v35  ;;  %v6775_v35 = vmul.f32 %v332_v0, %v6535_v3  ;;  %v355_v3 = vadd.f32 %v6658_v21, %v354_v1  ;;  %v370_v0 = vmul.f32 %v6687_v50, %v369_v58  ;;  %v6815_v1 = vld [vmem:[#allocation5 + $0x110] sm:$0xff]  ;;  %v6817_v58 = vld [vmem:[#allocation5 + $0x118] sm:$0xff]  ;;  %v386_v5 = vmul.f32 %v6720_v42, %v385_v22  ;;  %vm6826_vm10 = vmor %vm404_vm7, %vm405_vm9 }
  0x5b   : > { %10491 = vst [vmem:[#allocation36_spill] sm:$0xff] %v6743_v40  ;;  %v6802_v40 = vld [vmem:[#allocation5 + $0x100] sm:$0xff]  ;;  %v401_v27 = vsub.f32 1.0, %v400_v53  ;;  %v6842_v22 = vld [vmem:[#allocation5 + $0x138] sm:$0xff]  ;;  %v6858_v53 = vld [vmem:[#allocation5 + $0x150] sm:$0xff]  ;;  %v7956_v11 = vmov 0.0625  }
  0x5c   : > { %10494 = vst [vmem:[#allocation37_spill] sm:$0xff] %v6755_v34  ;;  %v359_v44 = vsel %vm6712_vm3, %v6658_v21, %v355_v3  ;;  %v410_v3 = vand.u32 2147483648, %v6583_v33  ;;  %v7950_v34 = vmov 0.0625   ;;  %v7958_v32 = vmov 0.0625  }
  0x5d   : > { %10495 = vst [vmem:[#allocation38_spill] sm:$0xff] %v6757_v25  ;;  %v364_v21 = vsel %vm6665_vm13, %v6640_v59, %v359_v44  ;;  %v6860_v44 = vld [vmem:[#allocation5 + $0x158] sm:$0xff]  ;;  %v7946_v25 = vmov 0.0625   ;;  %v7960_v16 = vmov 0.0625   ;;  %v7962_v29 = vmov 0.0625  }
  0x5e   : > { %10496 = vst [vmem:[#allocation39_spill] sm:$0xff] %v6765_v20  ;;  %v411_v51 = vor.u32 1.1754944e-38, %v410_v3  ;;  %v7942_v20 = vmov 0.0625   ;;  %v7964_v62 = vmov 0.0625   ;;  %v7966_v15 = vmov 0.0625  }
  0x5f   : > { %10497 = vst [vmem:[#allocation40_spill] sm:$0xff] %v6767_v30  ;;  %v7948_v30 = vmov 0.0625   ;;  %v7968_v56 = vmov 0.0625   ;;  %v7970_v63 = vmov 0.0625   ;;  %v7972_v49 = vmov 0.0625  }
  0x60   : > { %10498 = vst [vmem:[#allocation41_spill] sm:$0xff] %v6769_v60  ;;  %v7944_v60 = vmov 0.0625   ;;  %v7974_v55 = vmov 0.0625   ;;  %v7976_v48 = vmov 0.0625   ;;  %v7978_v54 = vmov 0.0625  }
  0x61   : > { %10499 = vst [vmem:[#allocation42_spill] sm:$0xff] %v6772_v38  ;;  %v6805_v38 = vmul.f32 %v348_v2, %v6537_v4  ;;  %v371_v4 = vadd.f32 %v6687_v50, %v370_v0  ;;  %v408_v2 = vand.u32 2147483647, %v6583_v33  ;;  %v6840_v0 = vld [vmem:[#allocation5 + $0x130] sm:$0xff]  ;;  %v387_v33 = vadd.f32 %v6720_v42, %v386_v5 }
  0x62   : > { %10500 = vst [vmem:[#allocation43_spill] sm:$0xff] %v6775_v35  ;;  %v6844_v35 = vld [vmem:[#allocation5 + $0x140] sm:$0xff] }
  0x63   : > { %10501 = vst [vmem:[#allocation44_spill] sm:$0xff] %v6781_v46  ;;  %v375_v59 = vsel %vm6751_vm1, %v6687_v50, %v371_v4  ;;  %v391_v5 = vsel %vm6796_vm8, %v6720_v42, %v387_v33  ;;  %vm409_vm11 = vcmp.eq.f32.partialorder %v408_v2, 8.507059e+37  ;;  %v6904_v33 = vld [vmem:[#allocation5 + $0x1a8] sm:$0xff]  ;;  %v7938_v46 = vmov 0.0625  }
  0x64   : > { %10502 = vst [vmem:[#allocation45_spill] sm:$0xff] %v6783_v61  ;;  %v7934_v61 = vmov 0.0625  }
  0x65   : > { %10503 = vst [vmem:[#allocation46_spill] sm:$0xff] %v6785_v45  ;;  %v7940_v45 = vmov 0.0625  }
  0x66   : > { %10506 = vst [vmem:[#allocation47_spill] sm:$0xff] %v6800_v37  ;;  %v7936_v37 = vmov 0.0625  }
  0x67   : > { %10507 = vst [vmem:[#allocation48_spill] sm:$0xff] %v6802_v40  ;;  %v7930_v40 = vmov 0.0625  }
  0x68   : > { %10508 = vst [vmem:[#allocation49_spill] sm:$0xff] %v6805_v38  ;;  %v6831_v38 = vld [vmem:[#allocation5 + $0x120] sm:$0xff] }
  0x69   : > { %10509 = vst [vmem:[#allocation50_spill] sm:$0xff] %v6808_v52  ;;  %v6833_v52 = vld [vmem:[#allocation5 + $0x128] sm:$0xff] }
  0x6a   : > { %10510 = vst [vmem:[#allocation51_spill] sm:$0xff] %v6813_v31  ;;  %v6847_v31 = vmul.f32 %v364_v21, %v6543_v7  ;;  %v380_v7 = vsel %vm6690_vm2, %v6694_v6, %v375_v59  ;;  %v6881_v6 = vld [vmem:[#allocation5 + $0x178] sm:$0xff]  ;;  %v6885_v59 = vld [vmem:[#allocation5 + $0x188] sm:$0xff] }
  0x6b   : > { %10511 = vst [vmem:[#allocation52_spill] sm:$0xff] %v6815_v1  ;;  %v6873_v50 = vmul.f32 %v380_v7, %v6547_v9  ;;  %v6876_v4 = vmul.f32 %v380_v7, %v6553_v12  ;;  %v6891_v12 = vld [vmem:[#allocation5 + $0x190] sm:$0xff]  ;;  %v6893_v7 = vld [vmem:[#allocation5 + $0x198] sm:$0xff]  ;;  %v7932_v1 = vmov 0.0625  }
  0x6c   : > { %10512 = vst [vmem:[#allocation53_spill] sm:$0xff] %v6817_v58  ;;  %v7928_v58 = vmov 0.0625  }
  0x6d   : > { %10515 = vst [vmem:[#allocation54_spill] sm:$0xff] %v6831_v38  ;;  %v7924_v38 = vmov 0.0625  }
  0x6e   : > { %10516 = vst [vmem:[#allocation55_spill] sm:$0xff] %v6833_v52  ;;  %v6850_v52 = vmul.f32 %v364_v21, %v6545_v8  ;;  %v6866_v8 = vld [vmem:[#allocation5 + $0x160] sm:$0xff]  ;;  %v6868_v21 = vld [vmem:[#allocation5 + $0x168] sm:$0xff] }
  0x6f   : > { %10517 = vst [vmem:[#allocation56_spill] sm:$0xff] %v6840_v0  ;;  %v7926_v0 = vmov 0.0625  }
  0x70   : > { %10518 = vst [vmem:[#allocation57_spill] sm:$0xff] %v6842_v22  ;;  %v7922_v22 = vmov 0.0625  }
  0x71   : > { %10519 = vst [vmem:[#allocation58_spill] sm:$0xff] %v6844_v35  ;;  %v7918_v35 = vmov 0.0625  }
  0x72   : > { %10520 = vst [vmem:[#allocation59_spill] sm:$0xff] %v6847_v31  ;;  %v402_v31 = vmul.f32 %v6787_v26, %v401_v27  ;;  %v6883_v27 = vld [vmem:[#allocation5 + $0x180] sm:$0xff] }
  0x73   : > { %10521 = vst [vmem:[#allocation60_spill] sm:$0xff] %v6850_v52  ;;  %v396_v52 = vsel %vm6728_vm6, %v6696_v10, %v391_v5  ;;  %v6906_v10 = vld [vmem:[#allocation5 + $0x1b0] sm:$0xff]  ;;  %v6913_v5 = vld [vmem:[#allocation5 + $0x1c0] sm:$0xff] }
  0x74   : > { %10522 = vst [vmem:[#allocation61_spill] sm:$0xff] %v6856_v23  ;;  %v403_v9 = vadd.f32 %v6787_v26, %v402_v31  ;;  %v6898_v42 = vmul.f32 %v396_v52, %v6555_v13  ;;  %v6901_v3 = vmul.f32 %v396_v52, %v6557_v14  ;;  %v5507_v31 = vpop.eup %5506  ;;  %v6915_v13 = vld [vmem:[#allocation5 + $0x1c8] sm:$0xff]  ;;  %v7914_v23 = vmov 0.0625  }
  0x75   : > { %10523 = vst [vmem:[#allocation62_spill] sm:$0xff] %v6858_v53  ;;  %v416_v52 = vmul.f32 %v5507_v31, %v6591_v39  ;;  %vm421_vm13 = vweird.f32 %v5507_v31  ;;  %v7920_v53 = vmov 0.0625  }
  0x76   : > { %10524 = vst [vmem:[#allocation63_spill] sm:$0xff] %v6860_v44  ;;  %v407_v2 = vsel %vm6826_vm10, %v6787_v26, %v403_v9  ;;  %vm6934_vm14 = vmor %vm420_vm12, %vm421_vm13  ;;  %v6939_v9 = vld [vmem:[#allocation5 + $0x1f0] sm:$0xff]  ;;  %v7916_v44 = vmov 0.0625  }
  0x77   : > { %10525 = vst [vmem:[#allocation64_spill] sm:$0xff] %v6866_v8  ;;  %v412_v14 = vsel %vm409_vm11, %v411_v51, %v407_v2  ;;  %v426_v51 = vand.u32 2147483648, %v6591_v39  ;;  %v6941_v2 = vld [vmem:[#allocation5 + $0x1f8] sm:$0xff]  ;;  %v7910_v8 = vmov 0.0625  }
  0x78   : > { %10526 = vst [vmem:[#allocation65_spill] sm:$0xff] %v6868_v21  ;;  %v6930_v26 = vmul.f32 %v412_v14, %v6563_v18  ;;  %v6948_v18 = vld [vmem:[#allocation5 + $0x210] sm:$0xff]  ;;  %v7906_v21 = vmov 0.0625  }
  0x79   : > { %10527 = vst [vmem:[#allocation66_spill] sm:$0xff] %v6870_v47  ;;  %v7912_v47 = vmov 0.0625  }
  0x7a   : > { %10528 = vst [vmem:[#allocation67_spill] sm:$0xff] %v6873_v50  ;;  %v6917_v50 = vld [vmem:[#allocation5 + $0x1d0] sm:$0xff] }
  0x7b   : > { %10529 = vst [vmem:[#allocation68_spill] sm:$0xff] %v6876_v4  ;;  %v6920_v4 = vld [vmem:[#allocation5 + $0x1d8] sm:$0xff] }
  0x7c   : > { %10530 = vst [vmem:[#allocation69_spill] sm:$0xff] %v6881_v6  ;;  %v7908_v6 = vmov 0.0625  }
  0x7d   : > { %10531 = vst [vmem:[#allocation70_spill] sm:$0xff] %v6883_v27  ;;  %v7902_v27 = vmov 0.0625  }
  0x7e   : > { %10532 = vst [vmem:[#allocation71_spill] sm:$0xff] %v6885_v59  ;;  %v7898_v59 = vmov 0.0625  }
  0x7f   : > { %10533 = vst [vmem:[#allocation72_spill] sm:$0xff] %v6891_v12  ;;  %v7904_v12 = vmov 0.0625  }
  0x80   : > { %10534 = vst [vmem:[#allocation73_spill] sm:$0xff] %v6893_v7  ;;  %v7900_v7 = vmov 0.0625  }
  0x81   : > { %10535 = vst [vmem:[#allocation74_spill] sm:$0xff] %v6895_v57  ;;  %v7894_v57 = vmov 0.0625  }
  0x82   : > { %10536 = vst [vmem:[#allocation75_spill] sm:$0xff] %v6898_v42  ;;  %v6922_v42 = vld [vmem:[#allocation5 + $0x1e0] sm:$0xff] }
  0x83   : > { %10537 = vst [vmem:[#allocation76_spill] sm:$0xff] %v6901_v3  ;;  %v6924_v3 = vld [vmem:[#allocation5 + $0x1e8] sm:$0xff] }
  0x84   : > { %10538 = vst [vmem:[#allocation77_spill] sm:$0xff] %v6904_v33  ;;  %v6927_v33 = vmul.f32 %v412_v14, %v6561_v17  ;;  %v6944_v17 = vld [vmem:[#allocation5 + $0x200] sm:$0xff]  ;;  %v6950_v14 = vld [vmem:[#allocation5 + $0x218] sm:$0xff] }
  0x85   : > { %10539 = vst [vmem:[#allocation78_spill] sm:$0xff] %v6906_v10  ;;  %v7896_v10 = vmov 0.0625  }
  0x86   : > { %10540 = vst [vmem:[#allocation79_spill] sm:$0xff] %v6908_v28  ;;  %v7892_v28 = vmov 0.0625  }
  0x87   : > { %10541 = vst [vmem:[#allocation80_spill] sm:$0xff] %v6913_v5  ;;  %v6956_v5 = vld [vmem:[#allocation5 + $0x230] sm:$0xff] }
  0x88   : > { %10542 = vst [vmem:[#allocation81_spill] sm:$0xff] %v6915_v13  ;;  %v6954_v13 = vld [vmem:[#allocation5 + $0x228] sm:$0xff] }
  0x89   : > { %10543 = vst [vmem:[#allocation82_spill] sm:$0xff] %v6917_v50  ;;  %v7890_v50 = vmov 0.0625  }
  0x8a   : > { %10544 = vst [vmem:[#allocation83_spill] sm:$0xff] %v6920_v4 }
  0x8b   : > { %10545 = vst [vmem:[#allocation84_spill] sm:$0xff] %v6922_v42  ;;  %v417_v42 = vsub.f32 1.0, %v416_v52  ;;  %v6960_v52 = vld [vmem:[#allocation5 + $0x240] sm:$0xff] }
  0x8c   : > { %10546 = vst [vmem:[#allocation85_spill] sm:$0xff] %v6924_v3  ;;  %v424_v3 = vand.u32 2147483647, %v6591_v39  ;;  %v427_v39 = vor.u32 1.1754944e-38, %v426_v51 }
  0x8d   : > { %10547 = vst [vmem:[#allocation86_spill] sm:$0xff] %v6927_v33  ;;  %v6946_v33 = vld [vmem:[#allocation5 + $0x208] sm:$0xff]  ;;  %v418_v4 = vmul.f32 %v5507_v31, %v417_v42  ;;  %v6972_v42 = vld [vmem:[#allocation5 + $0x270] sm:$0xff] }
  0x8e   : > { %10548 = vst [vmem:[#allocation87_spill] sm:$0xff] %v6930_v26  ;;  %v6952_v26 = vld [vmem:[#allocation5 + $0x220] sm:$0xff]  ;;  %vm425_vm15 = vcmp.eq.f32.partialorder %v424_v3, 8.507059e+37 }
  0x8f   : > { %10551 = vst [vmem:[#allocation88_spill] sm:$0xff] %v6939_v9  ;;  %v6958_v9 = vld [vmem:[#allocation5 + $0x238] sm:$0xff] }
  0x90   : > { %10552 = vst [vmem:[#allocation89_spill] sm:$0xff] %v6941_v2  ;;  %v6962_v2 = vld [vmem:[#allocation5 + $0x248] sm:$0xff] }
  0x91   : > { %10553 = vst [vmem:[#allocation90_spill] sm:$0xff] %v6944_v17  ;;  %v6964_v17 = vld [vmem:[#allocation5 + $0x250] sm:$0xff] }
  0x92   : > { %10554 = vst [vmem:[#allocation91_spill] sm:$0xff] %v6946_v33  ;;  %v6966_v33 = vld [vmem:[#allocation5 + $0x258] sm:$0xff] }
  0x93   : > { %10555 = vst [vmem:[#allocation92_spill] sm:$0xff] %v6948_v18  ;;  %v419_v18 = vadd.f32 %v5507_v31, %v418_v4  ;;  %v6986_v4 = vld [vmem:[#allocation5 + $0x2a0] sm:$0xff] }
  0x94   : > { %10556 = vst [vmem:[#allocation93_spill] sm:$0xff] %v6950_v14  ;;  %v6968_v14 = vld [vmem:[#allocation5 + $0x260] sm:$0xff] }
  0x95   : > { %10557 = vst [vmem:[#allocation94_spill] sm:$0xff] %v6952_v26  ;;  %v6970_v26 = vld [vmem:[#allocation5 + $0x268] sm:$0xff]  ;;  %v423_v51 = vsel %vm6934_vm14, %v5507_v31, %v419_v18  ;;  %v7000_v31 = vld [vmem:[#allocation5 + $0x2c0] sm:$0xff]  ;;  %v7004_v18 = vld [vmem:[#allocation5 + $0x2d0] sm:$0xff] }
  0x96   : > { %10558 = vst [vmem:[#allocation95_spill] sm:$0xff] %v6954_v13  ;;  %v6974_v13 = vld [vmem:[#allocation5 + $0x278] sm:$0xff]  ;;  %v428_v3 = vsel %vm425_vm15, %v427_v39, %v423_v51  ;;  %v7008_v39 = vld [vmem:[#allocation5 + $0x2e0] sm:$0xff]  ;;  %v7010_v51 = vld [vmem:[#allocation5 + $0x2e8] sm:$0xff] }
  0x97   : > { %10559 = vst [vmem:[#allocation96_spill] sm:$0xff] %v6956_v5  ;;  %v7888_v5 = vmov 0.0625  }
  0x98   : > { %10560 = vst [vmem:[#allocation97_spill] sm:$0xff] %v6958_v9  ;;  %v6976_v9 = vld [vmem:[#allocation5 + $0x280] sm:$0xff] }
  0x99   : > { %10561 = vst [vmem:[#allocation98_spill] sm:$0xff] %v6960_v52  ;;  %v6978_v52 = vld [vmem:[#allocation5 + $0x288] sm:$0xff] }
  0x9a   : > { %10562 = vst [vmem:[#allocation99_spill] sm:$0xff] %v6962_v2  ;;  %v6982_v2 = vld [vmem:[#allocation5 + $0x290] sm:$0xff] }
  0x9b   : > { %10563 = vst [vmem:[#allocation100_spill] sm:$0xff] %v6964_v17  ;;  %v7886_v17 = vmov 0.0625  }
  0x9c   : > { %10564 = vst [vmem:[#allocation101_spill] sm:$0xff] %v6966_v33  ;;  %v6984_v33 = vld [vmem:[#allocation5 + $0x298] sm:$0xff] }
  0x9d   : > { %10565 = vst [vmem:[#allocation102_spill] sm:$0xff] %v6968_v14  ;;  %v6988_v14 = vld [vmem:[#allocation5 + $0x2a8] sm:$0xff] }
  0x9e   : > { %10566 = vst [vmem:[#allocation103_spill] sm:$0xff] %v6970_v26  ;;  %v6990_v26 = vld [vmem:[#allocation5 + $0x2b0] sm:$0xff] }
  0x9f   : > { %10567 = vst [vmem:[#allocation104_spill] sm:$0xff] %v6972_v42  ;;  %v6992_v42 = vld [vmem:[#allocation5 + $0x2b8] sm:$0xff] }
  0xa0   : > { %10568 = vst [vmem:[#allocation105_spill] sm:$0xff] %v6974_v13  ;;  %v7884_v13 = vmov 0.0625  }
  0xa1   : > { %10569 = vst [vmem:[#allocation106_spill] sm:$0xff] %v6976_v9  ;;  %v6995_v9 = vmul.f32 %v428_v3, %v6565_v19  ;;  %v7016_v19 = vld [vmem:[#allocation5 + $0x300] sm:$0xff] }
  0xa2   : > { %10570 = vst [vmem:[#allocation107_spill] sm:$0xff] %v6978_v52  ;;  %v6998_v52 = vmul.f32 %v428_v3, %v6571_v24  ;;  %v7018_v24 = vld [vmem:[#allocation5 + $0x308] sm:$0xff]  ;;  %v7020_v3 = vld [vmem:[#allocation5 + $0x310] sm:$0xff] }
  0xa3   : > { %10571 = vst [vmem:[#allocation108_spill] sm:$0xff] %v6982_v2  ;;  %v7882_v2 = vmov 0.0625  }
  0xa4   : > { %10572 = vst [vmem:[#allocation109_spill] sm:$0xff] %v6984_v33  ;;  %v7880_v33 = vmov 0.0625  }
  0xa5   : > { %10573 = vst [vmem:[#allocation110_spill] sm:$0xff] %v6986_v4  ;;  %v7006_v4 = vld [vmem:[#allocation5 + $0x2d8] sm:$0xff] }
  0xa6   : > { %10574 = vst [vmem:[#allocation111_spill] sm:$0xff] %v6988_v14  ;;  %v7012_v14 = vld [vmem:[#allocation5 + $0x2f0] sm:$0xff] }
  0xa7   : > { %10575 = vst [vmem:[#allocation112_spill] sm:$0xff] %v6990_v26  ;;  %v7878_v26 = vmov 0.0625  }
  0xa8   : > { %10576 = vst [vmem:[#allocation113_spill] sm:$0xff] %v6992_v42  ;;  %v7014_v42 = vld [vmem:[#allocation5 + $0x2f8] sm:$0xff] }
  0xa9   : > { %10577 = vst [vmem:[#allocation114_spill] sm:$0xff] %v6995_v9  ;;  %v7022_v9 = vld [vmem:[#allocation5 + $0x318] sm:$0xff] }
  0xaa   : > { %10578 = vst [vmem:[#allocation115_spill] sm:$0xff] %v6998_v52  ;;  %v7024_v52 = vld [vmem:[#allocation5 + $0x320] sm:$0xff] }
  0xab   : > { %10579 = vst [vmem:[#allocation116_spill] sm:$0xff] %v7000_v31  ;;  %v7874_v31 = vmov 0.0625  }
  0xac   : > { %10580 = vst [vmem:[#allocation117_spill] sm:$0xff] %v7002_v43  ;;  %v7026_v43 = vld [vmem:[#allocation5 + $0x328] sm:$0xff] }
  0xad   : > { %10581 = vst [vmem:[#allocation118_spill] sm:$0xff] %v7004_v18  ;;  %v7876_v18 = vmov 0.0625  }
  0xae   : > { %10582 = vst [vmem:[#allocation119_spill] sm:$0xff] %v7006_v4  ;;  %v7028_v4 = vld [vmem:[#allocation5 + $0x330] sm:$0xff] }
  0xaf   : > { %10583 = vst [vmem:[#allocation120_spill] sm:$0xff] %v7008_v39  ;;  %v7030_v39 = vld [vmem:[#allocation5 + $0x338] sm:$0xff] }
  0xb0   : > { %10584 = vst [vmem:[#allocation121_spill] sm:$0xff] %v7010_v51  ;;  %v7032_v51 = vld [vmem:[#allocation5 + $0x340] sm:$0xff] }
  0xb1   : > { %10585 = vst [vmem:[#allocation122_spill] sm:$0xff] %v7012_v14  ;;  %v7034_v14 = vld [vmem:[#allocation5 + $0x348] sm:$0xff] }
  0xb2   : > { %10586 = vst [vmem:[#allocation123_spill] sm:$0xff] %v7014_v42  ;;  %v7036_v42 = vld [vmem:[#allocation5 + $0x350] sm:$0xff] }
  0xb3   : > { %10587 = vst [vmem:[#allocation124_spill] sm:$0xff] %v7016_v19  ;;  %v7038_v19 = vld [vmem:[#allocation5 + $0x358] sm:$0xff] }
  0xb4   : > { %10588 = vst [vmem:[#allocation125_spill] sm:$0xff] %v7018_v24  ;;  %v7040_v24 = vld [vmem:[#allocation5 + $0x360] sm:$0xff] }
  0xb5   : > { %10589 = vst [vmem:[#allocation126_spill] sm:$0xff] %v7020_v3  ;;  %v7042_v3 = vld [vmem:[#allocation5 + $0x368] sm:$0xff] }
  0xb6   : > { %10590 = vst [vmem:[#allocation127_spill] sm:$0xff] %v7022_v9  ;;  %v7044_v9 = vld [vmem:[#allocation5 + $0x370] sm:$0xff] }
  0xb7   : > { %10591 = vst [vmem:[#allocation128_spill] sm:$0xff] %v7024_v52  ;;  %v7046_v52 = vld [vmem:[#allocation5 + $0x378] sm:$0xff] }
  0xb8   : > { %10592 = vst [vmem:[#allocation129_spill] sm:$0xff] %v7026_v43  ;;  %v7048_v43 = vld [vmem:[#allocation5 + $0x380] sm:$0xff] }
  0xb9   : > { %10593 = vst [vmem:[#allocation130_spill] sm:$0xff] %v7028_v4  ;;  %v7050_v4 = vld [vmem:[#allocation5 + $0x388] sm:$0xff] }
  0xba   : > { %10594 = vst [vmem:[#allocation131_spill] sm:$0xff] %v7030_v39  ;;  %v7052_v39 = vld [vmem:[#allocation5 + $0x390] sm:$0xff] }
  0xbb   : > { %10595 = vst [vmem:[#allocation132_spill] sm:$0xff] %v7032_v51  ;;  %v7054_v51 = vld [vmem:[#allocation5 + $0x398] sm:$0xff] }
  0xbc   : > { %10596 = vst [vmem:[#allocation133_spill] sm:$0xff] %v7034_v14  ;;  %v7056_v14 = vld [vmem:[#allocation5 + $0x3a0] sm:$0xff] }
  0xbd   : > { %10597 = vst [vmem:[#allocation134_spill] sm:$0xff] %v7036_v42  ;;  %v7058_v42 = vld [vmem:[#allocation5 + $0x3a8] sm:$0xff] }
  0xbe   : > { %10598 = vst [vmem:[#allocation135_spill] sm:$0xff] %v7038_v19  ;;  %v7060_v19 = vld [vmem:[#allocation5 + $0x3b0] sm:$0xff] }
  0xbf   : > { %10599 = vst [vmem:[#allocation136_spill] sm:$0xff] %v7040_v24  ;;  %v7062_v24 = vld [vmem:[#allocation5 + $0x3b8] sm:$0xff] }
  0xc0   : > { %10600 = vst [vmem:[#allocation137_spill] sm:$0xff] %v7042_v3  ;;  %v7064_v3 = vld [vmem:[#allocation5 + $0x3c0] sm:$0xff] }
  0xc1   : > { %10601 = vst [vmem:[#allocation138_spill] sm:$0xff] %v7044_v9  ;;  %v7066_v9 = vld [vmem:[#allocation5 + $0x3c8] sm:$0xff] }
  0xc2   : > { %10602 = vst [vmem:[#allocation139_spill] sm:$0xff] %v7046_v52  ;;  %v7068_v52 = vld [vmem:[#allocation5 + $0x3d0] sm:$0xff] }
  0xc3   : > { %10603 = vst [vmem:[#allocation140_spill] sm:$0xff] %v7048_v43  ;;  %v7070_v43 = vld [vmem:[#allocation5 + $0x3d8] sm:$0xff] }
  0xc4   : > { %10604 = vst [vmem:[#allocation141_spill] sm:$0xff] %v7050_v4  ;;  %v7072_v4 = vld [vmem:[#allocation5 + $0x3e0] sm:$0xff] }
  0xc5   : > { %10605 = vst [vmem:[#allocation142_spill] sm:$0xff] %v7052_v39  ;;  %v7074_v39 = vld [vmem:[#allocation5 + $0x3e8] sm:$0xff] }
  0xc6   : > { %10606 = vst [vmem:[#allocation143_spill] sm:$0xff] %v7054_v51  ;;  %v7076_v51 = vld [vmem:[#allocation5 + $0x3f0] sm:$0xff] }
  0xc7   : > { %10607 = vst [vmem:[#allocation144_spill] sm:$0xff] %v7056_v14  ;;  %v7078_v14 = vld [vmem:[#allocation5 + $0x3f8] sm:$0xff] }
  0xc8   : > { %10608 = vst [vmem:[#allocation145_spill] sm:$0xff] %v7058_v42  ;;  %v7080_v42 = vld [vmem:[#allocation5 + $0x400] sm:$0xff] }
  0xc9   : > { %10609 = vst [vmem:[#allocation146_spill] sm:$0xff] %v7060_v19  ;;  %v7082_v19 = vld [vmem:[#allocation5 + $0x408] sm:$0xff] }
  0xca   : > { %10610 = vst [vmem:[#allocation147_spill] sm:$0xff] %v7062_v24  ;;  %v7084_v24 = vld [vmem:[#allocation5 + $0x410] sm:$0xff] }
  0xcb   : > { %10611 = vst [vmem:[#allocation148_spill] sm:$0xff] %v7064_v3  ;;  %v7086_v3 = vld [vmem:[#allocation5 + $0x418] sm:$0xff] }
  0xcc   : > { %10612 = vst [vmem:[#allocation149_spill] sm:$0xff] %v7066_v9  ;;  %v7088_v9 = vld [vmem:[#allocation5 + $0x420] sm:$0xff] }
  0xcd   : > { %10613 = vst [vmem:[#allocation150_spill] sm:$0xff] %v7068_v52  ;;  %v7090_v52 = vld [vmem:[#allocation5 + $0x428] sm:$0xff] }
  0xce   : > { %10614 = vst [vmem:[#allocation151_spill] sm:$0xff] %v7070_v43  ;;  %v7092_v43 = vld [vmem:[#allocation5 + $0x430] sm:$0xff] }
  0xcf   : > { %10615 = vst [vmem:[#allocation152_spill] sm:$0xff] %v7072_v4  ;;  %v7094_v4 = vld [vmem:[#allocation5 + $0x438] sm:$0xff] }
  0xd0   : > { %10616 = vst [vmem:[#allocation153_spill] sm:$0xff] %v7074_v39  ;;  %v7096_v39 = vld [vmem:[#allocation5 + $0x440] sm:$0xff] }
  0xd1   : > { %10617 = vst [vmem:[#allocation154_spill] sm:$0xff] %v7076_v51  ;;  %v7098_v51 = vld [vmem:[#allocation5 + $0x448] sm:$0xff] }
  0xd2   : > { %10618 = vst [vmem:[#allocation155_spill] sm:$0xff] %v7078_v14  ;;  %v7100_v14 = vld [vmem:[#allocation5 + $0x450] sm:$0xff] }
  0xd3   : > { %10619 = vst [vmem:[#allocation156_spill] sm:$0xff] %v7080_v42  ;;  %v7102_v42 = vld [vmem:[#allocation5 + $0x458] sm:$0xff] }
  0xd4   : > { %10620 = vst [vmem:[#allocation157_spill] sm:$0xff] %v7082_v19  ;;  %v7104_v19 = vld [vmem:[#allocation5 + $0x460] sm:$0xff] }
  0xd5   : > { %10621 = vst [vmem:[#allocation158_spill] sm:$0xff] %v7084_v24  ;;  %v7106_v24 = vld [vmem:[#allocation5 + $0x468] sm:$0xff] }
  0xd6   : > { %10622 = vst [vmem:[#allocation159_spill] sm:$0xff] %v7086_v3  ;;  %v7108_v3 = vld [vmem:[#allocation5 + $0x470] sm:$0xff] }
  0xd7   : > { %10623 = vst [vmem:[#allocation160_spill] sm:$0xff] %v7088_v9  ;;  %v7110_v9 = vld [vmem:[#allocation5 + $0x478] sm:$0xff] }
  0xd8   : > { %10624 = vst [vmem:[#allocation161_spill] sm:$0xff] %v7090_v52  ;;  %v7112_v52 = vld [vmem:[#allocation5 + $0x480] sm:$0xff] }
  0xd9   : > { %10625 = vst [vmem:[#allocation162_spill] sm:$0xff] %v7092_v43  ;;  %v7114_v43 = vld [vmem:[#allocation5 + $0x488] sm:$0xff] }
  0xda   : > { %10626 = vst [vmem:[#allocation163_spill] sm:$0xff] %v7094_v4  ;;  %v7116_v4 = vld [vmem:[#allocation5 + $0x490] sm:$0xff] }
  0xdb   : > { %10627 = vst [vmem:[#allocation164_spill] sm:$0xff] %v7096_v39  ;;  %v7118_v39 = vld [vmem:[#allocation5 + $0x498] sm:$0xff] }
  0xdc   : > { %10628 = vst [vmem:[#allocation165_spill] sm:$0xff] %v7098_v51  ;;  %v7120_v51 = vld [vmem:[#allocation5 + $0x4a0] sm:$0xff] }
  0xdd   : > { %10629 = vst [vmem:[#allocation166_spill] sm:$0xff] %v7100_v14  ;;  %v7122_v14 = vld [vmem:[#allocation5 + $0x4a8] sm:$0xff] }
  0xde   : > { %10630 = vst [vmem:[#allocation167_spill] sm:$0xff] %v7102_v42  ;;  %v7124_v42 = vld [vmem:[#allocation5 + $0x4b0] sm:$0xff] }
  0xdf   : > { %10631 = vst [vmem:[#allocation168_spill] sm:$0xff] %v7104_v19  ;;  %v7126_v19 = vld [vmem:[#allocation5 + $0x4b8] sm:$0xff] }
  0xe0   : > { %10632 = vst [vmem:[#allocation169_spill] sm:$0xff] %v7106_v24  ;;  %v7128_v24 = vld [vmem:[#allocation5 + $0x4c0] sm:$0xff] }
  0xe1   : > { %10633 = vst [vmem:[#allocation170_spill] sm:$0xff] %v7108_v3  ;;  %v7130_v3 = vld [vmem:[#allocation5 + $0x4c8] sm:$0xff] }
  0xe2   : > { %10634 = vst [vmem:[#allocation171_spill] sm:$0xff] %v7110_v9  ;;  %v7132_v9 = vld [vmem:[#allocation5 + $0x4d0] sm:$0xff] }
  0xe3   : > { %10635 = vst [vmem:[#allocation172_spill] sm:$0xff] %v7112_v52  ;;  %v7134_v52 = vld [vmem:[#allocation5 + $0x4d8] sm:$0xff] }
  0xe4   : > { %10636 = vst [vmem:[#allocation173_spill] sm:$0xff] %v7114_v43  ;;  %v7136_v43 = vld [vmem:[#allocation5 + $0x4e0] sm:$0xff] }
  0xe5   : > { %10637 = vst [vmem:[#allocation174_spill] sm:$0xff] %v7116_v4  ;;  %v7138_v4 = vld [vmem:[#allocation5 + $0x4e8] sm:$0xff] }
  0xe6   : > { %10638 = vst [vmem:[#allocation175_spill] sm:$0xff] %v7118_v39  ;;  %v7140_v39 = vld [vmem:[#allocation5 + $0x4f0] sm:$0xff] }
  0xe7   : > { %10639 = vst [vmem:[#allocation176_spill] sm:$0xff] %v7120_v51  ;;  %v7142_v51 = vld [vmem:[#allocation5 + $0x4f8] sm:$0xff] }
  0xe8   : > { %10640 = vst [vmem:[#allocation177_spill] sm:$0xff] %v7122_v14  ;;  %v7144_v14 = vld [vmem:[#allocation5 + $0x500] sm:$0xff] }
  0xe9   : > { %10641 = vst [vmem:[#allocation178_spill] sm:$0xff] %v7124_v42  ;;  %v7146_v42 = vld [vmem:[#allocation5 + $0x508] sm:$0xff] }
  0xea   : > { %10642 = vst [vmem:[#allocation179_spill] sm:$0xff] %v7126_v19  ;;  %v7148_v19 = vld [vmem:[#allocation5 + $0x510] sm:$0xff] }
  0xeb   : > { %10643 = vst [vmem:[#allocation180_spill] sm:$0xff] %v7128_v24  ;;  %v7150_v24 = vld [vmem:[#allocation5 + $0x518] sm:$0xff] }
  0xec   : > { %10644 = vst [vmem:[#allocation181_spill] sm:$0xff] %v7130_v3  ;;  %v7152_v3 = vld [vmem:[#allocation5 + $0x520] sm:$0xff] }
  0xed   : > { %10645 = vst [vmem:[#allocation182_spill] sm:$0xff] %v7132_v9  ;;  %v7154_v9 = vld [vmem:[#allocation5 + $0x528] sm:$0xff] }
  0xee   : > { %10646 = vst [vmem:[#allocation183_spill] sm:$0xff] %v7134_v52  ;;  %v7156_v52 = vld [vmem:[#allocation5 + $0x530] sm:$0xff] }
  0xef   : > { %10647 = vst [vmem:[#allocation184_spill] sm:$0xff] %v7136_v43  ;;  %v7158_v43 = vld [vmem:[#allocation5 + $0x538] sm:$0xff] }
  0xf0   : > { %10648 = vst [vmem:[#allocation185_spill] sm:$0xff] %v7138_v4  ;;  %v7160_v4 = vld [vmem:[#allocation5 + $0x540] sm:$0xff] }
  0xf1   : > { %10649 = vst [vmem:[#allocation186_spill] sm:$0xff] %v7140_v39  ;;  %v7162_v39 = vld [vmem:[#allocation5 + $0x548] sm:$0xff] }
  0xf2   : > { %10650 = vst [vmem:[#allocation187_spill] sm:$0xff] %v7142_v51  ;;  %v7164_v51 = vld [vmem:[#allocation5 + $0x550] sm:$0xff] }
  0xf3   : > { %10651 = vst [vmem:[#allocation188_spill] sm:$0xff] %v7144_v14  ;;  %v7166_v14 = vld [vmem:[#allocation5 + $0x558] sm:$0xff] }
  0xf4   : > { %10652 = vst [vmem:[#allocation189_spill] sm:$0xff] %v7146_v42  ;;  %v7168_v42 = vld [vmem:[#allocation5 + $0x560] sm:$0xff] }
  0xf5   : > { %10653 = vst [vmem:[#allocation190_spill] sm:$0xff] %v7148_v19  ;;  %v7170_v19 = vld [vmem:[#allocation5 + $0x568] sm:$0xff] }
  0xf6   : > { %10654 = vst [vmem:[#allocation191_spill] sm:$0xff] %v7150_v24  ;;  %v7172_v24 = vld [vmem:[#allocation5 + $0x570] sm:$0xff] }
  0xf7   : > { %10655 = vst [vmem:[#allocation192_spill] sm:$0xff] %v7152_v3  ;;  %v7174_v3 = vld [vmem:[#allocation5 + $0x578] sm:$0xff] }
  0xf8   : > { %10656 = vst [vmem:[#allocation193_spill] sm:$0xff] %v7154_v9  ;;  %v7176_v9 = vld [vmem:[#allocation5 + $0x580] sm:$0xff] }
  0xf9   : > { %10657 = vst [vmem:[#allocation194_spill] sm:$0xff] %v7156_v52  ;;  %v7178_v52 = vld [vmem:[#allocation5 + $0x588] sm:$0xff] }
  0xfa   : > { %10658 = vst [vmem:[#allocation195_spill] sm:$0xff] %v7158_v43  ;;  %v7180_v43 = vld [vmem:[#allocation5 + $0x590] sm:$0xff] }
  0xfb   : > { %10659 = vst [vmem:[#allocation196_spill] sm:$0xff] %v7160_v4  ;;  %v7182_v4 = vld [vmem:[#allocation5 + $0x598] sm:$0xff] }
  0xfc   : > { %10660 = vst [vmem:[#allocation197_spill] sm:$0xff] %v7162_v39  ;;  %v7184_v39 = vld [vmem:[#allocation5 + $0x5a0] sm:$0xff] }
  0xfd   : > { %10661 = vst [vmem:[#allocation198_spill] sm:$0xff] %v7164_v51  ;;  %v7186_v51 = vld [vmem:[#allocation5 + $0x5a8] sm:$0xff] }
  0xfe   : > { %10662 = vst [vmem:[#allocation199_spill] sm:$0xff] %v7166_v14  ;;  %v7188_v14 = vld [vmem:[#allocation5 + $0x5b0] sm:$0xff] }
  0xff   : > { %10663 = vst [vmem:[#allocation200_spill] sm:$0xff] %v7168_v42  ;;  %v7190_v42 = vld [vmem:[#allocation5 + $0x5b8] sm:$0xff] }
 0x100   : > { %10664 = vst [vmem:[#allocation201_spill] sm:$0xff] %v7170_v19  ;;  %v7192_v19 = vld [vmem:[#allocation5 + $0x5c0] sm:$0xff] }
 0x101   : > { %10665 = vst [vmem:[#allocation202_spill] sm:$0xff] %v7172_v24  ;;  %v7194_v24 = vld [vmem:[#allocation5 + $0x5c8] sm:$0xff] }
 0x102   : > { %10666 = vst [vmem:[#allocation203_spill] sm:$0xff] %v7174_v3  ;;  %v7196_v3 = vld [vmem:[#allocation5 + $0x5d0] sm:$0xff] }
 0x103   : > { %10667 = vst [vmem:[#allocation204_spill] sm:$0xff] %v7176_v9  ;;  %v7198_v9 = vld [vmem:[#allocation5 + $0x5d8] sm:$0xff] }
 0x104   : > { %10668 = vst [vmem:[#allocation205_spill] sm:$0xff] %v7178_v52  ;;  %v7200_v52 = vld [vmem:[#allocation5 + $0x5e0] sm:$0xff] }
 0x105   : > { %10669 = vst [vmem:[#allocation206_spill] sm:$0xff] %v7180_v43  ;;  %v7202_v43 = vld [vmem:[#allocation5 + $0x5e8] sm:$0xff] }
 0x106   : > { %10670 = vst [vmem:[#allocation207_spill] sm:$0xff] %v7182_v4  ;;  %v7204_v4 = vld [vmem:[#allocation5 + $0x5f0] sm:$0xff] }
 0x107   : > { %10671 = vst [vmem:[#allocation208_spill] sm:$0xff] %v7184_v39  ;;  %v7206_v39 = vld [vmem:[#allocation5 + $0x5f8] sm:$0xff] }
 0x108   : > { %10672 = vst [vmem:[#allocation209_spill] sm:$0xff] %v7186_v51  ;;  %v7208_v51 = vld [vmem:[#allocation5 + $0x600] sm:$0xff] }
 0x109   : > { %10673 = vst [vmem:[#allocation210_spill] sm:$0xff] %v7188_v14  ;;  %v7210_v14 = vld [vmem:[#allocation5 + $0x608] sm:$0xff] }
 0x10a   : > { %10674 = vst [vmem:[#allocation211_spill] sm:$0xff] %v7190_v42  ;;  %v7212_v42 = vld [vmem:[#allocation5 + $0x610] sm:$0xff] }
 0x10b   : > { %10675 = vst [vmem:[#allocation212_spill] sm:$0xff] %v7192_v19  ;;  %v7214_v19 = vld [vmem:[#allocation5 + $0x618] sm:$0xff] }
 0x10c   : > { %10676 = vst [vmem:[#allocation213_spill] sm:$0xff] %v7194_v24  ;;  %v7216_v24 = vld [vmem:[#allocation5 + $0x620] sm:$0xff] }
 0x10d   : > { %10677 = vst [vmem:[#allocation214_spill] sm:$0xff] %v7196_v3  ;;  %v7218_v3 = vld [vmem:[#allocation5 + $0x628] sm:$0xff] }
 0x10e   : > { %10678 = vst [vmem:[#allocation215_spill] sm:$0xff] %v7198_v9  ;;  %v7220_v9 = vld [vmem:[#allocation5 + $0x630] sm:$0xff] }
 0x10f   : > { %10679 = vst [vmem:[#allocation216_spill] sm:$0xff] %v7200_v52  ;;  %v7222_v52 = vld [vmem:[#allocation5 + $0x638] sm:$0xff] }
 0x110   : > { %10680 = vst [vmem:[#allocation217_spill] sm:$0xff] %v7202_v43  ;;  %v7224_v43 = vld [vmem:[#allocation5 + $0x640] sm:$0xff] }
 0x111   : > { %10681 = vst [vmem:[#allocation218_spill] sm:$0xff] %v7204_v4  ;;  %v7226_v4 = vld [vmem:[#allocation5 + $0x648] sm:$0xff] }
 0x112   : > { %10682 = vst [vmem:[#allocation219_spill] sm:$0xff] %v7206_v39  ;;  %v7228_v39 = vld [vmem:[#allocation5 + $0x650] sm:$0xff] }
 0x113   : > { %10683 = vst [vmem:[#allocation220_spill] sm:$0xff] %v7208_v51  ;;  %v7230_v51 = vld [vmem:[#allocation5 + $0x658] sm:$0xff] }
 0x114   : > { %10684 = vst [vmem:[#allocation221_spill] sm:$0xff] %v7210_v14  ;;  %v7232_v14 = vld [vmem:[#allocation5 + $0x660] sm:$0xff] }
 0x115   : > { %10685 = vst [vmem:[#allocation222_spill] sm:$0xff] %v7212_v42  ;;  %v7234_v42 = vld [vmem:[#allocation5 + $0x668] sm:$0xff] }
 0x116   : > { %10686 = vst [vmem:[#allocation223_spill] sm:$0xff] %v7214_v19  ;;  %v7236_v19 = vld [vmem:[#allocation5 + $0x670] sm:$0xff] }
 0x117   : > { %10687 = vst [vmem:[#allocation224_spill] sm:$0xff] %v7216_v24  ;;  %v7238_v24 = vld [vmem:[#allocation5 + $0x678] sm:$0xff] }
 0x118   : > { %10688 = vst [vmem:[#allocation225_spill] sm:$0xff] %v7218_v3  ;;  %v7240_v3 = vld [vmem:[#allocation5 + $0x680] sm:$0xff] }
 0x119   : > { %10689 = vst [vmem:[#allocation226_spill] sm:$0xff] %v7220_v9  ;;  %v7242_v9 = vld [vmem:[#allocation5 + $0x688] sm:$0xff] }
 0x11a   : > { %10690 = vst [vmem:[#allocation227_spill] sm:$0xff] %v7222_v52  ;;  %v7244_v52 = vld [vmem:[#allocation5 + $0x690] sm:$0xff] }
 0x11b   : > { %10691 = vst [vmem:[#allocation228_spill] sm:$0xff] %v7224_v43  ;;  %v7246_v43 = vld [vmem:[#allocation5 + $0x698] sm:$0xff] }
 0x11c   : > { %10692 = vst [vmem:[#allocation229_spill] sm:$0xff] %v7226_v4  ;;  %v7248_v4 = vld [vmem:[#allocation5 + $0x6a0] sm:$0xff] }
 0x11d   : > { %10693 = vst [vmem:[#allocation230_spill] sm:$0xff] %v7228_v39  ;;  %v7250_v39 = vld [vmem:[#allocation5 + $0x6a8] sm:$0xff] }
 0x11e   : > { %10694 = vst [vmem:[#allocation231_spill] sm:$0xff] %v7230_v51  ;;  %v7252_v51 = vld [vmem:[#allocation5 + $0x6b0] sm:$0xff] }
 0x11f   : > { %10695 = vst [vmem:[#allocation232_spill] sm:$0xff] %v7232_v14  ;;  %v7254_v14 = vld [vmem:[#allocation5 + $0x6b8] sm:$0xff] }
 0x120   : > { %10696 = vst [vmem:[#allocation233_spill] sm:$0xff] %v7234_v42  ;;  %v7256_v42 = vld [vmem:[#allocation5 + $0x6c0] sm:$0xff] }
 0x121   : > { %10697 = vst [vmem:[#allocation234_spill] sm:$0xff] %v7236_v19  ;;  %v7258_v19 = vld [vmem:[#allocation5 + $0x6c8] sm:$0xff] }
 0x122   : > { %10698 = vst [vmem:[#allocation235_spill] sm:$0xff] %v7238_v24  ;;  %v7260_v24 = vld [vmem:[#allocation5 + $0x6d0] sm:$0xff] }
 0x123   : > { %10699 = vst [vmem:[#allocation236_spill] sm:$0xff] %v7240_v3  ;;  %v7262_v3 = vld [vmem:[#allocation5 + $0x6d8] sm:$0xff] }
 0x124   : > { %10700 = vst [vmem:[#allocation237_spill] sm:$0xff] %v7242_v9  ;;  %v7264_v9 = vld [vmem:[#allocation5 + $0x6e0] sm:$0xff] }
 0x125   : > { %10701 = vst [vmem:[#allocation238_spill] sm:$0xff] %v7244_v52  ;;  %v7266_v52 = vld [vmem:[#allocation5 + $0x6e8] sm:$0xff] }
 0x126   : > { %10702 = vst [vmem:[#allocation239_spill] sm:$0xff] %v7246_v43  ;;  %v7268_v43 = vld [vmem:[#allocation5 + $0x6f0] sm:$0xff] }
 0x127   : > { %10703 = vst [vmem:[#allocation240_spill] sm:$0xff] %v7248_v4  ;;  %v7270_v4 = vld [vmem:[#allocation5 + $0x6f8] sm:$0xff] }
 0x128   : > { %10704 = vst [vmem:[#allocation241_spill] sm:$0xff] %v7250_v39  ;;  %v7272_v39 = vld [vmem:[#allocation5 + $0x700] sm:$0xff] }
 0x129   : > { %10705 = vst [vmem:[#allocation242_spill] sm:$0xff] %v7252_v51  ;;  %v7274_v51 = vld [vmem:[#allocation5 + $0x708] sm:$0xff] }
 0x12a   : > { %10706 = vst [vmem:[#allocation243_spill] sm:$0xff] %v7254_v14  ;;  %v7276_v14 = vld [vmem:[#allocation5 + $0x710] sm:$0xff] }
 0x12b   : > { %10707 = vst [vmem:[#allocation244_spill] sm:$0xff] %v7256_v42  ;;  %v7278_v42 = vld [vmem:[#allocation5 + $0x718] sm:$0xff] }
 0x12c   : > { %10708 = vst [vmem:[#allocation245_spill] sm:$0xff] %v7258_v19  ;;  %v7280_v19 = vld [vmem:[#allocation5 + $0x720] sm:$0xff] }
 0x12d   : > { %10709 = vst [vmem:[#allocation246_spill] sm:$0xff] %v7260_v24  ;;  %v7282_v24 = vld [vmem:[#allocation5 + $0x728] sm:$0xff] }
 0x12e   : > { %10710 = vst [vmem:[#allocation247_spill] sm:$0xff] %v7262_v3  ;;  %v7284_v3 = vld [vmem:[#allocation5 + $0x730] sm:$0xff] }
 0x12f   : > { %10711 = vst [vmem:[#allocation248_spill] sm:$0xff] %v7264_v9  ;;  %v7286_v9 = vld [vmem:[#allocation5 + $0x738] sm:$0xff] }
 0x130   : > { %10712 = vst [vmem:[#allocation249_spill] sm:$0xff] %v7266_v52  ;;  %v7288_v52 = vld [vmem:[#allocation5 + $0x740] sm:$0xff] }
 0x131   : > { %10713 = vst [vmem:[#allocation250_spill] sm:$0xff] %v7268_v43  ;;  %v7290_v43 = vld [vmem:[#allocation5 + $0x748] sm:$0xff] }
 0x132   : > { %10714 = vst [vmem:[#allocation251_spill] sm:$0xff] %v7270_v4  ;;  %v7292_v4 = vld [vmem:[#allocation5 + $0x750] sm:$0xff] }
 0x133   : > { %10715 = vst [vmem:[#allocation252_spill] sm:$0xff] %v7272_v39  ;;  %v7294_v39 = vld [vmem:[#allocation5 + $0x758] sm:$0xff] }
 0x134   : > { %10716 = vst [vmem:[#allocation253_spill] sm:$0xff] %v7274_v51  ;;  %v7296_v51 = vld [vmem:[#allocation5 + $0x760] sm:$0xff] }
 0x135   : > { %10717 = vst [vmem:[#allocation254_spill] sm:$0xff] %v7276_v14  ;;  %v7298_v14 = vld [vmem:[#allocation5 + $0x768] sm:$0xff] }
 0x136   : > { %10718 = vst [vmem:[#allocation255_spill] sm:$0xff] %v7278_v42  ;;  %v7300_v42 = vld [vmem:[#allocation5 + $0x770] sm:$0xff] }
 0x137   : > { %10719 = vst [vmem:[#allocation256_spill] sm:$0xff] %v7280_v19  ;;  %v7302_v19 = vld [vmem:[#allocation5 + $0x778] sm:$0xff] }
 0x138   : > { %10720 = vst [vmem:[#allocation257_spill] sm:$0xff] %v7282_v24  ;;  %v7304_v24 = vld [vmem:[#allocation5 + $0x780] sm:$0xff] }
 0x139   : > { %10721 = vst [vmem:[#allocation258_spill] sm:$0xff] %v7284_v3  ;;  %v7306_v3 = vld [vmem:[#allocation5 + $0x788] sm:$0xff] }
 0x13a   : > { %10722 = vst [vmem:[#allocation259_spill] sm:$0xff] %v7286_v9  ;;  %v7308_v9 = vld [vmem:[#allocation5 + $0x790] sm:$0xff] }
 0x13b   : > { %10723 = vst [vmem:[#allocation260_spill] sm:$0xff] %v7288_v52  ;;  %v7310_v52 = vld [vmem:[#allocation5 + $0x798] sm:$0xff] }
 0x13c   : > { %10724 = vst [vmem:[#allocation261_spill] sm:$0xff] %v7290_v43  ;;  %v7312_v43 = vld [vmem:[#allocation5 + $0x7a0] sm:$0xff] }
 0x13d   : > { %10725 = vst [vmem:[#allocation262_spill] sm:$0xff] %v7292_v4  ;;  %v7314_v4 = vld [vmem:[#allocation5 + $0x7a8] sm:$0xff] }
 0x13e   : > { %10726 = vst [vmem:[#allocation263_spill] sm:$0xff] %v7294_v39  ;;  %v7316_v39 = vld [vmem:[#allocation5 + $0x7b0] sm:$0xff] }
 0x13f   : > { %10727 = vst [vmem:[#allocation264_spill] sm:$0xff] %v7296_v51  ;;  %v7318_v51 = vld [vmem:[#allocation5 + $0x7b8] sm:$0xff] }
 0x140   : > { %10728 = vst [vmem:[#allocation265_spill] sm:$0xff] %v7298_v14  ;;  %v7320_v14 = vld [vmem:[#allocation5 + $0x7c0] sm:$0xff] }
 0x141   : > { %10729 = vst [vmem:[#allocation266_spill] sm:$0xff] %v7300_v42  ;;  %v7322_v42 = vld [vmem:[#allocation5 + $0x7c8] sm:$0xff] }
 0x142   : > { %10730 = vst [vmem:[#allocation267_spill] sm:$0xff] %v7302_v19  ;;  %v7324_v19 = vld [vmem:[#allocation5 + $0x7d0] sm:$0xff] }
 0x143   : > { %10731 = vst [vmem:[#allocation268_spill] sm:$0xff] %v7304_v24  ;;  %v7326_v24 = vld [vmem:[#allocation5 + $0x7d8] sm:$0xff] }
 0x144   : > { %10732 = vst [vmem:[#allocation269_spill] sm:$0xff] %v7306_v3  ;;  %v7328_v3 = vld [vmem:[#allocation5 + $0x7e0] sm:$0xff] }
 0x145   : > { %10733 = vst [vmem:[#allocation270_spill] sm:$0xff] %v7308_v9  ;;  %v7330_v9 = vld [vmem:[#allocation5 + $0x7e8] sm:$0xff] }
 0x146   : > { %10734 = vst [vmem:[#allocation271_spill] sm:$0xff] %v7310_v52  ;;  %v7332_v52 = vld [vmem:[#allocation5 + $0x7f0] sm:$0xff] }
 0x147   : > { %10735 = vst [vmem:[#allocation272_spill] sm:$0xff] %v7312_v43  ;;  %v7334_v43 = vld [vmem:[#allocation5 + $0x7f8] sm:$0xff] }
 0x148   : > { %10736 = vst [vmem:[#allocation273_spill] sm:$0xff] %v7314_v4  ;;  %v7336_v4 = vld [vmem:[#allocation7] sm:$0xff] }
 0x149   : > { %10737 = vst [vmem:[#allocation274_spill] sm:$0xff] %v7316_v39  ;;  %v7338_v39 = vld [vmem:[#allocation7 + $0x8] sm:$0xff] }
 0x14a   : > { %10738 = vst [vmem:[#allocation275_spill] sm:$0xff] %v7318_v51  ;;  %v7340_v51 = vld [vmem:[#allocation7 + $0x10] sm:$0xff] }
 0x14b   : > { %10739 = vst [vmem:[#allocation276_spill] sm:$0xff] %v7320_v14  ;;  %v7342_v14 = vld [vmem:[#allocation7 + $0x18] sm:$0xff] }
 0x14c   : > { %10740 = vst [vmem:[#allocation277_spill] sm:$0xff] %v7322_v42  ;;  %v7344_v42 = vld [vmem:[#allocation7 + $0x20] sm:$0xff] }
 0x14d   : > { %10741 = vst [vmem:[#allocation278_spill] sm:$0xff] %v7324_v19  ;;  %v7346_v19 = vld [vmem:[#allocation7 + $0x28] sm:$0xff] }
 0x14e   : > { %10742 = vst [vmem:[#allocation279_spill] sm:$0xff] %v7326_v24  ;;  %v7348_v24 = vld [vmem:[#allocation7 + $0x30] sm:$0xff] }
 0x14f   : > { %10743 = vst [vmem:[#allocation280_spill] sm:$0xff] %v7328_v3  ;;  %v7350_v3 = vld [vmem:[#allocation7 + $0x38] sm:$0xff] }
 0x150   : > { %10744 = vst [vmem:[#allocation281_spill] sm:$0xff] %v7330_v9  ;;  %v7352_v9 = vld [vmem:[#allocation7 + $0x40] sm:$0xff] }
 0x151   : > { %10745 = vst [vmem:[#allocation282_spill] sm:$0xff] %v7332_v52  ;;  %v7354_v52 = vld [vmem:[#allocation7 + $0x48] sm:$0xff] }
 0x152   : > { %10746 = vst [vmem:[#allocation283_spill] sm:$0xff] %v7334_v43  ;;  %v7356_v43 = vld [vmem:[#allocation7 + $0x50] sm:$0xff] }
 0x153   : > { %10747 = vst [vmem:[#allocation284_spill] sm:$0xff] %v7336_v4  ;;  %v7358_v4 = vld [vmem:[#allocation7 + $0x58] sm:$0xff] }
 0x154   : > { %10748 = vst [vmem:[#allocation285_spill] sm:$0xff] %v7338_v39  ;;  %v7360_v39 = vld [vmem:[#allocation7 + $0x60] sm:$0xff] }
 0x155   : > { %10749 = vst [vmem:[#allocation286_spill] sm:$0xff] %v7340_v51  ;;  %v7362_v51 = vld [vmem:[#allocation7 + $0x68] sm:$0xff] }
 0x156   : > { %10750 = vst [vmem:[#allocation287_spill] sm:$0xff] %v7342_v14  ;;  %v7364_v14 = vld [vmem:[#allocation7 + $0x70] sm:$0xff] }
 0x157   : > { %10751 = vst [vmem:[#allocation288_spill] sm:$0xff] %v7344_v42  ;;  %v7366_v42 = vld [vmem:[#allocation7 + $0x78] sm:$0xff] }
 0x158   : > { %10752 = vst [vmem:[#allocation289_spill] sm:$0xff] %v7346_v19  ;;  %v7368_v19 = vld [vmem:[#allocation7 + $0x80] sm:$0xff] }
 0x159   : > { %10753 = vst [vmem:[#allocation290_spill] sm:$0xff] %v7348_v24  ;;  %v7370_v24 = vld [vmem:[#allocation7 + $0x88] sm:$0xff] }
 0x15a   : > { %10754 = vst [vmem:[#allocation291_spill] sm:$0xff] %v7350_v3  ;;  %v7372_v3 = vld [vmem:[#allocation7 + $0x90] sm:$0xff] }
 0x15b   : > { %10755 = vst [vmem:[#allocation292_spill] sm:$0xff] %v7352_v9  ;;  %v7374_v9 = vld [vmem:[#allocation7 + $0x98] sm:$0xff] }
 0x15c   : > { %10756 = vst [vmem:[#allocation293_spill] sm:$0xff] %v7354_v52  ;;  %v7376_v52 = vld [vmem:[#allocation7 + $0xa0] sm:$0xff] }
 0x15d   : > { %10757 = vst [vmem:[#allocation294_spill] sm:$0xff] %v7356_v43  ;;  %v7378_v43 = vld [vmem:[#allocation7 + $0xa8] sm:$0xff] }
 0x15e   : > { %10758 = vst [vmem:[#allocation295_spill] sm:$0xff] %v7358_v4  ;;  %v7380_v4 = vld [vmem:[#allocation7 + $0xb0] sm:$0xff] }
 0x15f   : > { %10759 = vst [vmem:[#allocation296_spill] sm:$0xff] %v7360_v39  ;;  %v7382_v39 = vld [vmem:[#allocation7 + $0xb8] sm:$0xff] }
 0x160   : > { %10760 = vst [vmem:[#allocation297_spill] sm:$0xff] %v7362_v51  ;;  %v7384_v51 = vld [vmem:[#allocation7 + $0xc0] sm:$0xff] }
 0x161   : > { %10761 = vst [vmem:[#allocation298_spill] sm:$0xff] %v7364_v14  ;;  %v7386_v14 = vld [vmem:[#allocation7 + $0xc8] sm:$0xff] }
 0x162   : > { %10762 = vst [vmem:[#allocation299_spill] sm:$0xff] %v7366_v42  ;;  %v7388_v42 = vld [vmem:[#allocation7 + $0xd0] sm:$0xff] }
 0x163   : > { %10763 = vst [vmem:[#allocation300_spill] sm:$0xff] %v7368_v19  ;;  %v7390_v19 = vld [vmem:[#allocation7 + $0xd8] sm:$0xff] }
 0x164   : > { %10764 = vst [vmem:[#allocation301_spill] sm:$0xff] %v7370_v24  ;;  %v7392_v24 = vld [vmem:[#allocation7 + $0xe0] sm:$0xff] }
 0x165   : > { %10765 = vst [vmem:[#allocation302_spill] sm:$0xff] %v7372_v3  ;;  %v7394_v3 = vld [vmem:[#allocation7 + $0xe8] sm:$0xff] }
 0x166   : > { %10766 = vst [vmem:[#allocation303_spill] sm:$0xff] %v7374_v9  ;;  %v7396_v9 = vld [vmem:[#allocation7 + $0xf0] sm:$0xff] }
 0x167   : > { %10767 = vst [vmem:[#allocation304_spill] sm:$0xff] %v7376_v52  ;;  %v7398_v52 = vld [vmem:[#allocation7 + $0xf8] sm:$0xff] }
 0x168   : > { %10768 = vst [vmem:[#allocation305_spill] sm:$0xff] %v7378_v43  ;;  %v7400_v43 = vld [vmem:[#allocation7 + $0x100] sm:$0xff] }
 0x169   : > { %10769 = vst [vmem:[#allocation306_spill] sm:$0xff] %v7380_v4  ;;  %v7402_v4 = vld [vmem:[#allocation7 + $0x108] sm:$0xff] }
 0x16a   : > { %10770 = vst [vmem:[#allocation307_spill] sm:$0xff] %v7382_v39  ;;  %v7404_v39 = vld [vmem:[#allocation7 + $0x110] sm:$0xff] }
 0x16b   : > { %10771 = vst [vmem:[#allocation308_spill] sm:$0xff] %v7384_v51  ;;  %v7406_v51 = vld [vmem:[#allocation7 + $0x118] sm:$0xff] }
 0x16c   : > { %10772 = vst [vmem:[#allocation309_spill] sm:$0xff] %v7386_v14  ;;  %v7408_v14 = vld [vmem:[#allocation7 + $0x120] sm:$0xff] }
 0x16d   : > { %10773 = vst [vmem:[#allocation310_spill] sm:$0xff] %v7388_v42  ;;  %v7410_v42 = vld [vmem:[#allocation7 + $0x128] sm:$0xff] }
 0x16e   : > { %10774 = vst [vmem:[#allocation311_spill] sm:$0xff] %v7390_v19  ;;  %v7412_v19 = vld [vmem:[#allocation7 + $0x130] sm:$0xff] }
 0x16f   : > { %10775 = vst [vmem:[#allocation312_spill] sm:$0xff] %v7392_v24  ;;  %v7414_v24 = vld [vmem:[#allocation7 + $0x138] sm:$0xff] }
 0x170   : > { %10776 = vst [vmem:[#allocation313_spill] sm:$0xff] %v7394_v3  ;;  %v7416_v3 = vld [vmem:[#allocation7 + $0x140] sm:$0xff] }
 0x171   : > { %10777 = vst [vmem:[#allocation314_spill] sm:$0xff] %v7396_v9  ;;  %v7418_v9 = vld [vmem:[#allocation7 + $0x148] sm:$0xff] }
 0x172   : > { %10778 = vst [vmem:[#allocation315_spill] sm:$0xff] %v7398_v52  ;;  %v7420_v52 = vld [vmem:[#allocation7 + $0x150] sm:$0xff] }
 0x173   : > { %10779 = vst [vmem:[#allocation316_spill] sm:$0xff] %v7400_v43  ;;  %v7422_v43 = vld [vmem:[#allocation7 + $0x158] sm:$0xff] }
 0x174   : > { %10780 = vst [vmem:[#allocation317_spill] sm:$0xff] %v7402_v4  ;;  %v7424_v4 = vld [vmem:[#allocation7 + $0x160] sm:$0xff] }
 0x175   : > { %10781 = vst [vmem:[#allocation318_spill] sm:$0xff] %v7404_v39  ;;  %v7426_v39 = vld [vmem:[#allocation7 + $0x168] sm:$0xff] }
 0x176   : > { %10782 = vst [vmem:[#allocation319_spill] sm:$0xff] %v7406_v51  ;;  %v7428_v51 = vld [vmem:[#allocation7 + $0x170] sm:$0xff] }
 0x177   : > { %10783 = vst [vmem:[#allocation320_spill] sm:$0xff] %v7408_v14  ;;  %v7430_v14 = vld [vmem:[#allocation7 + $0x178] sm:$0xff] }
 0x178   : > { %10784 = vst [vmem:[#allocation321_spill] sm:$0xff] %v7410_v42  ;;  %v7432_v42 = vld [vmem:[#allocation7 + $0x180] sm:$0xff] }
 0x179   : > { %10785 = vst [vmem:[#allocation322_spill] sm:$0xff] %v7412_v19  ;;  %v7434_v19 = vld [vmem:[#allocation7 + $0x188] sm:$0xff] }
 0x17a   : > { %10786 = vst [vmem:[#allocation323_spill] sm:$0xff] %v7414_v24  ;;  %v7436_v24 = vld [vmem:[#allocation7 + $0x190] sm:$0xff] }
 0x17b   : > { %10787 = vst [vmem:[#allocation324_spill] sm:$0xff] %v7416_v3  ;;  %v7438_v3 = vld [vmem:[#allocation7 + $0x198] sm:$0xff] }
 0x17c   : > { %10788 = vst [vmem:[#allocation325_spill] sm:$0xff] %v7418_v9  ;;  %v7440_v9 = vld [vmem:[#allocation7 + $0x1a0] sm:$0xff] }
 0x17d   : > { %10789 = vst [vmem:[#allocation326_spill] sm:$0xff] %v7420_v52  ;;  %v7442_v52 = vld [vmem:[#allocation7 + $0x1a8] sm:$0xff] }
 0x17e   : > { %10790 = vst [vmem:[#allocation327_spill] sm:$0xff] %v7422_v43  ;;  %v7444_v43 = vld [vmem:[#allocation7 + $0x1b0] sm:$0xff] }
 0x17f   : > { %10791 = vst [vmem:[#allocation328_spill] sm:$0xff] %v7424_v4  ;;  %v7446_v4 = vld [vmem:[#allocation7 + $0x1b8] sm:$0xff] }
 0x180   : > { %10792 = vst [vmem:[#allocation329_spill] sm:$0xff] %v7426_v39  ;;  %v7448_v39 = vld [vmem:[#allocation7 + $0x1c0] sm:$0xff] }
 0x181   : > { %10793 = vst [vmem:[#allocation330_spill] sm:$0xff] %v7428_v51  ;;  %v7450_v51 = vld [vmem:[#allocation7 + $0x1c8] sm:$0xff] }
 0x182   : > { %10794 = vst [vmem:[#allocation331_spill] sm:$0xff] %v7430_v14  ;;  %v7452_v14 = vld [vmem:[#allocation7 + $0x1d0] sm:$0xff] }
 0x183   : > { %10795 = vst [vmem:[#allocation332_spill] sm:$0xff] %v7432_v42  ;;  %v7454_v42 = vld [vmem:[#allocation7 + $0x1d8] sm:$0xff] }
 0x184   : > { %10796 = vst [vmem:[#allocation333_spill] sm:$0xff] %v7434_v19  ;;  %v7456_v19 = vld [vmem:[#allocation7 + $0x1e0] sm:$0xff] }
 0x185   : > { %10797 = vst [vmem:[#allocation334_spill] sm:$0xff] %v7436_v24  ;;  %v7458_v24 = vld [vmem:[#allocation7 + $0x1e8] sm:$0xff] }
 0x186   : > { %10798 = vst [vmem:[#allocation335_spill] sm:$0xff] %v7438_v3  ;;  %v7460_v3 = vld [vmem:[#allocation7 + $0x1f0] sm:$0xff] }
 0x187   : > { %10799 = vst [vmem:[#allocation336_spill] sm:$0xff] %v7440_v9  ;;  %v7462_v9 = vld [vmem:[#allocation7 + $0x1f8] sm:$0xff] }
 0x188   : > { %10800 = vst [vmem:[#allocation337_spill] sm:$0xff] %v7442_v52  ;;  %v7464_v52 = vld [vmem:[#allocation7 + $0x200] sm:$0xff] }
 0x189   : > { %10801 = vst [vmem:[#allocation338_spill] sm:$0xff] %v7444_v43  ;;  %v7466_v43 = vld [vmem:[#allocation7 + $0x208] sm:$0xff] }
 0x18a   : > { %10802 = vst [vmem:[#allocation339_spill] sm:$0xff] %v7446_v4  ;;  %v7468_v4 = vld [vmem:[#allocation7 + $0x210] sm:$0xff] }
 0x18b   : > { %10803 = vst [vmem:[#allocation340_spill] sm:$0xff] %v7448_v39  ;;  %v7470_v39 = vld [vmem:[#allocation7 + $0x218] sm:$0xff] }
 0x18c   : > { %10804 = vst [vmem:[#allocation341_spill] sm:$0xff] %v7450_v51  ;;  %v7472_v51 = vld [vmem:[#allocation7 + $0x220] sm:$0xff] }
 0x18d   : > { %10805 = vst [vmem:[#allocation342_spill] sm:$0xff] %v7452_v14  ;;  %v7474_v14 = vld [vmem:[#allocation7 + $0x228] sm:$0xff] }
 0x18e   : > { %10806 = vst [vmem:[#allocation343_spill] sm:$0xff] %v7454_v42  ;;  %v7476_v42 = vld [vmem:[#allocation7 + $0x230] sm:$0xff] }
 0x18f   : > { %10807 = vst [vmem:[#allocation344_spill] sm:$0xff] %v7456_v19  ;;  %v7478_v19 = vld [vmem:[#allocation7 + $0x238] sm:$0xff] }
 0x190   : > { %10808 = vst [vmem:[#allocation345_spill] sm:$0xff] %v7458_v24  ;;  %v7480_v24 = vld [vmem:[#allocation7 + $0x240] sm:$0xff] }
 0x191   : > { %10809 = vst [vmem:[#allocation346_spill] sm:$0xff] %v7460_v3  ;;  %v7482_v3 = vld [vmem:[#allocation7 + $0x248] sm:$0xff] }
 0x192   : > { %10810 = vst [vmem:[#allocation347_spill] sm:$0xff] %v7462_v9  ;;  %v7484_v9 = vld [vmem:[#allocation7 + $0x250] sm:$0xff] }
 0x193   : > { %10811 = vst [vmem:[#allocation348_spill] sm:$0xff] %v7464_v52  ;;  %v7486_v52 = vld [vmem:[#allocation7 + $0x258] sm:$0xff] }
 0x194   : > { %10812 = vst [vmem:[#allocation349_spill] sm:$0xff] %v7466_v43  ;;  %v7488_v43 = vld [vmem:[#allocation7 + $0x260] sm:$0xff] }
 0x195   : > { %10813 = vst [vmem:[#allocation350_spill] sm:$0xff] %v7468_v4  ;;  %v7490_v4 = vld [vmem:[#allocation7 + $0x268] sm:$0xff] }
 0x196   : > { %10814 = vst [vmem:[#allocation351_spill] sm:$0xff] %v7470_v39  ;;  %v7492_v39 = vld [vmem:[#allocation7 + $0x270] sm:$0xff] }
 0x197   : > { %10815 = vst [vmem:[#allocation352_spill] sm:$0xff] %v7472_v51  ;;  %v7494_v51 = vld [vmem:[#allocation7 + $0x278] sm:$0xff] }
 0x198   : > { %10816 = vst [vmem:[#allocation353_spill] sm:$0xff] %v7474_v14  ;;  %v7496_v14 = vld [vmem:[#allocation7 + $0x280] sm:$0xff] }
 0x199   : > { %10817 = vst [vmem:[#allocation354_spill] sm:$0xff] %v7476_v42  ;;  %v7498_v42 = vld [vmem:[#allocation7 + $0x288] sm:$0xff] }
 0x19a   : > { %10818 = vst [vmem:[#allocation355_spill] sm:$0xff] %v7478_v19  ;;  %v7500_v19 = vld [vmem:[#allocation7 + $0x290] sm:$0xff] }
 0x19b   : > { %10819 = vst [vmem:[#allocation356_spill] sm:$0xff] %v7480_v24  ;;  %v7502_v24 = vld [vmem:[#allocation7 + $0x298] sm:$0xff] }
 0x19c   : > { %10820 = vst [vmem:[#allocation357_spill] sm:$0xff] %v7482_v3  ;;  %v7504_v3 = vld [vmem:[#allocation7 + $0x2a0] sm:$0xff] }
 0x19d   : > { %10821 = vst [vmem:[#allocation358_spill] sm:$0xff] %v7484_v9  ;;  %v7506_v9 = vld [vmem:[#allocation7 + $0x2a8] sm:$0xff] }
 0x19e   : > { %10822 = vst [vmem:[#allocation359_spill] sm:$0xff] %v7486_v52  ;;  %v7508_v52 = vld [vmem:[#allocation7 + $0x2b0] sm:$0xff] }
 0x19f   : > { %10823 = vst [vmem:[#allocation360_spill] sm:$0xff] %v7488_v43  ;;  %v7510_v43 = vld [vmem:[#allocation7 + $0x2b8] sm:$0xff] }
 0x1a0   : > { %10824 = vst [vmem:[#allocation361_spill] sm:$0xff] %v7490_v4  ;;  %v7512_v4 = vld [vmem:[#allocation7 + $0x2c0] sm:$0xff] }
 0x1a1   : > { %10825 = vst [vmem:[#allocation362_spill] sm:$0xff] %v7492_v39  ;;  %v7514_v39 = vld [vmem:[#allocation7 + $0x2c8] sm:$0xff] }
 0x1a2   : > { %10826 = vst [vmem:[#allocation363_spill] sm:$0xff] %v7494_v51  ;;  %v7516_v51 = vld [vmem:[#allocation7 + $0x2d0] sm:$0xff] }
 0x1a3   : > { %10827 = vst [vmem:[#allocation364_spill] sm:$0xff] %v7496_v14  ;;  %v7518_v14 = vld [vmem:[#allocation7 + $0x2d8] sm:$0xff] }
 0x1a4   : > { %10828 = vst [vmem:[#allocation365_spill] sm:$0xff] %v7498_v42  ;;  %v7520_v42 = vld [vmem:[#allocation7 + $0x2e0] sm:$0xff] }
 0x1a5   : > { %10829 = vst [vmem:[#allocation366_spill] sm:$0xff] %v7500_v19  ;;  %v7522_v19 = vld [vmem:[#allocation7 + $0x2e8] sm:$0xff] }
 0x1a6   : > { %10830 = vst [vmem:[#allocation367_spill] sm:$0xff] %v7502_v24  ;;  %v7524_v24 = vld [vmem:[#allocation7 + $0x2f0] sm:$0xff] }
 0x1a7   : > { %10831 = vst [vmem:[#allocation368_spill] sm:$0xff] %v7504_v3  ;;  %v7526_v3 = vld [vmem:[#allocation7 + $0x2f8] sm:$0xff] }
 0x1a8   : > { %10832 = vst [vmem:[#allocation369_spill] sm:$0xff] %v7506_v9  ;;  %v7528_v9 = vld [vmem:[#allocation7 + $0x300] sm:$0xff] }
 0x1a9   : > { %10833 = vst [vmem:[#allocation370_spill] sm:$0xff] %v7508_v52  ;;  %v7530_v52 = vld [vmem:[#allocation7 + $0x308] sm:$0xff] }
 0x1aa   : > { %10834 = vst [vmem:[#allocation371_spill] sm:$0xff] %v7510_v43  ;;  %v7532_v43 = vld [vmem:[#allocation7 + $0x310] sm:$0xff] }
 0x1ab   : > { %10835 = vst [vmem:[#allocation372_spill] sm:$0xff] %v7512_v4  ;;  %v7534_v4 = vld [vmem:[#allocation7 + $0x318] sm:$0xff] }
 0x1ac   : > { %10836 = vst [vmem:[#allocation373_spill] sm:$0xff] %v7514_v39  ;;  %v7536_v39 = vld [vmem:[#allocation7 + $0x320] sm:$0xff] }
 0x1ad   : > { %10837 = vst [vmem:[#allocation374_spill] sm:$0xff] %v7516_v51  ;;  %v7538_v51 = vld [vmem:[#allocation7 + $0x328] sm:$0xff] }
 0x1ae   : > { %10838 = vst [vmem:[#allocation375_spill] sm:$0xff] %v7518_v14  ;;  %v7540_v14 = vld [vmem:[#allocation7 + $0x330] sm:$0xff] }
 0x1af   : > { %10839 = vst [vmem:[#allocation376_spill] sm:$0xff] %v7520_v42  ;;  %v7542_v42 = vld [vmem:[#allocation7 + $0x338] sm:$0xff] }
 0x1b0   : > { %10840 = vst [vmem:[#allocation377_spill] sm:$0xff] %v7522_v19  ;;  %v7544_v19 = vld [vmem:[#allocation7 + $0x340] sm:$0xff] }
 0x1b1   : > { %10841 = vst [vmem:[#allocation378_spill] sm:$0xff] %v7524_v24  ;;  %v7546_v24 = vld [vmem:[#allocation7 + $0x348] sm:$0xff] }
 0x1b2   : > { %10842 = vst [vmem:[#allocation379_spill] sm:$0xff] %v7526_v3  ;;  %v7548_v3 = vld [vmem:[#allocation7 + $0x350] sm:$0xff] }
 0x1b3   : > { %10843 = vst [vmem:[#allocation380_spill] sm:$0xff] %v7528_v9  ;;  %v7550_v9 = vld [vmem:[#allocation7 + $0x358] sm:$0xff] }
 0x1b4   : > { %10844 = vst [vmem:[#allocation381_spill] sm:$0xff] %v7530_v52  ;;  %v7552_v52 = vld [vmem:[#allocation7 + $0x360] sm:$0xff] }
 0x1b5   : > { %10845 = vst [vmem:[#allocation382_spill] sm:$0xff] %v7532_v43  ;;  %v7554_v43 = vld [vmem:[#allocation7 + $0x368] sm:$0xff] }
 0x1b6   : > { %10846 = vst [vmem:[#allocation383_spill] sm:$0xff] %v7534_v4  ;;  %v7556_v4 = vld [vmem:[#allocation7 + $0x370] sm:$0xff] }
 0x1b7   : > { %10847 = vst [vmem:[#allocation384_spill] sm:$0xff] %v7536_v39  ;;  %v7558_v39 = vld [vmem:[#allocation7 + $0x378] sm:$0xff] }
 0x1b8   : > { %10848 = vst [vmem:[#allocation385_spill] sm:$0xff] %v7538_v51  ;;  %v7560_v51 = vld [vmem:[#allocation7 + $0x380] sm:$0xff] }
 0x1b9   : > { %10849 = vst [vmem:[#allocation386_spill] sm:$0xff] %v7540_v14  ;;  %v7562_v14 = vld [vmem:[#allocation7 + $0x388] sm:$0xff] }
 0x1ba   : > { %10850 = vst [vmem:[#allocation387_spill] sm:$0xff] %v7542_v42  ;;  %v7564_v42 = vld [vmem:[#allocation7 + $0x390] sm:$0xff] }
 0x1bb   : > { %10851 = vst [vmem:[#allocation388_spill] sm:$0xff] %v7544_v19  ;;  %v7566_v19 = vld [vmem:[#allocation7 + $0x398] sm:$0xff] }
 0x1bc   : > { %10852 = vst [vmem:[#allocation389_spill] sm:$0xff] %v7546_v24  ;;  %v7568_v24 = vld [vmem:[#allocation7 + $0x3a0] sm:$0xff] }
 0x1bd   : > { %10853 = vst [vmem:[#allocation390_spill] sm:$0xff] %v7548_v3  ;;  %v7570_v3 = vld [vmem:[#allocation7 + $0x3a8] sm:$0xff] }
 0x1be   : > { %10854 = vst [vmem:[#allocation391_spill] sm:$0xff] %v7550_v9  ;;  %v7572_v9 = vld [vmem:[#allocation7 + $0x3b0] sm:$0xff] }
 0x1bf   : > { %10855 = vst [vmem:[#allocation392_spill] sm:$0xff] %v7552_v52  ;;  %v7574_v52 = vld [vmem:[#allocation7 + $0x3b8] sm:$0xff] }
 0x1c0   : > { %10856 = vst [vmem:[#allocation393_spill] sm:$0xff] %v7554_v43  ;;  %v7576_v43 = vld [vmem:[#allocation7 + $0x3c0] sm:$0xff] }
 0x1c1   : > { %10857 = vst [vmem:[#allocation394_spill] sm:$0xff] %v7556_v4  ;;  %v7578_v4 = vld [vmem:[#allocation7 + $0x3c8] sm:$0xff] }
 0x1c2   : > { %10858 = vst [vmem:[#allocation395_spill] sm:$0xff] %v7558_v39  ;;  %v7580_v39 = vld [vmem:[#allocation7 + $0x3d0] sm:$0xff] }
 0x1c3   : > { %10859 = vst [vmem:[#allocation396_spill] sm:$0xff] %v7560_v51  ;;  %v7582_v51 = vld [vmem:[#allocation7 + $0x3d8] sm:$0xff] }
 0x1c4   : > { %10860 = vst [vmem:[#allocation397_spill] sm:$0xff] %v7562_v14  ;;  %v7584_v14 = vld [vmem:[#allocation7 + $0x3e0] sm:$0xff] }
 0x1c5   : > { %10861 = vst [vmem:[#allocation398_spill] sm:$0xff] %v7564_v42  ;;  %v7586_v42 = vld [vmem:[#allocation7 + $0x3e8] sm:$0xff] }
 0x1c6   : > { %10862 = vst [vmem:[#allocation399_spill] sm:$0xff] %v7566_v19  ;;  %v7588_v19 = vld [vmem:[#allocation7 + $0x3f0] sm:$0xff] }
 0x1c7   : > { %10863 = vst [vmem:[#allocation400_spill] sm:$0xff] %v7568_v24  ;;  %v7590_v24 = vld [vmem:[#allocation7 + $0x3f8] sm:$0xff] }
 0x1c8   : > { %10864 = vst [vmem:[#allocation401_spill] sm:$0xff] %v7570_v3  ;;  %v7592_v3 = vld [vmem:[#allocation7 + $0x400] sm:$0xff] }
 0x1c9   : > { %10865 = vst [vmem:[#allocation402_spill] sm:$0xff] %v7572_v9  ;;  %v7594_v9 = vld [vmem:[#allocation7 + $0x408] sm:$0xff] }
 0x1ca   : > { %10866 = vst [vmem:[#allocation403_spill] sm:$0xff] %v7574_v52  ;;  %v7596_v52 = vld [vmem:[#allocation7 + $0x410] sm:$0xff] }
 0x1cb   : > { %10867 = vst [vmem:[#allocation404_spill] sm:$0xff] %v7576_v43  ;;  %v7598_v43 = vld [vmem:[#allocation7 + $0x418] sm:$0xff] }
 0x1cc   : > { %10868 = vst [vmem:[#allocation405_spill] sm:$0xff] %v7578_v4  ;;  %v7600_v4 = vld [vmem:[#allocation7 + $0x420] sm:$0xff] }
 0x1cd   : > { %10869 = vst [vmem:[#allocation406_spill] sm:$0xff] %v7580_v39  ;;  %v7602_v39 = vld [vmem:[#allocation7 + $0x428] sm:$0xff] }
 0x1ce   : > { %10870 = vst [vmem:[#allocation407_spill] sm:$0xff] %v7582_v51  ;;  %v7604_v51 = vld [vmem:[#allocation7 + $0x430] sm:$0xff] }
 0x1cf   : > { %10871 = vst [vmem:[#allocation408_spill] sm:$0xff] %v7584_v14  ;;  %v7606_v14 = vld [vmem:[#allocation7 + $0x438] sm:$0xff] }
 0x1d0   : > { %10872 = vst [vmem:[#allocation409_spill] sm:$0xff] %v7586_v42  ;;  %v7608_v42 = vld [vmem:[#allocation7 + $0x440] sm:$0xff] }
 0x1d1   : > { %10873 = vst [vmem:[#allocation410_spill] sm:$0xff] %v7588_v19  ;;  %v7610_v19 = vld [vmem:[#allocation7 + $0x448] sm:$0xff] }
 0x1d2   : > { %10874 = vst [vmem:[#allocation411_spill] sm:$0xff] %v7590_v24  ;;  %v7612_v24 = vld [vmem:[#allocation7 + $0x450] sm:$0xff] }
 0x1d3   : > { %10875 = vst [vmem:[#allocation412_spill] sm:$0xff] %v7592_v3  ;;  %v7614_v3 = vld [vmem:[#allocation7 + $0x458] sm:$0xff] }
 0x1d4   : > { %10876 = vst [vmem:[#allocation413_spill] sm:$0xff] %v7594_v9  ;;  %v7616_v9 = vld [vmem:[#allocation7 + $0x460] sm:$0xff] }
 0x1d5   : > { %10877 = vst [vmem:[#allocation414_spill] sm:$0xff] %v7596_v52  ;;  %v7618_v52 = vld [vmem:[#allocation7 + $0x468] sm:$0xff] }
 0x1d6   : > { %10878 = vst [vmem:[#allocation415_spill] sm:$0xff] %v7598_v43  ;;  %v7620_v43 = vld [vmem:[#allocation7 + $0x470] sm:$0xff] }
 0x1d7   : > { %10879 = vst [vmem:[#allocation416_spill] sm:$0xff] %v7600_v4  ;;  %v7622_v4 = vld [vmem:[#allocation7 + $0x478] sm:$0xff] }
 0x1d8   : > { %10880 = vst [vmem:[#allocation417_spill] sm:$0xff] %v7602_v39  ;;  %v7624_v39 = vld [vmem:[#allocation7 + $0x480] sm:$0xff] }
 0x1d9   : > { %10881 = vst [vmem:[#allocation418_spill] sm:$0xff] %v7604_v51  ;;  %v7626_v51 = vld [vmem:[#allocation7 + $0x488] sm:$0xff] }
 0x1da   : > { %10882 = vst [vmem:[#allocation419_spill] sm:$0xff] %v7606_v14  ;;  %v7628_v14 = vld [vmem:[#allocation7 + $0x490] sm:$0xff] }
 0x1db   : > { %10883 = vst [vmem:[#allocation420_spill] sm:$0xff] %v7608_v42  ;;  %v7630_v42 = vld [vmem:[#allocation7 + $0x498] sm:$0xff] }
 0x1dc   : > { %10884 = vst [vmem:[#allocation421_spill] sm:$0xff] %v7610_v19  ;;  %v7632_v19 = vld [vmem:[#allocation7 + $0x4a0] sm:$0xff] }
 0x1dd   : > { %10885 = vst [vmem:[#allocation422_spill] sm:$0xff] %v7612_v24  ;;  %v7634_v24 = vld [vmem:[#allocation7 + $0x4a8] sm:$0xff] }
 0x1de   : > { %10886 = vst [vmem:[#allocation423_spill] sm:$0xff] %v7614_v3  ;;  %v7636_v3 = vld [vmem:[#allocation7 + $0x4b0] sm:$0xff] }
 0x1df   : > { %10887 = vst [vmem:[#allocation424_spill] sm:$0xff] %v7616_v9  ;;  %v7638_v9 = vld [vmem:[#allocation7 + $0x4b8] sm:$0xff] }
 0x1e0   : > { %10888 = vst [vmem:[#allocation425_spill] sm:$0xff] %v7618_v52  ;;  %v7640_v52 = vld [vmem:[#allocation7 + $0x4c0] sm:$0xff] }
 0x1e1   : > { %10889 = vst [vmem:[#allocation426_spill] sm:$0xff] %v7620_v43  ;;  %v7642_v43 = vld [vmem:[#allocation7 + $0x4c8] sm:$0xff] }
 0x1e2   : > { %10890 = vst [vmem:[#allocation427_spill] sm:$0xff] %v7622_v4  ;;  %v7644_v4 = vld [vmem:[#allocation7 + $0x4d0] sm:$0xff] }
 0x1e3   : > { %10891 = vst [vmem:[#allocation428_spill] sm:$0xff] %v7624_v39  ;;  %v7646_v39 = vld [vmem:[#allocation7 + $0x4d8] sm:$0xff] }
 0x1e4   : > { %10892 = vst [vmem:[#allocation429_spill] sm:$0xff] %v7626_v51  ;;  %v7648_v51 = vld [vmem:[#allocation7 + $0x4e0] sm:$0xff] }
 0x1e5   : > { %10893 = vst [vmem:[#allocation430_spill] sm:$0xff] %v7628_v14  ;;  %v7650_v14 = vld [vmem:[#allocation7 + $0x4e8] sm:$0xff] }
 0x1e6   : > { %10894 = vst [vmem:[#allocation431_spill] sm:$0xff] %v7630_v42  ;;  %v7652_v42 = vld [vmem:[#allocation7 + $0x4f0] sm:$0xff] }
 0x1e7   : > { %10895 = vst [vmem:[#allocation432_spill] sm:$0xff] %v7632_v19  ;;  %v7654_v19 = vld [vmem:[#allocation7 + $0x4f8] sm:$0xff] }
 0x1e8   : > { %10896 = vst [vmem:[#allocation433_spill] sm:$0xff] %v7634_v24  ;;  %v7656_v24 = vld [vmem:[#allocation7 + $0x500] sm:$0xff] }
 0x1e9   : > { %10897 = vst [vmem:[#allocation434_spill] sm:$0xff] %v7636_v3  ;;  %v7658_v3 = vld [vmem:[#allocation7 + $0x508] sm:$0xff] }
 0x1ea   : > { %10898 = vst [vmem:[#allocation435_spill] sm:$0xff] %v7638_v9  ;;  %v7660_v9 = vld [vmem:[#allocation7 + $0x510] sm:$0xff] }
 0x1eb   : > { %10899 = vst [vmem:[#allocation436_spill] sm:$0xff] %v7640_v52  ;;  %v7662_v52 = vld [vmem:[#allocation7 + $0x518] sm:$0xff] }
 0x1ec   : > { %10900 = vst [vmem:[#allocation437_spill] sm:$0xff] %v7642_v43  ;;  %v7664_v43 = vld [vmem:[#allocation7 + $0x520] sm:$0xff] }
 0x1ed   : > { %10901 = vst [vmem:[#allocation438_spill] sm:$0xff] %v7644_v4  ;;  %v7666_v4 = vld [vmem:[#allocation7 + $0x528] sm:$0xff] }
 0x1ee   : > { %10902 = vst [vmem:[#allocation439_spill] sm:$0xff] %v7646_v39  ;;  %v7668_v39 = vld [vmem:[#allocation7 + $0x530] sm:$0xff] }
 0x1ef   : > { %10903 = vst [vmem:[#allocation440_spill] sm:$0xff] %v7648_v51  ;;  %v7670_v51 = vld [vmem:[#allocation7 + $0x538] sm:$0xff] }
 0x1f0   : > { %10904 = vst [vmem:[#allocation441_spill] sm:$0xff] %v7650_v14  ;;  %v7672_v14 = vld [vmem:[#allocation7 + $0x540] sm:$0xff] }
 0x1f1   : > { %10905 = vst [vmem:[#allocation442_spill] sm:$0xff] %v7652_v42  ;;  %v7674_v42 = vld [vmem:[#allocation7 + $0x548] sm:$0xff] }
 0x1f2   : > { %10906 = vst [vmem:[#allocation443_spill] sm:$0xff] %v7654_v19  ;;  %v7676_v19 = vld [vmem:[#allocation7 + $0x550] sm:$0xff] }
 0x1f3   : > { %10907 = vst [vmem:[#allocation444_spill] sm:$0xff] %v7656_v24  ;;  %v7678_v24 = vld [vmem:[#allocation7 + $0x558] sm:$0xff] }
 0x1f4   : > { %10908 = vst [vmem:[#allocation445_spill] sm:$0xff] %v7658_v3  ;;  %v7680_v3 = vld [vmem:[#allocation7 + $0x560] sm:$0xff] }
 0x1f5   : > { %10909 = vst [vmem:[#allocation446_spill] sm:$0xff] %v7660_v9  ;;  %v7682_v9 = vld [vmem:[#allocation7 + $0x568] sm:$0xff] }
 0x1f6   : > { %10910 = vst [vmem:[#allocation447_spill] sm:$0xff] %v7662_v52  ;;  %v7684_v52 = vld [vmem:[#allocation7 + $0x570] sm:$0xff] }
 0x1f7   : > { %10911 = vst [vmem:[#allocation448_spill] sm:$0xff] %v7664_v43  ;;  %v7686_v43 = vld [vmem:[#allocation7 + $0x578] sm:$0xff] }
 0x1f8   : > { %10912 = vst [vmem:[#allocation449_spill] sm:$0xff] %v7666_v4  ;;  %v7688_v4 = vld [vmem:[#allocation7 + $0x580] sm:$0xff] }
 0x1f9   : > { %10913 = vst [vmem:[#allocation450_spill] sm:$0xff] %v7668_v39  ;;  %v7690_v39 = vld [vmem:[#allocation7 + $0x588] sm:$0xff] }
 0x1fa   : > { %10914 = vst [vmem:[#allocation451_spill] sm:$0xff] %v7670_v51  ;;  %v7692_v51 = vld [vmem:[#allocation7 + $0x590] sm:$0xff] }
 0x1fb   : > { %10915 = vst [vmem:[#allocation452_spill] sm:$0xff] %v7672_v14  ;;  %v7694_v14 = vld [vmem:[#allocation7 + $0x598] sm:$0xff] }
 0x1fc   : > { %10916 = vst [vmem:[#allocation453_spill] sm:$0xff] %v7674_v42  ;;  %v7696_v42 = vld [vmem:[#allocation7 + $0x5a0] sm:$0xff] }
 0x1fd   : > { %10917 = vst [vmem:[#allocation454_spill] sm:$0xff] %v7676_v19  ;;  %v7698_v19 = vld [vmem:[#allocation7 + $0x5a8] sm:$0xff] }
 0x1fe   : > { %10918 = vst [vmem:[#allocation455_spill] sm:$0xff] %v7678_v24  ;;  %v7700_v24 = vld [vmem:[#allocation7 + $0x5b0] sm:$0xff] }
 0x1ff   : > { %10919 = vst [vmem:[#allocation456_spill] sm:$0xff] %v7680_v3  ;;  %v7702_v3 = vld [vmem:[#allocation7 + $0x5b8] sm:$0xff] }
 0x200   : > { %10920 = vst [vmem:[#allocation457_spill] sm:$0xff] %v7682_v9  ;;  %v7704_v9 = vld [vmem:[#allocation7 + $0x5c0] sm:$0xff] }
 0x201   : > { %10921 = vst [vmem:[#allocation458_spill] sm:$0xff] %v7684_v52  ;;  %v7706_v52 = vld [vmem:[#allocation7 + $0x5c8] sm:$0xff] }
 0x202   : > { %10922 = vst [vmem:[#allocation459_spill] sm:$0xff] %v7686_v43  ;;  %v7708_v43 = vld [vmem:[#allocation7 + $0x5d0] sm:$0xff] }
 0x203   : > { %10923 = vst [vmem:[#allocation460_spill] sm:$0xff] %v7688_v4  ;;  %v7710_v4 = vld [vmem:[#allocation7 + $0x5d8] sm:$0xff] }
 0x204   : > { %10924 = vst [vmem:[#allocation461_spill] sm:$0xff] %v7690_v39  ;;  %v7712_v39 = vld [vmem:[#allocation7 + $0x5e0] sm:$0xff] }
 0x205   : > { %10925 = vst [vmem:[#allocation462_spill] sm:$0xff] %v7692_v51  ;;  %v7714_v51 = vld [vmem:[#allocation7 + $0x5e8] sm:$0xff] }
 0x206   : > { %10926 = vst [vmem:[#allocation463_spill] sm:$0xff] %v7694_v14  ;;  %v7716_v14 = vld [vmem:[#allocation7 + $0x5f0] sm:$0xff] }
 0x207   : > { %10927 = vst [vmem:[#allocation464_spill] sm:$0xff] %v7696_v42  ;;  %v7718_v42 = vld [vmem:[#allocation7 + $0x5f8] sm:$0xff] }
 0x208   : > { %10928 = vst [vmem:[#allocation465_spill] sm:$0xff] %v7698_v19  ;;  %v7720_v19 = vld [vmem:[#allocation7 + $0x600] sm:$0xff] }
 0x209   : > { %10929 = vst [vmem:[#allocation466_spill] sm:$0xff] %v7700_v24  ;;  %v7722_v24 = vld [vmem:[#allocation7 + $0x608] sm:$0xff] }
 0x20a   : > { %10930 = vst [vmem:[#allocation467_spill] sm:$0xff] %v7702_v3  ;;  %v7724_v3 = vld [vmem:[#allocation7 + $0x610] sm:$0xff] }
 0x20b   : > { %10931 = vst [vmem:[#allocation468_spill] sm:$0xff] %v7704_v9  ;;  %v7726_v9 = vld [vmem:[#allocation7 + $0x618] sm:$0xff] }
 0x20c   : > { %10932 = vst [vmem:[#allocation469_spill] sm:$0xff] %v7706_v52  ;;  %v7728_v52 = vld [vmem:[#allocation7 + $0x620] sm:$0xff] }
 0x20d   : > { %10933 = vst [vmem:[#allocation470_spill] sm:$0xff] %v7708_v43  ;;  %v7730_v43 = vld [vmem:[#allocation7 + $0x628] sm:$0xff] }
 0x20e   : > { %10934 = vst [vmem:[#allocation471_spill] sm:$0xff] %v7710_v4  ;;  %v7732_v4 = vld [vmem:[#allocation7 + $0x630] sm:$0xff] }
 0x20f   : > { %10935 = vst [vmem:[#allocation472_spill] sm:$0xff] %v7712_v39  ;;  %v7734_v39 = vld [vmem:[#allocation7 + $0x638] sm:$0xff] }
 0x210   : > { %10936 = vst [vmem:[#allocation473_spill] sm:$0xff] %v7714_v51  ;;  %v7736_v51 = vld [vmem:[#allocation7 + $0x640] sm:$0xff] }
 0x211   : > { %10937 = vst [vmem:[#allocation474_spill] sm:$0xff] %v7716_v14  ;;  %v7738_v14 = vld [vmem:[#allocation7 + $0x648] sm:$0xff] }
 0x212   : > { %10938 = vst [vmem:[#allocation475_spill] sm:$0xff] %v7718_v42  ;;  %v7740_v42 = vld [vmem:[#allocation7 + $0x650] sm:$0xff] }
 0x213   : > { %10939 = vst [vmem:[#allocation476_spill] sm:$0xff] %v7720_v19  ;;  %v7742_v19 = vld [vmem:[#allocation7 + $0x658] sm:$0xff] }
 0x214   : > { %10940 = vst [vmem:[#allocation477_spill] sm:$0xff] %v7722_v24  ;;  %v7744_v24 = vld [vmem:[#allocation7 + $0x660] sm:$0xff] }
 0x215   : > { %10941 = vst [vmem:[#allocation478_spill] sm:$0xff] %v7724_v3  ;;  %v7746_v3 = vld [vmem:[#allocation7 + $0x668] sm:$0xff] }
 0x216   : > { %10942 = vst [vmem:[#allocation479_spill] sm:$0xff] %v7726_v9  ;;  %v7748_v9 = vld [vmem:[#allocation7 + $0x670] sm:$0xff] }
 0x217   : > { %10943 = vst [vmem:[#allocation480_spill] sm:$0xff] %v7728_v52  ;;  %v7750_v52 = vld [vmem:[#allocation7 + $0x678] sm:$0xff] }
 0x218   : > { %10944 = vst [vmem:[#allocation481_spill] sm:$0xff] %v7730_v43  ;;  %v7752_v43 = vld [vmem:[#allocation7 + $0x680] sm:$0xff] }
 0x219   : > { %10945 = vst [vmem:[#allocation482_spill] sm:$0xff] %v7732_v4  ;;  %v7754_v4 = vld [vmem:[#allocation7 + $0x688] sm:$0xff] }
 0x21a   : > { %10946 = vst [vmem:[#allocation483_spill] sm:$0xff] %v7734_v39  ;;  %v7756_v39 = vld [vmem:[#allocation7 + $0x690] sm:$0xff] }
 0x21b   : > { %10947 = vst [vmem:[#allocation484_spill] sm:$0xff] %v7736_v51  ;;  %v7758_v51 = vld [vmem:[#allocation7 + $0x698] sm:$0xff] }
 0x21c   : > { %10948 = vst [vmem:[#allocation485_spill] sm:$0xff] %v7738_v14  ;;  %v7760_v14 = vld [vmem:[#allocation7 + $0x6a0] sm:$0xff] }
 0x21d   : > { %10949 = vst [vmem:[#allocation486_spill] sm:$0xff] %v7740_v42  ;;  %v7762_v42 = vld [vmem:[#allocation7 + $0x6a8] sm:$0xff] }
 0x21e   : > { %10950 = vst [vmem:[#allocation487_spill] sm:$0xff] %v7742_v19  ;;  %v7764_v19 = vld [vmem:[#allocation7 + $0x6b0] sm:$0xff] }
 0x21f   : > { %10951 = vst [vmem:[#allocation488_spill] sm:$0xff] %v7744_v24  ;;  %v7766_v24 = vld [vmem:[#allocation7 + $0x6b8] sm:$0xff] }
 0x220   : > { %10952 = vst [vmem:[#allocation489_spill] sm:$0xff] %v7746_v3  ;;  %v7768_v3 = vld [vmem:[#allocation7 + $0x6c0] sm:$0xff] }
 0x221   : > { %10953 = vst [vmem:[#allocation490_spill] sm:$0xff] %v7748_v9  ;;  %v7770_v9 = vld [vmem:[#allocation7 + $0x6c8] sm:$0xff] }
 0x222   : > { %10954 = vst [vmem:[#allocation491_spill] sm:$0xff] %v7750_v52  ;;  %v7772_v52 = vld [vmem:[#allocation7 + $0x6d0] sm:$0xff] }
 0x223   : > { %10955 = vst [vmem:[#allocation492_spill] sm:$0xff] %v7752_v43  ;;  %v7774_v43 = vld [vmem:[#allocation7 + $0x6d8] sm:$0xff] }
 0x224   : > { %10956 = vst [vmem:[#allocation493_spill] sm:$0xff] %v7754_v4  ;;  %v7776_v4 = vld [vmem:[#allocation7 + $0x6e0] sm:$0xff] }
 0x225   : > { %10957 = vst [vmem:[#allocation494_spill] sm:$0xff] %v7756_v39  ;;  %v7778_v39 = vld [vmem:[#allocation7 + $0x6e8] sm:$0xff] }
 0x226   : > { %10958 = vst [vmem:[#allocation495_spill] sm:$0xff] %v7758_v51  ;;  %v7780_v51 = vld [vmem:[#allocation7 + $0x6f0] sm:$0xff] }
 0x227   : > { %10959 = vst [vmem:[#allocation496_spill] sm:$0xff] %v7760_v14  ;;  %v7782_v14 = vld [vmem:[#allocation7 + $0x6f8] sm:$0xff] }
 0x228   : > { %10960 = vst [vmem:[#allocation497_spill] sm:$0xff] %v7762_v42  ;;  %v7784_v42 = vld [vmem:[#allocation7 + $0x700] sm:$0xff] }
 0x229   : > { %10961 = vst [vmem:[#allocation498_spill] sm:$0xff] %v7764_v19  ;;  %v7786_v19 = vld [vmem:[#allocation7 + $0x708] sm:$0xff] }
 0x22a   : > { %10962 = vst [vmem:[#allocation499_spill] sm:$0xff] %v7766_v24  ;;  %v7788_v24 = vld [vmem:[#allocation7 + $0x710] sm:$0xff] }
 0x22b   : > { %10963 = vst [vmem:[#allocation500_spill] sm:$0xff] %v7768_v3  ;;  %v7790_v3 = vld [vmem:[#allocation7 + $0x718] sm:$0xff] }
 0x22c   : > { %10964 = vst [vmem:[#allocation501_spill] sm:$0xff] %v7770_v9  ;;  %v7792_v9 = vld [vmem:[#allocation7 + $0x720] sm:$0xff] }
 0x22d   : > { %10965 = vst [vmem:[#allocation502_spill] sm:$0xff] %v7772_v52  ;;  %v7794_v52 = vld [vmem:[#allocation7 + $0x728] sm:$0xff] }
 0x22e   : > { %10966 = vst [vmem:[#allocation503_spill] sm:$0xff] %v7774_v43  ;;  %v7796_v43 = vld [vmem:[#allocation7 + $0x730] sm:$0xff] }
 0x22f   : > { %10967 = vst [vmem:[#allocation504_spill] sm:$0xff] %v7776_v4  ;;  %v7798_v4 = vld [vmem:[#allocation7 + $0x738] sm:$0xff] }
 0x230   : > { %10968 = vst [vmem:[#allocation505_spill] sm:$0xff] %v7778_v39  ;;  %v7800_v39 = vld [vmem:[#allocation7 + $0x740] sm:$0xff] }
 0x231   : > { %10969 = vst [vmem:[#allocation506_spill] sm:$0xff] %v7780_v51  ;;  %v7802_v51 = vld [vmem:[#allocation7 + $0x748] sm:$0xff] }
 0x232   : > { %10970 = vst [vmem:[#allocation507_spill] sm:$0xff] %v7782_v14  ;;  %v7804_v14 = vld [vmem:[#allocation7 + $0x750] sm:$0xff] }
 0x233   : > { %10971 = vst [vmem:[#allocation508_spill] sm:$0xff] %v7784_v42  ;;  %v7806_v42 = vld [vmem:[#allocation7 + $0x758] sm:$0xff] }
 0x234   : > { %10972 = vst [vmem:[#allocation509_spill] sm:$0xff] %v7786_v19  ;;  %v7808_v19 = vld [vmem:[#allocation7 + $0x760] sm:$0xff] }
 0x235   : > { %10973 = vst [vmem:[#allocation510_spill] sm:$0xff] %v7788_v24  ;;  %v7810_v24 = vld [vmem:[#allocation7 + $0x768] sm:$0xff] }
 0x236   : > { %10974 = vst [vmem:[#allocation511_spill] sm:$0xff] %v7790_v3  ;;  %v7812_v3 = vld [vmem:[#allocation7 + $0x770] sm:$0xff] }
 0x237   : > { %10975 = vst [vmem:[#allocation512_spill] sm:$0xff] %v7792_v9  ;;  %v7814_v9 = vld [vmem:[#allocation7 + $0x778] sm:$0xff] }
 0x238   : > { %10976 = vst [vmem:[#allocation513_spill] sm:$0xff] %v7794_v52  ;;  %v7816_v52 = vld [vmem:[#allocation7 + $0x780] sm:$0xff] }
 0x239   : > { %10977 = vst [vmem:[#allocation514_spill] sm:$0xff] %v7796_v43  ;;  %v7838_v43 = vld [vmem:[#allocation7 + $0x7d8] sm:$0xff] }
 0x23a   : > { %10978 = vst [vmem:[#allocation515_spill] sm:$0xff] %v7798_v4  ;;  %v7818_v4 = vld [vmem:[#allocation7 + $0x788] sm:$0xff] }
 0x23b   : > { %10979 = vst [vmem:[#allocation516_spill] sm:$0xff] %v7800_v39  ;;  %v7820_v39 = vld [vmem:[#allocation7 + $0x790] sm:$0xff] }
 0x23c   : > { %10980 = vst [vmem:[#allocation517_spill] sm:$0xff] %v7802_v51  ;;  %v7822_v51 = vld [vmem:[#allocation7 + $0x798] sm:$0xff] }
 0x23d   : > { %10981 = vst [vmem:[#allocation518_spill] sm:$0xff] %v7804_v14  ;;  %v7824_v14 = vld [vmem:[#allocation7 + $0x7a0] sm:$0xff] }
 0x23e   : > { %10982 = vst [vmem:[#allocation519_spill] sm:$0xff] %v7806_v42  ;;  %v7826_v42 = vld [vmem:[#allocation7 + $0x7a8] sm:$0xff] }
 0x23f   : > { %10983 = vst [vmem:[#allocation520_spill] sm:$0xff] %v7808_v19  ;;  %v7828_v19 = vld [vmem:[#allocation7 + $0x7b0] sm:$0xff] }
 0x240   : > { %10984 = vst [vmem:[#allocation521_spill] sm:$0xff] %v7810_v24  ;;  %v7830_v24 = vld [vmem:[#allocation7 + $0x7b8] sm:$0xff] }
 0x241   : > { %10985 = vst [vmem:[#allocation522_spill] sm:$0xff] %v7812_v3  ;;  %v7832_v3 = vld [vmem:[#allocation7 + $0x7c0] sm:$0xff] }
 0x242   : > { %10986 = vst [vmem:[#allocation523_spill] sm:$0xff] %v7814_v9  ;;  %v7834_v9 = vld [vmem:[#allocation7 + $0x7c8] sm:$0xff] }
 0x243   : > { %10987 = vst [vmem:[#allocation524_spill] sm:$0xff] %v7816_v52  ;;  %v7836_v52 = vld [vmem:[#allocation7 + $0x7d0] sm:$0xff] }
 0x244   : > { %10988 = vst [vmem:[#allocation525_spill] sm:$0xff] %v7818_v4  ;;  %v7840_v4 = vld [vmem:[#allocation7 + $0x7e0] sm:$0xff] }
 0x245   : > { %10989 = vst [vmem:[#allocation526_spill] sm:$0xff] %v7820_v39  ;;  %v7842_v39 = vld [vmem:[#allocation7 + $0x7e8] sm:$0xff] }
 0x246   : > { %10990 = vst [vmem:[#allocation527_spill] sm:$0xff] %v7822_v51  ;;  %v7844_v51 = vld [vmem:[#allocation7 + $0x7f0] sm:$0xff] }
 0x247   : > { %10991 = vst [vmem:[#allocation528_spill] sm:$0xff] %v7824_v14  ;;  %v7846_v14 = vld [vmem:[#allocation7 + $0x7f8] sm:$0xff] }
 0x248   : > { %10992 = vst [vmem:[#allocation529_spill] sm:$0xff] %v7826_v42  ;;  %v7872_v42 = vmov 0.0625  }
 0x249   : > { %10993 = vst [vmem:[#allocation530_spill] sm:$0xff] %v7828_v19  ;;  %v7870_v19 = vmov 0.0625  }
 0x24a   : > { %10994 = vst [vmem:[#allocation531_spill] sm:$0xff] %v7830_v24  ;;  %v7852_v24 = vmov 0.0625  }
 0x24b   : > { %10995 = vst [vmem:[#allocation532_spill] sm:$0xff] %v7832_v3  ;;  %v7854_v3 = vmov 0.0625  }
 0x24c   : > { %10996 = vst [vmem:[#allocation533_spill] sm:$0xff] %v7834_v9  ;;  %v7856_v9 = vmov 0.0625  }
 0x24d   : > { %10997 = vst [vmem:[#allocation534_spill] sm:$0xff] %v7836_v52  ;;  %v7858_v52 = vmov 0.0625  }
 0x24e   : > { %10998 = vst [vmem:[#allocation535_spill] sm:$0xff] %v7838_v43  ;;  %v7860_v43 = vmov 0.0625  }
 0x24f   : > { %10999 = vst [vmem:[#allocation536_spill] sm:$0xff] %v7840_v4  ;;  %v7862_v4 = vmov 0.0625  }
 0x250   : > { %11000 = vst [vmem:[#allocation537_spill] sm:$0xff] %v7842_v39  ;;  %v7864_v39 = vmov 0.0625  }
 0x251   : > { %11001 = vst [vmem:[#allocation538_spill] sm:$0xff] %v7844_v51  ;;  %v7866_v51 = vmov 0.0625  }
 0x252   : > { %11002 = vst [vmem:[#allocation539_spill] sm:$0xff] %v7846_v14  ;;  %v7868_v14 = vmov 0.0625  }
 0x253   : > { %11003 = vst [vmem:[#allocation540_spill] sm:$0xff] %v7968_v56 }
 0x254   : > { %11004 = vst [vmem:[#allocation541_spill] sm:$0xff] %v7970_v63 }
 0x255   : > { %11005 = vst [vmem:[#allocation542_spill] sm:$0xff] %v7972_v49 }
 0x256   : > { %11006 = vst [vmem:[#allocation543_spill] sm:$0xff] %v7976_v48 }
 0x257 LB: >> { %11011 = vst [vmem:[#allocation544_spill] sm:$0xff] %v6132_v24  ;;  %1431 = vmatpush.msra.mxu2 %v6196_v13  ;;  %1013 = vmatpush.msra.mxu0 %v6324_v30  ;;  %s948_s27 = sadd.s32 1, %s6388_s26   ;;  %s6388_s26 = sphi %s7980_s26, %s11834_s26   ;;  %v6384_v54 = vphi %v7978_v54, %v11833_v54   ;;  %v6376_v55 = vphi %v7974_v55, %v11830_v55   ;;  %v6360_v15 = vphi %v7966_v15, %v11823_v15   ;;  %v6356_v62 = vphi %v7964_v62, %v11822_v62   ;;  %v6352_v29 = vphi %v7962_v29, %v11821_v29   ;;  %v6348_v16 = vphi %v7960_v16, %v11820_v16   ;;  %v6344_v32 = vphi %v7958_v32, %v11819_v32   ;;  %v6340_v11 = vphi %v7956_v11, %v11818_v11   ;;  %v6336_v41 = vphi %v7954_v41, %v11817_v41   ;;  %v6332_v36 = vphi %v7952_v36, %v11816_v36   ;;  %v6328_v34 = vphi %v7950_v34, %v11815_v34   ;;  %v6324_v30 = vphi %v7948_v30, %v11814_v30   ;;  %v6320_v25 = vphi %v7946_v25, %v11813_v25   ;;  %v6316_v60 = vphi %v7944_v60, %v11812_v60   ;;  %v6312_v20 = vphi %v7942_v20, %v11811_v20   ;;  %v6308_v45 = vphi %v7940_v45, %v11810_v45   ;;  %v6304_v46 = vphi %v7938_v46, %v11809_v46   ;;  %v6300_v37 = vphi %v7936_v37, %v11808_v37   ;;  %v6296_v61 = vphi %v7934_v61, %v11807_v61   ;;  %v6292_v1 = vphi %v7932_v1, %v11806_v1   ;;  %v6288_v40 = vphi %v7930_v40, %v11805_v40   ;;  %v6284_v58 = vphi %v7928_v58, %v11804_v58   ;;  %v6280_v0 = vphi %v7926_v0, %v11803_v0   ;;  %v6276_v38 = vphi %v7924_v38, %v11802_v38   ;;  %v6272_v22 = vphi %v7922_v22, %v11801_v22   ;;  %v6268_v53 = vphi %v7920_v53, %v11800_v53   ;;  %v6264_v35 = vphi %v7918_v35, %v11799_v35   ;;  %v6260_v44 = vphi %v7916_v44, %v11798_v44   ;;  %v6256_v23 = vphi %v7914_v23, %v11797_v23   ;;  %v6252_v47 = vphi %v7912_v47, %v11796_v47   ;;  %v6248_v8 = vphi %v7910_v8, %v11795_v8   ;;  %v6244_v6 = vphi %v7908_v6, %v11794_v6   ;;  %v6240_v21 = vphi %v7906_v21, %v11793_v21   ;;  %v6236_v12 = vphi %v7904_v12, %v11792_v12   ;;  %v6232_v27 = vphi %v7902_v27, %v11791_v27   ;;  %v6228_v7 = vphi %v7900_v7, %v11790_v7   ;;  %v6224_v59 = vphi %v7898_v59, %v11789_v59   ;;  %v6220_v10 = vphi %v7896_v10, %v11788_v10   ;;  %v6216_v57 = vphi %v7894_v57, %v11787_v57   ;;  %v6212_v28 = vphi %v7892_v28, %v11786_v28   ;;  %v6208_v50 = vphi %v7890_v50, %v11785_v50   ;;  %v6204_v5 = vphi %v7888_v5, %v11784_v5   ;;  %v6200_v17 = vphi %v7886_v17, %v11783_v17   ;;  %v6196_v13 = vphi %v7884_v13, %v11782_v13   ;;  %v6192_v2 = vphi %v7882_v2, %v11781_v2   ;;  %v6188_v33 = vphi %v7880_v33, %v11780_v33   ;;  %v6184_v26 = vphi %v7878_v26, %v11779_v26   ;;  %v6180_v18 = vphi %v7876_v18, %v11778_v18   ;;  %v6176_v31 = vphi %v7874_v31, %v11777_v31   ;;  %v6172_v42 = vphi %v7872_v42, %v11776_v42   ;;  %v6168_v19 = vphi %v7870_v19, %v11775_v19   ;;  %v6164_v14 = vphi %v7868_v14, %v11774_v14   ;;  %v6160_v51 = vphi %v7866_v51, %v11773_v51   ;;  %v6156_v39 = vphi %v7864_v39, %v11772_v39   ;;  %v6152_v4 = vphi %v7862_v4, %v11771_v4   ;;  %v6148_v43 = vphi %v7860_v43, %v11770_v43   ;;  %v6144_v52 = vphi %v7858_v52, %v11769_v52   ;;  %v6140_v9 = vphi %v7856_v9, %v11768_v9   ;;  %v6136_v3 = vphi %v7854_v3, %v11766_v3   ;;  %v6132_v24 = vphi %v7852_v24, %v11764_v24  }
 0x258   : >> { %11012 = vst [vmem:[#allocation545_spill] sm:$0xff] %v6136_v3  ;;  %1640 = vmatpush.msra.mxu3 %v6132_v24  ;;  %1222 = vmatpush.msra.mxu1 %v6260_v44  ;;  %v11079_v24 = vld [vmem:[#allocation14_spill] sm:$0xff]  ;;  %p9399_p1 = scmp.ge.s32.totalorder %s948_s27, 5   ;;  %s11834_s26 = smov %s948_s27 }
 0x259   : >> { %11013 = vst [vmem:[#allocation546_spill] sm:$0xff] %v6140_v9  ;;  %1432 = vmatpush.msra.mxu2 %v6200_v17  ;;  %1014 = vmatpush.msra.mxu0 %v6328_v34  ;;  %s4894_s29 = sshll.u32 (%p9399_p1), %s6441_s16, 3  ;;  %s4589_s17 = sshll.u32 (%p9399_p1), %s7850_s18, 4  ;;  %s4590_s17 = int_to_ptr.vmem [resolvable:$true] %s4589_s17 }
 0x25a   : >> { %11014 = vst [vmem:[#allocation547_spill] sm:$0xff] %v6144_v52  ;;  %v11069_v56 = vld [vmem:[#allocation540_spill] sm:$0xff]  ;;  %1641 = vmatpush.msra.mxu3 %v6136_v3  ;;  %1223 = vmatpush.msra.mxu1 %v6264_v35  ;;  %s4588_s8 = scalar_lea.hbm (%p9399_p1), %s10278_s3, %s4894_s29  ;;  %s4578_s16 = scalar_lea.sflag (%p9399_p1), [#allocation4], %s6516_s24 }
 0x25b   : >> { %11015 = vst [vmem:[#allocation548_spill] sm:$0xff] %v6148_v43  ;;  %v11071_v63 = vld [vmem:[#allocation541_spill] sm:$0xff]  ;;  %1433 = vmatpush.msra.mxu2 %v6204_v5  ;;  %1015 = vmatpush.msra.mxu0 %v6332_v36  ;;  %v11080_v3 = vld [vmem:[#allocation12_spill] sm:$0xff]  ;;  %s4591_s20 = sshll.u32 (%p9399_p1), %s4588_s8, 4  ;;  %s5818_s30 = scalar_lea.hbm (%p9399_p1), %s10278_s3, 128  ;;  %s4592_s20 = int_to_ptr.hbm [resolvable:$true] %s4591_s20 }
 0x25c   : >> { %11016 = vst [vmem:[#allocation549_spill] sm:$0xff] %v6152_v4  ;;  %v11073_v49 = vld [vmem:[#allocation542_spill] sm:$0xff]  ;;  %1642 = vmatpush.msra.mxu3 %v6140_v9  ;;  %1224 = vmatpush.msra.mxu1 %v6268_v53  ;;  %v11081_v9 = vld [vmem:[#allocation15_spill] sm:$0xff]  ;;  %s5812_s11 = sshra.s32 (%p9399_p1), %s4592_s20, 4  ;;  %s5813_s11 = int_to_ptr.hbm [resolvable:$true] %s5812_s11 }
 0x25d   : >> { %11017 = vst [vmem:[#allocation550_spill] sm:$0xff] %v6156_v39  ;;  %v11076_v48 = vld [vmem:[#allocation543_spill] sm:$0xff]  ;;  %1434 = vmatpush.msra.mxu2 %v6208_v50  ;;  %1016 = vmatpush.msra.mxu0 %v6336_v41  ;;  %s5814_s21 = scalar_lea.hbm (%p9399_p1), %s5813_s11, 64  ;;  %p5819_p2 = scmp.lt.s32.totalorder (%p9399_p1), %s5813_s11, %s10278_s3 }
 0x25e   : >> { %11018 = vst [vmem:[#allocation551_spill] sm:$0xff] %v6160_v51  ;;  %1643 = vmatpush.msra.mxu3 %v6144_v52  ;;  %1225 = vmatpush.msra.mxu1 %v6272_v22  ;;  %v11082_v52 = vld [vmem:[#allocation13_spill] sm:$0xff]  ;;  %p5815_p4 = scmp.ne.s32.totalorder (%p9399_p1), %s5813_s11, %s5814_s21  ;;  %p5820_p9 = scmp.lt.s32.totalorder (%p9399_p1), %s5818_s30, %s5814_s21 }
 0x25f   : >> { %11019 = vst [vmem:[#allocation552_spill] sm:$0xff] %v6164_v14  ;;  %1435 = vmatpush.msra.mxu2 %v6212_v28  ;;  %1017 = vmatpush.msra.mxu0 %v6340_v11 }
 0x260   : >> { %11020 = vst [vmem:[#allocation553_spill] sm:$0xff] %v6168_v19  ;;  %1644 = vmatpush.msra.mxu3 %v6148_v43  ;;  %1226 = vmatpush.msra.mxu1 %v6276_v38  ;;  %v11083_v43 = vld [vmem:[#allocation18_spill] sm:$0xff]  ;;  %p5816_p8 = pnand (%p9399_p1), %p5815_p4, %p6486_p3  ;;  %p5821_p10 = por (%p9399_p1), %p5820_p9, %p5819_p2 }
 0x261   : >> { %11021 = vst [vmem:[#allocation554_spill] sm:$0xff] %v6172_v42  ;;  %1436 = vmatpush.msra.mxu2 %v6216_v57  ;;  %1018 = vmatpush.msra.mxu0 %v6344_v32 }
 0x262   : >> { %11022 = vst [vmem:[#allocation555_spill] sm:$0xff] %v6176_v31  ;;  %1645 = vmatpush.msra.mxu3 %v6152_v4  ;;  %1227 = vmatpush.msra.mxu1 %v6280_v0  ;;  %v11084_v4 = vld [vmem:[#allocation16_spill] sm:$0xff]  ;;  %p5817_p11 = pneg (%p9399_p1), %p5816_p8 }
 0x263   : >> { %11023 = vst [vmem:[#allocation556_spill] sm:$0xff] %v6180_v18  ;;  %1437 = vmatpush.msra.mxu2 %v6220_v10  ;;  %1019 = vmatpush.msra.mxu0 %v6348_v16 }
 0x264   : >> { %11024 = vst [vmem:[#allocation557_spill] sm:$0xff] %v6184_v26  ;;  %1646 = vmatpush.msra.mxu3 %v6156_v39  ;;  %1228 = vmatpush.msra.mxu1 %v6284_v58  ;;  %v11085_v39 = vld [vmem:[#allocation19_spill] sm:$0xff]  ;;  %p5822_p12 = pnand (%p9399_p1), %p5821_p10, %p5817_p11 }
 0x265   : >> { %11025 = vst [vmem:[#allocation558_spill] sm:$0xff] %v6188_v33  ;;  %1438 = vmatpush.msra.mxu2 %v6224_v59  ;;  %1020 = vmatpush.msra.mxu0 %v6352_v29 }
 0x266   : >> { %11026 = vst [vmem:[#allocation559_spill] sm:$0xff] %v6192_v2  ;;  %1647 = vmatpush.msra.mxu3 %v6160_v51  ;;  %1229 = vmatpush.msra.mxu1 %v6288_v40  ;;  %v11086_v51 = vld [vmem:[#allocation17_spill] sm:$0xff] }
 0x267   : >> { %11027 = vst [vmem:[#allocation560_spill] sm:$0xff] %v6196_v13  ;;  %1439 = vmatpush.msra.mxu2 %v6228_v7  ;;  %1021 = vmatpush.msra.mxu0 %v6356_v62 }
 0x268   : >> { %11028 = vst [vmem:[#allocation561_spill] sm:$0xff] %v6200_v17  ;;  %1648 = vmatpush.msra.mxu3 %v6164_v14  ;;  %1230 = vmatpush.msra.mxu1 %v6292_v1  ;;  %v11088_v14 = vld [vmem:[#allocation20_spill] sm:$0xff] }
 0x269   : >> { %11029 = vst [vmem:[#allocation562_spill] sm:$0xff] %v6204_v5  ;;  %1440 = vmatpush.msra.mxu2 %v6232_v27  ;;  %1022 = vmatpush.msra.mxu0 %v6360_v15 }
 0x26a   : >> { %11030 = vst [vmem:[#allocation563_spill] sm:$0xff] %v6208_v50  ;;  %1649 = vmatpush.msra.mxu3 %v6168_v19  ;;  %1231 = vmatpush.msra.mxu1 %v6296_v61  ;;  %v11089_v19 = vld [vmem:[#allocation23_spill] sm:$0xff] }
 0x26b   : >> { %11031 = vst [vmem:[#allocation564_spill] sm:$0xff] %v6212_v28  ;;  %1441 = vmatpush.msra.mxu2 %v6236_v12  ;;  %1023 = vmatpush.msra.mxu0 %v11069_v56 }
 0x26c   : >> { %11032 = vst [vmem:[#allocation565_spill] sm:$0xff] %v6216_v57  ;;  %1650 = vmatpush.msra.mxu3 %v6172_v42  ;;  %1232 = vmatpush.msra.mxu1 %v6300_v37  ;;  %v11092_v42 = vld [vmem:[#allocation24_spill] sm:$0xff] }
 0x26d   : >> { %11033 = vst [vmem:[#allocation566_spill] sm:$0xff] %v6220_v10  ;;  %1442 = vmatpush.msra.mxu2 %v6240_v21  ;;  %1024 = vmatpush.msra.mxu0 %v11071_v63 }
 0x26e   : >> { %11034 = vst [vmem:[#allocation567_spill] sm:$0xff] %v6224_v59  ;;  %1651 = vmatpush.msra.mxu3 %v6176_v31  ;;  %1233 = vmatpush.msra.mxu1 %v6304_v46  ;;  %v11143_v31 = vld [vmem:[#allocation92_spill] sm:$0xff] }
 0x26f   : >> { %11035 = vst [vmem:[#allocation568_spill] sm:$0xff] %v6228_v7  ;;  %1443 = vmatpush.msra.mxu2 %v6244_v6  ;;  %1025 = vmatpush.msra.mxu0 %v11073_v49  ;;  %v11188_v7 = vld [vmem:[#allocation136_spill] sm:$0xff] }
 0x270   : >> { %11036 = vst [vmem:[#allocation569_spill] sm:$0xff] %v6232_v27  ;;  %1652 = vmatpush.msra.mxu3 %v6180_v18  ;;  %1234 = vmatpush.msra.mxu1 %v6308_v45  ;;  %v11144_v18 = vld [vmem:[#allocation90_spill] sm:$0xff]  ;;  %v11189_v27 = vld [vmem:[#allocation139_spill] sm:$0xff] }
 0x271   : >> { %11037 = vst [vmem:[#allocation570_spill] sm:$0xff] %v6236_v12  ;;  %1444 = vmatpush.msra.mxu2 %v6248_v8  ;;  %1026 = vmatpush.msra.mxu0 %v6376_v55  ;;  %v11190_v12 = vld [vmem:[#allocation137_spill] sm:$0xff] }
 0x272   : >> { %11038 = vst [vmem:[#allocation571_spill] sm:$0xff] %v6240_v21  ;;  %1653 = vmatpush.msra.mxu3 %v6184_v26  ;;  %1235 = vmatpush.msra.mxu1 %v6312_v20  ;;  %v11191_v21 = vld [vmem:[#allocation142_spill] sm:$0xff] }
 0x273   : >> { %11039 = vst [vmem:[#allocation572_spill] sm:$0xff] %v6244_v6  ;;  %1445 = vmatpush.msra.mxu2 %v6252_v47  ;;  %1027 = vmatpush.msra.mxu0 %v11076_v48 }
 0x274   : >> { %11040 = vst [vmem:[#allocation573_spill] sm:$0xff] %v6248_v8  ;;  %1654 = vmatpush.msra.mxu3 %v6188_v33  ;;  %1236 = vmatpush.msra.mxu1 %v6316_v60  ;;  %v11193_v8 = vld [vmem:[#allocation143_spill] sm:$0xff] }
 0x275   : >> { %11041 = vst [vmem:[#allocation574_spill] sm:$0xff] %v6252_v47  ;;  %1446 = vmatpush.msra.mxu2 %v6256_v23  ;;  %1028 = vmatpush.msra.mxu0 %v6384_v54 }
 0x276   : >> { %11042 = vst [vmem:[#allocation575_spill] sm:$0xff] %v6256_v23  ;;  %1447 = vmatmul.f32.vlgmr.msra.gmra.mxu2 %v11079_v24  ;;  %1655 = vmatpush.msra.mxu3 %v6192_v2  ;;  %v11087_v24 = vld [vmem:[#allocation22_spill] sm:$0xff] }
 0x277   : >> { %11043 = vst [vmem:[#allocation576_spill] sm:$0xff] %v6260_v44  ;;  %1029 = vmatmul.f32.vlgmr.msra.gmra.mxu0 %v11080_v3  ;;  %1656 = vmatmul.f32.vlgmr.msra.gmra.mxu3 %v11081_v9  ;;  %v11090_v3 = vld [vmem:[#allocation21_spill] sm:$0xff]  ;;  %v11091_v9 = vld [vmem:[#allocation26_spill] sm:$0xff] }
 0x278   : >> { %11044 = vst [vmem:[#allocation577_spill] sm:$0xff] %v6264_v35  ;;  %1237 = vmatpush.msra.mxu1 %v6320_v25  ;;  %v11195_v44 = vld [vmem:[#allocation146_spill] sm:$0xff]  ;;  %v11196_v35 = vld [vmem:[#allocation144_spill] sm:$0xff] }
 0x279   : >> { %11045 = vst [vmem:[#allocation578_spill] sm:$0xff] %v6268_v53  ;;  %1238 = vmatmul.f32.vlgmr.msra.gmra.mxu1 %v11082_v52  ;;  %v11093_v52 = vld [vmem:[#allocation27_spill] sm:$0xff] }
 0x27a   : >> { %11046 = vst [vmem:[#allocation579_spill] sm:$0xff] %v6272_v22  ;;  %v11198_v22 = vld [vmem:[#allocation145_spill] sm:$0xff] }
 0x27b   : >> { %11047 = vst [vmem:[#allocation580_spill] sm:$0xff] %v6276_v38 }
 0x27c   : >> { %11048 = vst [vmem:[#allocation581_spill] sm:$0xff] %v6280_v0  ;;  %v11199_v0 = vld [vmem:[#allocation150_spill] sm:$0xff] }
 0x27d   : >> { %11049 = vst [vmem:[#allocation582_spill] sm:$0xff] %v6284_v58  ;;  %v11200_v58 = vld [vmem:[#allocation148_spill] sm:$0xff] }
 0x27e   : >> { %11050 = vst [vmem:[#allocation583_spill] sm:$0xff] %v6288_v40  ;;  %1450 = vmatmul.f32.gmra.mxu2 %v11083_v43  ;;  %v11094_v43 = vld [vmem:[#allocation25_spill] sm:$0xff]  ;;  %v11201_v40 = vld [vmem:[#allocation151_spill] sm:$0xff] }
 0x27f   : >> { %11051 = vst [vmem:[#allocation584_spill] sm:$0xff] %v6292_v1  ;;  %1032 = vmatmul.f32.gmra.mxu0 %v11084_v4  ;;  %1659 = vmatmul.f32.gmra.mxu3 %v11085_v39  ;;  %v11095_v4 = vld [vmem:[#allocation30_spill] sm:$0xff]  ;;  %v11096_v39 = vld [vmem:[#allocation28_spill] sm:$0xff] }
 0x280   : >> { %11052 = vst [vmem:[#allocation585_spill] sm:$0xff] %v6296_v61  ;;  %v11202_v61 = vld [vmem:[#allocation149_spill] sm:$0xff] }
 0x281   : >> { %11053 = vst [vmem:[#allocation586_spill] sm:$0xff] %v6300_v37  ;;  %1241 = vmatmul.f32.gmra.mxu1 %v11086_v51  ;;  %v11097_v51 = vld [vmem:[#allocation31_spill] sm:$0xff] }
 0x282   : >> { %11054 = vst [vmem:[#allocation587_spill] sm:$0xff] %v6304_v46 }
 0x283   : >> { %11055 = vst [vmem:[#allocation588_spill] sm:$0xff] %v6308_v45 }
 0x284   : >> { %11056 = vst [vmem:[#allocation589_spill] sm:$0xff] %v6312_v20 }
 0x285   : >> { %11057 = vst [vmem:[#allocation590_spill] sm:$0xff] %v6316_v60 }
 0x286   : >> { %11058 = vst [vmem:[#allocation591_spill] sm:$0xff] %v6320_v25  ;;  %1453 = vmatmul.f32.gmra.mxu2 %v11087_v24  ;;  %v11098_v24 = vld [vmem:[#allocation29_spill] sm:$0xff] }
 0x287   : >> { %11059 = vst [vmem:[#allocation592_spill] sm:$0xff] %v6324_v30  ;;  %1035 = vmatmul.f32.gmra.mxu0 %v11088_v14  ;;  %1662 = vmatmul.f32.gmra.mxu3 %v11089_v19  ;;  %v11099_v14 = vld [vmem:[#allocation34_spill] sm:$0xff]  ;;  %v11100_v19 = vld [vmem:[#allocation32_spill] sm:$0xff]  ;;  %v11205_v30 = vld [vmem:[#allocation155_spill] sm:$0xff] }
 0x288   : >> { %11060 = vst [vmem:[#allocation593_spill] sm:$0xff] %v6328_v34 }
 0x289   : >> { %11061 = vst [vmem:[#allocation594_spill] sm:$0xff] %v6332_v36  ;;  %1244 = vmatmul.f32.gmra.mxu1 %v11090_v3  ;;  %v11101_v3 = vld [vmem:[#allocation37_spill] sm:$0xff] }
 0x28a   : >> { %11062 = vst [vmem:[#allocation595_spill] sm:$0xff] %v6336_v41  ;;  %v11389_v41 = vld [vmem:[#allocation329_spill] sm:$0xff] }
 0x28b   : >> { %11063 = vst [vmem:[#allocation596_spill] sm:$0xff] %v6340_v11 }
 0x28c   : >> { %11064 = vst [vmem:[#allocation597_spill] sm:$0xff] %v6344_v32  ;;  %v11390_v32 = vld [vmem:[#allocation314_spill] sm:$0xff] }
 0x28d   : >> { %11065 = vst [vmem:[#allocation598_spill] sm:$0xff] %v6348_v16  ;;  %v11391_v16 = vld [vmem:[#allocation332_spill] sm:$0xff] }
 0x28e   : >> { %11066 = vst [vmem:[#allocation599_spill] sm:$0xff] %v6352_v29  ;;  %1456 = vmatmul.f32.gmra.mxu2 %v11091_v9  ;;  %v11102_v9 = vld [vmem:[#allocation33_spill] sm:$0xff] }
 0x28f   : >> { %11067 = vst [vmem:[#allocation600_spill] sm:$0xff] %v6356_v62  ;;  %1038 = vmatmul.f32.gmra.mxu0 %v11092_v42  ;;  %1665 = vmatmul.f32.gmra.mxu3 %v11093_v52  ;;  %v11103_v42 = vld [vmem:[#allocation40_spill] sm:$0xff]  ;;  %v11104_v52 = vld [vmem:[#allocation38_spill] sm:$0xff] }
 0x290   : >> { %11068 = vst [vmem:[#allocation601_spill] sm:$0xff] %v6360_v15 }
 0x291   : >> { %11070 = vst [vmem:[#allocation540_spill] sm:$0xff] %v11069_v56  ;;  %1247 = vmatmul.f32.gmra.mxu1 %v11094_v43  ;;  %v11105_v43 = vld [vmem:[#allocation41_spill] sm:$0xff]  ;;  %v11393_v56 = vld [vmem:[#allocation318_spill] sm:$0xff] }
 0x292   : >> { %11072 = vst [vmem:[#allocation541_spill] sm:$0xff] %v11071_v63  ;;  %v11394_v63 = vld [vmem:[#allocation336_spill] sm:$0xff] }
 0x293   : >> { %11074 = vst [vmem:[#allocation542_spill] sm:$0xff] %v11073_v49  ;;  %v11395_v49 = vld [vmem:[#allocation337_spill] sm:$0xff] }
 0x294   : >> { %11075 = vst [vmem:[#allocation602_spill] sm:$0xff] %v6376_v55 }
 0x295   : >> { %11077 = vst [vmem:[#allocation543_spill] sm:$0xff] %v11076_v48 }
 0x296   : >> { %11078 = vst [vmem:[#allocation603_spill] sm:$0xff] %v6384_v54  ;;  %1459 = vmatmul.f32.gmra.mxu2 %v11095_v4  ;;  %v11106_v4 = vld [vmem:[#allocation39_spill] sm:$0xff] }
 0x297   : >> { %1041 = vmatmul.f32.gmra.mxu0 %v11096_v39  ;;  %1668 = vmatmul.f32.gmra.mxu3 %v11097_v51  ;;  %v11107_v39 = vld [vmem:[#allocation46_spill] sm:$0xff]  ;;  %v11108_v51 = vld [vmem:[#allocation44_spill] sm:$0xff] }
 0x299   : >> { %1250 = vmatmul.f32.gmra.mxu1 %v11098_v24  ;;  %v11109_v24 = vld [vmem:[#allocation47_spill] sm:$0xff] }
 0x29e   : >> { %1462 = vmatmul.f32.gmra.mxu2 %v11099_v14  ;;  %v11110_v14 = vld [vmem:[#allocation45_spill] sm:$0xff] }
 0x29f   : >> { %1044 = vmatmul.f32.gmra.mxu0 %v11100_v19  ;;  %1671 = vmatmul.f32.gmra.mxu3 %v11101_v3  ;;  %v11111_v19 = vld [vmem:[#allocation52_spill] sm:$0xff] }
 0x2a0   : >> { %v11112_v3 = vld [vmem:[#allocation48_spill] sm:$0xff] }
 0x2a1   : >> { %1253 = vmatmul.f32.gmra.mxu1 %v11102_v9  ;;  %v11113_v9 = vld [vmem:[#allocation53_spill] sm:$0xff] }
 0x2a6   : >> { %1465 = vmatmul.f32.gmra.mxu2 %v11103_v42  ;;  %v11114_v42 = vld [vmem:[#allocation51_spill] sm:$0xff] }
 0x2a7   : >> { %1047 = vmatmul.f32.gmra.mxu0 %v11104_v52  ;;  %1674 = vmatmul.f32.gmra.mxu3 %v11105_v43  ;;  %v11115_v52 = vld [vmem:[#allocation56_spill] sm:$0xff]  ;;  %v11116_v43 = vld [vmem:[#allocation54_spill] sm:$0xff] }
 0x2a9   : >> { %1256 = vmatmul.f32.gmra.mxu1 %v11106_v4  ;;  %v11117_v4 = vld [vmem:[#allocation57_spill] sm:$0xff] }
 0x2ae   : >> { %1468 = vmatmul.f32.gmra.mxu2 %v11107_v39  ;;  %v11118_v39 = vld [vmem:[#allocation55_spill] sm:$0xff] }
 0x2af   : >> { %1050 = vmatmul.f32.gmra.mxu0 %v11108_v51  ;;  %1677 = vmatmul.f32.gmra.mxu3 %v11109_v24  ;;  %v11119_v51 = vld [vmem:[#allocation62_spill] sm:$0xff] }
 0x2b0   : >> { %v11120_v24 = vld [vmem:[#allocation58_spill] sm:$0xff] }
 0x2b1   : >> { %1259 = vmatmul.f32.gmra.mxu1 %v11110_v14  ;;  %v11121_v14 = vld [vmem:[#allocation63_spill] sm:$0xff] }
 0x2b6   : >> { %1471 = vmatmul.f32.gmra.mxu2 %v11111_v19  ;;  %v11122_v19 = vld [vmem:[#allocation61_spill] sm:$0xff] }
 0x2b7   : >> { %1053 = vmatmul.f32.gmra.mxu0 %v11112_v3  ;;  %1680 = vmatmul.f32.gmra.mxu3 %v11113_v9  ;;  %v11123_v3 = vld [vmem:[#allocation66_spill] sm:$0xff]  ;;  %v11124_v9 = vld [vmem:[#allocation64_spill] sm:$0xff] }
 0x2b9   : >> { %1262 = vmatmul.f32.gmra.mxu1 %v11114_v42  ;;  %v11125_v42 = vld [vmem:[#allocation69_spill] sm:$0xff] }
 0x2be   : >> { %1474 = vmatmul.f32.gmra.mxu2 %v11115_v52  ;;  %v11126_v52 = vld [vmem:[#allocation65_spill] sm:$0xff] }
 0x2bf   : >> { %1056 = vmatmul.f32.gmra.mxu0 %v11116_v43  ;;  %1683 = vmatmul.f32.gmra.mxu3 %v11117_v4  ;;  %v11127_v43 = vld [vmem:[#allocation72_spill] sm:$0xff]  ;;  %v11128_v4 = vld [vmem:[#allocation70_spill] sm:$0xff] }
 0x2c1   : >> { %1265 = vmatmul.f32.gmra.mxu1 %v11118_v39  ;;  %v11129_v39 = vld [vmem:[#allocation73_spill] sm:$0xff] }
 0x2c6   : >> { %1477 = vmatmul.f32.gmra.mxu2 %v11119_v51  ;;  %v11130_v51 = vld [vmem:[#allocation71_spill] sm:$0xff] }
 0x2c7   : >> { %1059 = vmatmul.f32.gmra.mxu0 %v11120_v24  ;;  %1686 = vmatmul.f32.gmra.mxu3 %v11121_v14  ;;  %v11131_v24 = vld [vmem:[#allocation78_spill] sm:$0xff] }
 0x2c8   : >> { %v11132_v14 = vld [vmem:[#allocation74_spill] sm:$0xff] }
 0x2c9   : >> { %1268 = vmatmul.f32.gmra.mxu1 %v11122_v19  ;;  %v11133_v19 = vld [vmem:[#allocation79_spill] sm:$0xff] }
 0x2ce   : >> { %1480 = vmatmul.f32.gmra.mxu2 %v11123_v3  ;;  %v11134_v3 = vld [vmem:[#allocation77_spill] sm:$0xff] }
 0x2cf   : >> { %1062 = vmatmul.f32.gmra.mxu0 %v11124_v9  ;;  %1689 = vmatmul.f32.gmra.mxu3 %v11125_v42  ;;  %v11135_v9 = vld [vmem:[#allocation82_spill] sm:$0xff]  ;;  %v11136_v42 = vld [vmem:[#allocation80_spill] sm:$0xff] }
 0x2d1   : >> { %1271 = vmatmul.f32.gmra.mxu1 %v11126_v52  ;;  %v11137_v52 = vld [vmem:[#allocation83_spill] sm:$0xff] }
 0x2d6   : >> { %1483 = vmatmul.f32.gmra.mxu2 %v11127_v43  ;;  %v11138_v43 = vld [vmem:[#allocation81_spill] sm:$0xff] }
 0x2d7   : >> { %1065 = vmatmul.f32.gmra.mxu0 %v11128_v4  ;;  %1692 = vmatmul.f32.gmra.mxu3 %v11129_v39  ;;  %v11139_v4 = vld [vmem:[#allocation88_spill] sm:$0xff] }
 0x2d8   : >> { %v11140_v39 = vld [vmem:[#allocation84_spill] sm:$0xff] }
 0x2d9   : >> { %1274 = vmatmul.f32.gmra.mxu1 %v11130_v51  ;;  %v11141_v51 = vld [vmem:[#allocation89_spill] sm:$0xff] }
 0x2de   : >> { %1486 = vmatmul.f32.gmra.mxu2 %v11131_v24  ;;  %v11142_v24 = vld [vmem:[#allocation85_spill] sm:$0xff] }
 0x2df   : >> { %1068 = vmatmul.f32.gmra.mxu0 %v11132_v14  ;;  %1695 = vmatmul.f32.gmra.mxu3 %v11133_v19 }
 0x2e1   : >> { %1277 = vmatmul.f32.gmra.mxu1 %v11134_v3 }
 0x2e6   : >> { %1489 = vmatmul.f32.gmra.mxu2 %v11135_v9 }
 0x2e7   : >> { %1071 = vmatmul.f32.gmra.mxu0 %v11136_v42  ;;  %1698 = vmatmul.f32.gmra.mxu3 %v11137_v52  ;;  %v11145_v42 = vld [vmem:[#allocation93_spill] sm:$0xff] }
 0x2e9   : >> { %1280 = vmatmul.f32.gmra.mxu1 %v11138_v43  ;;  %v11146_v43 = vld [vmem:[#allocation91_spill] sm:$0xff] }
 0x2ee   : >> { %1492 = vmatmul.f32.gmra.mxu2 %v11139_v4 }
 0x2ef   : >> { %1074 = vmatmul.f32.gmra.mxu0 %v11140_v39  ;;  %1701 = vmatmul.f32.gmra.mxu3 %v11141_v51 }
 0x2f1   : >> { %1283 = vmatmul.f32.gmra.mxu1 %v11142_v24  ;;  %v11147_v24 = vld [vmem:[#allocation96_spill] sm:$0xff] }
 0x2f4   : >> { %v1030_v14 = vpop.f32.mrf.mxu0 }
 0x2f5   : >> { %v1031_v19 = vadd.f32 1e-20, %v1030_v14 }
 0x2f6   : >> { %1495 = vmatmul.f32.gmra.mxu2 %v11143_v31  ;;  %v1239_v3 = vpop.f32.mrf.mxu1  ;;  %v11148_v31 = vld [vmem:[#allocation94_spill] sm:$0xff] }
 0x2f7   : >> { %v1240_v9 = vadd.f32 %v1239_v3, %v1031_v19  ;;  %1077 = vmatmul.f32.gmra.mxu0 %v11144_v18  ;;  %1704 = vmatmul.f32.gmra.mxu3 %v11145_v42  ;;  %v11149_v19 = vld [vmem:[#allocation97_spill] sm:$0xff]  ;;  %v11150_v3 = vld [vmem:[#allocation95_spill] sm:$0xff] }
 0x2f9   : >> { %v1448_v52 = vpop.f32.mrf.mxu2  ;;  %1286 = vmatmul.f32.gmra.mxu1 %v11146_v43 }
 0x2fa   : >> { %v1449_v4 = vadd.f32 %v1448_v52, %v1240_v9  ;;  %v1657_v26 = vpop.f32.mrf.mxu3  ;;  %v11151_v52 = vld [vmem:[#allocation100_spill] sm:$0xff] }
 0x2fc   : >> { %v8309_v39 = vadd.f32 %v1657_v26, %v1449_v4  ;;  %v1033_v51 = vpop.f32.mrf.mxu0 }
 0x2fd   : >> { %v1034_v33 = vadd.f32 1e-20, %v1033_v51 }
 0x2fe   : >> { %1498 = vmatmul.f32.gmra.mxu2 %v11147_v24  ;;  %v1242_v14 = vpop.f32.mrf.mxu1  ;;  %v11152_v24 = vld [vmem:[#allocation98_spill] sm:$0xff] }
 0x2ff   : >> { %v1243_v2 = vadd.f32 %v1242_v14, %v1034_v33  ;;  %1080 = vmatmul.f32.gmra.mxu0 %v11148_v31  ;;  %1707 = vmatmul.f32.gmra.mxu3 %v11149_v19  ;;  %v11153_v33 = vld [vmem:[#allocation101_spill] sm:$0xff]  ;;  %v11154_v31 = vld [vmem:[#allocation99_spill] sm:$0xff] }
 0x301   : >> { %v1451_v18 = vpop.f32.mrf.mxu2  ;;  %1289 = vmatmul.f32.gmra.mxu1 %v11150_v3 }
 0x302   : >> { %v1452_v42 = vadd.f32 %v1451_v18, %v1243_v2  ;;  %v1660_v13 = vpop.f32.mrf.mxu3  ;;  %v11155_v18 = vld [vmem:[#allocation104_spill] sm:$0xff] }
 0x304   : >> { %v8315_v43 = vadd.f32 %v1660_v13, %v1452_v42  ;;  %v1036_v9 = vpop.f32.mrf.mxu0 }
 0x305   : >> { %v1037_v26 = vadd.f32 1e-20, %v1036_v9 }
 0x306   : >> { %1501 = vmatmul.f32.gmra.mxu2 %v11151_v52  ;;  %v1245_v4 = vpop.f32.mrf.mxu1  ;;  %v11156_v52 = vld [vmem:[#allocation102_spill] sm:$0xff] }
 0x307   : >> { %v1246_v51 = vadd.f32 %v1245_v4, %v1037_v26  ;;  %1083 = vmatmul.f32.gmra.mxu0 %v11152_v24  ;;  %1710 = vmatmul.f32.gmra.mxu3 %v11153_v33  ;;  %v11157_v26 = vld [vmem:[#allocation105_spill] sm:$0xff]  ;;  %v11158_v24 = vld [vmem:[#allocation103_spill] sm:$0xff] }
 0x309   : >> { %v1454_v14 = vpop.f32.mrf.mxu2  ;;  %1292 = vmatmul.f32.gmra.mxu1 %v11154_v31 }
 0x30a   : >> { %v1455_v19 = vadd.f32 %v1454_v14, %v1246_v51  ;;  %v1663_v17 = vpop.f32.mrf.mxu3  ;;  %v11159_v14 = vld [vmem:[#allocation108_spill] sm:$0xff] }
 0x30c   : >> { %v8321_v3 = vadd.f32 %v1663_v17, %v1455_v19  ;;  %v1039_v2 = vpop.f32.mrf.mxu0 }
 0x30d   : >> { %v1040_v13 = vadd.f32 1e-20, %v1039_v2 }
 0x30e   : >> { %1504 = vmatmul.f32.gmra.mxu2 %v11155_v18  ;;  %v1248_v42 = vpop.f32.mrf.mxu1  ;;  %v11160_v18 = vld [vmem:[#allocation106_spill] sm:$0xff] }
 0x30f   : >> { %v1249_v9 = vadd.f32 %v1248_v42, %v1040_v13  ;;  %1086 = vmatmul.f32.gmra.mxu0 %v11156_v52  ;;  %1713 = vmatmul.f32.gmra.mxu3 %v11157_v26  ;;  %v11161_v13 = vld [vmem:[#allocation109_spill] sm:$0xff]  ;;  %v11162_v52 = vld [vmem:[#allocation107_spill] sm:$0xff] }
 0x311   : >> { %v1457_v4 = vpop.f32.mrf.mxu2  ;;  %1295 = vmatmul.f32.gmra.mxu1 %v11158_v24 }
 0x312   : >> { %v1458_v33 = vadd.f32 %v1457_v4, %v1249_v9  ;;  %v1666_v5 = vpop.f32.mrf.mxu3  ;;  %v11163_v4 = vld [vmem:[#allocation112_spill] sm:$0xff] }
 0x314   : >> { %v8327_v31 = vadd.f32 %v1666_v5, %v1458_v33  ;;  %v1042_v51 = vpop.f32.mrf.mxu0 }
 0x315   : >> { %v1043_v17 = vadd.f32 1e-20, %v1042_v51 }
 0x316   : >> { %1507 = vmatmul.f32.gmra.mxu2 %v11159_v14  ;;  %v1251_v19 = vpop.f32.mrf.mxu1  ;;  %v11164_v14 = vld [vmem:[#allocation110_spill] sm:$0xff] }
 0x317   : >> { %v1252_v2 = vadd.f32 %v1251_v19, %v1043_v17  ;;  %1089 = vmatmul.f32.gmra.mxu0 %v11160_v18  ;;  %1716 = vmatmul.f32.gmra.mxu3 %v11161_v13  ;;  %v11165_v17 = vld [vmem:[#allocation113_spill] sm:$0xff]  ;;  %v11166_v18 = vld [vmem:[#allocation111_spill] sm:$0xff] }
 0x319   : >> { %v1460_v42 = vpop.f32.mrf.mxu2  ;;  %1298 = vmatmul.f32.gmra.mxu1 %v11162_v52 }
 0x31a   : >> { %v1461_v26 = vadd.f32 %v1460_v42, %v1252_v2  ;;  %v1669_v50 = vpop.f32.mrf.mxu3  ;;  %v11167_v42 = vld [vmem:[#allocation118_spill] sm:$0xff] }
 0x31c   : >> { %v8333_v24 = vadd.f32 %v1669_v50, %v1461_v26  ;;  %v1045_v9 = vpop.f32.mrf.mxu0 }
 0x31d   : >> { %v1046_v5 = vadd.f32 1e-20, %v1045_v9 }
 0x31e   : >> { %1510 = vmatmul.f32.gmra.mxu2 %v11163_v4  ;;  %v1254_v33 = vpop.f32.mrf.mxu1  ;;  %v11168_v4 = vld [vmem:[#allocation116_spill] sm:$0xff] }
 0x31f   : >> { %v1255_v51 = vadd.f32 %v1254_v33, %v1046_v5  ;;  %1092 = vmatmul.f32.gmra.mxu0 %v11164_v14  ;;  %1719 = vmatmul.f32.gmra.mxu3 %v11165_v17  ;;  %v11169_v5 = vld [vmem:[#allocation119_spill] sm:$0xff]  ;;  %v11170_v14 = vld [vmem:[#allocation117_spill] sm:$0xff] }
 0x321   : >> { %v1463_v19 = vpop.f32.mrf.mxu2  ;;  %1301 = vmatmul.f32.gmra.mxu1 %v11166_v18 }
 0x322   : >> { %v1464_v13 = vadd.f32 %v1463_v19, %v1255_v51  ;;  %v1672_v28 = vpop.f32.mrf.mxu3  ;;  %v11171_v19 = vld [vmem:[#allocation122_spill] sm:$0xff] }
 0x324   : >> { %v8339_v52 = vadd.f32 %v1672_v28, %v1464_v13  ;;  %v1048_v2 = vpop.f32.mrf.mxu0 }
 0x325   : >> { %v1049_v50 = vadd.f32 1e-20, %v1048_v2 }
 0x326   : >> { %1513 = vmatmul.f32.gmra.mxu2 %v11167_v42  ;;  %v1257_v26 = vpop.f32.mrf.mxu1  ;;  %v11172_v42 = vld [vmem:[#allocation120_spill] sm:$0xff] }
 0x327   : >> { %v1258_v9 = vadd.f32 %v1257_v26, %v1049_v50  ;;  %1095 = vmatmul.f32.gmra.mxu0 %v11168_v4  ;;  %1722 = vmatmul.f32.gmra.mxu3 %v11169_v5  ;;  %v11173_v50 = vld [vmem:[#allocation123_spill] sm:$0xff]  ;;  %v11174_v4 = vld [vmem:[#allocation121_spill] sm:$0xff] }
 0x329   : >> { %v1466_v33 = vpop.f32.mrf.mxu2  ;;  %1304 = vmatmul.f32.gmra.mxu1 %v11170_v14 }
 0x32a   : >> { %v1467_v17 = vadd.f32 %v1466_v33, %v1258_v9  ;;  %v1675_v57 = vpop.f32.mrf.mxu3  ;;  %v11175_v33 = vld [vmem:[#allocation126_spill] sm:$0xff] }
 0x32c   : >> { %v8345_v18 = vadd.f32 %v1675_v57, %v1467_v17  ;;  %v1051_v51 = vpop.f32.mrf.mxu0 }
 0x32d   : >> { %v1052_v28 = vadd.f32 1e-20, %v1051_v51 }
 0x32e   : >> { %1516 = vmatmul.f32.gmra.mxu2 %v11171_v19  ;;  %v1260_v13 = vpop.f32.mrf.mxu1  ;;  %v11176_v19 = vld [vmem:[#allocation124_spill] sm:$0xff] }
 0x32f   : >> { %v1261_v2 = vadd.f32 %v1260_v13, %v1052_v28  ;;  %1098 = vmatmul.f32.gmra.mxu0 %v11172_v42  ;;  %1725 = vmatmul.f32.gmra.mxu3 %v11173_v50  ;;  %v11177_v28 = vld [vmem:[#allocation127_spill] sm:$0xff]  ;;  %v11178_v42 = vld [vmem:[#allocation125_spill] sm:$0xff] }
 0x331   : >> { %v1469_v26 = vpop.f32.mrf.mxu2  ;;  %1307 = vmatmul.f32.gmra.mxu1 %v11174_v4 }
 0x332   : >> { %v1470_v5 = vadd.f32 %v1469_v26, %v1261_v2  ;;  %v1678_v10 = vpop.f32.mrf.mxu3 }
 0x334   : >> { %v8351_v14 = vadd.f32 %v1678_v10, %v1470_v5  ;;  %v1054_v9 = vpop.f32.mrf.mxu0  ;;  %v11179_v10 = vld [vmem:[#allocation130_spill] sm:$0xff]  ;;  %v11180_v5 = vld [vmem:[#allocation128_spill] sm:$0xff] }
 0x335   : >> { %v1055_v57 = vadd.f32 1e-20, %v1054_v9  ;;  %v11181_v9 = vld [vmem:[#allocation131_spill] sm:$0xff] }
 0x336   : >> { %1519 = vmatmul.f32.gmra.mxu2 %v11175_v33  ;;  %v1263_v17 = vpop.f32.mrf.mxu1  ;;  %v11182_v33 = vld [vmem:[#allocation129_spill] sm:$0xff] }
 0x337   : >> { %v1264_v51 = vadd.f32 %v1263_v17, %v1055_v57  ;;  %1101 = vmatmul.f32.gmra.mxu0 %v11176_v19  ;;  %1728 = vmatmul.f32.gmra.mxu3 %v11177_v28  ;;  %v11184_v28 = vld [vmem:[#allocation132_spill] sm:$0xff] }
 0x339   : >> { %v1472_v13 = vpop.f32.mrf.mxu2  ;;  %1310 = vmatmul.f32.gmra.mxu1 %v11178_v42 }
 0x33a   : >> { %v1473_v50 = vadd.f32 %v1472_v13, %v1264_v51  ;;  %v1681_v59 = vpop.f32.mrf.mxu3  ;;  %v11183_v51 = vld [vmem:[#allocation134_spill] sm:$0xff]  ;;  %v11185_v13 = vld [vmem:[#allocation135_spill] sm:$0xff] }
 0x33c   : >> { %v8357_v4 = vadd.f32 %v1681_v59, %v1473_v50  ;;  %v1057_v2 = vpop.f32.mrf.mxu0  ;;  %v11186_v50 = vld [vmem:[#allocation133_spill] sm:$0xff] }
 0x33e   : >> { %1522 = vmatmul.f32.gmra.mxu2 %v11179_v10  ;;  %v8360_v26 = vpop.f32.mrf.mxu1 }
 0x33f   : >> { %1104 = vmatmul.f32.gmra.mxu0 %v11180_v5  ;;  %1731 = vmatmul.f32.gmra.mxu3 %v11181_v9  ;;  %v11187_v9 = vld [vmem:[#allocation138_spill] sm:$0xff] }
 0x341   : >> { %v8364_v57 = vpop.f32.mrf.mxu2  ;;  %1313 = vmatmul.f32.gmra.mxu1 %v11182_v33 }
 0x342   : >> { %v8367_v17 = vpop.f32.mrf.mxu3 }
 0x344   : >> { %v1060_v19 = vpop.f32.mrf.mxu0 }
 0x346   : >> { %1525 = vmatmul.f32.gmra.mxu2 %v11183_v51  ;;  %v1269_v59 = vpop.f32.mrf.mxu1 }
 0x347   : >> { %1107 = vmatmul.f32.gmra.mxu0 %v11184_v28  ;;  %1734 = vmatmul.f32.gmra.mxu3 %v11185_v13 }
 0x349   : >> { %v8372_v42 = vpop.f32.mrf.mxu2  ;;  %1316 = vmatmul.f32.gmra.mxu1 %v11186_v50  ;;  %v11192_v50 = vld [vmem:[#allocation140_spill] sm:$0xff] }
 0x34a   : >> { %v8375_v10 = vpop.f32.mrf.mxu3 }
 0x34c   : >> { %v1063_v5 = vpop.f32.mrf.mxu0 }
 0x34d   : >> { %v1064_v37 = vadd.f32 1e-20, %v1063_v5  ;;  %v11206_v5 = vld [vmem:[#allocation153_spill] sm:$0xff] }
 0x34e   : >> { %1528 = vmatmul.f32.gmra.mxu2 %v11187_v9  ;;  %v1272_v33 = vpop.f32.mrf.mxu1  ;;  %v11194_v9 = vld [vmem:[#allocation141_spill] sm:$0xff] }
 0x34f   : >> { %1110 = vmatmul.f32.gmra.mxu0 %v11188_v7  ;;  %1737 = vmatmul.f32.gmra.mxu3 %v11189_v27 }
 0x351   : >> { %v1481_v51 = vpop.f32.mrf.mxu2  ;;  %1319 = vmatmul.f32.gmra.mxu1 %v11190_v12  ;;  %v11197_v12 = vld [vmem:[#allocation147_spill] sm:$0xff] }
 0x352   : >> { %v8381_v28 = vpop.f32.mrf.mxu3 }
 0x354   : >> { %v1066_v13 = vpop.f32.mrf.mxu0 }
 0x356   : >> { %1531 = vmatmul.f32.gmra.mxu2 %v11191_v21  ;;  %v1275_v6 = vpop.f32.mrf.mxu1 }
 0x357   : >> { %1113 = vmatmul.f32.gmra.mxu0 %v11192_v50  ;;  %1740 = vmatmul.f32.gmra.mxu3 %v11193_v8 }
 0x359   : >> { %v1484_v47 = vpop.f32.mrf.mxu2  ;;  %1322 = vmatmul.f32.gmra.mxu1 %v11194_v9 }
 0x35a   : >> { %v1693_v23 = vpop.f32.mrf.mxu3 }
 0x35c   : >> { %v1069_v7 = vpop.f32.mrf.mxu0 }
 0x35d   : >> { %v1070_v9 = vadd.f32 1e-20, %v1069_v7  ;;  %v11204_v7 = vld [vmem:[#allocation152_spill] sm:$0xff] }
 0x35e   : >> { %1534 = vmatmul.f32.gmra.mxu2 %v11195_v44  ;;  %v1278_v27 = vpop.f32.mrf.mxu1 }
 0x35f   : >> { %1116 = vmatmul.f32.gmra.mxu0 %v11196_v35  ;;  %1743 = vmatmul.f32.gmra.mxu3 %v11197_v12  ;;  %v1067_v35 = vadd.f32 1e-20, %v1066_v13  ;;  %v1279_v46 = vadd.f32 %v1278_v27, %v1070_v9 }
 0x361   : >> { %v1487_v53 = vpop.f32.mrf.mxu2  ;;  %1325 = vmatmul.f32.gmra.mxu1 %v11198_v22  ;;  %v1276_v60 = vadd.f32 %v1275_v6, %v1067_v35 }
 0x362   : >> { %v1696_v21 = vpop.f32.mrf.mxu3 }
 0x364   : >> { %v1072_v38 = vpop.f32.mrf.mxu0 }
 0x365   : >> { %v1073_v50 = vadd.f32 1e-20, %v1072_v38  ;;  %v1061_v38 = vadd.f32 1e-20, %v1060_v19 }
 0x366   : >> { %1537 = vmatmul.f32.gmra.mxu2 %v11199_v0  ;;  %v1281_v8 = vpop.f32.mrf.mxu1  ;;  %v11203_v0 = vld [vmem:[#allocation154_spill] sm:$0xff] }
 0x367   : >> { %1119 = vmatmul.f32.gmra.mxu0 %v11200_v58  ;;  %1746 = vmatmul.f32.gmra.mxu3 %v11201_v40  ;;  %v1282_v44 = vadd.f32 %v1281_v8, %v1073_v50  ;;  %v1058_v40 = vadd.f32 1e-20, %v1057_v2  ;;  %v1273_v50 = vadd.f32 %v1272_v33, %v1064_v37  ;;  %v1488_v8 = vadd.f32 %v1487_v53, %v1279_v46 }
 0x368   : >> { %v1270_v27 = vadd.f32 %v1269_v59, %v1061_v38  ;;  %v11208_v59 = vld [vmem:[#allocation156_spill] sm:$0xff] }
 0x369   : >> { %v1490_v1 = vpop.f32.mrf.mxu2  ;;  %1328 = vmatmul.f32.gmra.mxu1 %v11202_v61  ;;  %v1267_v6 = vadd.f32 %v8360_v26, %v1058_v40  ;;  %v1697_v35 = vadd.f32 %v1696_v21, %v1488_v8  ;;  %v11209_v26 = vld [vmem:[#allocation159_spill] sm:$0xff] }
 0x36a   : >> { %v1699_v12 = vpop.f32.mrf.mxu3  ;;  %v1491_v45 = vadd.f32 %v1490_v1, %v1282_v44  ;;  %v1485_v1 = vadd.f32 %v1484_v47, %v1276_v60  ;;  %v1482_v44 = vadd.f32 %v1481_v51, %v1273_v50  ;;  %v1479_v46 = vadd.f32 %v8372_v42, %v1270_v27  ;;  %v11210_v51 = vld [vmem:[#allocation157_spill] sm:$0xff]  ;;  %v11212_v50 = vld [vmem:[#allocation162_spill] sm:$0xff]  ;;  %v11214_v27 = vld [vmem:[#allocation160_spill] sm:$0xff] }
 0x36b   : >> { %v1476_v60 = vadd.f32 %v8364_v57, %v1267_v6 }
 0x36c   : >> { %v1075_v22 = vpop.f32.mrf.mxu0  ;;  %v1700_v61 = vadd.f32 %v1699_v12, %v1491_v45  ;;  %v1694_v37 = vadd.f32 %v1693_v23, %v1485_v1  ;;  %v1691_v47 = vadd.f32 %v8381_v28, %v1482_v44  ;;  %v1688_v42 = vadd.f32 %v8375_v10, %v1479_v46 }
 0x36d   : >> { %v1076_v20 = vadd.f32 1e-20, %v1075_v22  ;;  %v1685_v38 = vadd.f32 %v8367_v17, %v1476_v60  ;;  %v11215_v17 = vld [vmem:[#allocation163_spill] sm:$0xff] }
 0x36e   : >> { %1540 = vmatmul.f32.gmra.mxu2 %v11203_v0  ;;  %v1284_v25 = vpop.f32.mrf.mxu1  ;;  %5508 = vrcp.f32 %v1700_v61  ;;  %v11213_v61 = vld [vmem:[#allocation42_spill] sm:$0xff] }
 0x36f   : >> { %v1285_v58 = vadd.f32 %v1284_v25, %v1076_v20  ;;  %1122 = vmatmul.f32.gmra.mxu0 %v11204_v7  ;;  %1749 = vmatmul.f32.gmra.mxu3 %v11205_v30  ;;  %v11207_v30 = vld [vmem:[#allocation158_spill] sm:$0xff] }
 0x371   : >> { %v1493_v13 = vpop.f32.mrf.mxu2  ;;  %1331 = vmatmul.f32.gmra.mxu1 %v11206_v5 }
 0x372   : >> { %v1494_v9 = vadd.f32 %v1493_v13, %v1285_v58  ;;  %v1702_v19 = vpop.f32.mrf.mxu3  ;;  %v11211_v58 = vld [vmem:[#allocation43_spill] sm:$0xff] }
 0x374   : >> { %v1703_v25 = vadd.f32 %v1702_v19, %v1494_v9  ;;  %v1078_v20 = vpop.f32.mrf.mxu0  ;;  %v5509_v21 = vpop.eup %5508  ;;  %v11216_v9 = vld [vmem:[#allocation161_spill] sm:$0xff] }
 0x375   : >> { %v1079_v2 = vadd.f32 1e-20, %v1078_v20  ;;  %v1927_v13 = vmul.f32 %v5509_v21, %v11213_v61 }
 0x376   : >> { %5510 = vrcp.f32 %v1703_v25  ;;  %1543 = vmatmul.f32.gmra.mxu2 %v11207_v30  ;;  %v1287_v45 = vpop.f32.mrf.mxu1 }
 0x377   : >> { %v1288_v53 = vadd.f32 %v1287_v45, %v1079_v2  ;;  %1125 = vmatmul.f32.gmra.mxu0 %v11208_v59  ;;  %5512 = vrcp.f32 %v1697_v35  ;;  %1752 = vmatmul.f32.gmra.mxu3 %v11209_v26  ;;  %v11219_v26 = vld [vmem:[#allocation167_spill] sm:$0xff] }
 0x378   : >> { %5514 = vrcp.f32 %v1694_v37 }
 0x379   : >> { %v1496_v33 = vpop.f32.mrf.mxu2  ;;  %1334 = vmatmul.f32.gmra.mxu1 %v11210_v51  ;;  %5516 = vrcp.f32 %v1691_v47  ;;  %v11220_v51 = vld [vmem:[#allocation165_spill] sm:$0xff] }
 0x37a   : >> { %v1497_v23 = vadd.f32 %v1496_v33, %v1288_v53  ;;  %v1705_v12 = vpop.f32.mrf.mxu3  ;;  %5518 = vrcp.f32 %v1688_v42  ;;  %v11217_v53 = vld [vmem:[#allocation166_spill] sm:$0xff] }
 0x37b   : >> { %5520 = vrcp.f32 %v1685_v38 }
 0x37c   : >> { %v5511_v22 = vpop.eup %5510  ;;  %v8409_v0 = vadd.f32 %v1705_v12, %v1497_v23  ;;  %v1081_v57 = vpop.f32.mrf.mxu0  ;;  %5522 = vrcp.f32 %v8357_v4 }
 0x37d   : >> { %v1082_v28 = vadd.f32 1e-20, %v1081_v57  ;;  %v1928_v7 = vmul.f32 %v5511_v22, %v11211_v58  ;;  %v5513_v40 = vpop.eup %5512  ;;  %5524 = vrcp.f32 %v8351_v14  ;;  %v11218_v14 = vld [vmem:[#allocation164_spill] sm:$0xff] }
 0x37e   : >> { %1546 = vmatmul.f32.gmra.mxu2 %v11212_v50  ;;  %v1290_v8 = vpop.f32.mrf.mxu1  ;;  %v5515_v5 = vpop.eup %5514  ;;  %v1926_v19 = vmul.f32 %v5513_v40, %v11211_v58  ;;  %5526 = vrcp.f32 %v8345_v18 }
 0x37f   : >> { %v1291_v10 = vadd.f32 %v1290_v8, %v1082_v28  ;;  %1977 = vmatpush.msrb.mxu0 %v1928_v7  ;;  %1755 = vmatmul.f32.gmra.mxu3 %v11215_v17  ;;  %v5517_v6 = vpop.eup %5516  ;;  %v1925_v25 = vmul.f32 %v5515_v5, %v11213_v61  ;;  %5528 = vrcp.f32 %v8339_v52  ;;  %v11221_v28 = vld [vmem:[#allocation36_spill] sm:$0xff]  ;;  %v11223_v8 = vld [vmem:[#allocation35_spill] sm:$0xff] }
 0x380   : >> { %1128 = vmatmul.f32.gmra.mxu0 %v11214_v27  ;;  %v5519_v20 = vpop.eup %5518  ;;  %v1924_v30 = vmul.f32 %v5517_v6, %v11211_v58  ;;  %5530 = vrcp.f32 %v8333_v24  ;;  %v11226_v27 = vld [vmem:[#allocation169_spill] sm:$0xff] }
 0x381   : >> { %v1499_v1 = vpop.f32.mrf.mxu2  ;;  %1978 = vmatpush.msrb.mxu0 %v1927_v13  ;;  %1337 = vmatmul.f32.gmra.mxu1 %v11216_v9  ;;  %v5521_v45 = vpop.eup %5520  ;;  %v1923_v60 = vmul.f32 %v5519_v20, %v11213_v61  ;;  %5532 = vrcp.f32 %v8327_v31  ;;  %v11224_v31 = vld [vmem:[#allocation168_spill] sm:$0xff]  ;;  %v11225_v13 = vld [vmem:[#allocation171_spill] sm:$0xff] }
 0x382   : >> { %v1500_v44 = vadd.f32 %v1499_v1, %v1291_v10  ;;  %v1708_v35 = vpop.f32.mrf.mxu3  ;;  %v5523_v47 = vpop.eup %5522  ;;  %v1922_v18 = vmul.f32 %v5521_v45, %v11211_v58  ;;  %5534 = vrcp.f32 %v8321_v3  ;;  %v11222_v58 = vld [vmem:[#allocation170_spill] sm:$0xff] }
 0x383   : >> { %1979 = vmatpush.msrb.mxu0 %v1926_v19  ;;  %v5525_v42 = vpop.eup %5524  ;;  %v1921_v12 = vmul.f32 %v5523_v47, %v11213_v61  ;;  %5536 = vrcp.f32 %v8315_v43 }
 0x384   : >> { %v8421_v2 = vadd.f32 %v1708_v35, %v1500_v44  ;;  %v1084_v46 = vpop.f32.mrf.mxu0  ;;  %v5527_v22 = vpop.eup %5526  ;;  %v1920_v7 = vmul.f32 %v5525_v42, %v11221_v28  ;;  %5538 = vrcp.f32 %v8309_v39 }
 0x385   : >> { %v1085_v37 = vadd.f32 1e-20, %v1084_v46  ;;  %1980 = vmatpush.msrb.mxu0 %v1925_v25  ;;  %v5529_v40 = vpop.eup %5528  ;;  %v1919_v10 = vmul.f32 %v5527_v22, %v11223_v8  ;;  %v11227_v46 = vld [vmem:[#allocation174_spill] sm:$0xff]  ;;  %v11232_v22 = vld [vmem:[#allocation176_spill] sm:$0xff] }
 0x386   : >> { %1549 = vmatmul.f32.gmra.mxu2 %v11217_v53  ;;  %v1293_v4 = vpop.f32.mrf.mxu1  ;;  %v5531_v61 = vpop.eup %5530  ;;  %v1918_v3 = vmul.f32 %v5529_v40, %v11221_v28  ;;  %v11228_v53 = vld [vmem:[#allocation172_spill] sm:$0xff] }
 0x387   : >> { %v1294_v59 = vadd.f32 %v1293_v4, %v1085_v37  ;;  %1981 = vmatpush.msrb.mxu0 %v1924_v30  ;;  %1758 = vmatmul.f32.gmra.mxu3 %v11219_v26  ;;  %v5533_v17 = vpop.eup %5532  ;;  %v1917_v19 = vmul.f32 %v5531_v61, %v11223_v8  ;;  %v11229_v4 = vld [vmem:[#allocation175_spill] sm:$0xff] }
 0x388   : >> { %1131 = vmatmul.f32.gmra.mxu0 %v11218_v14  ;;  %v5535_v6 = vpop.eup %5534  ;;  %v1916_v25 = vmul.f32 %v5533_v17, %v11221_v28 }
 0x389   : >> { %v1502_v33 = vpop.f32.mrf.mxu2  ;;  %1982 = vmatpush.msrb.mxu0 %v1923_v60  ;;  %1340 = vmatmul.f32.gmra.mxu1 %v11220_v51  ;;  %v5537_v20 = vpop.eup %5536  ;;  %v1915_v39 = vmul.f32 %v5535_v6, %v11223_v8  ;;  %v11230_v60 = vld [vmem:[#allocation173_spill] sm:$0xff]  ;;  %v11239_v6 = vld [vmem:[#allocation186_spill] sm:$0xff] }
 0x38a   : >> { %v1503_v23 = vadd.f32 %v1502_v33, %v1294_v59  ;;  %v1711_v21 = vpop.f32.mrf.mxu3  ;;  %v5539_v45 = vpop.eup %5538  ;;  %v1914_v47 = vmul.f32 %v5537_v20, %v11221_v28  ;;  %v11234_v28 = vld [vmem:[#allocation177_spill] sm:$0xff]  ;;  %v11241_v20 = vld [vmem:[#allocation187_spill] sm:$0xff] }
 0x38b   : >> { %1983 = vmatpush.msrb.mxu0 %v1922_v18  ;;  %v1913_v33 = vmul.f32 %v5539_v45, %v11223_v8  ;;  %v11235_v8 = vld [vmem:[#allocation182_spill] sm:$0xff] }
 0x38c   : >> { %v8435_v52 = vadd.f32 %v1711_v21, %v1503_v23  ;;  %v1087_v38 = vpop.f32.mrf.mxu0  ;;  %v11231_v23 = vld [vmem:[#allocation178_spill] sm:$0xff] }
 0x38d   : >> { %v1088_v57 = vadd.f32 1e-20, %v1087_v38  ;;  %1984 = vmatpush.msrb.mxu0 %v1921_v12  ;;  %v11233_v38 = vld [vmem:[#allocation179_spill] sm:$0xff] }
 0x38e   : >> { %1552 = vmatmul.f32.gmra.mxu2 %v11222_v58  ;;  %v1296_v24 = vpop.f32.mrf.mxu1 }
 0x38f   : >> { %v1297_v50 = vadd.f32 %v1296_v24, %v1088_v57  ;;  %1985 = vmatpush.msrb.mxu0 %v1920_v7  ;;  %1761 = vmatmul.f32.gmra.mxu3 %v11225_v13  ;;  %v11237_v13 = vld [vmem:[#allocation183_spill] sm:$0xff] }
 0x390   : >> { %1134 = vmatmul.f32.gmra.mxu0 %v11224_v31  ;;  %v11236_v31 = vld [vmem:[#allocation180_spill] sm:$0xff] }
 0x391   : >> { %v1505_v5 = vpop.f32.mrf.mxu2  ;;  %1986 = vmatpush.msrb.mxu0 %v1919_v10  ;;  %1343 = vmatmul.f32.gmra.mxu1 %v11226_v27  ;;  %v11238_v27 = vld [vmem:[#allocation181_spill] sm:$0xff] }
 0x392   : >> { %v1506_v1 = vadd.f32 %v1505_v5, %v1297_v50  ;;  %v1714_v9 = vpop.f32.mrf.mxu3 }
 0x393   : >> { %1987 = vmatpush.msrb.mxu0 %v1918_v3 }
 0x394   : >> { %v8448_v43 = vadd.f32 %v1714_v9, %v1506_v1  ;;  %v1090_v44 = vpop.f32.mrf.mxu0 }
 0x395   : >> { %v1091_v35 = vadd.f32 1e-20, %v1090_v44  ;;  %1988 = vmatpush.msrb.mxu0 %v1917_v19 }
 0x396   : >> { %1555 = vmatmul.f32.gmra.mxu2 %v11227_v46  ;;  %v1299_v37 = vpop.f32.mrf.mxu1 }
 0x397   : >> { %v1300_v30 = vadd.f32 %v1299_v37, %v1091_v35  ;;  %1989 = vmatpush.msrb.mxu0 %v1916_v25  ;;  %1764 = vmatmul.f32.gmra.mxu3 %v11229_v4  ;;  %v11240_v25 = vld [vmem:[#allocation184_spill] sm:$0xff]  ;;  %v11242_v37 = vld [vmem:[#allocation185_spill] sm:$0xff] }
 0x398   : >> { %1137 = vmatmul.f32.gmra.mxu0 %v11228_v53 }
 0x399   : >> { %v1508_v59 = vpop.f32.mrf.mxu2  ;;  %1990 = vmatpush.msrb.mxu0 %v1915_v39  ;;  %1346 = vmatmul.f32.gmra.mxu1 %v11230_v60 }
 0x39a   : >> { %v1509_v14 = vadd.f32 %v1508_v59, %v1300_v30  ;;  %v1717_v26 = vpop.f32.mrf.mxu3  ;;  %v11243_v59 = vld [vmem:[#allocation190_spill] sm:$0xff] }
 0x39b   : >> { %1991 = vmatpush.msrb.mxu0 %v1914_v47 }
 0x39c   : >> { %v8458_v51 = vadd.f32 %v1717_v26, %v1509_v14  ;;  %v1093_v18 = vpop.f32.mrf.mxu0  ;;  %v11244_v14 = vld [vmem:[#allocation188_spill] sm:$0xff]  ;;  %v11245_v26 = vld [vmem:[#allocation191_spill] sm:$0xff] }
 0x39d   : >> { %v1094_v42 = vadd.f32 1e-20, %v1093_v18  ;;  %1992 = vmatpush.msrb.mxu0 %v1913_v33  ;;  %v11246_v18 = vld [vmem:[#allocation189_spill] sm:$0xff] }
 0x39e   : >> { %1558 = vmatmul.f32.gmra.mxu2 %v11231_v23  ;;  %v1302_v21 = vpop.f32.mrf.mxu1 }
 0x39f   : >> { %v1303_v12 = vadd.f32 %v1302_v21, %v1094_v42  ;;  %1767 = vmatmul.f32.gmra.mxu3 %v11233_v38 }
 0x3a0   : >> { %1140 = vmatmul.f32.gmra.mxu0 %v11232_v22  ;;  %v11247_v22 = vld [vmem:[#allocation194_spill] sm:$0xff] }
 0x3a1   : >> { %v1511_v57 = vpop.f32.mrf.mxu2  ;;  %1349 = vmatmul.f32.gmra.mxu1 %v11234_v28  ;;  %v11249_v28 = vld [vmem:[#allocation195_spill] sm:$0xff] }
 0x3a2   : >> { %v1512_v7 = vadd.f32 %v1511_v57, %v1303_v12  ;;  %v1720_v40 = vpop.f32.mrf.mxu3  ;;  %v11248_v57 = vld [vmem:[#allocation192_spill] sm:$0xff] }
 0x3a4   : >> { %v8464_v58 = vadd.f32 %v1720_v40, %v1512_v7  ;;  %v1096_v24 = vpop.f32.mrf.mxu0  ;;  %v11250_v40 = vld [vmem:[#allocation193_spill] sm:$0xff] }
 0x3a5   : >> { %v1097_v50 = vadd.f32 1e-20, %v1096_v24 }
 0x3a6   : >> { %1561 = vmatmul.f32.gmra.mxu2 %v11235_v8  ;;  %v1305_v10 = vpop.f32.mrf.mxu1  ;;  %v11251_v8 = vld [vmem:[#allocation198_spill] sm:$0xff] }
 0x3a7   : >> { %v1306_v61 = vadd.f32 %v1305_v10, %v1097_v50  ;;  %1770 = vmatmul.f32.gmra.mxu3 %v11237_v13 }
 0x3a8   : >> { %1143 = vmatmul.f32.gmra.mxu0 %v11236_v31  ;;  %v11253_v31 = vld [vmem:[#allocation199_spill] sm:$0xff] }
 0x3a9   : >> { %v1514_v5 = vpop.f32.mrf.mxu2  ;;  %1352 = vmatmul.f32.gmra.mxu1 %v11238_v27 }
 0x3aa   : >> { %v1515_v3 = vadd.f32 %v1514_v5, %v1306_v61  ;;  %v1723_v17 = vpop.f32.mrf.mxu3  ;;  %v11252_v61 = vld [vmem:[#allocation196_spill] sm:$0xff]  ;;  %v11254_v5 = vld [vmem:[#allocation197_spill] sm:$0xff] }
 0x3ac   : >> { %v8470_v1 = vadd.f32 %v1723_v17, %v1515_v3  ;;  %v1099_v9 = vpop.f32.mrf.mxu0  ;;  %v11255_v17 = vld [vmem:[#allocation202_spill] sm:$0xff] }
 0x3ad   : >> { %v1100_v19 = vadd.f32 1e-20, %v1099_v9 }
 0x3ae   : >> { %1564 = vmatmul.f32.gmra.mxu2 %v11239_v6  ;;  %v1308_v44 = vpop.f32.mrf.mxu1  ;;  %v11257_v6 = vld [vmem:[#allocation203_spill] sm:$0xff] }
 0x3af   : >> { %v1309_v35 = vadd.f32 %v1308_v44, %v1100_v19  ;;  %1773 = vmatmul.f32.gmra.mxu3 %v11241_v20  ;;  %v11256_v19 = vld [vmem:[#allocation200_spill] sm:$0xff] }
 0x3b0   : >> { %1146 = vmatmul.f32.gmra.mxu0 %v11240_v25 }
 0x3b1   : >> { %v1517_v46 = vpop.f32.mrf.mxu2  ;;  %1355 = vmatmul.f32.gmra.mxu1 %v11242_v37 }
 0x3b2   : >> { %v1518_v30 = vadd.f32 %v1517_v46, %v1309_v35  ;;  %v1726_v39 = vpop.f32.mrf.mxu3  ;;  %v11258_v35 = vld [vmem:[#allocation201_spill] sm:$0xff]  ;;  %v11259_v46 = vld [vmem:[#allocation206_spill] sm:$0xff] }
 0x3b4   : >> { %v8476_v45 = vadd.f32 %v1726_v39, %v1518_v30  ;;  %v1102_v53 = vpop.f32.mrf.mxu0  ;;  %v11260_v30 = vld [vmem:[#allocation204_spill] sm:$0xff]  ;;  %v11261_v39 = vld [vmem:[#allocation207_spill] sm:$0xff] }
 0x3b5   : >> { %v1103_v4 = vadd.f32 1e-20, %v1102_v53 }
 0x3b6   : >> { %1567 = vmatmul.f32.gmra.mxu2 %v11243_v59  ;;  %v1311_v60 = vpop.f32.mrf.mxu1 }
 0x3b7   : >> { %v1312_v47 = vadd.f32 %v1311_v60, %v1103_v4  ;;  %1776 = vmatmul.f32.gmra.mxu3 %v11245_v26  ;;  %v11262_v4 = vld [vmem:[#allocation205_spill] sm:$0xff]  ;;  %v11264_v26 = vld [vmem:[#allocation208_spill] sm:$0xff] }
 0x3b8   : >> { %1149 = vmatmul.f32.gmra.mxu0 %v11244_v14 }
 0x3b9   : >> { %v1520_v33 = vpop.f32.mrf.mxu2  ;;  %1358 = vmatmul.f32.gmra.mxu1 %v11246_v18 }
 0x3ba   : >> { %v1521_v42 = vadd.f32 %v1520_v33, %v1312_v47  ;;  %v1729_v23 = vpop.f32.mrf.mxu3  ;;  %v11263_v47 = vld [vmem:[#allocation210_spill] sm:$0xff]  ;;  %v11265_v33 = vld [vmem:[#allocation211_spill] sm:$0xff] }
 0x3bc   : >> { %v8482_v21 = vadd.f32 %v1729_v23, %v1521_v42  ;;  %v1105_v12 = vpop.f32.mrf.mxu0  ;;  %v11266_v42 = vld [vmem:[#allocation209_spill] sm:$0xff] }
 0x3be   : >> { %1570 = vmatmul.f32.gmra.mxu2 %v11247_v22  ;;  %v8485_v38 = vpop.f32.mrf.mxu1 }
 0x3bf   : >> { %1779 = vmatmul.f32.gmra.mxu3 %v11249_v28  ;;  %v11267_v28 = vld [vmem:[#allocation214_spill] sm:$0xff] }
 0x3c0   : >> { %1152 = vmatmul.f32.gmra.mxu0 %v11248_v57 }
 0x3c1   : >> { %v8489_v7 = vpop.f32.mrf.mxu2  ;;  %1361 = vmatmul.f32.gmra.mxu1 %v11250_v40 }
 0x3c2   : >> { %v8492_v24 = vpop.f32.mrf.mxu3 }
 0x3c4   : >> { %v1108_v50 = vpop.f32.mrf.mxu0 }
 0x3c6   : >> { %1573 = vmatmul.f32.gmra.mxu2 %v11251_v8  ;;  %v1317_v10 = vpop.f32.mrf.mxu1 }
 0x3c7   : >> { %1782 = vmatmul.f32.gmra.mxu3 %v11253_v31  ;;  %v11269_v31 = vld [vmem:[#allocation215_spill] sm:$0xff] }
 0x3c8   : >> { %1155 = vmatmul.f32.gmra.mxu0 %v11252_v61  ;;  %v11268_v61 = vld [vmem:[#allocation212_spill] sm:$0xff] }
 0x3c9   : >> { %v8497_v13 = vpop.f32.mrf.mxu2  ;;  %1364 = vmatmul.f32.gmra.mxu1 %v11254_v5 }
 0x3ca   : >> { %v8500_v27 = vpop.f32.mrf.mxu3 }
 0x3cc   : >> { %v1111_v3 = vpop.f32.mrf.mxu0 }
 0x3ce   : >> { %1576 = vmatmul.f32.gmra.mxu2 %v11255_v17  ;;  %v1320_v9 = vpop.f32.mrf.mxu1 }
 0x3cf   : >> { %1785 = vmatmul.f32.gmra.mxu3 %v11257_v6 }
 0x3d0   : >> { %1158 = vmatmul.f32.gmra.mxu0 %v11256_v19  ;;  %v11270_v19 = vld [vmem:[#allocation213_spill] sm:$0xff] }
 0x3d1   : >> { %v1529_v44 = vpop.f32.mrf.mxu2  ;;  %1367 = vmatmul.f32.gmra.mxu1 %v11258_v35 }
 0x3d2   : >> { %v8506_v25 = vpop.f32.mrf.mxu3 }
 0x3d4   : >> { %v1114_v20 = vpop.f32.mrf.mxu0 }
 0x3d5   : >> { %v1115_v6 = vadd.f32 1e-20, %v1114_v20 }
 0x3d6   : >> { %1579 = vmatmul.f32.gmra.mxu2 %v11259_v46  ;;  %v1323_v37 = vpop.f32.mrf.mxu1  ;;  %v1112_v46 = vadd.f32 1e-20, %v1111_v3  ;;  %v11274_v3 = vld [vmem:[#allocation217_spill] sm:$0xff] }
 0x3d7   : >> { %1788 = vmatmul.f32.gmra.mxu3 %v11261_v39 }
 0x3d8   : >> { %1161 = vmatmul.f32.gmra.mxu0 %v11260_v30 }
 0x3d9   : >> { %v1532_v53 = vpop.f32.mrf.mxu2  ;;  %1370 = vmatmul.f32.gmra.mxu1 %v11262_v4 }
 0x3da   : >> { %v1741_v59 = vpop.f32.mrf.mxu3 }
 0x3dc   : >> { %v1117_v60 = vpop.f32.mrf.mxu0 }
 0x3dd   : >> { %v1118_v8 = vadd.f32 1e-20, %v1117_v60 }
 0x3de   : >> { %1582 = vmatmul.f32.gmra.mxu2 %v11263_v47  ;;  %v1326_v14 = vpop.f32.mrf.mxu1 }
 0x3df   : >> { %1791 = vmatmul.f32.gmra.mxu3 %v11265_v33  ;;  %v1327_v30 = vadd.f32 %v1326_v14, %v1118_v8  ;;  %v1324_v33 = vadd.f32 %v1323_v37, %v1115_v6 }
 0x3e0   : >> { %1164 = vmatmul.f32.gmra.mxu0 %v11264_v26  ;;  %v1109_v26 = vadd.f32 1e-20, %v1108_v50 }
 0x3e1   : >> { %v1535_v18 = vpop.f32.mrf.mxu2  ;;  %1373 = vmatmul.f32.gmra.mxu1 %v11266_v42  ;;  %v11271_v42 = vld [vmem:[#allocation218_spill] sm:$0xff]  ;;  %v1533_v8 = vadd.f32 %v1532_v53, %v1324_v33 }
 0x3e2   : >> { %v1744_v23 = vpop.f32.mrf.mxu3  ;;  %v1318_v14 = vadd.f32 %v1317_v10, %v1109_v26 }
 0x3e4   : >> { %v1120_v22 = vpop.f32.mrf.mxu0 }
 0x3e5   : >> { %v1121_v57 = vadd.f32 1e-20, %v1120_v22 }
 0x3e6   : >> { %1585 = vmatmul.f32.gmra.mxu2 %v11267_v28  ;;  %v1329_v40 = vpop.f32.mrf.mxu1  ;;  %v1106_v28 = vadd.f32 1e-20, %v1105_v12 }
 0x3e7   : >> { %1794 = vmatmul.f32.gmra.mxu3 %v11269_v31  ;;  %v1330_v5 = vadd.f32 %v1329_v40, %v1121_v57  ;;  %v1536_v31 = vadd.f32 %v1535_v18, %v1327_v30  ;;  %v11272_v57 = vld [vmem:[#allocation216_spill] sm:$0xff]  ;;  %v11273_v40 = vld [vmem:[#allocation219_spill] sm:$0xff]  ;;  %v1527_v18 = vadd.f32 %v8497_v13, %v1318_v14 }
 0x3e8   : >> { %1167 = vmatmul.f32.gmra.mxu0 %v11268_v61  ;;  %v1321_v61 = vadd.f32 %v1320_v9, %v1112_v46  ;;  %v1315_v37 = vadd.f32 %v8485_v38, %v1106_v28  ;;  %v1742_v46 = vadd.f32 %v1741_v59, %v1533_v8  ;;  %v11276_v38 = vld [vmem:[#allocation220_spill] sm:$0xff] }
 0x3e9   : >> { %v1538_v17 = vpop.f32.mrf.mxu2  ;;  %1376 = vmatmul.f32.gmra.mxu1 %v11270_v19  ;;  %v1745_v6 = vadd.f32 %v1744_v23, %v1536_v31  ;;  %v1736_v13 = vadd.f32 %v8500_v27, %v1527_v18  ;;  %v11281_v27 = vld [vmem:[#allocation59_spill] sm:$0xff]  ;;  %v11282_v14 = vld [vmem:[#allocation224_spill] sm:$0xff] }
 0x3ea   : >> { %v1747_v35 = vpop.f32.mrf.mxu3  ;;  %v1539_v4 = vadd.f32 %v1538_v17, %v1330_v5  ;;  %v1530_v17 = vadd.f32 %v1529_v44, %v1321_v61  ;;  %v1524_v10 = vadd.f32 %v8489_v7, %v1315_v37  ;;  %v11277_v44 = vld [vmem:[#allocation223_spill] sm:$0xff] }
 0x3ec   : >> { %v1123_v39 = vpop.f32.mrf.mxu0  ;;  %v1748_v20 = vadd.f32 %v1747_v35, %v1539_v4  ;;  %v11275_v35 = vld [vmem:[#allocation222_spill] sm:$0xff]  ;;  %v1739_v53 = vadd.f32 %v8506_v25, %v1530_v17  ;;  %v11284_v17 = vld [vmem:[#allocation225_spill] sm:$0xff] }
 0x3ed   : >> { %v1124_v47 = vadd.f32 1e-20, %v1123_v39 }
 0x3ee   : >> { %1588 = vmatmul.f32.gmra.mxu2 %v11271_v42  ;;  %v1332_v60 = vpop.f32.mrf.mxu1  ;;  %5540 = vrcp.f32 %v1748_v20 }
 0x3ef   : >> { %v1333_v22 = vadd.f32 %v1332_v60, %v1124_v47  ;;  %1797 = vmatmul.f32.gmra.mxu3 %v11273_v40  ;;  %v11278_v47 = vld [vmem:[#allocation221_spill] sm:$0xff]  ;;  %v1733_v60 = vadd.f32 %v8492_v24, %v1524_v10  ;;  %v11283_v24 = vld [vmem:[#allocation227_spill] sm:$0xff] }
 0x3f0   : >> { %1170 = vmatmul.f32.gmra.mxu0 %v11272_v57  ;;  %v11280_v57 = vld [vmem:[#allocation226_spill] sm:$0xff] }
 0x3f1   : >> { %v1541_v19 = vpop.f32.mrf.mxu2  ;;  %1379 = vmatmul.f32.gmra.mxu1 %v11274_v3 }
 0x3f2   : >> { %v1542_v5 = vadd.f32 %v1541_v19, %v1333_v22  ;;  %v1750_v50 = vpop.f32.mrf.mxu3  ;;  %v11279_v22 = vld [vmem:[#allocation60_spill] sm:$0xff] }
 0x3f4   : >> { %v1751_v39 = vadd.f32 %v1750_v50, %v1542_v5  ;;  %v1126_v12 = vpop.f32.mrf.mxu0  ;;  %v5541_v26 = vpop.eup %5540 }
 0x3f5   : >> { %v1127_v9 = vadd.f32 1e-20, %v1126_v12  ;;  %v1943_v20 = vmul.f32 %v5541_v26, %v11281_v27 }
 0x3f6   : >> { %5542 = vrcp.f32 %v1751_v39  ;;  %1591 = vmatmul.f32.gmra.mxu2 %v11275_v35  ;;  %v1335_v30 = vpop.f32.mrf.mxu1 }
 0x3f7   : >> { %v1336_v4 = vadd.f32 %v1335_v30, %v1127_v9  ;;  %5544 = vrcp.f32 %v1745_v6  ;;  %1800 = vmatmul.f32.gmra.mxu3 %v11277_v44  ;;  %v11285_v30 = vld [vmem:[#allocation230_spill] sm:$0xff]  ;;  %v11287_v44 = vld [vmem:[#allocation231_spill] sm:$0xff] }
 0x3f8   : >> { %1173 = vmatmul.f32.gmra.mxu0 %v11276_v38  ;;  %5546 = vrcp.f32 %v1742_v46  ;;  %v11286_v38 = vld [vmem:[#allocation228_spill] sm:$0xff] }
 0x3f9   : >> { %v1544_v23 = vpop.f32.mrf.mxu2  ;;  %1382 = vmatmul.f32.gmra.mxu1 %v11278_v47  ;;  %5548 = vrcp.f32 %v1739_v53 }
 0x3fa   : >> { %v1545_v59 = vadd.f32 %v1544_v23, %v1336_v4  ;;  %v1753_v33 = vpop.f32.mrf.mxu3  ;;  %5550 = vrcp.f32 %v1736_v13 }
 0x3fb   : >> { %5552 = vrcp.f32 %v1733_v60 }
 0x3fc   : >> { %v5543_v42 = vpop.eup %5542  ;;  %v8534_v7 = vadd.f32 %v1753_v33, %v1545_v59  ;;  %5554 = vrcp.f32 %v8482_v21  ;;  %v11288_v59 = vld [vmem:[#allocation229_spill] sm:$0xff] }
 0x3fd   : >> { %v1129_v25 = vpop.f32.mrf.mxu0  ;;  %v1944_v28 = vmul.f32 %v5543_v42, %v11279_v22  ;;  %v5545_v61 = vpop.eup %5544  ;;  %5556 = vrcp.f32 %v8476_v45 }
 0x3fe   : >> { %v1130_v31 = vadd.f32 1e-20, %v1129_v25  ;;  %1594 = vmatmul.f32.gmra.mxu2 %v11280_v57  ;;  %v1338_v40 = vpop.f32.mrf.mxu1  ;;  %v5547_v19 = vpop.eup %5546  ;;  %v1942_v5 = vmul.f32 %v5545_v61, %v11279_v22  ;;  %5558 = vrcp.f32 %v8470_v1  ;;  %v11289_v25 = vld [vmem:[#allocation50_spill] sm:$0xff]  ;;  %v11291_v57 = vld [vmem:[#allocation49_spill] sm:$0xff] }
 0x3ff   : >> { %2186 = vmatpush.msrb.mxu1 %v1944_v28  ;;  %1803 = vmatmul.f32.gmra.mxu3 %v11283_v24  ;;  %v5549_v50 = vpop.eup %5548  ;;  %v1941_v39 = vmul.f32 %v5547_v19, %v11281_v27  ;;  %5560 = vrcp.f32 %v8464_v58  ;;  %v11290_v61 = vld [vmem:[#allocation234_spill] sm:$0xff]  ;;  %v11293_v19 = vld [vmem:[#allocation235_spill] sm:$0xff] }
 0x400   : >> { %v1339_v3 = vadd.f32 %v1338_v40, %v1130_v31  ;;  %1176 = vmatmul.f32.gmra.mxu0 %v11282_v14  ;;  %v5551_v12 = vpop.eup %5550  ;;  %v1940_v46 = vmul.f32 %v5549_v50, %v11279_v22  ;;  %5562 = vrcp.f32 %v8458_v51 }
 0x401   : >> { %v1547_v8 = vpop.f32.mrf.mxu2  ;;  %2187 = vmatpush.msrb.mxu1 %v1943_v20  ;;  %v5553_v35 = vpop.eup %5552  ;;  %v1939_v10 = vmul.f32 %v5551_v12, %v11281_v27  ;;  %5564 = vrcp.f32 %v8448_v43  ;;  %v11292_v20 = vld [vmem:[#allocation232_spill] sm:$0xff] }
 0x402   : >> { %v1548_v37 = vadd.f32 %v1547_v8, %v1339_v3  ;;  %1385 = vmatmul.f32.gmra.mxu1 %v11284_v17  ;;  %v1756_v6 = vpop.f32.mrf.mxu3  ;;  %v5555_v53 = vpop.eup %5554  ;;  %v1938_v47 = vmul.f32 %v5553_v35, %v11279_v22  ;;  %5566 = vrcp.f32 %v8435_v52  ;;  %v11294_v8 = vld [vmem:[#allocation233_spill] sm:$0xff] }
 0x403   : >> { %2188 = vmatpush.msrb.mxu1 %v1942_v5  ;;  %v5557_v1 = vpop.eup %5556  ;;  %v1937_v33 = vmul.f32 %v5555_v53, %v11281_v27  ;;  %5568 = vrcp.f32 %v8421_v2 }
 0x404   : >> { %v8546_v9 = vadd.f32 %v1756_v6, %v1548_v37  ;;  %v5559_v58 = vpop.eup %5558  ;;  %v1936_v28 = vmul.f32 %v5557_v1, %v11289_v25  ;;  %5570 = vrcp.f32 %v8409_v0 }
 0x405   : >> { %v1132_v18 = vpop.f32.mrf.mxu0  ;;  %2189 = vmatpush.msrb.mxu1 %v1941_v39  ;;  %v5561_v22 = vpop.eup %5560  ;;  %v1935_v40 = vmul.f32 %v5559_v58, %v11291_v57  ;;  %v11300_v58 = vld [vmem:[#allocation240_spill] sm:$0xff] }
 0x406   : >> { %v1133_v21 = vadd.f32 1e-20, %v1132_v18  ;;  %1597 = vmatmul.f32.gmra.mxu2 %v11285_v30  ;;  %v1341_v4 = vpop.f32.mrf.mxu1  ;;  %v5563_v27 = vpop.eup %5562  ;;  %v1934_v14 = vmul.f32 %v5561_v22, %v11289_v25  ;;  %v11295_v18 = vld [vmem:[#allocation238_spill] sm:$0xff]  ;;  %v11296_v30 = vld [vmem:[#allocation236_spill] sm:$0xff]  ;;  %v11302_v22 = vld [vmem:[#allocation241_spill] sm:$0xff] }
 0x407   : >> { %2190 = vmatpush.msrb.mxu1 %v1940_v46  ;;  %1806 = vmatmul.f32.gmra.mxu3 %v11287_v44  ;;  %v5565_v52 = vpop.eup %5564  ;;  %v1933_v50 = vmul.f32 %v5563_v27, %v11291_v57 }
 0x408   : >> { %v1342_v45 = vadd.f32 %v1341_v4, %v1133_v21  ;;  %1179 = vmatmul.f32.gmra.mxu0 %v11286_v38  ;;  %v5567_v2 = vpop.eup %5566  ;;  %v1932_v6 = vmul.f32 %v5565_v52, %v11289_v25  ;;  %v11297_v4 = vld [vmem:[#allocation239_spill] sm:$0xff]  ;;  %v11298_v38 = vld [vmem:[#allocation237_spill] sm:$0xff] }
 0x409   : >> { %v1550_v23 = vpop.f32.mrf.mxu2  ;;  %2191 = vmatpush.msrb.mxu1 %v1939_v10  ;;  %v5569_v39 = vpop.eup %5568  ;;  %v1931_v0 = vmul.f32 %v5567_v2, %v11291_v57  ;;  %v11306_v52 = vld [vmem:[#allocation245_spill] sm:$0xff]  ;;  %v11307_v2 = vld [vmem:[#allocation250_spill] sm:$0xff] }
 0x40a   : >> { %v1551_v13 = vadd.f32 %v1550_v23, %v1342_v45  ;;  %1388 = vmatmul.f32.gmra.mxu1 %v11288_v59  ;;  %v1759_v26 = vpop.f32.mrf.mxu3  ;;  %v5571_v35 = vpop.eup %5570  ;;  %v1930_v53 = vmul.f32 %v5569_v39, %v11289_v25  ;;  %v11299_v59 = vld [vmem:[#allocation242_spill] sm:$0xff]  ;;  %v11308_v39 = vld [vmem:[#allocation248_spill] sm:$0xff] }
 0x40b   : >> { %2192 = vmatpush.msrb.mxu1 %v1938_v47  ;;  %v1929_v23 = vmul.f32 %v5571_v35, %v11291_v57 }
 0x40c   : >> { %v8560_v42 = vadd.f32 %v1759_v26, %v1551_v13 }
 0x40d   : >> { %v1135_v60 = vpop.f32.mrf.mxu0  ;;  %2193 = vmatpush.msrb.mxu1 %v1937_v33 }
 0x40e   : >> { %v1136_v51 = vadd.f32 1e-20, %v1135_v60  ;;  %1600 = vmatmul.f32.gmra.mxu2 %v11290_v61  ;;  %v1344_v31 = vpop.f32.mrf.mxu1  ;;  %v11301_v60 = vld [vmem:[#allocation243_spill] sm:$0xff] }
 0x40f   : >> { %2194 = vmatpush.msrb.mxu1 %v1936_v28  ;;  %1809 = vmatmul.f32.gmra.mxu3 %v11293_v19  ;;  %v11305_v19 = vld [vmem:[#allocation247_spill] sm:$0xff] }
 0x410   : >> { %v1345_v43 = vadd.f32 %v1344_v31, %v1136_v51  ;;  %1182 = vmatmul.f32.gmra.mxu0 %v11292_v20  ;;  %v11304_v20 = vld [vmem:[#allocation244_spill] sm:$0xff] }
 0x411   : >> { %v1553_v3 = vpop.f32.mrf.mxu2  ;;  %2195 = vmatpush.msrb.mxu1 %v1935_v40  ;;  %v11303_v40 = vld [vmem:[#allocation246_spill] sm:$0xff] }
 0x412   : >> { %v1554_v24 = vadd.f32 %v1553_v3, %v1345_v43  ;;  %1391 = vmatmul.f32.gmra.mxu1 %v11294_v8  ;;  %v1762_v5 = vpop.f32.mrf.mxu3 }
 0x413   : >> { %2196 = vmatpush.msrb.mxu1 %v1934_v14 }
 0x414   : >> { %v8573_v37 = vadd.f32 %v1762_v5, %v1554_v24 }
 0x415   : >> { %v1138_v17 = vpop.f32.mrf.mxu0  ;;  %2197 = vmatpush.msrb.mxu1 %v1933_v50 }
 0x416   : >> { %v1139_v12 = vadd.f32 1e-20, %v1138_v17  ;;  %1603 = vmatmul.f32.gmra.mxu2 %v11295_v18  ;;  %v1347_v46 = vpop.f32.mrf.mxu1 }
 0x417   : >> { %2198 = vmatpush.msrb.mxu1 %v1932_v6  ;;  %1812 = vmatmul.f32.gmra.mxu3 %v11297_v4 }
 0x418   : >> { %v1348_v21 = vadd.f32 %v1347_v46, %v1139_v12  ;;  %1185 = vmatmul.f32.gmra.mxu0 %v11296_v30  ;;  %v11309_v12 = vld [vmem:[#allocation251_spill] sm:$0xff] }
 0x419   : >> { %v1556_v10 = vpop.f32.mrf.mxu2  ;;  %2199 = vmatpush.msrb.mxu1 %v1931_v0  ;;  %v11310_v0 = vld [vmem:[#allocation249_spill] sm:$0xff] }
 0x41a   : >> { %v1557_v45 = vadd.f32 %v1556_v10, %v1348_v21  ;;  %1394 = vmatmul.f32.gmra.mxu1 %v11298_v38  ;;  %v1765_v44 = vpop.f32.mrf.mxu3  ;;  %v11311_v10 = vld [vmem:[#allocation254_spill] sm:$0xff]  ;;  %v11312_v38 = vld [vmem:[#allocation252_spill] sm:$0xff] }
 0x41b   : >> { %2200 = vmatpush.msrb.mxu1 %v1930_v53 }
 0x41c   : >> { %v8583_v47 = vadd.f32 %v1765_v44, %v1557_v45  ;;  %v11313_v44 = vld [vmem:[#allocation255_spill] sm:$0xff] }
 0x41d   : >> { %v1141_v1 = vpop.f32.mrf.mxu0  ;;  %2201 = vmatpush.msrb.mxu1 %v1929_v23 }
 0x41e   : >> { %v1142_v13 = vadd.f32 1e-20, %v1141_v1  ;;  %1606 = vmatmul.f32.gmra.mxu2 %v11299_v59  ;;  %v1350_v26 = vpop.f32.mrf.mxu1  ;;  %v11314_v1 = vld [vmem:[#allocation253_spill] sm:$0xff] }
 0x41f   : >> { %1815 = vmatmul.f32.gmra.mxu3 %v11301_v60  ;;  %v11317_v60 = vld [vmem:[#allocation259_spill] sm:$0xff] }
 0x420   : >> { %v1351_v33 = vadd.f32 %v1350_v26, %v1142_v13  ;;  %1188 = vmatmul.f32.gmra.mxu0 %v11300_v58  ;;  %v11315_v26 = vld [vmem:[#allocation258_spill] sm:$0xff]  ;;  %v11316_v58 = vld [vmem:[#allocation256_spill] sm:$0xff] }
 0x421   : >> { %v1559_v25 = vpop.f32.mrf.mxu2 }
 0x422   : >> { %v1560_v28 = vadd.f32 %v1559_v25, %v1351_v33  ;;  %1397 = vmatmul.f32.gmra.mxu1 %v11302_v22  ;;  %v1768_v51 = vpop.f32.mrf.mxu3 }
 0x424   : >> { %v8589_v61 = vadd.f32 %v1768_v51, %v1560_v28  ;;  %v11318_v28 = vld [vmem:[#allocation257_spill] sm:$0xff] }
 0x425   : >> { %v1144_v31 = vpop.f32.mrf.mxu0 }
 0x426   : >> { %v1145_v57 = vadd.f32 1e-20, %v1144_v31  ;;  %1609 = vmatmul.f32.gmra.mxu2 %v11303_v40  ;;  %v1353_v27 = vpop.f32.mrf.mxu1  ;;  %v11319_v31 = vld [vmem:[#allocation262_spill] sm:$0xff]  ;;  %v11320_v40 = vld [vmem:[#allocation260_spill] sm:$0xff] }
 0x427   : >> { %1818 = vmatmul.f32.gmra.mxu3 %v11305_v19 }
 0x428   : >> { %v1354_v43 = vadd.f32 %v1353_v27, %v1145_v57  ;;  %1191 = vmatmul.f32.gmra.mxu0 %v11304_v20  ;;  %v11321_v27 = vld [vmem:[#allocation263_spill] sm:$0xff]  ;;  %v11322_v20 = vld [vmem:[#allocation261_spill] sm:$0xff] }
 0x429   : >> { %v1562_v3 = vpop.f32.mrf.mxu2 }
 0x42a   : >> { %v1563_v14 = vadd.f32 %v1562_v3, %v1354_v43  ;;  %1400 = vmatmul.f32.gmra.mxu1 %v11306_v52  ;;  %v1771_v24 = vpop.f32.mrf.mxu3 }
 0x42c   : >> { %v8595_v8 = vadd.f32 %v1771_v24, %v1563_v14  ;;  %v11323_v14 = vld [vmem:[#allocation266_spill] sm:$0xff]  ;;  %v11324_v24 = vld [vmem:[#allocation264_spill] sm:$0xff] }
 0x42d   : >> { %v1147_v5 = vpop.f32.mrf.mxu0 }
 0x42e   : >> { %v1148_v50 = vadd.f32 1e-20, %v1147_v5  ;;  %1612 = vmatmul.f32.gmra.mxu2 %v11307_v2  ;;  %v1356_v17 = vpop.f32.mrf.mxu1  ;;  %v11325_v5 = vld [vmem:[#allocation267_spill] sm:$0xff]  ;;  %v11326_v2 = vld [vmem:[#allocation265_spill] sm:$0xff] }
 0x42f   : >> { %1821 = vmatmul.f32.gmra.mxu3 %v11309_v12 }
 0x430   : >> { %v1357_v6 = vadd.f32 %v1356_v17, %v1148_v50  ;;  %1194 = vmatmul.f32.gmra.mxu0 %v11308_v39  ;;  %v11327_v39 = vld [vmem:[#allocation270_spill] sm:$0xff] }
 0x431   : >> { %v1565_v18 = vpop.f32.mrf.mxu2 }
 0x432   : >> { %v1566_v46 = vadd.f32 %v1565_v18, %v1357_v6  ;;  %1403 = vmatmul.f32.gmra.mxu1 %v11310_v0  ;;  %v1774_v35 = vpop.f32.mrf.mxu3  ;;  %v11328_v18 = vld [vmem:[#allocation268_spill] sm:$0xff] }
 0x434   : >> { %v8601_v21 = vadd.f32 %v1774_v35, %v1566_v46  ;;  %v11329_v46 = vld [vmem:[#allocation271_spill] sm:$0xff]  ;;  %v11330_v35 = vld [vmem:[#allocation269_spill] sm:$0xff] }
 0x435   : >> { %v1150_v30 = vpop.f32.mrf.mxu0 }
 0x436   : >> { %v1151_v4 = vadd.f32 1e-20, %v1150_v30  ;;  %1615 = vmatmul.f32.gmra.mxu2 %v11311_v10  ;;  %v1359_v53 = vpop.f32.mrf.mxu1  ;;  %v11331_v10 = vld [vmem:[#allocation274_spill] sm:$0xff] }
 0x437   : >> { %1824 = vmatmul.f32.gmra.mxu3 %v11313_v44  ;;  %v11333_v44 = vld [vmem:[#allocation275_spill] sm:$0xff] }
 0x438   : >> { %v8604_v45 = vadd.f32 %v1359_v53, %v1151_v4  ;;  %1197 = vmatmul.f32.gmra.mxu0 %v11312_v38  ;;  %v11332_v38 = vld [vmem:[#allocation272_spill] sm:$0xff] }
 0x439   : >> { %v8608_v23 = vpop.f32.mrf.mxu2 }
 0x43a   : >> { %1406 = vmatmul.f32.gmra.mxu1 %v11314_v1  ;;  %v8611_v13 = vpop.f32.mrf.mxu3 }
 0x43d   : >> { %v1153_v59 = vpop.f32.mrf.mxu0 }
 0x43e   : >> { %1618 = vmatmul.f32.gmra.mxu2 %v11315_v26  ;;  %v8614_v33 = vpop.f32.mrf.mxu1  ;;  %v11334_v26 = vld [vmem:[#allocation273_spill] sm:$0xff]  ;;  %v1154_v34 = vadd.f32 1e-20, %v1153_v59 }
 0x43f   : >> { %1827 = vmatmul.f32.gmra.mxu3 %v11317_v60 }
 0x440   : >> { %1200 = vmatmul.f32.gmra.mxu0 %v11316_v58 }
 0x441   : >> { %v8618_v25 = vpop.f32.mrf.mxu2 }
 0x442   : >> { %1409 = vmatmul.f32.gmra.mxu1 %v11318_v28  ;;  %v8621_v22 = vpop.f32.mrf.mxu3 }
 0x445   : >> { %v1156_v51 = vpop.f32.mrf.mxu0 }
 0x446   : >> { %1621 = vmatmul.f32.gmra.mxu2 %v11319_v31  ;;  %v1365_v57 = vpop.f32.mrf.mxu1  ;;  %v11335_v31 = vld [vmem:[#allocation278_spill] sm:$0xff] }
 0x447   : >> { %1830 = vmatmul.f32.gmra.mxu3 %v11321_v27 }
 0x448   : >> { %1203 = vmatmul.f32.gmra.mxu0 %v11320_v40 }
 0x449   : >> { %v8626_v43 = vpop.f32.mrf.mxu2 }
 0x44a   : >> { %1412 = vmatmul.f32.gmra.mxu1 %v11322_v20  ;;  %v8629_v19 = vpop.f32.mrf.mxu3  ;;  %v11336_v20 = vld [vmem:[#allocation276_spill] sm:$0xff] }
 0x44d   : >> { %v1159_v3 = vpop.f32.mrf.mxu0 }
 0x44e   : >> { %1624 = vmatmul.f32.gmra.mxu2 %v11323_v14  ;;  %v1368_v52 = vpop.f32.mrf.mxu1  ;;  %v11337_v14 = vld [vmem:[#allocation279_spill] sm:$0xff] }
 0x44f   : >> { %1833 = vmatmul.f32.gmra.mxu3 %v11325_v5 }
 0x450   : >> { %1206 = vmatmul.f32.gmra.mxu0 %v11324_v24 }
 0x451   : >> { %v1577_v50 = vpop.f32.mrf.mxu2 }
 0x452   : >> { %1415 = vmatmul.f32.gmra.mxu1 %v11326_v2  ;;  %v1786_v17 = vpop.f32.mrf.mxu3 }
 0x455   : >> { %v1162_v6 = vpop.f32.mrf.mxu0 }
 0x456   : >> { %1627 = vmatmul.f32.gmra.mxu2 %v11327_v39  ;;  %v1371_v12 = vpop.f32.mrf.mxu1  ;;  %v1163_v2 = vadd.f32 1e-20, %v1162_v6  ;;  %v11338_v39 = vld [vmem:[#allocation277_spill] sm:$0xff]  ;;  %v11341_v6 = vld [vmem:[#allocation283_spill] sm:$0xff] }
 0x457   : >> { %1836 = vmatmul.f32.gmra.mxu3 %v11329_v46  ;;  %v1160_v46 = vadd.f32 1e-20, %v1159_v3 }
 0x458   : >> { %1209 = vmatmul.f32.gmra.mxu0 %v11328_v18 }
 0x459   : >> { %v1580_v0 = vpop.f32.mrf.mxu2 }
 0x45a   : >> { %1418 = vmatmul.f32.gmra.mxu1 %v11330_v35  ;;  %v1789_v30 = vpop.f32.mrf.mxu3 }
 0x45d   : >> { %v1165_v4 = vpop.f32.mrf.mxu0 }
 0x45e   : >> { %1630 = vmatmul.f32.gmra.mxu2 %v11331_v10  ;;  %v1374_v53 = vpop.f32.mrf.mxu1  ;;  %v1166_v27 = vadd.f32 1e-20, %v1165_v4 }
 0x45f   : >> { %1839 = vmatmul.f32.gmra.mxu3 %v11333_v44  ;;  %v1157_v44 = vadd.f32 1e-20, %v1156_v51 }
 0x460   : >> { %1212 = vmatmul.f32.gmra.mxu0 %v11332_v38  ;;  %v1375_v35 = vadd.f32 %v1374_v53, %v1166_v27 }
 0x461   : >> { %v1583_v1 = vpop.f32.mrf.mxu2  ;;  %v1366_v3 = vadd.f32 %v1365_v57, %v1157_v44 }
 0x462   : >> { %1421 = vmatmul.f32.gmra.mxu1 %v11334_v26  ;;  %v1792_v58 = vpop.f32.mrf.mxu3  ;;  %v1372_v26 = vadd.f32 %v1371_v12, %v1163_v2  ;;  %v1584_v36 = vadd.f32 %v1583_v1, %v1375_v35  ;;  %v1363_v12 = vadd.f32 %v8614_v33, %v1154_v34  ;;  %v11344_v35 = vld [vmem:[#allocation284_spill] sm:$0xff]  ;;  %v1569_v34 = vadd.f32 %v8608_v23, %v8604_v45  ;;  %v11346_v33 = vld [vmem:[#allocation285_spill] sm:$0xff]  ;;  %v11350_v23 = vld [vmem:[#allocation75_spill] sm:$0xff] }
 0x463   : >> { %v1575_v1 = vadd.f32 %v8626_v43, %v1366_v3 }
 0x464   : >> { %v1581_v53 = vadd.f32 %v1580_v0, %v1372_v26  ;;  %v1793_v2 = vadd.f32 %v1792_v58, %v1584_v36  ;;  %v1572_v57 = vadd.f32 %v8618_v25, %v1363_v12  ;;  %v11348_v58 = vld [vmem:[#allocation76_spill] sm:$0xff]  ;;  %v1778_v26 = vadd.f32 %v8611_v13, %v1569_v34 }
 0x465   : >> { %v1168_v60 = vpop.f32.mrf.mxu0  ;;  %v1784_v36 = vadd.f32 %v8629_v19, %v1575_v1 }
 0x466   : >> { %v1169_v28 = vadd.f32 1e-20, %v1168_v60  ;;  %1633 = vmatmul.f32.gmra.mxu2 %v11335_v31  ;;  %v1377_v40 = vpop.f32.mrf.mxu1  ;;  %v11339_v31 = vld [vmem:[#allocation282_spill] sm:$0xff]  ;;  %v1781_v25 = vadd.f32 %v8621_v22, %v1572_v57 }
 0x467   : >> { %1842 = vmatmul.f32.gmra.mxu3 %v11337_v14 }
 0x468   : >> { %1215 = vmatmul.f32.gmra.mxu0 %v11336_v20  ;;  %v1378_v24 = vadd.f32 %v1377_v40, %v1169_v28  ;;  %v1369_v20 = vadd.f32 %v1368_v52, %v1160_v46  ;;  %v11340_v28 = vld [vmem:[#allocation280_spill] sm:$0xff]  ;;  %v1790_v46 = vadd.f32 %v1789_v30, %v1581_v53 }
 0x469   : >> { %v1586_v5 = vpop.f32.mrf.mxu2 }
 0x46a   : >> { %1424 = vmatmul.f32.gmra.mxu1 %v11338_v39  ;;  %v1795_v18 = vpop.f32.mrf.mxu3  ;;  %v1587_v10 = vadd.f32 %v1586_v5, %v1378_v24  ;;  %v11342_v24 = vld [vmem:[#allocation281_spill] sm:$0xff]  ;;  %v1578_v5 = vadd.f32 %v1577_v50, %v1369_v20 }
 0x46c   : >> { %v1796_v40 = vadd.f32 %v1795_v18, %v1587_v10  ;;  %v1787_v0 = vadd.f32 %v1786_v17, %v1578_v5 }
 0x46d   : >> { %v1171_v38 = vpop.f32.mrf.mxu0 }
 0x46e   : >> { %v1172_v60 = vadd.f32 1e-20, %v1171_v38  ;;  %1636 = vmatmul.f32.gmra.mxu2 %v11339_v31  ;;  %v1380_v4 = vpop.f32.mrf.mxu1  ;;  %5572 = vrcp.f32 %v1796_v40  ;;  %v11351_v31 = vld [vmem:[#allocation288_spill] sm:$0xff] }
 0x46f   : >> { %1845 = vmatmul.f32.gmra.mxu3 %v11341_v6 }
 0x470   : >> { %v1381_v14 = vadd.f32 %v1380_v4, %v1172_v60  ;;  %1218 = vmatmul.f32.gmra.mxu0 %v11340_v28 }
 0x471   : >> { %v1589_v39 = vpop.f32.mrf.mxu2 }
 0x472   : >> { %v1590_v27 = vadd.f32 %v1589_v39, %v1381_v14  ;;  %1427 = vmatmul.f32.gmra.mxu1 %v11342_v24  ;;  %v1798_v51 = vpop.f32.mrf.mxu3  ;;  %v11353_v14 = vld [vmem:[#allocation289_spill] sm:$0xff] }
 0x474   : >> { %v1799_v59 = vadd.f32 %v1798_v51, %v1590_v27  ;;  %v5573_v43 = vpop.eup %5572  ;;  %v11355_v51 = vld [vmem:[#allocation292_spill] sm:$0xff] }
 0x475   : >> { %v8652_v52 = vpop.f32.mrf.mxu0  ;;  %v1959_v19 = vmul.f32 %v5573_v43, %v11350_v23 }
 0x476   : >> { %5574 = vrcp.f32 %v1799_v59  ;;  %v8655_v18 = vpop.f32.mrf.mxu1 }
 0x477   : >> { %11343 = vst [vmem:[#allocation604_spill] sm:$0xff] %v8655_v18  ;;  %5576 = vrcp.f32 %v1793_v2  ;;  %v11357_v2 = vld [vmem:[#allocation293_spill] sm:$0xff] }
 0x478   : >> { %1993 = vmatmul.f32.vlgmr.msrb.gmra.mxu0 %v11344_v35  ;;  %5578 = vrcp.f32 %v1790_v46  ;;  %v11359_v46 = vld [vmem:[#allocation68_spill] sm:$0xff] }
 0x479   : >> { %v8659_v10 = vpop.f32.mrf.mxu2  ;;  %5580 = vrcp.f32 %v1787_v0 }
 0x47a   : >> { %11345 = vst [vmem:[#allocation605_spill] sm:$0xff] %v8659_v10  ;;  %2202 = vmatmul.f32.vlgmr.msrb.gmra.mxu1 %v11346_v33  ;;  %v8665_v50 = vpop.f32.mrf.mxu3  ;;  %5582 = vrcp.f32 %v1784_v36  ;;  %v11361_v33 = vld [vmem:[#allocation296_spill] sm:$0xff]  ;;  %v11398_v10 = vld [vmem:[#allocation341_spill] sm:$0xff] }
 0x47b   : >> { %11347 = vst [vmem:[#allocation606_spill] sm:$0xff] %v8665_v50  ;;  %5584 = vrcp.f32 %v1781_v25  ;;  %v11363_v25 = vld [vmem:[#allocation297_spill] sm:$0xff]  ;;  %v11397_v50 = vld [vmem:[#allocation340_spill] sm:$0xff] }
 0x47c   : >> { %v5575_v30 = vpop.eup %5574  ;;  %5586 = vrcp.f32 %v1778_v26 }
 0x47d   : >> { %v8668_v17 = vpop.f32.mrf.mxu0  ;;  %v1960_v38 = vmul.f32 %v5575_v30, %v11348_v58  ;;  %v5577_v44 = vpop.eup %5576  ;;  %5588 = vrcp.f32 %v8601_v21 }
 0x47e   : >> { %v5579_v60 = vpop.eup %5578  ;;  %v1958_v22 = vmul.f32 %v5577_v44, %v11348_v58  ;;  %5590 = vrcp.f32 %v8595_v8 }
 0x47f   : >> { %v8672_v45 = vpop.f32.mrf.mxu1  ;;  %2395 = vmatpush.msrb.mxu2 %v1960_v38  ;;  %v5581_v20 = vpop.eup %5580  ;;  %v1957_v28 = vmul.f32 %v5579_v60, %v11350_v23  ;;  %5592 = vrcp.f32 %v8589_v61  ;;  %v11365_v60 = vld [vmem:[#allocation300_spill] sm:$0xff] }
 0x480   : >> { %11349 = vst [vmem:[#allocation607_spill] sm:$0xff] %v8672_v45  ;;  %1996 = vmatmul.f32.gmra.mxu0 %v11351_v31  ;;  %v5583_v6 = vpop.eup %5582  ;;  %v1956_v39 = vmul.f32 %v5581_v20, %v11348_v58  ;;  %5594 = vrcp.f32 %v8583_v47  ;;  %v11360_v47 = vld [vmem:[#allocation67_spill] sm:$0xff]  ;;  %v11366_v20 = vld [vmem:[#allocation301_spill] sm:$0xff] }
 0x481   : >> { %v8676_v4 = vpop.f32.mrf.mxu2  ;;  %2396 = vmatpush.msrb.mxu2 %v1959_v19  ;;  %v5585_v3 = vpop.eup %5584  ;;  %v1955_v27 = vmul.f32 %v5583_v6, %v11350_v23  ;;  %5596 = vrcp.f32 %v8573_v37 }
 0x482   : >> { %11352 = vst [vmem:[#allocation608_spill] sm:$0xff] %v8676_v4  ;;  %2205 = vmatmul.f32.gmra.mxu1 %v11353_v14  ;;  %v8680_v13 = vpop.f32.mrf.mxu3  ;;  %v5587_v24 = vpop.eup %5586  ;;  %v1954_v21 = vmul.f32 %v5585_v3, %v11348_v58  ;;  %5598 = vrcp.f32 %v8560_v42 }
 0x483   : >> { %11354 = vst [vmem:[#allocation609_spill] sm:$0xff] %v8680_v13  ;;  %2397 = vmatpush.msrb.mxu2 %v1958_v22  ;;  %v5589_v5 = vpop.eup %5588  ;;  %v1953_v59 = vmul.f32 %v5587_v24, %v11350_v23  ;;  %5600 = vrcp.f32 %v8546_v9 }
 0x484   : >> { %v5591_v1 = vpop.eup %5590  ;;  %v1952_v57 = vmul.f32 %v5589_v5, %v11359_v46  ;;  %5602 = vrcp.f32 %v8534_v7 }
 0x485   : >> { %v8684_v40 = vpop.f32.mrf.mxu0  ;;  %2398 = vmatpush.msrb.mxu2 %v1957_v28  ;;  %v5593_v0 = vpop.eup %5592  ;;  %v1951_v34 = vmul.f32 %v5591_v1, %v11360_v47  ;;  %v11373_v1 = vld [vmem:[#allocation308_spill] sm:$0xff] }
 0x486   : >> { %v5595_v36 = vpop.eup %5594  ;;  %v1950_v37 = vmul.f32 %v5593_v0, %v11359_v46 }
 0x487   : >> { %v8688_v53 = vpop.f32.mrf.mxu1  ;;  %2399 = vmatpush.msrb.mxu2 %v1956_v39  ;;  %v5597_v30 = vpop.eup %5596  ;;  %v1949_v58 = vmul.f32 %v5595_v36, %v11360_v47  ;;  %v11368_v39 = vld [vmem:[#allocation286_spill] sm:$0xff] }
 0x488   : >> { %1999 = vmatmul.f32.gmra.mxu0 %v11355_v51  ;;  %v5599_v38 = vpop.eup %5598  ;;  %v1948_v9 = vmul.f32 %v5597_v30, %v11359_v46  ;;  %v11370_v51 = vld [vmem:[#allocation305_spill] sm:$0xff] }
 0x489   : >> { %v8693_v12 = vpop.f32.mrf.mxu2  ;;  %2400 = vmatpush.msrb.mxu2 %v1955_v27  ;;  %v5601_v26 = vpop.eup %5600  ;;  %v1947_v19 = vmul.f32 %v5599_v38, %v11360_v47  ;;  %v11369_v27 = vld [vmem:[#allocation304_spill] sm:$0xff]  ;;  %v11377_v30 = vld [vmem:[#allocation313_spill] sm:$0xff] }
 0x48a   : >> { %11356 = vst [vmem:[#allocation610_spill] sm:$0xff] %v8693_v12  ;;  %2208 = vmatmul.f32.gmra.mxu1 %v11357_v2  ;;  %v8698_v8 = vpop.f32.mrf.mxu3  ;;  %v5603_v7 = vpop.eup %5602  ;;  %v1946_v22 = vmul.f32 %v5601_v26, %v11359_v46  ;;  %v11372_v2 = vld [vmem:[#allocation290_spill] sm:$0xff] }
 0x48b   : >> { %11358 = vst [vmem:[#allocation611_spill] sm:$0xff] %v8698_v8  ;;  %2401 = vmatpush.msrb.mxu2 %v1954_v21  ;;  %v1945_v28 = vmul.f32 %v5603_v7, %v11360_v47  ;;  %v11379_v7 = vld [vmem:[#allocation316_spill] sm:$0xff] }
 0x48d   : >> { %v8702_v61 = vpop.f32.mrf.mxu0  ;;  %2402 = vmatpush.msrb.mxu2 %v1953_v59 }
 0x48f   : >> { %v8706_v35 = vpop.f32.mrf.mxu1  ;;  %2403 = vmatpush.msrb.mxu2 %v1952_v57  ;;  %v11374_v57 = vld [vmem:[#allocation309_spill] sm:$0xff] }
 0x490   : >> { %2002 = vmatmul.f32.gmra.mxu0 %v11361_v33  ;;  %v11376_v33 = vld [vmem:[#allocation312_spill] sm:$0xff] }
 0x491   : >> { %v8711_v43 = vpop.f32.mrf.mxu2  ;;  %2404 = vmatpush.msrb.mxu2 %v1951_v34  ;;  %v11375_v34 = vld [vmem:[#allocation294_spill] sm:$0xff] }
 0x492   : >> { %11362 = vst [vmem:[#allocation612_spill] sm:$0xff] %v8711_v43  ;;  %2211 = vmatmul.f32.gmra.mxu1 %v11363_v25  ;;  %v8716_v42 = vpop.f32.mrf.mxu3 }
 0x493   : >> { %11364 = vst [vmem:[#allocation613_spill] sm:$0xff] %v8716_v42  ;;  %2405 = vmatpush.msrb.mxu2 %v1950_v37 }
 0x495   : >> { %v8719_v44 = vpop.f32.mrf.mxu0  ;;  %2406 = vmatpush.msrb.mxu2 %v1949_v58 }
 0x497   : >> { %v8722_v23 = vpop.f32.mrf.mxu1  ;;  %2407 = vmatpush.msrb.mxu2 %v1948_v9  ;;  %v11378_v9 = vld [vmem:[#allocation298_spill] sm:$0xff] }
 0x498   : >> { %2005 = vmatmul.f32.gmra.mxu0 %v11365_v60 }
 0x499   : >> { %v8726_v31 = vpop.f32.mrf.mxu2  ;;  %2408 = vmatpush.msrb.mxu2 %v1947_v19 }
 0x49a   : >> { %2214 = vmatmul.f32.gmra.mxu1 %v11366_v20  ;;  %v8730_v14 = vpop.f32.mrf.mxu3 }
 0x49b   : >> { %11367 = vst [vmem:[#allocation614_spill] sm:$0xff] %v8730_v14  ;;  %2409 = vmatpush.msrb.mxu2 %v1946_v22  ;;  %v11380_v22 = vld [vmem:[#allocation317_spill] sm:$0xff] }
 0x49d   : >> { %v8733_v6 = vpop.f32.mrf.mxu0  ;;  %2410 = vmatpush.msrb.mxu2 %v1945_v28 }
 0x49e   : >> { %2411 = vmatmul.f32.vlgmr.msrb.gmra.mxu2 %v11368_v39  ;;  %v11381_v39 = vld [vmem:[#allocation302_spill] sm:$0xff] }
 0x49f   : >> { %v8736_v3 = vpop.f32.mrf.mxu1 }
 0x4a0   : >> { %2008 = vmatmul.f32.gmra.mxu0 %v11369_v27 }
 0x4a1   : >> { %v8739_v24 = vpop.f32.mrf.mxu2 }
 0x4a2   : >> { %2217 = vmatmul.f32.gmra.mxu1 %v11370_v51  ;;  %v8742_v21 = vpop.f32.mrf.mxu3  ;;  %v11382_v51 = vld [vmem:[#allocation320_spill] sm:$0xff] }
 0x4a3   : >> { %11371 = vst [vmem:[#allocation615_spill] sm:$0xff] %v8742_v21 }
 0x4a5   : >> { %v8744_v5 = vpop.f32.mrf.mxu0 }
 0x4a6   : >> { %2414 = vmatmul.f32.gmra.mxu2 %v11372_v2 }
 0x4a7   : >> { %v8747_v59 = vpop.f32.mrf.mxu1 }
 0x4a8   : >> { %2011 = vmatmul.f32.gmra.mxu0 %v11373_v1  ;;  %v11383_v1 = vld [vmem:[#allocation321_spill] sm:$0xff] }
 0x4a9   : >> { %v8750_v46 = vpop.f32.mrf.mxu2 }
 0x4aa   : >> { %2220 = vmatmul.f32.gmra.mxu1 %v11374_v57  ;;  %v8753_v0 = vpop.f32.mrf.mxu3 }
 0x4ad   : >> { %v8755_v47 = vpop.f32.mrf.mxu0 }
 0x4ae   : >> { %2417 = vmatmul.f32.gmra.mxu2 %v11375_v34 }
 0x4af   : >> { %v8758_v36 = vpop.f32.mrf.mxu1 }
 0x4b0   : >> { %2014 = vmatmul.f32.gmra.mxu0 %v11376_v33  ;;  %v11384_v33 = vld [vmem:[#allocation306_spill] sm:$0xff] }
 0x4b1   : >> { %v8761_v37 = vpop.f32.mrf.mxu2 }
 0x4b2   : >> { %2223 = vmatmul.f32.gmra.mxu1 %v11377_v30  ;;  %v8764_v25 = vpop.f32.mrf.mxu3 }
 0x4b5   : >> { %v1198_v58 = vpop.f32.mrf.mxu0 }
 0x4b6   : >> { %v1199_v38 = vadd.f32 1e-20, %v1198_v58  ;;  %2420 = vmatmul.f32.gmra.mxu2 %v11378_v9  ;;  %v11385_v58 = vld [vmem:[#allocation324_spill] sm:$0xff]  ;;  %v11386_v9 = vld [vmem:[#allocation325_spill] sm:$0xff] }
 0x4b7   : >> { %v1407_v26 = vpop.f32.mrf.mxu1 }
 0x4b8   : >> { %v8767_v19 = vadd.f32 %v1407_v26, %v1199_v38  ;;  %2017 = vmatmul.f32.gmra.mxu0 %v11379_v7 }
 0x4b9   : >> { %v8770_v60 = vpop.f32.mrf.mxu2 }
 0x4ba   : >> { %2226 = vmatmul.f32.gmra.mxu1 %v11380_v22  ;;  %v8773_v20 = vpop.f32.mrf.mxu3  ;;  %v11387_v22 = vld [vmem:[#allocation310_spill] sm:$0xff] }
 0x4bd   : >> { %v1201_v28 = vpop.f32.mrf.mxu0 }
 0x4be   : >> { %2423 = vmatmul.f32.gmra.mxu2 %v11381_v39  ;;  %v1202_v21 = vadd.f32 1e-20, %v1201_v28 }
 0x4bf   : >> { %v8776_v27 = vpop.f32.mrf.mxu1 }
 0x4c0   : >> { %2020 = vmatmul.f32.gmra.mxu0 %v11382_v51  ;;  %v11388_v51 = vld [vmem:[#allocation328_spill] sm:$0xff] }
 0x4c1   : >> { %v8779_v2 = vpop.f32.mrf.mxu2 }
 0x4c2   : >> { %2229 = vmatmul.f32.gmra.mxu1 %v11383_v1  ;;  %v8782_v57 = vpop.f32.mrf.mxu3 }
 0x4c5   : >> { %v1204_v34 = vpop.f32.mrf.mxu0 }
 0x4c6   : >> { %2426 = vmatmul.f32.gmra.mxu2 %v11384_v33 }
 0x4c7   : >> { %v1413_v30 = vpop.f32.mrf.mxu1 }
 0x4c8   : >> { %2023 = vmatmul.f32.gmra.mxu0 %v11385_v58 }
 0x4c9   : >> { %v8786_v38 = vpop.f32.mrf.mxu2 }
 0x4ca   : >> { %2232 = vmatmul.f32.gmra.mxu1 %v11386_v9  ;;  %v8789_v26 = vpop.f32.mrf.mxu3  ;;  %v11392_v9 = vld [vmem:[#allocation333_spill] sm:$0xff] }
 0x4cd   : >> { %v1207_v7 = vpop.f32.mrf.mxu0 }
 0x4ce   : >> { %2429 = vmatmul.f32.gmra.mxu2 %v11387_v22  ;;  %v1208_v42 = vadd.f32 1e-20, %v1207_v7 }
 0x4cf   : >> { %v1416_v39 = vpop.f32.mrf.mxu1 }
 0x4d0   : >> { %2026 = vmatmul.f32.gmra.mxu0 %v11388_v51 }
 0x4d1   : >> { %v1625_v1 = vpop.f32.mrf.mxu2 }
 0x4d2   : >> { %2235 = vmatmul.f32.gmra.mxu1 %v11389_v41  ;;  %v1834_v11 = vpop.f32.mrf.mxu3 }
 0x4d5   : >> { %v1210_v33 = vpop.f32.mrf.mxu0 }
 0x4d6   : >> { %2432 = vmatmul.f32.gmra.mxu2 %v11390_v32  ;;  %v11396_v32 = vld [vmem:[#allocation322_spill] sm:$0xff]  ;;  %v1211_v8 = vadd.f32 1e-20, %v1210_v33 }
 0x4d7   : >> { %v1419_v58 = vpop.f32.mrf.mxu1 }
 0x4d8   : >> { %2029 = vmatmul.f32.gmra.mxu0 %v11391_v16  ;;  %v1420_v12 = vadd.f32 %v1419_v58, %v1211_v8 }
 0x4d9   : >> { %v1628_v29 = vpop.f32.mrf.mxu2 }
 0x4da   : >> { %2238 = vmatmul.f32.gmra.mxu1 %v11392_v9  ;;  %v1837_v62 = vpop.f32.mrf.mxu3  ;;  %v1629_v45 = vadd.f32 %v1628_v29, %v1420_v12  ;;  %v1190_v29 = vadd.f32 1e-20, %v8733_v6 }
 0x4dd   : >> { %v1213_v15 = vpop.f32.mrf.mxu0 }
 0x4de   : >> { %2435 = vmatmul.f32.gmra.mxu2 %v11393_v56  ;;  %v1214_v16 = vadd.f32 1e-20, %v1213_v15  ;;  %v1417_v15 = vadd.f32 %v1416_v39, %v1208_v42 }
 0x4df   : >> { %v1422_v22 = vpop.f32.mrf.mxu1 }
 0x4e0   : >> { %2032 = vmatmul.f32.gmra.mxu0 %v11394_v63  ;;  %v1423_v63 = vadd.f32 %v1422_v22, %v1214_v16  ;;  %v11401_v22 = vld [vmem:[#allocation345_spill] sm:$0xff] }
 0x4e1   : >> { %v1631_v51 = vpop.f32.mrf.mxu2 }
 0x4e2   : >> { %2241 = vmatmul.f32.gmra.mxu1 %v11395_v49  ;;  %v1840_v41 = vpop.f32.mrf.mxu3  ;;  %v1205_v49 = vadd.f32 1e-20, %v1204_v34  ;;  %v1632_v43 = vadd.f32 %v1631_v51, %v1423_v63  ;;  %v1626_v34 = vadd.f32 %v1625_v1, %v1417_v15  ;;  %v11405_v1 = vld [vmem:[#allocation115_spill] sm:$0xff] }
 0x4e4   : >> { %v1841_v58 = vadd.f32 %v1840_v41, %v1632_v43  ;;  %v1835_v39 = vadd.f32 %v1834_v11, %v1626_v34  ;;  %v1187_v43 = vadd.f32 1e-20, %v8719_v44  ;;  %v1399_v11 = vadd.f32 %v8736_v3, %v1190_v29 }
 0x4e5   : >> { %v1216_v55 = vpop.f32.mrf.mxu0  ;;  %v1178_v3 = vadd.f32 1e-20, %v8668_v17 }
 0x4e6   : >> { %v1217_v48 = vadd.f32 1e-20, %v1216_v55  ;;  %2438 = vmatmul.f32.gmra.mxu2 %v11396_v32  ;;  %v11399_v55 = vld [vmem:[#allocation326_spill] sm:$0xff] }
 0x4e7   : >> { %v1425_v54 = vpop.f32.mrf.mxu1 }
 0x4e8   : >> { %2035 = vmatmul.f32.gmra.mxu0 %v11397_v50  ;;  %v1426_v9 = vadd.f32 %v1425_v54, %v1217_v48  ;;  %v11400_v48 = vld [vmem:[#allocation344_spill] sm:$0xff] }
 0x4e9   : >> { %v1634_v13 = vpop.f32.mrf.mxu2 }
 0x4ea   : >> { %2244 = vmatmul.f32.gmra.mxu1 %v11398_v10  ;;  %v1843_v56 = vpop.f32.mrf.mxu3  ;;  %v1635_v4 = vadd.f32 %v1634_v13, %v1426_v9  ;;  %v1414_v10 = vadd.f32 %v1413_v30, %v1205_v49  ;;  %v1196_v13 = vadd.f32 1e-20, %v8755_v47  ;;  %v11402_v30 = vld [vmem:[#allocation330_spill] sm:$0xff]  ;;  %v1608_v9 = vadd.f32 %v8739_v24, %v1399_v11 }
 0x4eb   : >> { %v11425_v11 = vld [vmem:[#allocation606_spill] sm:$0xff] }
 0x4ec   : >> { %v1844_v54 = vadd.f32 %v1843_v56, %v1635_v4  ;;  %v1623_v42 = vadd.f32 %v8786_v38, %v1414_v10  ;;  %v1838_v4 = vadd.f32 %v1837_v62, %v1629_v45  ;;  %v1405_v12 = vadd.f32 %v8758_v36, %v1196_v13  ;;  %v11414_v10 = vld [vmem:[#allocation610_spill] sm:$0xff] }
 0x4ed   : >> { %v1219_v14 = vpop.f32.mrf.mxu0  ;;  %v1617_v62 = vadd.f32 %v8770_v60, %v8767_v19  ;;  %v1184_v36 = vadd.f32 1e-20, %v8702_v61  ;;  %v11406_v61 = vld [vmem:[#allocation334_spill] sm:$0xff] }
 0x4ee   : >> { %v1220_v18 = vadd.f32 1e-20, %v1219_v14  ;;  %2441 = vmatmul.f32.gmra.mxu2 %v11399_v55  ;;  %v1411_v14 = vadd.f32 %v8776_v27, %v1202_v21  ;;  %5604 = vrcp.f32 %v1844_v54  ;;  %v11403_v21 = vld [vmem:[#allocation348_spill] sm:$0xff]  ;;  %v1832_v45 = vadd.f32 %v8789_v26, %v1623_v42  ;;  %v11404_v27 = vld [vmem:[#allocation349_spill] sm:$0xff] }
 0x4ef   : >> { %v1428_v32 = vpop.f32.mrf.mxu1  ;;  %v1614_v38 = vadd.f32 %v8761_v37, %v1405_v12  ;;  %v1396_v26 = vadd.f32 %v8722_v23, %v1187_v43  ;;  %v1826_v41 = vadd.f32 %v8773_v20, %v1617_v62  ;;  %v11407_v37 = vld [vmem:[#allocation114_spill] sm:$0xff]  ;;  %v11408_v23 = vld [vmem:[#allocation352_spill] sm:$0xff]  ;;  %v11420_v12 = vld [vmem:[#allocation605_spill] sm:$0xff] }
 0x4f0   : >> { %v1429_v50 = vadd.f32 %v1428_v32, %v1220_v18  ;;  %2038 = vmatmul.f32.gmra.mxu0 %v11400_v48  ;;  %v1193_v18 = vadd.f32 1e-20, %v8744_v5  ;;  %v1620_v47 = vadd.f32 %v8779_v2, %v1411_v14  ;;  %v11410_v32 = vld [vmem:[#allocation607_spill] sm:$0xff]  ;;  %v11422_v43 = vld [vmem:[#allocation357_spill] sm:$0xff] }
 0x4f1   : >> { %v1637_v33 = vpop.f32.mrf.mxu2  ;;  %v1823_v56 = vadd.f32 %v8764_v25, %v1614_v38  ;;  %v1605_v49 = vadd.f32 %v8726_v31, %v1396_v26  ;;  %v1387_v15 = vadd.f32 %v11410_v32, %v1178_v3  ;;  %v11412_v48 = vld [vmem:[#allocation615_spill] sm:$0xff]  ;;  %v11440_v32 = vld [vmem:[#allocation373_spill] sm:$0xff] }
 0x4f2   : >> { %v1638_v7 = vadd.f32 %v1637_v33, %v1429_v50  ;;  %2247 = vmatmul.f32.gmra.mxu1 %v11401_v22  ;;  %v1846_v8 = vpop.f32.mrf.mxu3  ;;  %v1402_v5 = vadd.f32 %v8747_v59, %v1193_v18  ;;  %v1829_v44 = vadd.f32 %v8782_v57, %v1620_v47  ;;  %v1181_v59 = vadd.f32 1e-20, %v8684_v40  ;;  %v11413_v33 = vld [vmem:[#allocation604_spill] sm:$0xff]  ;;  %v11415_v22 = vld [vmem:[#allocation614_spill] sm:$0xff]  ;;  %v11418_v18 = vld [vmem:[#allocation613_spill] sm:$0xff] }
 0x4f3   : >> { %v1393_v40 = vadd.f32 %v8706_v35, %v1184_v36  ;;  %v11409_v35 = vld [vmem:[#allocation353_spill] sm:$0xff]  ;;  %v1817_v54 = vadd.f32 %v11412_v48, %v1608_v9  ;;  %v1814_v13 = vadd.f32 %v11415_v22, %v1605_v49  ;;  %v11435_v49 = vld [vmem:[#allocation368_spill] sm:$0xff]  ;;  %v11452_v22 = vld [vmem:[#allocation374_spill] sm:$0xff] }
 0x4f4   : >> { %v1847_v28 = vadd.f32 %v1846_v8, %v1638_v7  ;;  %v5605_v6 = vpop.eup %5604  ;;  %v1611_v51 = vadd.f32 %v8750_v46, %v1402_v5  ;;  %v1175_v46 = vadd.f32 1e-20, %v8652_v52  ;;  %v1390_v17 = vadd.f32 %v8688_v53, %v1181_v59  ;;  %v11411_v52 = vld [vmem:[#allocation612_spill] sm:$0xff]  ;;  %v11416_v8 = vld [vmem:[#allocation338_spill] sm:$0xff]  ;;  %v11444_v48 = vld [vmem:[#allocation377_spill] sm:$0xff] }
 0x4f5   : >> { %v1975_v57 = vmul.f32 %v5605_v6, %v11407_v37  ;;  %v1602_v50 = vadd.f32 %v11411_v52, %v1393_v40  ;;  %v11424_v6 = vld [vmem:[#allocation87_spill] sm:$0xff]  ;;  %v11427_v59 = vld [vmem:[#allocation86_spill] sm:$0xff] }
 0x4f6   : >> { %5606 = vrcp.f32 %v1847_v28  ;;  %2444 = vmatmul.f32.gmra.mxu2 %v11402_v30  ;;  %v1820_v55 = vadd.f32 %v8753_v0, %v1611_v51  ;;  %v1384_v0 = vadd.f32 %v11413_v33, %v1175_v46  ;;  %v1599_v7 = vadd.f32 %v11414_v10, %v1390_v17  ;;  %v11432_v46 = vld [vmem:[#allocation365_spill] sm:$0xff]  ;;  %v11434_v17 = vld [vmem:[#allocation350_spill] sm:$0xff] }
 0x4f7   : >> { %5608 = vrcp.f32 %v1841_v58  ;;  %v11417_v58 = vld [vmem:[#allocation608_spill] sm:$0xff]  ;;  %v1811_v42 = vadd.f32 %v11418_v18, %v1602_v50  ;;  %v11442_v52 = vld [vmem:[#allocation358_spill] sm:$0xff]  ;;  %v1994_v18 = vpop.f32.mrf.mxu0 }
 0x4f8   : >> { %2041 = vmatmul.f32.gmra.mxu0 %v11403_v21  ;;  %5610 = vrcp.f32 %v1838_v4  ;;  %v1596_v28 = vadd.f32 %v11417_v58, %v1387_v15  ;;  %v11419_v4 = vld [vmem:[#allocation356_spill] sm:$0xff]  ;;  %v1593_v47 = vadd.f32 %v11420_v12, %v1384_v0  ;;  %v11441_v15 = vld [vmem:[#allocation295_spill] sm:$0xff]  ;;  %v11448_v33 = vld [vmem:[#allocation366_spill] sm:$0xff] }
 0x4f9   : >> { %5612 = vrcp.f32 %v1835_v39  ;;  %v11421_v39 = vld [vmem:[#allocation611_spill] sm:$0xff]  ;;  %v11443_v50 = vld [vmem:[#allocation376_spill] sm:$0xff]  ;;  %v11450_v10 = vld [vmem:[#allocation370_spill] sm:$0xff] }
 0x4fa   : >> { %2250 = vmatmul.f32.gmra.mxu1 %v11404_v27  ;;  %5614 = vrcp.f32 %v1832_v45  ;;  %v1808_v21 = vadd.f32 %v11421_v39, %v1599_v7  ;;  %v11423_v45 = vld [vmem:[#allocation609_spill] sm:$0xff]  ;;  %v1802_v38 = vadd.f32 %v11425_v11, %v1593_v47  ;;  %v11449_v0 = vld [vmem:[#allocation307_spill] sm:$0xff]  ;;  %v11462_v39 = vld [vmem:[#allocation382_spill] sm:$0xff] }
 0x4fb   : >> { %5616 = vrcp.f32 %v1829_v44  ;;  %v1805_v27 = vadd.f32 %v11423_v45, %v1596_v28  ;;  %v11426_v44 = vld [vmem:[#allocation342_spill] sm:$0xff]  ;;  %v11451_v7 = vld [vmem:[#allocation311_spill] sm:$0xff]  ;;  %v11464_v45 = vld [vmem:[#allocation385_spill] sm:$0xff] }
 0x4fc   : >> { %v5607_v2 = vpop.eup %5606  ;;  %5618 = vrcp.f32 %v1826_v41  ;;  %v11429_v41 = vld [vmem:[#allocation361_spill] sm:$0xff]  ;;  %v11457_v58 = vld [vmem:[#allocation327_spill] sm:$0xff] }
 0x4fd   : >> { %v1976_v19 = vmul.f32 %v5607_v2, %v11405_v1  ;;  %v5609_v60 = vpop.eup %5608  ;;  %5620 = vrcp.f32 %v1823_v56  ;;  %v11431_v56 = vld [vmem:[#allocation364_spill] sm:$0xff]  ;;  %v11458_v28 = vld [vmem:[#allocation331_spill] sm:$0xff] }
 0x4fe   : >> { %2447 = vmatmul.f32.gmra.mxu2 %v11406_v61  ;;  %v5611_v16 = vpop.eup %5610  ;;  %v1974_v20 = vmul.f32 %v5609_v60, %v11405_v1  ;;  %5622 = vrcp.f32 %v1820_v55  ;;  %v11428_v60 = vld [vmem:[#allocation360_spill] sm:$0xff]  ;;  %v11436_v55 = vld [vmem:[#allocation369_spill] sm:$0xff]  ;;  %v11461_v12 = vld [vmem:[#allocation335_spill] sm:$0xff] }
 0x4ff   : >> { %2604 = vmatpush.msrb.mxu3 %v1976_v19  ;;  %v5613_v63 = vpop.eup %5612  ;;  %v1973_v24 = vmul.f32 %v5611_v16, %v11407_v37  ;;  %5624 = vrcp.f32 %v1817_v54  ;;  %v11430_v16 = vld [vmem:[#allocation346_spill] sm:$0xff]  ;;  %v11445_v54 = vld [vmem:[#allocation299_spill] sm:$0xff] }
 0x500   : >> { %2044 = vmatmul.f32.gmra.mxu0 %v11408_v23  ;;  %v5615_v25 = vpop.eup %5614  ;;  %v1972_v53 = vmul.f32 %v5613_v63, %v11405_v1  ;;  %5626 = vrcp.f32 %v1814_v13  ;;  %v11433_v63 = vld [vmem:[#allocation287_spill] sm:$0xff] }
 0x501   : >> { %2605 = vmatpush.msrb.mxu3 %v1975_v57  ;;  %v5617_v31 = vpop.eup %5616  ;;  %v1971_v14 = vmul.f32 %v5615_v25, %v11407_v37  ;;  %5628 = vrcp.f32 %v1811_v42  ;;  %v11439_v25 = vld [vmem:[#allocation372_spill] sm:$0xff]  ;;  %v11453_v13 = vld [vmem:[#allocation315_spill] sm:$0xff]  ;;  %v2203_v42 = vpop.f32.mrf.mxu1 }
 0x502   : >> { %2253 = vmatmul.f32.gmra.mxu1 %v11409_v35  ;;  %v5619_v34 = vpop.eup %5618  ;;  %v1970_v30 = vmul.f32 %v5617_v31, %v11405_v1  ;;  %5630 = vrcp.f32 %v1808_v21  ;;  %v11437_v35 = vld [vmem:[#allocation291_spill] sm:$0xff] }
 0x503   : >> { %2606 = vmatpush.msrb.mxu3 %v1974_v20  ;;  %v5621_v29 = vpop.eup %5620  ;;  %v1969_v5 = vmul.f32 %v5619_v34, %v11407_v37  ;;  %5632 = vrcp.f32 %v1805_v27  ;;  %v11447_v31 = vld [vmem:[#allocation303_spill] sm:$0xff] }
 0x504   : >> { %v5623_v62 = vpop.eup %5622  ;;  %v1968_v36 = vmul.f32 %v5621_v29, %v11424_v6  ;;  %5634 = vrcp.f32 %v1802_v38  ;;  %v11456_v34 = vld [vmem:[#allocation323_spill] sm:$0xff]  ;;  %v11460_v29 = vld [vmem:[#allocation381_spill] sm:$0xff] }
 0x505   : >> { %2607 = vmatpush.msrb.mxu3 %v1973_v24  ;;  %v5625_v2 = vpop.eup %5624  ;;  %v1967_v1 = vmul.f32 %v5623_v62, %v11427_v59  ;;  %v11438_v24 = vld [vmem:[#allocation354_spill] sm:$0xff]  ;;  %v11463_v62 = vld [vmem:[#allocation384_spill] sm:$0xff] }
 0x506   : >> { %2450 = vmatmul.f32.gmra.mxu2 %v11416_v8  ;;  %v5627_v19 = vpop.eup %5626  ;;  %v1966_v26 = vmul.f32 %v5625_v2, %v11424_v6  ;;  %v11454_v8 = vld [vmem:[#allocation378_spill] sm:$0xff] }
 0x507   : >> { %2608 = vmatpush.msrb.mxu3 %v1972_v53  ;;  %v5629_v51 = vpop.eup %5628  ;;  %v1965_v61 = vmul.f32 %v5627_v19, %v11427_v59  ;;  %v11446_v53 = vld [vmem:[#allocation362_spill] sm:$0xff]  ;;  %v11469_v19 = vld [vmem:[#allocation343_spill] sm:$0xff] }
 0x508   : >> { %2047 = vmatmul.f32.gmra.mxu0 %v11419_v4  ;;  %v5631_v3 = vpop.eup %5630  ;;  %v1964_v37 = vmul.f32 %v5629_v51, %v11424_v6  ;;  %v11459_v4 = vld [vmem:[#allocation380_spill] sm:$0xff]  ;;  %v11466_v2 = vld [vmem:[#allocation386_spill] sm:$0xff] }
 0x509   : >> { %2609 = vmatpush.msrb.mxu3 %v1971_v14  ;;  %v5633_v57 = vpop.eup %5632  ;;  %v1963_v40 = vmul.f32 %v5631_v3, %v11427_v59  ;;  %v11455_v14 = vld [vmem:[#allocation319_spill] sm:$0xff]  ;;  %v11470_v51 = vld [vmem:[#allocation390_spill] sm:$0xff] }
 0x50a   : >> { %2256 = vmatmul.f32.gmra.mxu1 %v11422_v43  ;;  %v5635_v9 = vpop.eup %5634  ;;  %v1962_v23 = vmul.f32 %v5633_v57, %v11424_v6  ;;  %v1997_v43 = vpop.f32.mrf.mxu0  ;;  %v11465_v6 = vld [vmem:[#allocation339_spill] sm:$0xff]  ;;  %v11472_v57 = vld [vmem:[#allocation393_spill] sm:$0xff] }
 0x50b   : >> { %2610 = vmatpush.msrb.mxu3 %v1970_v30  ;;  %v1961_v20 = vmul.f32 %v5635_v9, %v11427_v59  ;;  %v2204_v30 = vadd.f32 %v2203_v42, %v1994_v18  ;;  %v11467_v59 = vld [vmem:[#allocation388_spill] sm:$0xff]  ;;  %v11486_v42 = vld [vmem:[#allocation405_spill] sm:$0xff] }
 0x50c   : >> { %v11485_v18 = vld [vmem:[#allocation404_spill] sm:$0xff] }
 0x50d   : >> { %2611 = vmatpush.msrb.mxu3 %v1969_v5  ;;  %v2206_v5 = vpop.f32.mrf.mxu1 }
 0x50e   : >> { %2453 = vmatmul.f32.gmra.mxu2 %v11426_v44  ;;  %v2207_v27 = vadd.f32 %v2206_v5, %v1997_v43 }
 0x50f   : >> { %2612 = vmatpush.msrb.mxu3 %v1968_v36 }
 0x510   : >> { %2050 = vmatmul.f32.gmra.mxu0 %v11428_v60 }
 0x511   : >> { %2613 = vmatpush.msrb.mxu3 %v1967_v1  ;;  %v11468_v1 = vld [vmem:[#allocation389_spill] sm:$0xff] }
 0x512   : >> { %2259 = vmatmul.f32.gmra.mxu1 %v11429_v41  ;;  %v2000_v38 = vpop.f32.mrf.mxu0 }
 0x513   : >> { %2614 = vmatpush.msrb.mxu3 %v1966_v26 }
 0x515   : >> { %2615 = vmatpush.msrb.mxu3 %v1965_v61  ;;  %v2209_v44 = vpop.f32.mrf.mxu1 }
 0x516   : >> { %2456 = vmatmul.f32.gmra.mxu2 %v11430_v16  ;;  %v2210_v60 = vadd.f32 %v2209_v44, %v2000_v38  ;;  %v11473_v16 = vld [vmem:[#allocation347_spill] sm:$0xff] }
 0x517   : >> { %2616 = vmatpush.msrb.mxu3 %v1964_v37  ;;  %v11471_v37 = vld [vmem:[#allocation392_spill] sm:$0xff]  ;;  %v11491_v38 = vld [vmem:[#allocation363_spill] sm:$0xff] }
 0x518   : >> { %2053 = vmatmul.f32.gmra.mxu0 %v11431_v56  ;;  %v11474_v56 = vld [vmem:[#allocation394_spill] sm:$0xff] }
 0x519   : >> { %2617 = vmatpush.msrb.mxu3 %v1963_v40 }
 0x51a   : >> { %2262 = vmatmul.f32.gmra.mxu1 %v11432_v46  ;;  %v2003_v61 = vpop.f32.mrf.mxu0 }
 0x51b   : >> { %2618 = vmatpush.msrb.mxu3 %v1962_v23 }
 0x51d   : >> { %2619 = vmatpush.msrb.mxu3 %v1961_v20  ;;  %v2212_v3 = vpop.f32.mrf.mxu1 }
 0x51e   : >> { %2620 = vmatmul.f32.vlgmr.msrb.gmra.mxu3 %v11433_v63  ;;  %2459 = vmatmul.f32.gmra.mxu2 %v11434_v17  ;;  %v2213_v40 = vadd.f32 %v2212_v3, %v2003_v61  ;;  %v11475_v63 = vld [vmem:[#allocation396_spill] sm:$0xff]  ;;  %v11476_v17 = vld [vmem:[#allocation397_spill] sm:$0xff]  ;;  %v11493_v3 = vld [vmem:[#allocation602_spill] sm:$0xff] }
 0x520   : >> { %2056 = vmatmul.f32.gmra.mxu0 %v11435_v49  ;;  %v11477_v49 = vld [vmem:[#allocation351_spill] sm:$0xff] }
 0x521   : >> { %v2412_v47 = vpop.f32.mrf.mxu2 }
 0x522   : >> { %2265 = vmatmul.f32.gmra.mxu1 %v11436_v55  ;;  %v2413_v21 = vadd.f32 %v2412_v47, %v2204_v30  ;;  %v2006_v46 = vpop.f32.mrf.mxu0  ;;  %v11487_v30 = vld [vmem:[#allocation359_spill] sm:$0xff]  ;;  %v11488_v47 = vld [vmem:[#allocation406_spill] sm:$0xff] }
 0x525   : >> { %v2215_v20 = vpop.f32.mrf.mxu1 }
 0x526   : >> { %2623 = vmatmul.f32.gmra.mxu3 %v11437_v35  ;;  %2462 = vmatmul.f32.gmra.mxu2 %v11438_v24  ;;  %v2216_v55 = vadd.f32 %v2215_v20, %v2006_v46  ;;  %v11478_v24 = vld [vmem:[#allocation398_spill] sm:$0xff]  ;;  %v11496_v46 = vld [vmem:[#allocation413_spill] sm:$0xff] }
 0x528   : >> { %2059 = vmatmul.f32.gmra.mxu0 %v11439_v25 }
 0x529   : >> { %v2415_v36 = vpop.f32.mrf.mxu2 }
 0x52a   : >> { %2268 = vmatmul.f32.gmra.mxu1 %v11440_v32  ;;  %v2416_v11 = vadd.f32 %v2415_v36, %v2207_v27  ;;  %v11489_v36 = vld [vmem:[#allocation408_spill] sm:$0xff] }
 0x52e   : >> { %2626 = vmatmul.f32.gmra.mxu3 %v11441_v15  ;;  %2465 = vmatmul.f32.gmra.mxu2 %v11442_v52  ;;  %v2009_v52 = vpop.f32.mrf.mxu0 }
 0x530   : >> { %2062 = vmatmul.f32.gmra.mxu0 %v11443_v50  ;;  %v2218_v50 = vpop.f32.mrf.mxu1 }
 0x531   : >> { %v2418_v26 = vpop.f32.mrf.mxu2 }
 0x532   : >> { %2271 = vmatmul.f32.gmra.mxu1 %v11444_v48  ;;  %v2419_v41 = vadd.f32 %v2418_v26, %v2210_v60  ;;  %v11479_v48 = vld [vmem:[#allocation400_spill] sm:$0xff] }
 0x536   : >> { %2629 = vmatmul.f32.gmra.mxu3 %v11445_v54  ;;  %2468 = vmatmul.f32.gmra.mxu2 %v11446_v53  ;;  %v11480_v54 = vld [vmem:[#allocation401_spill] sm:$0xff]  ;;  %v11481_v53 = vld [vmem:[#allocation355_spill] sm:$0xff] }
 0x538   : >> { %2065 = vmatmul.f32.gmra.mxu0 %v11459_v4 }
 0x539   : >> { %v2421_v9 = vpop.f32.mrf.mxu2 }
 0x53a   : >> { %2274 = vmatmul.f32.gmra.mxu1 %v11460_v29  ;;  %v2422_v23 = vadd.f32 %v2421_v9, %v2213_v40 }
 0x53e   : >> { %2632 = vmatmul.f32.gmra.mxu3 %v11447_v31  ;;  %2471 = vmatmul.f32.gmra.mxu2 %v11448_v33  ;;  %v2219_v31 = vadd.f32 %v2218_v50, %v2009_v52 }
 0x540   : >> { %2068 = vmatmul.f32.gmra.mxu0 %v11463_v62 }
 0x541   : >> { %v2424_v35 = vpop.f32.mrf.mxu2 }
 0x542   : >> { %2277 = vmatmul.f32.gmra.mxu1 %v11464_v45  ;;  %v2425_v25 = vadd.f32 %v2424_v35, %v2216_v55  ;;  %v11498_v55 = vld [vmem:[#allocation414_spill] sm:$0xff] }
 0x546   : >> { %2635 = vmatmul.f32.gmra.mxu3 %v11449_v0  ;;  %2474 = vmatmul.f32.gmra.mxu2 %v11450_v10  ;;  %v11482_v0 = vld [vmem:[#allocation402_spill] sm:$0xff] }
 0x548   : >> { %2071 = vmatmul.f32.gmra.mxu0 %v11467_v59 }
 0x549   : >> { %v2427_v33 = vpop.f32.mrf.mxu2 }
 0x54a   : >> { %2280 = vmatmul.f32.gmra.mxu1 %v11468_v1  ;;  %v8927_v10 = vadd.f32 %v2427_v33, %v2219_v31  ;;  %v11492_v1 = vld [vmem:[#allocation410_spill] sm:$0xff] }
 0x54e   : >> { %2638 = vmatmul.f32.gmra.mxu3 %v11451_v7  ;;  %2477 = vmatmul.f32.gmra.mxu2 %v11452_v22 }
 0x550   : >> { %2074 = vmatmul.f32.gmra.mxu0 %v11471_v37 }
 0x552   : >> { %2283 = vmatmul.f32.gmra.mxu1 %v11472_v57  ;;  %v11494_v57 = vld [vmem:[#allocation542_spill] sm:$0xff] }
 0x556   : >> { %2641 = vmatmul.f32.gmra.mxu3 %v11453_v13  ;;  %2480 = vmatmul.f32.gmra.mxu2 %v11454_v8  ;;  %v11483_v13 = vld [vmem:[#allocation603_spill] sm:$0xff] }
 0x558   : >> { %2077 = vmatmul.f32.gmra.mxu0 %v11475_v63  ;;  %v11497_v63 = vld [vmem:[#allocation367_spill] sm:$0xff] }
 0x55a   : >> { %2286 = vmatmul.f32.gmra.mxu1 %v11476_v17 }
 0x55e   : >> { %2644 = vmatmul.f32.gmra.mxu3 %v11455_v14  ;;  %2483 = vmatmul.f32.gmra.mxu2 %v11462_v39  ;;  %v11484_v14 = vld [vmem:[#allocation543_spill] sm:$0xff] }
 0x560   : >> { %2080 = vmatmul.f32.gmra.mxu0 %v11479_v48 }
 0x562   : >> { %2289 = vmatmul.f32.gmra.mxu1 %v11480_v54 }
 0x566   : >> { %2647 = vmatmul.f32.gmra.mxu3 %v11456_v34  ;;  %2486 = vmatmul.f32.gmra.mxu2 %v11466_v2  ;;  %v11490_v2 = vld [vmem:[#allocation409_spill] sm:$0xff] }
 0x56e   : >> { %2650 = vmatmul.f32.gmra.mxu3 %v11457_v58  ;;  %2489 = vmatmul.f32.gmra.mxu2 %v11470_v51  ;;  %v2012_v58 = vpop.f32.mrf.mxu0 }
 0x56f   : >> { %2083 = vmatmul.f32.gmra.mxu0 %v11485_v18 }
 0x576   : >> { %2653 = vmatmul.f32.gmra.mxu3 %v11458_v28  ;;  %2492 = vmatmul.f32.gmra.mxu2 %v11474_v56  ;;  %v2221_v28 = vpop.f32.mrf.mxu1  ;;  %v2015_v27 = vpop.f32.mrf.mxu0  ;;  %v11495_v56 = vld [vmem:[#allocation412_spill] sm:$0xff] }
 0x577   : >> { %2292 = vmatmul.f32.gmra.mxu1 %v11486_v42  ;;  %v2222_v29 = vadd.f32 %v2221_v28, %v2012_v58  ;;  %2086 = vmatmul.f32.gmra.mxu0 %v11489_v36  ;;  %v11504_v28 = vld [vmem:[#allocation418_spill] sm:$0xff] }
 0x578   : >> { %v11510_v36 = vld [vmem:[#allocation422_spill] sm:$0xff] }
 0x57e   : >> { %2656 = vmatmul.f32.gmra.mxu3 %v11461_v12  ;;  %2495 = vmatmul.f32.gmra.mxu2 %v11478_v24  ;;  %v2430_v12 = vpop.f32.mrf.mxu2  ;;  %v2018_v40 = vpop.f32.mrf.mxu0 }
 0x57f   : >> { %2089 = vmatmul.f32.gmra.mxu0 %v11495_v56 }
 0x586   : >> { %2659 = vmatmul.f32.gmra.mxu3 %v11465_v6  ;;  %2498 = vmatmul.f32.gmra.mxu2 %v11482_v0  ;;  %v2224_v6 = vpop.f32.mrf.mxu1  ;;  %v2433_v59 = vpop.f32.mrf.mxu2  ;;  %v11501_v0 = vld [vmem:[#allocation416_spill] sm:$0xff] }
 0x587   : >> { %2295 = vmatmul.f32.gmra.mxu1 %v11490_v2  ;;  %v2225_v44 = vadd.f32 %v2224_v6, %v2015_v27  ;;  %v2021_v31 = vpop.f32.mrf.mxu0  ;;  %2092 = vmatmul.f32.gmra.mxu0 %v11501_v0  ;;  %v11522_v0 = vld [vmem:[#allocation430_spill] sm:$0xff] }
 0x589   : >> { %v8941_v60 = vadd.f32 %v2433_v59, %v2225_v44 }
 0x58e   : >> { %2662 = vmatmul.f32.gmra.mxu3 %v11469_v19  ;;  %2501 = vmatmul.f32.gmra.mxu2 %v11488_v47  ;;  %v2227_v9 = vpop.f32.mrf.mxu1 }
 0x58f   : >> { %2298 = vmatmul.f32.gmra.mxu1 %v11496_v46  ;;  %v2228_v17 = vadd.f32 %v2227_v9, %v2018_v40  ;;  %v2024_v47 = vpop.f32.mrf.mxu0  ;;  %v11516_v9 = vld [vmem:[#allocation426_spill] sm:$0xff] }
 0x596   : >> { %2665 = vmatmul.f32.gmra.mxu3 %v11473_v16  ;;  %2504 = vmatmul.f32.gmra.mxu2 %v11492_v1  ;;  %v2230_v33 = vpop.f32.mrf.mxu1 }
 0x59e   : >> { %2668 = vmatmul.f32.gmra.mxu3 %v11477_v49  ;;  %v2436_v49 = vpop.f32.mrf.mxu2  ;;  %2507 = vmatmul.f32.gmra.mxu2 %v11498_v55 }
 0x59f   : >> { %v8949_v35 = vadd.f32 %v2436_v49, %v2228_v17  ;;  %v11517_v17 = vld [vmem:[#allocation601_spill] sm:$0xff] }
 0x5a1   : >> { %v2621_v32 = vpop.f32.mrf.mxu3 }
 0x5a2   : >> { %v2622_v15 = vadd.f32 %v2621_v32, %v2413_v21  ;;  %v8935_v21 = vadd.f32 %v2430_v12, %v2222_v29  ;;  %v11506_v29 = vld [vmem:[#allocation540_spill] sm:$0xff] }
 0x5a4   : >> { %v2813_v8 = vmul.f32 %v11483_v13, %v2622_v15  ;;  %v11503_v13 = vld [vmem:[#allocation371_spill] sm:$0xff] }
 0x5a6   : >> { %2671 = vmatmul.f32.gmra.mxu3 %v11481_v53  ;;  %v2439_v58 = vpop.f32.mrf.mxu2  ;;  %2510 = vmatmul.f32.gmra.mxu2 %v11504_v28 }
 0x5a9   : >> { %v2624_v7 = vpop.f32.mrf.mxu3 }
 0x5aa   : >> { %v2625_v22 = vadd.f32 %v2624_v7, %v2416_v11  ;;  %v11502_v7 = vld [vmem:[#allocation417_spill] sm:$0xff] }
 0x5ab   : >> { %2301 = vmatmul.f32.gmra.mxu1 %v11502_v7 }
 0x5ac   : >> { %v2814_v34 = vmul.f32 %v11484_v14, %v2625_v22  ;;  %v2231_v14 = vadd.f32 %v2230_v33, %v2021_v31 }
 0x5ae   : >> { %v2877_v4 = vadd.f32 %v2814_v34, %v2813_v8  ;;  %2674 = vmatmul.f32.gmra.mxu3 %v11487_v30  ;;  %v8959_v18 = vadd.f32 %v2439_v58, %v2231_v14  ;;  %v2442_v6 = vpop.f32.mrf.mxu2  ;;  %2513 = vmatmul.f32.gmra.mxu2 %v11510_v36  ;;  %v11530_v36 = vld [vmem:[#allocation598_spill] sm:$0xff] }
 0x5b0   : >> { %v2878_v39 = vrot.slane %v2877_v4, 4 }
 0x5b1   : >> { %v2627_v43 = vpop.f32.mrf.mxu3 }
 0x5b2   : >> { %v2879_v5 = vadd.f32 %v2878_v39, %v2877_v4  ;;  %v2628_v62 = vadd.f32 %v2627_v43, %v2419_v41  ;;  %v11505_v4 = vld [vmem:[#allocation541_spill] sm:$0xff]  ;;  %v2233_v39 = vpop.f32.mrf.mxu1  ;;  %v11507_v43 = vld [vmem:[#allocation420_spill] sm:$0xff] }
 0x5b3   : >> { %2095 = vmatmul.f32.gmra.mxu0 %v11507_v43  ;;  %v2234_v27 = vadd.f32 %v2233_v39, %v2024_v47  ;;  %v11528_v43 = vld [vmem:[#allocation434_spill] sm:$0xff] }
 0x5b4   : >> { %v2880_v45 = vrot.slane %v2879_v5, 2  ;;  %v2815_v37 = vmul.f32 %v11493_v3, %v2628_v62  ;;  %v11515_v3 = vld [vmem:[#allocation379_spill] sm:$0xff] }
 0x5b5   : >> { %v8968_v2 = vadd.f32 %v2442_v6, %v2234_v27  ;;  %v11529_v27 = vld [vmem:[#allocation599_spill] sm:$0xff] }
 0x5b6   : >> { %v2881_v11 = vadd.f32 %v2880_v45, %v2879_v5  ;;  %2677 = vmatmul.f32.gmra.mxu3 %v11491_v38  ;;  %v11508_v5 = vld [vmem:[#allocation421_spill] sm:$0xff]  ;;  %v11509_v45 = vld [vmem:[#allocation375_spill] sm:$0xff]  ;;  %v2445_v40 = vpop.f32.mrf.mxu2  ;;  %2516 = vmatmul.f32.gmra.mxu2 %v11516_v9 }
 0x5b7   : >> { %2304 = vmatmul.f32.gmra.mxu1 %v11508_v5 }
 0x5b8   : >> { %v2882_v19 = vrot.slane %v2881_v11, 1 }
 0x5b9   : >> { %v2630_v26 = vpop.f32.mrf.mxu3 }
 0x5ba   : >> { %v2883_v51 = vadd.f32 %v2882_v19, %v2881_v11  ;;  %v2631_v41 = vadd.f32 %v2630_v26, %v2422_v23  ;;  %v2027_v19 = vpop.f32.mrf.mxu0  ;;  %v2236_v26 = vpop.f32.mrf.mxu1 }
 0x5bc   : >> { %v3101_v61 = vadd.f32 1e-20, %v2883_v51  ;;  %v2816_v16 = vmul.f32 %v11494_v57, %v2631_v41  ;;  %v11513_v51 = vld [vmem:[#allocation424_spill] sm:$0xff]  ;;  %v11514_v41 = vld [vmem:[#allocation425_spill] sm:$0xff]  ;;  %v2237_v57 = vadd.f32 %v2236_v26, %v2027_v19  ;;  %v11533_v19 = vld [vmem:[#allocation391_spill] sm:$0xff] }
 0x5bd   : >> { %2098 = vmatmul.f32.gmra.mxu0 %v11513_v51 }
 0x5be   : >> { %5636 = vrcp.f32 %v3101_v61  ;;  %v2884_v20 = vadd.f32 %v2816_v16, %v2815_v37  ;;  %2680 = vmatmul.f32.gmra.mxu3 %v11497_v63  ;;  %v8979_v46 = vadd.f32 %v2445_v40, %v2237_v57  ;;  %v2448_v33 = vpop.f32.mrf.mxu2  ;;  %2519 = vmatmul.f32.gmra.mxu2 %v11522_v0  ;;  %v11542_v0 = vld [vmem:[#allocation596_spill] sm:$0xff] }
 0x5bf   : >> { %2307 = vmatmul.f32.gmra.mxu1 %v11514_v41  ;;  %v11534_v41 = vld [vmem:[#allocation438_spill] sm:$0xff] }
 0x5c0   : >> { %v2885_v23 = vrot.slane %v2884_v20, 4 }
 0x5c1   : >> { %v2633_v24 = vpop.f32.mrf.mxu3 }
 0x5c2   : >> { %v2886_v32 = vadd.f32 %v2885_v23, %v2884_v20  ;;  %v2634_v15 = vadd.f32 %v2633_v24, %v2425_v25  ;;  %v2030_v24 = vpop.f32.mrf.mxu0 }
 0x5c4   : >> { %v5637_v52 = vpop.eup %5636  ;;  %v2887_v50 = vrot.slane %v2886_v32, 2  ;;  %v2817_v30 = vmul.f32 %v11505_v4, %v2634_v15  ;;  %v11519_v15 = vld [vmem:[#allocation428_spill] sm:$0xff] }
 0x5c5   : >> { %v8951_v54 = vmul.f32 %v5637_v52, %v2813_v8   ;;  %v8953_v53 = vmul.f32 %v5637_v52, %v2814_v34   ;;  %2101 = vmatmul.f32.gmra.mxu0 %v11519_v15  ;;  %v11520_v52 = vld [vmem:[#allocation429_spill] sm:$0xff] }
 0x5c6   : >> { %v2888_v22 = vadd.f32 %v2887_v50, %v2886_v32  ;;  %2683 = vmatmul.f32.gmra.mxu3 %v11503_v13  ;;  %v2239_v32 = vpop.f32.mrf.mxu1  ;;  %v2451_v39 = vpop.f32.mrf.mxu2  ;;  %2522 = vmatmul.f32.gmra.mxu2 %v11528_v43 }
 0x5c7   : >> { %11499 = vst [vmem:[#allocation616_spill] sm:$0xff] %v8951_v54  ;;  %2310 = vmatmul.f32.gmra.mxu1 %v11520_v52  ;;  %v2240_v31 = vadd.f32 %v2239_v32, %v2030_v24  ;;  %v11540_v52 = vld [vmem:[#allocation442_spill] sm:$0xff] }
 0x5c8   : >> { %11500 = vst [vmem:[#allocation617_spill] sm:$0xff] %v8953_v53  ;;  %v2889_v25 = vrot.slane %v2888_v22, 1  ;;  %v11521_v53 = vld [vmem:[#allocation383_spill] sm:$0xff] }
 0x5c9   : >> { %v2636_v8 = vpop.f32.mrf.mxu3  ;;  %v8988_v7 = vadd.f32 %v2448_v33, %v2240_v31  ;;  %v11541_v31 = vld [vmem:[#allocation597_spill] sm:$0xff] }
 0x5ca   : >> { %v2890_v54 = vadd.f32 %v2889_v25, %v2888_v22  ;;  %v2637_v34 = vadd.f32 %v2636_v8, %v8927_v10  ;;  %v2033_v8 = vpop.f32.mrf.mxu0 }
 0x5cc   : >> { %v3102_v42 = vadd.f32 1e-20, %v2890_v54  ;;  %v2818_v12 = vmul.f32 %v11506_v29, %v2637_v34  ;;  %v11525_v34 = vld [vmem:[#allocation432_spill] sm:$0xff]  ;;  %v11527_v29 = vld [vmem:[#allocation387_spill] sm:$0xff] }
 0x5cd   : >> { %2104 = vmatmul.f32.gmra.mxu0 %v11525_v34  ;;  %v11546_v34 = vld [vmem:[#allocation446_spill] sm:$0xff] }
 0x5ce   : >> { %5638 = vrcp.f32 %v3102_v42  ;;  %v2891_v62 = vadd.f32 %v2818_v12, %v2817_v30  ;;  %2686 = vmatmul.f32.gmra.mxu3 %v11509_v45  ;;  %v2242_v54 = vpop.f32.mrf.mxu1  ;;  %v11526_v42 = vld [vmem:[#allocation433_spill] sm:$0xff]  ;;  %v2454_v51 = vpop.f32.mrf.mxu2  ;;  %2525 = vmatmul.f32.gmra.mxu2 %v11534_v41  ;;  %v11554_v41 = vld [vmem:[#allocation594_spill] sm:$0xff] }
 0x5cf   : >> { %2313 = vmatmul.f32.gmra.mxu1 %v11526_v42  ;;  %v2243_v47 = vadd.f32 %v2242_v54, %v2033_v8 }
 0x5d0   : >> { %v2892_v10 = vrot.slane %v2891_v62, 4 }
 0x5d1   : >> { %v2639_v11 = vpop.f32.mrf.mxu3  ;;  %v8999_v5 = vadd.f32 %v2451_v39, %v2243_v47 }
 0x5d2   : >> { %v2893_v38 = vadd.f32 %v2892_v10, %v2891_v62  ;;  %v2640_v44 = vadd.f32 %v2639_v11, %v8935_v21  ;;  %v2036_v11 = vpop.f32.mrf.mxu0 }
 0x5d4   : >> { %v5639_v59 = vpop.eup %5638  ;;  %v2894_v1 = vrot.slane %v2893_v38, 2 }
 0x5d5   : >> { %v8971_v55 = vmul.f32 %v5639_v59, %v2815_v37   ;;  %v8973_v49 = vmul.f32 %v5639_v59, %v2816_v16   ;;  %v11532_v59 = vld [vmem:[#allocation437_spill] sm:$0xff] }
 0x5d6   : >> { %v2895_v61 = vadd.f32 %v2894_v1, %v2893_v38  ;;  %2689 = vmatmul.f32.gmra.mxu3 %v11515_v3  ;;  %v2245_v38 = vpop.f32.mrf.mxu1  ;;  %v2457_v32 = vpop.f32.mrf.mxu2  ;;  %2528 = vmatmul.f32.gmra.mxu2 %v11540_v52 }
 0x5d7   : >> { %11511 = vst [vmem:[#allocation618_spill] sm:$0xff] %v8971_v55  ;;  %v11518_v55 = vld [vmem:[#allocation600_spill] sm:$0xff]  ;;  %2316 = vmatmul.f32.gmra.mxu1 %v11532_v59  ;;  %v2246_v26 = vadd.f32 %v2245_v38, %v2036_v11 }
 0x5d8   : >> { %11512 = vst [vmem:[#allocation619_spill] sm:$0xff] %v8973_v49  ;;  %v2896_v21 = vrot.slane %v2895_v61, 1  ;;  %v2819_v49 = vmul.f32 %v11517_v17, %v2640_v44  ;;  %v11531_v44 = vld [vmem:[#allocation436_spill] sm:$0xff] }
 0x5d9   : >> { %v2642_v37 = vpop.f32.mrf.mxu3  ;;  %2107 = vmatmul.f32.gmra.mxu0 %v11531_v44  ;;  %v11552_v44 = vld [vmem:[#allocation450_spill] sm:$0xff] }
 0x5da   : >> { %v2897_v20 = vadd.f32 %v2896_v21, %v2895_v61  ;;  %v2643_v16 = vadd.f32 %v2642_v37, %v8941_v60  ;;  %v9008_v61 = vadd.f32 %v2454_v51, %v2246_v26  ;;  %v2039_v37 = vpop.f32.mrf.mxu0  ;;  %v11553_v26 = vld [vmem:[#allocation595_spill] sm:$0xff] }
 0x5dc   : >> { %v3103_v63 = vadd.f32 1e-20, %v2897_v20  ;;  %v2820_v23 = vmul.f32 %v11518_v55, %v2643_v16  ;;  %v11537_v16 = vld [vmem:[#allocation440_spill] sm:$0xff]  ;;  %v11539_v55 = vld [vmem:[#allocation395_spill] sm:$0xff] }
 0x5de   : >> { %5640 = vrcp.f32 %v3103_v63  ;;  %v2898_v50 = vadd.f32 %v2820_v23, %v2819_v49  ;;  %2692 = vmatmul.f32.gmra.mxu3 %v11521_v53  ;;  %v2248_v20 = vpop.f32.mrf.mxu1  ;;  %v2460_v54 = vpop.f32.mrf.mxu2  ;;  %2531 = vmatmul.f32.gmra.mxu2 %v11546_v34 }
 0x5df   : >> { %v2249_v24 = vadd.f32 %v2248_v20, %v2039_v37  ;;  %v11557_v37 = vld [vmem:[#allocation407_spill] sm:$0xff] }
 0x5e0   : >> { %v2899_v60 = vrot.slane %v2898_v50, 4 }
 0x5e1   : >> { %v2645_v22 = vpop.f32.mrf.mxu3  ;;  %2110 = vmatmul.f32.gmra.mxu0 %v11537_v16 }
 0x5e2   : >> { %v2900_v13 = vadd.f32 %v2899_v60, %v2898_v50  ;;  %v2646_v14 = vadd.f32 %v2645_v22, %v8949_v35  ;;  %v9019_v50 = vadd.f32 %v2457_v32, %v2249_v24  ;;  %v2042_v22 = vpop.f32.mrf.mxu0 }
 0x5e4   : >> { %v5641_v58 = vpop.eup %5640  ;;  %v2901_v28 = vrot.slane %v2900_v13, 2  ;;  %v2821_v6 = vmul.f32 %v11529_v27, %v2646_v14  ;;  %v11543_v14 = vld [vmem:[#allocation444_spill] sm:$0xff] }
 0x5e5   : >> { %v8991_v63 = vmul.f32 %v5641_v58, %v2817_v30   ;;  %v8993_v25 = vmul.f32 %v5641_v58, %v2818_v12   ;;  %v11544_v58 = vld [vmem:[#allocation445_spill] sm:$0xff] }
 0x5e6   : >> { %v2902_v4 = vadd.f32 %v2901_v28, %v2900_v13  ;;  %2695 = vmatmul.f32.gmra.mxu3 %v11527_v29  ;;  %v2251_v13 = vpop.f32.mrf.mxu1  ;;  %v2463_v38 = vpop.f32.mrf.mxu2  ;;  %2534 = vmatmul.f32.gmra.mxu2 %v11552_v44 }
 0x5e7   : >> { %11523 = vst [vmem:[#allocation620_spill] sm:$0xff] %v8991_v63  ;;  %v11538_v63 = vld [vmem:[#allocation441_spill] sm:$0xff]  ;;  %v2252_v8 = vadd.f32 %v2251_v13, %v2042_v22  ;;  %v11563_v22 = vld [vmem:[#allocation411_spill] sm:$0xff] }
 0x5e8   : >> { %11524 = vst [vmem:[#allocation621_spill] sm:$0xff] %v8993_v25  ;;  %v2903_v35 = vrot.slane %v2902_v4, 1  ;;  %2319 = vmatmul.f32.gmra.mxu1 %v11538_v63  ;;  %v11545_v25 = vld [vmem:[#allocation399_spill] sm:$0xff]  ;;  %v11558_v63 = vld [vmem:[#allocation454_spill] sm:$0xff] }
 0x5e9   : >> { %v2648_v30 = vpop.f32.mrf.mxu3  ;;  %2113 = vmatmul.f32.gmra.mxu0 %v11543_v14  ;;  %v9028_v42 = vadd.f32 %v2460_v54, %v2252_v8  ;;  %v11565_v54 = vld [vmem:[#allocation593_spill] sm:$0xff] }
 0x5ea   : >> { %v2904_v62 = vadd.f32 %v2903_v35, %v2902_v4  ;;  %v2649_v12 = vadd.f32 %v2648_v30, %v8959_v18  ;;  %v2045_v30 = vpop.f32.mrf.mxu0 }
 0x5ec   : >> { %v3104_v45 = vadd.f32 1e-20, %v2904_v62  ;;  %v2822_v10 = vmul.f32 %v11530_v36, %v2649_v12  ;;  %v11549_v12 = vld [vmem:[#allocation448_spill] sm:$0xff]  ;;  %v11551_v36 = vld [vmem:[#allocation403_spill] sm:$0xff] }
 0x5ee   : >> { %5642 = vrcp.f32 %v3104_v45  ;;  %v2905_v1 = vadd.f32 %v2822_v10, %v2821_v6  ;;  %2698 = vmatmul.f32.gmra.mxu3 %v11533_v19  ;;  %v11550_v45 = vld [vmem:[#allocation449_spill] sm:$0xff] }
 0x5f0   : >> { %v2906_v18 = vrot.slane %v2905_v1, 4  ;;  %2322 = vmatmul.f32.gmra.mxu1 %v11544_v58  ;;  %v11564_v58 = vld [vmem:[#allocation458_spill] sm:$0xff] }
 0x5f1   : >> { %v2651_v3 = vpop.f32.mrf.mxu3  ;;  %2116 = vmatmul.f32.gmra.mxu0 %v11549_v12 }
 0x5f2   : >> { %v2907_v57 = vadd.f32 %v2906_v18, %v2905_v1  ;;  %v2652_v40 = vadd.f32 %v2651_v3, %v8968_v2  ;;  %v2048_v3 = vpop.f32.mrf.mxu0 }
 0x5f4   : >> { %v5643_v9 = vpop.eup %5642  ;;  %v2908_v21 = vrot.slane %v2907_v57, 2  ;;  %v2823_v33 = vmul.f32 %v11541_v31, %v2652_v40  ;;  %v11555_v40 = vld [vmem:[#allocation452_spill] sm:$0xff]  ;;  %v11562_v31 = vld [vmem:[#allocation457_spill] sm:$0xff] }
 0x5f5   : >> { %v9011_v15 = vmul.f32 %v5643_v9, %v2819_v49   ;;  %v9013_v62 = vmul.f32 %v5643_v9, %v2820_v23   ;;  %v11556_v9 = vld [vmem:[#allocation453_spill] sm:$0xff] }
 0x5f6   : >> { %v2909_v17 = vadd.f32 %v2908_v21, %v2907_v57  ;;  %2701 = vmatmul.f32.gmra.mxu3 %v11539_v55 }
 0x5f7   : >> { %11535 = vst [vmem:[#allocation622_spill] sm:$0xff] %v9011_v15 }
 0x5f8   : >> { %11536 = vst [vmem:[#allocation623_spill] sm:$0xff] %v9013_v62  ;;  %v2910_v2 = vrot.slane %v2909_v17, 1  ;;  %v2254_v62 = vpop.f32.mrf.mxu1  ;;  %2325 = vmatmul.f32.gmra.mxu1 %v11550_v45  ;;  %v11570_v45 = vld [vmem:[#allocation462_spill] sm:$0xff] }
 0x5f9   : >> { %v2654_v49 = vpop.f32.mrf.mxu3  ;;  %v2255_v11 = vadd.f32 %v2254_v62, %v2045_v30  ;;  %2119 = vmatmul.f32.gmra.mxu0 %v11555_v40  ;;  %v11569_v30 = vld [vmem:[#allocation415_spill] sm:$0xff] }
 0x5fa   : >> { %v2911_v15 = vadd.f32 %v2910_v2, %v2909_v17  ;;  %v2655_v23 = vadd.f32 %v2654_v49, %v8979_v46 }
 0x5fb   : >> { %v9039_v59 = vadd.f32 %v2463_v38, %v2255_v11 }
 0x5fc   : >> { %v3105_v53 = vadd.f32 1e-20, %v2911_v15  ;;  %v2824_v60 = vmul.f32 %v11542_v0, %v2655_v23  ;;  %v2051_v15 = vpop.f32.mrf.mxu0 }
 0x5fe   : >> { %5644 = vrcp.f32 %v3105_v53  ;;  %v2912_v28 = vadd.f32 %v2824_v60, %v2823_v33  ;;  %2704 = vmatmul.f32.gmra.mxu3 %v11545_v25  ;;  %v11561_v53 = vld [vmem:[#allocation456_spill] sm:$0xff] }
 0x600   : >> { %v2913_v46 = vrot.slane %v2912_v28, 4  ;;  %v2257_v57 = vpop.f32.mrf.mxu1  ;;  %2328 = vmatmul.f32.gmra.mxu1 %v11556_v9  ;;  %v11576_v9 = vld [vmem:[#allocation466_spill] sm:$0xff] }
 0x601   : >> { %v2657_v4 = vpop.f32.mrf.mxu3  ;;  %v2258_v20 = vadd.f32 %v2257_v57, %v2048_v3  ;;  %2122 = vmatmul.f32.gmra.mxu0 %v11561_v53  ;;  %v11575_v3 = vld [vmem:[#allocation419_spill] sm:$0xff]  ;;  %v11582_v53 = vld [vmem:[#allocation470_spill] sm:$0xff] }
 0x602   : >> { %v2914_v29 = vadd.f32 %v2913_v46, %v2912_v28  ;;  %v2658_v47 = vadd.f32 %v2657_v4, %v8988_v7  ;;  %v11566_v46 = vld [vmem:[#allocation592_spill] sm:$0xff] }
 0x604   : >> { %v5645_v39 = vpop.eup %5644  ;;  %v2915_v43 = vrot.slane %v2914_v29, 2  ;;  %v2825_v51 = vmul.f32 %v11553_v26, %v2658_v47 }
 0x605   : >> { %v9031_v35 = vmul.f32 %v5645_v39, %v2821_v6   ;;  %v9033_v16 = vmul.f32 %v5645_v39, %v2822_v10   ;;  %v11567_v39 = vld [vmem:[#allocation460_spill] sm:$0xff] }
 0x606   : >> { %v2916_v27 = vadd.f32 %v2915_v43, %v2914_v29  ;;  %2707 = vmatmul.f32.gmra.mxu3 %v11551_v36  ;;  %v2054_v29 = vpop.f32.mrf.mxu0  ;;  %v11568_v43 = vld [vmem:[#allocation461_spill] sm:$0xff] }
 0x607   : >> { %11547 = vst [vmem:[#allocation624_spill] sm:$0xff] %v9031_v35 }
 0x608   : >> { %11548 = vst [vmem:[#allocation625_spill] sm:$0xff] %v9033_v16  ;;  %v2917_v7 = vrot.slane %v2916_v27, 1  ;;  %v2466_v16 = vpop.f32.mrf.mxu2  ;;  %2537 = vmatmul.f32.gmra.mxu2 %v11558_v63  ;;  %v2260_v23 = vpop.f32.mrf.mxu1  ;;  %2331 = vmatmul.f32.gmra.mxu1 %v11562_v31  ;;  %v11578_v63 = vld [vmem:[#allocation590_spill] sm:$0xff] }
 0x609   : >> { %v2660_v6 = vpop.f32.mrf.mxu3  ;;  %v9048_v17 = vadd.f32 %v2466_v16, %v2258_v20  ;;  %v2261_v13 = vadd.f32 %v2260_v23, %v2051_v15  ;;  %2125 = vmatmul.f32.gmra.mxu0 %v11567_v39  ;;  %v11577_v20 = vld [vmem:[#allocation591_spill] sm:$0xff] }
 0x60a   : >> { %v2918_v1 = vadd.f32 %v2917_v7, %v2916_v27  ;;  %v2661_v10 = vadd.f32 %v2660_v6, %v8999_v5 }
 0x60c   : >> { %v3106_v19 = vadd.f32 1e-20, %v2918_v1  ;;  %v2826_v18 = vmul.f32 %v11554_v41, %v2661_v10  ;;  %v11573_v10 = vld [vmem:[#allocation464_spill] sm:$0xff] }
 0x60e   : >> { %5646 = vrcp.f32 %v3106_v19  ;;  %v2919_v21 = vadd.f32 %v2826_v18, %v2825_v51  ;;  %2710 = vmatmul.f32.gmra.mxu3 %v11557_v37  ;;  %v2057_v6 = vpop.f32.mrf.mxu0  ;;  %v11574_v19 = vld [vmem:[#allocation465_spill] sm:$0xff] }
 0x610   : >> { %v2920_v5 = vrot.slane %v2919_v21, 4  ;;  %v2469_v14 = vpop.f32.mrf.mxu2  ;;  %2540 = vmatmul.f32.gmra.mxu2 %v11564_v58  ;;  %v2263_v47 = vpop.f32.mrf.mxu1  ;;  %2334 = vmatmul.f32.gmra.mxu1 %v11568_v43 }
 0x611   : >> { %v2663_v55 = vpop.f32.mrf.mxu3  ;;  %v9059_v28 = vadd.f32 %v2469_v14, %v2261_v13  ;;  %v2264_v62 = vadd.f32 %v2263_v47, %v2054_v29  ;;  %2128 = vmatmul.f32.gmra.mxu0 %v11573_v10  ;;  %v11588_v47 = vld [vmem:[#allocation474_spill] sm:$0xff] }
 0x612   : >> { %v2921_v24 = vadd.f32 %v2920_v5, %v2919_v21  ;;  %v2664_v32 = vadd.f32 %v2663_v55, %v9008_v61  ;;  %v11594_v10 = vld [vmem:[#allocation478_spill] sm:$0xff] }
 0x614   : >> { %v5647_v52 = vpop.eup %5646  ;;  %v2922_v2 = vrot.slane %v2921_v24, 2  ;;  %v2827_v34 = vmul.f32 %v11565_v54, %v2664_v32  ;;  %v11579_v32 = vld [vmem:[#allocation468_spill] sm:$0xff]  ;;  %v11587_v54 = vld [vmem:[#allocation427_spill] sm:$0xff] }
 0x615   : >> { %v9051_v49 = vmul.f32 %v5647_v52, %v2823_v33   ;;  %v9053_v11 = vmul.f32 %v5647_v52, %v2824_v60   ;;  %v11580_v52 = vld [vmem:[#allocation469_spill] sm:$0xff] }
 0x616   : >> { %v2923_v0 = vadd.f32 %v2922_v2, %v2921_v24  ;;  %2713 = vmatmul.f32.gmra.mxu3 %v11563_v22  ;;  %v2060_v55 = vpop.f32.mrf.mxu0 }
 0x617   : >> { %11559 = vst [vmem:[#allocation626_spill] sm:$0xff] %v9051_v49  ;;  %v11581_v49 = vld [vmem:[#allocation423_spill] sm:$0xff] }
 0x618   : >> { %11560 = vst [vmem:[#allocation627_spill] sm:$0xff] %v9053_v11  ;;  %v2924_v61 = vrot.slane %v2923_v0, 1  ;;  %v2472_v12 = vpop.f32.mrf.mxu2  ;;  %2543 = vmatmul.f32.gmra.mxu2 %v11570_v45  ;;  %v2266_v1 = vpop.f32.mrf.mxu1  ;;  %2337 = vmatmul.f32.gmra.mxu1 %v11574_v19 }
 0x619   : >> { %v2666_v33 = vpop.f32.mrf.mxu3  ;;  %v9068_v27 = vadd.f32 %v2472_v12, %v2264_v62  ;;  %v2267_v57 = vadd.f32 %v2266_v1, %v2057_v6  ;;  %2131 = vmatmul.f32.gmra.mxu0 %v11579_v32  ;;  %v11590_v12 = vld [vmem:[#allocation588_spill] sm:$0xff] }
 0x61a   : >> { %v2925_v25 = vadd.f32 %v2924_v61, %v2923_v0  ;;  %v2667_v60 = vadd.f32 %v2666_v33, %v9019_v50 }
 0x61c   : >> { %v3107_v8 = vadd.f32 1e-20, %v2925_v25  ;;  %v2828_v4 = vmul.f32 %v11566_v46, %v2667_v60  ;;  %v11585_v25 = vld [vmem:[#allocation472_spill] sm:$0xff]  ;;  %v11586_v60 = vld [vmem:[#allocation473_spill] sm:$0xff] }
 0x61e   : >> { %5648 = vrcp.f32 %v3107_v8  ;;  %v2926_v35 = vadd.f32 %v2828_v4, %v2827_v34  ;;  %2716 = vmatmul.f32.gmra.mxu3 %v11569_v30  ;;  %v2063_v61 = vpop.f32.mrf.mxu0 }
 0x620   : >> { %v2927_v50 = vrot.slane %v2926_v35, 4  ;;  %v2475_v40 = vpop.f32.mrf.mxu2  ;;  %2546 = vmatmul.f32.gmra.mxu2 %v11576_v9  ;;  %v2269_v24 = vpop.f32.mrf.mxu1  ;;  %2340 = vmatmul.f32.gmra.mxu1 %v11580_v52 }
 0x621   : >> { %v2669_v36 = vpop.f32.mrf.mxu3  ;;  %v9079_v21 = vadd.f32 %v2475_v40, %v2267_v57  ;;  %v2270_v15 = vadd.f32 %v2269_v24, %v2060_v55  ;;  %2134 = vmatmul.f32.gmra.mxu0 %v11585_v25  ;;  %v11600_v24 = vld [vmem:[#allocation482_spill] sm:$0xff] }
 0x622   : >> { %v2928_v11 = vadd.f32 %v2927_v50, %v2926_v35  ;;  %v2670_v38 = vadd.f32 %v2669_v36, %v9028_v42 }
 0x624   : >> { %v5649_v44 = vpop.eup %5648  ;;  %v2929_v7 = vrot.slane %v2928_v11, 2  ;;  %v2829_v16 = vmul.f32 %v11577_v20, %v2670_v38  ;;  %v11592_v38 = vld [vmem:[#allocation477_spill] sm:$0xff]  ;;  %v11599_v20 = vld [vmem:[#allocation435_spill] sm:$0xff] }
 0x625   : >> { %v9071_v41 = vmul.f32 %v5649_v44, %v2825_v51   ;;  %v9073_v36 = vmul.f32 %v5649_v44, %v2826_v18  }
 0x626   : >> { %v2930_v26 = vadd.f32 %v2929_v7, %v2928_v11  ;;  %2719 = vmatmul.f32.gmra.mxu3 %v11575_v3  ;;  %v2066_v50 = vpop.f32.mrf.mxu0  ;;  %v11591_v11 = vld [vmem:[#allocation476_spill] sm:$0xff]  ;;  %v11593_v7 = vld [vmem:[#allocation431_spill] sm:$0xff] }
 0x627   : >> { %11571 = vst [vmem:[#allocation628_spill] sm:$0xff] %v9071_v41 }
 0x628   : >> { %11572 = vst [vmem:[#allocation629_spill] sm:$0xff] %v9073_v36  ;;  %v2931_v42 = vrot.slane %v2930_v26, 1  ;;  %v2478_v23 = vpop.f32.mrf.mxu2  ;;  %2549 = vmatmul.f32.gmra.mxu2 %v11582_v53  ;;  %v2272_v33 = vpop.f32.mrf.mxu1  ;;  %2343 = vmatmul.f32.gmra.mxu1 %v11586_v60 }
 0x629   : >> { %v2672_v51 = vpop.f32.mrf.mxu3  ;;  %v9088_v31 = vadd.f32 %v2478_v23, %v2270_v15  ;;  %v2273_v46 = vadd.f32 %v2272_v33, %v2063_v61  ;;  %2137 = vmatmul.f32.gmra.mxu0 %v11591_v11  ;;  %v11602_v23 = vld [vmem:[#allocation586_spill] sm:$0xff] }
 0x62a   : >> { %v2932_v41 = vadd.f32 %v2931_v42, %v2930_v26  ;;  %v2673_v18 = vadd.f32 %v2672_v51, %v9039_v59 }
 0x62c   : >> { %v3108_v37 = vadd.f32 1e-20, %v2932_v41  ;;  %v2830_v5 = vmul.f32 %v11578_v63, %v2673_v18  ;;  %v11597_v41 = vld [vmem:[#allocation480_spill] sm:$0xff]  ;;  %v11598_v18 = vld [vmem:[#allocation481_spill] sm:$0xff] }
 0x62e   : >> { %5650 = vrcp.f32 %v3108_v37  ;;  %v2933_v2 = vadd.f32 %v2830_v5, %v2829_v16  ;;  %2722 = vmatmul.f32.gmra.mxu3 %v11581_v49  ;;  %v2069_v42 = vpop.f32.mrf.mxu0  ;;  %v11601_v49 = vld [vmem:[#allocation587_spill] sm:$0xff] }
 0x630   : >> { %v2934_v59 = vrot.slane %v2933_v2, 4  ;;  %v2481_v29 = vpop.f32.mrf.mxu2  ;;  %2552 = vmatmul.f32.gmra.mxu2 %v11588_v47  ;;  %v2275_v36 = vpop.f32.mrf.mxu1  ;;  %2346 = vmatmul.f32.gmra.mxu1 %v11592_v38 }
 0x631   : >> { %v2675_v0 = vpop.f32.mrf.mxu3  ;;  %v9099_v39 = vadd.f32 %v2481_v29, %v2273_v46  ;;  %v2276_v6 = vadd.f32 %v2275_v36, %v2066_v50  ;;  %2140 = vmatmul.f32.gmra.mxu0 %v11597_v41  ;;  %v11612_v36 = vld [vmem:[#allocation490_spill] sm:$0xff] }
 0x632   : >> { %v2935_v22 = vadd.f32 %v2934_v59, %v2933_v2  ;;  %v2676_v13 = vadd.f32 %v2675_v0, %v9048_v17  ;;  %v11618_v41 = vld [vmem:[#allocation494_spill] sm:$0xff] }
 0x634   : >> { %v5651_v14 = vpop.eup %5650  ;;  %v2936_v58 = vrot.slane %v2935_v22, 2 }
 0x635   : >> { %v9091_v34 = vmul.f32 %v5651_v14, %v2827_v34   ;;  %v9093_v30 = vmul.f32 %v5651_v14, %v2828_v4  }
 0x636   : >> { %v2937_v8 = vadd.f32 %v2936_v58, %v2935_v22  ;;  %2725 = vmatmul.f32.gmra.mxu3 %v11587_v54  ;;  %v2072_v59 = vpop.f32.mrf.mxu0  ;;  %v11603_v22 = vld [vmem:[#allocation484_spill] sm:$0xff]  ;;  %v11605_v58 = vld [vmem:[#allocation439_spill] sm:$0xff] }
 0x637   : >> { %11583 = vst [vmem:[#allocation630_spill] sm:$0xff] %v9091_v34 }
 0x638   : >> { %11584 = vst [vmem:[#allocation631_spill] sm:$0xff] %v9093_v30  ;;  %v2938_v17 = vrot.slane %v2937_v8, 1  ;;  %v11589_v30 = vld [vmem:[#allocation589_spill] sm:$0xff]  ;;  %v2484_v1 = vpop.f32.mrf.mxu2  ;;  %2555 = vmatmul.f32.gmra.mxu2 %v11594_v10  ;;  %v2278_v51 = vpop.f32.mrf.mxu1  ;;  %2349 = vmatmul.f32.gmra.mxu1 %v11598_v18 }
 0x639   : >> { %v2678_v43 = vpop.f32.mrf.mxu3  ;;  %v2831_v62 = vmul.f32 %v11589_v30, %v2676_v13  ;;  %v9108_v19 = vadd.f32 %v2484_v1, %v2276_v6  ;;  %v2279_v63 = vadd.f32 %v2278_v51, %v2069_v42  ;;  %2143 = vmatmul.f32.gmra.mxu0 %v11603_v22  ;;  %v11604_v13 = vld [vmem:[#allocation485_spill] sm:$0xff]  ;;  %v11611_v30 = vld [vmem:[#allocation443_spill] sm:$0xff]  ;;  %v11614_v1 = vld [vmem:[#allocation584_spill] sm:$0xff] }
 0x63a   : >> { %v2939_v34 = vadd.f32 %v2938_v17, %v2937_v8  ;;  %v2679_v4 = vadd.f32 %v2678_v43, %v9059_v28 }
 0x63c   : >> { %v3109_v35 = vadd.f32 1e-20, %v2939_v34  ;;  %v2832_v45 = vmul.f32 %v11590_v12, %v2679_v4  ;;  %v11609_v34 = vld [vmem:[#allocation488_spill] sm:$0xff]  ;;  %v11610_v4 = vld [vmem:[#allocation489_spill] sm:$0xff] }
 0x63e   : >> { %5652 = vrcp.f32 %v3109_v35  ;;  %v2940_v44 = vadd.f32 %v2832_v45, %v2831_v62  ;;  %2728 = vmatmul.f32.gmra.mxu3 %v11593_v7  ;;  %v2075_v17 = vpop.f32.mrf.mxu0  ;;  %v11613_v7 = vld [vmem:[#allocation585_spill] sm:$0xff] }
 0x640   : >> { %v2941_v28 = vrot.slane %v2940_v44, 4  ;;  %v2487_v55 = vpop.f32.mrf.mxu2  ;;  %2558 = vmatmul.f32.gmra.mxu2 %v11600_v24  ;;  %v2281_v0 = vpop.f32.mrf.mxu1  ;;  %2352 = vmatmul.f32.gmra.mxu1 %v11604_v13 }
 0x641   : >> { %v2681_v26 = vpop.f32.mrf.mxu3  ;;  %v9119_v32 = vadd.f32 %v2487_v55, %v2279_v63  ;;  %v2282_v61 = vadd.f32 %v2281_v0, %v2072_v59  ;;  %2146 = vmatmul.f32.gmra.mxu0 %v11609_v34  ;;  %v11624_v0 = vld [vmem:[#allocation498_spill] sm:$0xff] }
 0x642   : >> { %v2942_v3 = vadd.f32 %v2941_v28, %v2940_v44  ;;  %v2682_v57 = vadd.f32 %v2681_v26, %v9068_v27  ;;  %v11630_v34 = vld [vmem:[#allocation502_spill] sm:$0xff] }
 0x644   : >> { %v5653_v40 = vpop.eup %5652  ;;  %v2943_v9 = vrot.slane %v2942_v3, 2  ;;  %v2833_v15 = vmul.f32 %v11601_v49, %v2682_v57  ;;  %v11616_v57 = vld [vmem:[#allocation493_spill] sm:$0xff]  ;;  %v11623_v49 = vld [vmem:[#allocation451_spill] sm:$0xff] }
 0x645   : >> { %v9111_v25 = vmul.f32 %v5653_v40, %v2829_v16   ;;  %v9113_v60 = vmul.f32 %v5653_v40, %v2830_v5  }
 0x646   : >> { %v2944_v37 = vadd.f32 %v2943_v9, %v2942_v3  ;;  %2731 = vmatmul.f32.gmra.mxu3 %v11599_v20  ;;  %v2078_v28 = vpop.f32.mrf.mxu0  ;;  %v11615_v3 = vld [vmem:[#allocation492_spill] sm:$0xff]  ;;  %v11617_v9 = vld [vmem:[#allocation447_spill] sm:$0xff] }
 0x647   : >> { %11595 = vst [vmem:[#allocation632_spill] sm:$0xff] %v9111_v25  ;;  %v11606_v25 = vld [vmem:[#allocation486_spill] sm:$0xff] }
 0x648   : >> { %11596 = vst [vmem:[#allocation633_spill] sm:$0xff] %v9113_v60  ;;  %v2945_v27 = vrot.slane %v2944_v37, 1  ;;  %v2490_v33 = vpop.f32.mrf.mxu2  ;;  %2561 = vmatmul.f32.gmra.mxu2 %v11606_v25  ;;  %v2284_v43 = vpop.f32.mrf.mxu1  ;;  %2355 = vmatmul.f32.gmra.mxu1 %v11610_v4 }
 0x649   : >> { %v2684_v16 = vpop.f32.mrf.mxu3  ;;  %v9128_v60 = vadd.f32 %v2490_v33, %v2282_v61  ;;  %v2285_v12 = vadd.f32 %v2284_v43, %v2075_v17  ;;  %2149 = vmatmul.f32.gmra.mxu0 %v11615_v3  ;;  %v11626_v33 = vld [vmem:[#allocation582_spill] sm:$0xff] }
 0x64a   : >> { %v2946_v52 = vadd.f32 %v2945_v27, %v2944_v37  ;;  %v2685_v5 = vadd.f32 %v2684_v16, %v9079_v21 }
 0x64c   : >> { %v3110_v2 = vadd.f32 1e-20, %v2946_v52  ;;  %v2834_v53 = vmul.f32 %v11602_v23, %v2685_v5  ;;  %v11621_v52 = vld [vmem:[#allocation496_spill] sm:$0xff]  ;;  %v11622_v5 = vld [vmem:[#allocation497_spill] sm:$0xff] }
 0x64e   : >> { %5654 = vrcp.f32 %v3110_v2  ;;  %v2947_v14 = vadd.f32 %v2834_v53, %v2833_v15  ;;  %2734 = vmatmul.f32.gmra.mxu3 %v11605_v58  ;;  %v2081_v27 = vpop.f32.mrf.mxu0  ;;  %v11625_v58 = vld [vmem:[#allocation583_spill] sm:$0xff] }
 0x650   : >> { %v2948_v21 = vrot.slane %v2947_v14, 4  ;;  %v2493_v50 = vpop.f32.mrf.mxu2  ;;  %2564 = vmatmul.f32.gmra.mxu2 %v11612_v36  ;;  %v2287_v26 = vpop.f32.mrf.mxu1  ;;  %2358 = vmatmul.f32.gmra.mxu1 %v11616_v57  ;;  %v11636_v57 = vld [vmem:[#allocation506_spill] sm:$0xff] }
 0x651   : >> { %v2687_v8 = vpop.f32.mrf.mxu3  ;;  %v9139_v11 = vadd.f32 %v2493_v50, %v2285_v12  ;;  %v2288_v42 = vadd.f32 %v2287_v26, %v2078_v28  ;;  %2152 = vmatmul.f32.gmra.mxu0 %v11621_v52  ;;  %v11635_v28 = vld [vmem:[#allocation459_spill] sm:$0xff] }
 0x652   : >> { %v2949_v54 = vadd.f32 %v2948_v21, %v2947_v14  ;;  %v2688_v46 = vadd.f32 %v2687_v8, %v9088_v31 }
 0x654   : >> { %v5655_v29 = vpop.eup %5654  ;;  %v2950_v47 = vrot.slane %v2949_v54, 2  ;;  %v2835_v6 = vmul.f32 %v11613_v7, %v2688_v46 }
 0x655   : >> { %v9131_v20 = vmul.f32 %v5655_v29, %v2831_v62   ;;  %v9133_v45 = vmul.f32 %v5655_v29, %v2832_v45  }
 0x656   : >> { %v2951_v35 = vadd.f32 %v2950_v47, %v2949_v54  ;;  %2737 = vmatmul.f32.gmra.mxu3 %v11611_v30  ;;  %v2084_v21 = vpop.f32.mrf.mxu0  ;;  %v11627_v54 = vld [vmem:[#allocation500_spill] sm:$0xff]  ;;  %v11629_v47 = vld [vmem:[#allocation455_spill] sm:$0xff] }
 0x657   : >> { %11607 = vst [vmem:[#allocation634_spill] sm:$0xff] %v9131_v20 }
 0x658   : >> { %11608 = vst [vmem:[#allocation635_spill] sm:$0xff] %v9133_v45  ;;  %v2952_v31 = vrot.slane %v2951_v35, 1  ;;  %v2496_v51 = vpop.f32.mrf.mxu2  ;;  %2567 = vmatmul.f32.gmra.mxu2 %v11618_v41  ;;  %v2290_v16 = vpop.f32.mrf.mxu1  ;;  %2361 = vmatmul.f32.gmra.mxu1 %v11622_v5  ;;  %v11638_v41 = vld [vmem:[#allocation580_spill] sm:$0xff]  ;;  %v11642_v5 = vld [vmem:[#allocation510_spill] sm:$0xff] }
 0x659   : >> { %v2690_v62 = vpop.f32.mrf.mxu3  ;;  %v9148_v18 = vadd.f32 %v2496_v51, %v2288_v42  ;;  %v2291_v23 = vadd.f32 %v2290_v16, %v2081_v27  ;;  %2155 = vmatmul.f32.gmra.mxu0 %v11627_v54  ;;  %v11637_v42 = vld [vmem:[#allocation581_spill] sm:$0xff]  ;;  %v11641_v27 = vld [vmem:[#allocation463_spill] sm:$0xff] }
 0x65a   : >> { %v2953_v38 = vadd.f32 %v2952_v31, %v2951_v35  ;;  %v2691_v45 = vadd.f32 %v2690_v62, %v9099_v39 }
 0x65c   : >> { %v3111_v44 = vadd.f32 1e-20, %v2953_v38  ;;  %v2836_v10 = vmul.f32 %v11614_v1, %v2691_v45  ;;  %v11633_v45 = vld [vmem:[#allocation504_spill] sm:$0xff] }
 0x65e   : >> { %5656 = vrcp.f32 %v3111_v44  ;;  %v2954_v40 = vadd.f32 %v2836_v10, %v2835_v6  ;;  %2740 = vmatmul.f32.gmra.mxu3 %v11617_v9  ;;  %v2087_v62 = vpop.f32.mrf.mxu0  ;;  %v11634_v44 = vld [vmem:[#allocation505_spill] sm:$0xff] }
 0x660   : >> { %v2955_v39 = vrot.slane %v2954_v40, 4  ;;  %v2499_v59 = vpop.f32.mrf.mxu2  ;;  %2570 = vmatmul.f32.gmra.mxu2 %v11624_v0  ;;  %v2293_v8 = vpop.f32.mrf.mxu1 }
 0x661   : >> { %v2693_v37 = vpop.f32.mrf.mxu3  ;;  %v9159_v22 = vadd.f32 %v2499_v59, %v2291_v23  ;;  %v2294_v17 = vadd.f32 %v2293_v8, %v2084_v21  ;;  %2158 = vmatmul.f32.gmra.mxu0 %v11633_v45  ;;  %v11647_v8 = vld [vmem:[#allocation467_spill] sm:$0xff] }
 0x662   : >> { %v2956_v20 = vadd.f32 %v2955_v39, %v2954_v40  ;;  %v2694_v63 = vadd.f32 %v2693_v37, %v9108_v19 }
 0x664   : >> { %v5657_v55 = vpop.eup %5656  ;;  %v2957_v24 = vrot.slane %v2956_v20, 2  ;;  %v2837_v61 = vmul.f32 %v11625_v58, %v2694_v63  ;;  %v11639_v63 = vld [vmem:[#allocation508_spill] sm:$0xff] }
 0x665   : >> { %v9151_v46 = vmul.f32 %v5657_v55, %v2833_v15   ;;  %v9153_v37 = vmul.f32 %v5657_v55, %v2834_v53   ;;  %v11640_v55 = vld [vmem:[#allocation509_spill] sm:$0xff] }
 0x666   : >> { %v2958_v2 = vadd.f32 %v2957_v24, %v2956_v20  ;;  %2743 = vmatmul.f32.gmra.mxu3 %v11623_v49 }
 0x667   : >> { %11619 = vst [vmem:[#allocation636_spill] sm:$0xff] %v9151_v46  ;;  %v11628_v46 = vld [vmem:[#allocation501_spill] sm:$0xff] }
 0x668   : >> { %11620 = vst [vmem:[#allocation637_spill] sm:$0xff] %v9153_v37  ;;  %v2959_v19 = vrot.slane %v2958_v2, 1  ;;  %2364 = vmatmul.f32.gmra.mxu1 %v11628_v46  ;;  %v2502_v43 = vpop.f32.mrf.mxu2  ;;  %2573 = vmatmul.f32.gmra.mxu2 %v11630_v34  ;;  %v2296_v38 = vpop.f32.mrf.mxu1 }
 0x669   : >> { %v2696_v15 = vpop.f32.mrf.mxu3  ;;  %v9168_v4 = vadd.f32 %v2502_v43, %v2294_v17  ;;  %v2297_v26 = vadd.f32 %v2296_v38, %v2087_v62  ;;  %v2090_v37 = vpop.f32.mrf.mxu0  ;;  %2161 = vmatmul.f32.gmra.mxu0 %v11639_v63  ;;  %v11649_v43 = vld [vmem:[#allocation579_spill] sm:$0xff]  ;;  %v11660_v63 = vld [vmem:[#allocation522_spill] sm:$0xff] }
 0x66a   : >> { %v2960_v13 = vadd.f32 %v2959_v19, %v2958_v2  ;;  %v2697_v53 = vadd.f32 %v2696_v15, %v9119_v32  ;;  %v11653_v62 = vld [vmem:[#allocation471_spill] sm:$0xff] }
 0x66c   : >> { %v3112_v14 = vadd.f32 1e-20, %v2960_v13  ;;  %v2838_v25 = vmul.f32 %v11626_v33, %v2697_v53  ;;  %v11646_v33 = vld [vmem:[#allocation513_spill] sm:$0xff] }
 0x66e   : >> { %5658 = vrcp.f32 %v3112_v14  ;;  %v2961_v29 = vadd.f32 %v2838_v25, %v2837_v61  ;;  %2746 = vmatmul.f32.gmra.mxu3 %v11629_v47  ;;  %v11645_v14 = vld [vmem:[#allocation512_spill] sm:$0xff] }
 0x670   : >> { %v2962_v32 = vrot.slane %v2961_v29, 4  ;;  %2367 = vmatmul.f32.gmra.mxu1 %v11634_v44  ;;  %v2505_v3 = vpop.f32.mrf.mxu2  ;;  %2576 = vmatmul.f32.gmra.mxu2 %v11636_v57  ;;  %v2299_v20 = vpop.f32.mrf.mxu1  ;;  %v11654_v44 = vld [vmem:[#allocation518_spill] sm:$0xff] }
 0x671   : >> { %v2699_v35 = vpop.f32.mrf.mxu3  ;;  %v9179_v40 = vadd.f32 %v2505_v3, %v2297_v26  ;;  %v2300_v16 = vadd.f32 %v2299_v20, %v2090_v37  ;;  %v2093_v13 = vpop.f32.mrf.mxu0  ;;  %2164 = vmatmul.f32.gmra.mxu0 %v11645_v14  ;;  %v11666_v14 = vld [vmem:[#allocation526_spill] sm:$0xff] }
 0x672   : >> { %v2963_v30 = vadd.f32 %v2962_v32, %v2961_v29  ;;  %v2700_v12 = vadd.f32 %v2699_v35, %v9128_v60  ;;  %v11648_v29 = vld [vmem:[#allocation514_spill] sm:$0xff] }
 0x673   : >> { %v11650_v32 = vld [vmem:[#allocation578_spill] sm:$0xff] }
 0x674   : >> { %v5659_v50 = vpop.eup %5658  ;;  %v2964_v36 = vrot.slane %v2963_v30, 2  ;;  %v2839_v51 = vmul.f32 %v11637_v42, %v2700_v12 }
 0x675   : >> { %v9171_v31 = vmul.f32 %v5659_v50, %v2835_v6   ;;  %v9173_v1 = vmul.f32 %v5659_v50, %v2836_v10   ;;  %v11651_v50 = vld [vmem:[#allocation516_spill] sm:$0xff] }
 0x676   : >> { %v2965_v7 = vadd.f32 %v2964_v36, %v2963_v30  ;;  %2749 = vmatmul.f32.gmra.mxu3 %v11635_v28  ;;  %v11652_v36 = vld [vmem:[#allocation517_spill] sm:$0xff] }
 0x677   : >> { %11631 = vst [vmem:[#allocation638_spill] sm:$0xff] %v9171_v31 }
 0x678   : >> { %11632 = vst [vmem:[#allocation639_spill] sm:$0xff] %v9173_v1  ;;  %v2966_v60 = vrot.slane %v2965_v7, 1  ;;  %2370 = vmatmul.f32.gmra.mxu1 %v11640_v55  ;;  %v2508_v52 = vpop.f32.mrf.mxu2  ;;  %2579 = vmatmul.f32.gmra.mxu2 %v11642_v5  ;;  %v2302_v53 = vpop.f32.mrf.mxu1  ;;  %v11662_v5 = vld [vmem:[#allocation576_spill] sm:$0xff] }
 0x679   : >> { %v2702_v6 = vpop.f32.mrf.mxu3  ;;  %v9188_v2 = vadd.f32 %v2508_v52, %v2300_v16  ;;  %v2303_v54 = vadd.f32 %v2302_v53, %v2093_v13  ;;  %v2096_v30 = vpop.f32.mrf.mxu0  ;;  %2167 = vmatmul.f32.gmra.mxu0 %v11651_v50  ;;  %v11661_v16 = vld [vmem:[#allocation577_spill] sm:$0xff] }
 0x67a   : >> { %v2967_v9 = vadd.f32 %v2966_v60, %v2965_v7  ;;  %v2703_v1 = vadd.f32 %v2702_v6, %v9139_v11 }
 0x67c   : >> { %v3113_v10 = vadd.f32 1e-20, %v2967_v9  ;;  %v2840_v39 = vmul.f32 %v11638_v41, %v2703_v1  ;;  %v11657_v1 = vld [vmem:[#allocation520_spill] sm:$0xff]  ;;  %v11659_v41 = vld [vmem:[#allocation475_spill] sm:$0xff] }
 0x67e   : >> { %5660 = vrcp.f32 %v3113_v10  ;;  %v2968_v24 = vadd.f32 %v2840_v39, %v2839_v51  ;;  %2752 = vmatmul.f32.gmra.mxu3 %v11641_v27  ;;  %v11658_v10 = vld [vmem:[#allocation521_spill] sm:$0xff] }
 0x680   : >> { %v2969_v11 = vrot.slane %v2968_v24, 4  ;;  %2373 = vmatmul.f32.gmra.mxu1 %v11646_v33  ;;  %v2511_v46 = vpop.f32.mrf.mxu2  ;;  %2582 = vmatmul.f32.gmra.mxu2 %v11648_v29  ;;  %v2305_v12 = vpop.f32.mrf.mxu1 }
 0x681   : >> { %v2705_v49 = vpop.f32.mrf.mxu3  ;;  %v9199_v47 = vadd.f32 %v2511_v46, %v2303_v54  ;;  %v2306_v38 = vadd.f32 %v2305_v12, %v2096_v30  ;;  %v2099_v6 = vpop.f32.mrf.mxu0  ;;  %2170 = vmatmul.f32.gmra.mxu0 %v11657_v1  ;;  %v11672_v12 = vld [vmem:[#allocation530_spill] sm:$0xff] }
 0x682   : >> { %v2970_v23 = vadd.f32 %v2969_v11, %v2968_v24  ;;  %v2706_v59 = vadd.f32 %v2705_v49, %v9148_v18  ;;  %v11678_v1 = vld [vmem:[#allocation534_spill] sm:$0xff] }
 0x684   : >> { %v5661_v0 = vpop.eup %5660  ;;  %v2971_v19 = vrot.slane %v2970_v23, 2  ;;  %v2841_v34 = vmul.f32 %v11649_v43, %v2706_v59  ;;  %v11663_v59 = vld [vmem:[#allocation524_spill] sm:$0xff]  ;;  %v11671_v43 = vld [vmem:[#allocation483_spill] sm:$0xff] }
 0x685   : >> { %v9191_v15 = vmul.f32 %v5661_v0, %v2837_v61   ;;  %v9193_v58 = vmul.f32 %v5661_v0, %v2838_v25  }
 0x686   : >> { %v2972_v21 = vadd.f32 %v2971_v19, %v2970_v23  ;;  %2755 = vmatmul.f32.gmra.mxu3 %v11647_v8 }
 0x687   : >> { %11643 = vst [vmem:[#allocation640_spill] sm:$0xff] %v9191_v15  ;;  %v11665_v15 = vld [vmem:[#allocation479_spill] sm:$0xff] }
 0x688   : >> { %11644 = vst [vmem:[#allocation641_spill] sm:$0xff] %v9193_v58  ;;  %v2973_v18 = vrot.slane %v2972_v21, 1  ;;  %2376 = vmatmul.f32.gmra.mxu1 %v11652_v36  ;;  %v2514_v45 = vpop.f32.mrf.mxu2  ;;  %2585 = vmatmul.f32.gmra.mxu2 %v11654_v44  ;;  %v2308_v9 = vpop.f32.mrf.mxu1 }
 0x689   : >> { %v2708_v61 = vpop.f32.mrf.mxu3  ;;  %v9208_v7 = vadd.f32 %v2514_v45, %v2306_v38  ;;  %v2309_v37 = vadd.f32 %v2308_v9, %v2099_v6  ;;  %v2102_v49 = vpop.f32.mrf.mxu0  ;;  %2173 = vmatmul.f32.gmra.mxu0 %v11663_v59  ;;  %v11674_v45 = vld [vmem:[#allocation574_spill] sm:$0xff] }
 0x68a   : >> { %v2974_v17 = vadd.f32 %v2973_v18, %v2972_v21  ;;  %v2709_v58 = vadd.f32 %v2708_v61, %v9159_v22  ;;  %v11684_v59 = vld [vmem:[#allocation538_spill] sm:$0xff] }
 0x68c   : >> { %v3114_v25 = vadd.f32 1e-20, %v2974_v17  ;;  %v2842_v35 = vmul.f32 %v11650_v32, %v2709_v58  ;;  %v11669_v17 = vld [vmem:[#allocation528_spill] sm:$0xff]  ;;  %v11670_v58 = vld [vmem:[#allocation529_spill] sm:$0xff] }
 0x68e   : >> { %5662 = vrcp.f32 %v3114_v25  ;;  %v2975_v31 = vadd.f32 %v2842_v35, %v2841_v34  ;;  %2758 = vmatmul.f32.gmra.mxu3 %v11653_v62  ;;  %v11673_v62 = vld [vmem:[#allocation575_spill] sm:$0xff] }
 0x690   : >> { %v2976_v22 = vrot.slane %v2975_v31, 4  ;;  %2379 = vmatmul.f32.gmra.mxu1 %v11658_v10  ;;  %v2517_v20 = vpop.f32.mrf.mxu2  ;;  %2588 = vmatmul.f32.gmra.mxu2 %v11660_v63  ;;  %v2311_v23 = vpop.f32.mrf.mxu1 }
 0x691   : >> { %v2711_v28 = vpop.f32.mrf.mxu3  ;;  %v9219_v55 = vadd.f32 %v2517_v20, %v2309_v37  ;;  %v2312_v13 = vadd.f32 %v2311_v23, %v2102_v49  ;;  %v2105_v18 = vpop.f32.mrf.mxu0  ;;  %2176 = vmatmul.f32.gmra.mxu0 %v11669_v17 }
 0x692   : >> { %v2977_v26 = vadd.f32 %v2976_v22, %v2975_v31  ;;  %v2712_v3 = vadd.f32 %v2711_v28, %v9168_v4 }
 0x694   : >> { %v5663_v57 = vpop.eup %5662  ;;  %v2978_v60 = vrot.slane %v2977_v26, 2  ;;  %v2843_v52 = vmul.f32 %v11661_v16, %v2712_v3  ;;  %v11676_v3 = vld [vmem:[#allocation533_spill] sm:$0xff] }
 0x695   : >> { %v9211_v0 = vmul.f32 %v5663_v57, %v2839_v51   ;;  %v9213_v38 = vmul.f32 %v5663_v57, %v2840_v39  }
 0x696   : >> { %v2979_v42 = vadd.f32 %v2978_v60, %v2977_v26  ;;  %2761 = vmatmul.f32.gmra.mxu3 %v11659_v41  ;;  %v11675_v26 = vld [vmem:[#allocation532_spill] sm:$0xff]  ;;  %v11677_v60 = vld [vmem:[#allocation487_spill] sm:$0xff] }
 0x697   : >> { %11655 = vst [vmem:[#allocation642_spill] sm:$0xff] %v9211_v0  ;;  %v11664_v0 = vld [vmem:[#allocation525_spill] sm:$0xff] }
 0x698   : >> { %11656 = vst [vmem:[#allocation643_spill] sm:$0xff] %v9213_v38  ;;  %v2980_v4 = vrot.slane %v2979_v42, 1  ;;  %2382 = vmatmul.f32.gmra.mxu1 %v11664_v0  ;;  %v2520_v53 = vpop.f32.mrf.mxu2  ;;  %2591 = vmatmul.f32.gmra.mxu2 %v11666_v14  ;;  %v2314_v61 = vpop.f32.mrf.mxu1  ;;  %v11686_v14 = vld [vmem:[#allocation572_spill] sm:$0xff] }
 0x699   : >> { %v2714_v51 = vpop.f32.mrf.mxu3  ;;  %v9228_v33 = vadd.f32 %v2520_v53, %v2312_v13  ;;  %v2315_v32 = vadd.f32 %v2314_v61, %v2105_v18  ;;  %v11685_v13 = vld [vmem:[#allocation573_spill] sm:$0xff] }
 0x69a   : >> { %v2981_v24 = vadd.f32 %v2980_v4, %v2979_v42  ;;  %v2715_v39 = vadd.f32 %v2714_v51, %v9179_v40 }
 0x69c   : >> { %v3115_v27 = vadd.f32 1e-20, %v2981_v24  ;;  %v2844_v11 = vmul.f32 %v11662_v5, %v2715_v39  ;;  %v11681_v39 = vld [vmem:[#allocation536_spill] sm:$0xff]  ;;  %v11683_v5 = vld [vmem:[#allocation491_spill] sm:$0xff] }
 0x69e   : >> { %5664 = vrcp.f32 %v3115_v27  ;;  %v2982_v19 = vadd.f32 %v2844_v11, %v2843_v52  ;;  %2764 = vmatmul.f32.gmra.mxu3 %v11665_v15  ;;  %v11682_v27 = vld [vmem:[#allocation537_spill] sm:$0xff] }
 0x6a0   : >> { %v2983_v40 = vrot.slane %v2982_v19, 4  ;;  %2385 = vmatmul.f32.gmra.mxu1 %v11670_v58  ;;  %v2523_v30 = vpop.f32.mrf.mxu2  ;;  %2594 = vmatmul.f32.gmra.mxu2 %v11672_v12  ;;  %v2317_v28 = vpop.f32.mrf.mxu1 }
 0x6a1   : >> { %v2717_v21 = vpop.f32.mrf.mxu3  ;;  %v9239_v50 = vadd.f32 %v2523_v30, %v2315_v32 }
 0x6a2   : >> { %v2984_v8 = vadd.f32 %v2983_v40, %v2982_v19  ;;  %v2718_v54 = vadd.f32 %v2717_v21, %v9188_v2 }
 0x6a4   : >> { %v5665_v46 = vpop.eup %5664  ;;  %v2985_v29 = vrot.slane %v2984_v8, 2  ;;  %v2845_v38 = vmul.f32 %v11673_v62, %v2718_v54 }
 0x6a5   : >> { %v9231_v22 = vmul.f32 %v5665_v46, %v2841_v34   ;;  %v9233_v53 = vmul.f32 %v5665_v46, %v2842_v35   ;;  %v11687_v46 = vld [vmem:[#allocation495_spill] sm:$0xff] }
 0x6a6   : >> { %v2986_v25 = vadd.f32 %v2985_v29, %v2984_v8  ;;  %2767 = vmatmul.f32.gmra.mxu3 %v11671_v43 }
 0x6a7   : >> { %11667 = vst [vmem:[#allocation644_spill] sm:$0xff] %v9231_v22  ;;  %v2108_v22 = vpop.f32.mrf.mxu0  ;;  %2179 = vmatmul.f32.gmra.mxu0 %v11675_v26  ;;  %v11691_v26 = vld [vmem:[#allocation571_spill] sm:$0xff] }
 0x6a8   : >> { %11668 = vst [vmem:[#allocation645_spill] sm:$0xff] %v9233_v53  ;;  %v2987_v2 = vrot.slane %v2986_v25, 1  ;;  %2388 = vmatmul.f32.gmra.mxu1 %v11676_v3  ;;  %v2318_v6 = vadd.f32 %v2317_v28, %v2108_v22  ;;  %v2526_v9 = vpop.f32.mrf.mxu2  ;;  %2597 = vmatmul.f32.gmra.mxu2 %v11678_v1  ;;  %v2320_v24 = vpop.f32.mrf.mxu1  ;;  %v11692_v3 = vld [vmem:[#allocation570_spill] sm:$0xff] }
 0x6a9   : >> { %v2720_v34 = vpop.f32.mrf.mxu3 }
 0x6aa   : >> { %v2988_v36 = vadd.f32 %v2987_v2, %v2986_v25  ;;  %v2721_v35 = vadd.f32 %v2720_v34, %v9199_v47  ;;  %v9248_v10 = vadd.f32 %v2526_v9, %v2318_v6  ;;  %v11690_v34 = vld [vmem:[#allocation499_spill] sm:$0xff] }
 0x6ab   : >> { %v11693_v9 = vld [vmem:[#allocation503_spill] sm:$0xff] }
 0x6ac   : >> { %v3116_v31 = vadd.f32 1e-20, %v2988_v36  ;;  %v2846_v44 = vmul.f32 %v11674_v45, %v2721_v35 }
 0x6ae   : >> { %5666 = vrcp.f32 %v3116_v31  ;;  %v2989_v57 = vadd.f32 %v2846_v44, %v2845_v38  ;;  %2770 = vmatmul.f32.gmra.mxu3 %v11677_v60 }
 0x6af   : >> { %v2111_v51 = vpop.f32.mrf.mxu0  ;;  %2182 = vmatmul.f32.gmra.mxu0 %v11681_v39 }
 0x6b0   : >> { %v2990_v47 = vrot.slane %v2989_v57, 4  ;;  %2391 = vmatmul.f32.gmra.mxu1 %v11682_v27  ;;  %v2321_v49 = vadd.f32 %v2320_v24, %v2111_v51  ;;  %v2529_v23 = vpop.f32.mrf.mxu2  ;;  %2600 = vmatmul.f32.gmra.mxu2 %v11684_v59  ;;  %v2323_v8 = vpop.f32.mrf.mxu1  ;;  %v11696_v27 = vld [vmem:[#allocation507_spill] sm:$0xff] }
 0x6b1   : >> { %v2723_v42 = vpop.f32.mrf.mxu3 }
 0x6b2   : >> { %v2991_v41 = vadd.f32 %v2990_v47, %v2989_v57  ;;  %v2724_v37 = vadd.f32 %v2723_v42, %v9208_v7  ;;  %v9259_v0 = vadd.f32 %v2529_v23, %v2321_v49 }
 0x6b4   : >> { %v5667_v20 = vpop.eup %5666  ;;  %v2992_v63 = vrot.slane %v2991_v41, 2  ;;  %v2847_v53 = vmul.f32 %v11685_v13, %v2724_v37 }
 0x6b5   : >> { %v9251_v35 = vmul.f32 %v5667_v20, %v2843_v52   ;;  %v9253_v4 = vmul.f32 %v5667_v20, %v2844_v11  }
 0x6b6   : >> { %v2993_v16 = vadd.f32 %v2992_v63, %v2991_v41  ;;  %2773 = vmatmul.f32.gmra.mxu3 %v11683_v5 }
 0x6b7   : >> { %11679 = vst [vmem:[#allocation646_spill] sm:$0xff] %v9251_v35  ;;  %v2114_v21 = vpop.f32.mrf.mxu0 }
 0x6b8   : >> { %11680 = vst [vmem:[#allocation647_spill] sm:$0xff] %v9253_v4  ;;  %v2994_v7 = vrot.slane %v2993_v16, 1  ;;  %v2324_v29 = vadd.f32 %v2323_v8, %v2114_v21  ;;  %v2532_v18 = vpop.f32.mrf.mxu2  ;;  %v2326_v12 = vpop.f32.mrf.mxu1  ;;  %v11699_v21 = vld [vmem:[#allocation511_spill] sm:$0xff] }
 0x6b9   : >> { %v2726_v52 = vpop.f32.mrf.mxu3 }
 0x6ba   : >> { %v2995_v19 = vadd.f32 %v2994_v7, %v2993_v16  ;;  %v2727_v11 = vadd.f32 %v2726_v52, %v9219_v55  ;;  %v9265_v17 = vadd.f32 %v2532_v18, %v2324_v29 }
 0x6bc   : >> { %v3117_v15 = vadd.f32 1e-20, %v2995_v19  ;;  %v2848_v40 = vmul.f32 %v11686_v14, %v2727_v11  ;;  %v11697_v19 = vld [vmem:[#allocation569_spill] sm:$0xff] }
 0x6be   : >> { %5668 = vrcp.f32 %v3117_v15  ;;  %v2996_v54 = vadd.f32 %v2848_v40, %v2847_v53  ;;  %2776 = vmatmul.f32.gmra.mxu3 %v11687_v46  ;;  %v11698_v15 = vld [vmem:[#allocation568_spill] sm:$0xff] }
 0x6bf   : >> { %v2117_v30 = vpop.f32.mrf.mxu0 }
 0x6c0   : >> { %v2997_v61 = vrot.slane %v2996_v54, 4  ;;  %v2327_v36 = vadd.f32 %v2326_v12, %v2117_v30  ;;  %v2535_v35 = vpop.f32.mrf.mxu2  ;;  %v2329_v60 = vpop.f32.mrf.mxu1  ;;  %v11702_v30 = vld [vmem:[#allocation515_spill] sm:$0xff] }
 0x6c1   : >> { %v2729_v58 = vpop.f32.mrf.mxu3 }
 0x6c2   : >> { %v2998_v25 = vadd.f32 %v2997_v61, %v2996_v54  ;;  %v2730_v55 = vadd.f32 %v2729_v58, %v9228_v33  ;;  %v9273_v62 = vadd.f32 %v2535_v35, %v2327_v36 }
 0x6c4   : >> { %v5669_v43 = vpop.eup %5668  ;;  %v2999_v32 = vrot.slane %v2998_v25, 2 }
 0x6c5   : >> { %v9268_v23 = vmul.f32 %v5669_v43, %v2845_v38   ;;  %v9270_v47 = vmul.f32 %v5669_v43, %v2846_v44   ;;  %v2849_v38 = vmul.f32 %v11691_v26, %v2730_v55  ;;  %v11704_v26 = vld [vmem:[#allocation566_spill] sm:$0xff] }
 0x6c6   : >> { %v3000_v2 = vadd.f32 %v2999_v32, %v2998_v25  ;;  %2779 = vmatmul.f32.gmra.mxu3 %v11690_v34 }
 0x6c7   : >> { %11688 = vst [vmem:[#allocation648_spill] sm:$0xff] %v9268_v23  ;;  %v2120_v57 = vpop.f32.mrf.mxu0 }
 0x6c8   : >> { %11689 = vst [vmem:[#allocation649_spill] sm:$0xff] %v9270_v47  ;;  %v3001_v31 = vrot.slane %v3000_v2, 1  ;;  %v2330_v1 = vadd.f32 %v2329_v60, %v2120_v57  ;;  %v2538_v47 = vpop.f32.mrf.mxu2  ;;  %v2332_v24 = vpop.f32.mrf.mxu1  ;;  %v11705_v57 = vld [vmem:[#allocation519_spill] sm:$0xff] }
 0x6c9   : >> { %v2732_v45 = vpop.f32.mrf.mxu3 }
 0x6ca   : >> { %v3002_v22 = vadd.f32 %v3001_v31, %v3000_v2  ;;  %v2733_v33 = vadd.f32 %v2732_v45, %v9239_v50  ;;  %v9279_v41 = vadd.f32 %v2538_v47, %v2330_v1 }
 0x6cc   : >> { %v3118_v28 = vadd.f32 1e-20, %v3002_v22  ;;  %v2850_v44 = vmul.f32 %v11692_v3, %v2733_v33  ;;  %v11703_v33 = vld [vmem:[#allocation567_spill] sm:$0xff] }
 0x6ce   : >> { %5670 = vrcp.f32 %v3118_v28  ;;  %v3003_v6 = vadd.f32 %v2850_v44, %v2849_v38  ;;  %2782 = vmatmul.f32.gmra.mxu3 %v11693_v9 }
 0x6cf   : >> { %v2123_v51 = vpop.f32.mrf.mxu0 }
 0x6d0   : >> { %v3004_v42 = vrot.slane %v3003_v6, 4  ;;  %v2333_v16 = vadd.f32 %v2332_v24, %v2123_v51  ;;  %v2541_v5 = vpop.f32.mrf.mxu2  ;;  %v2335_v14 = vpop.f32.mrf.mxu1  ;;  %v11708_v51 = vld [vmem:[#allocation523_spill] sm:$0xff] }
 0x6d1   : >> { %v2735_v37 = vpop.f32.mrf.mxu3 }
 0x6d2   : >> { %v3005_v20 = vadd.f32 %v3004_v42, %v3003_v6  ;;  %v2736_v50 = vadd.f32 %v2735_v37, %v9248_v10  ;;  %v9287_v23 = vadd.f32 %v2541_v5, %v2333_v16 }
 0x6d4   : >> { %v5671_v63 = vpop.eup %5670  ;;  %v3006_v4 = vrot.slane %v3005_v20, 2  ;;  %v2851_v11 = vmul.f32 %v11697_v19, %v2736_v50 }
 0x6d5   : >> { %v9282_v8 = vmul.f32 %v5671_v63, %v2847_v53   ;;  %v9284_v6 = vmul.f32 %v5671_v63, %v2848_v40  }
 0x6d6   : >> { %v3007_v39 = vadd.f32 %v3006_v4, %v3005_v20  ;;  %2785 = vmatmul.f32.gmra.mxu3 %v11696_v27 }
 0x6d7   : >> { %11694 = vst [vmem:[#allocation650_spill] sm:$0xff] %v9282_v8  ;;  %v2126_v53 = vpop.f32.mrf.mxu0 }
 0x6d8   : >> { %11695 = vst [vmem:[#allocation651_spill] sm:$0xff] %v9284_v6  ;;  %v3008_v49 = vrot.slane %v3007_v39, 1  ;;  %v2336_v8 = vadd.f32 %v2335_v14, %v2126_v53  ;;  %v2544_v54 = vpop.f32.mrf.mxu2  ;;  %v2338_v43 = vpop.f32.mrf.mxu1  ;;  %v11711_v53 = vld [vmem:[#allocation527_spill] sm:$0xff] }
 0x6d9   : >> { %v2738_v59 = vpop.f32.mrf.mxu3 }
 0x6da   : >> { %v3009_v7 = vadd.f32 %v3008_v49, %v3007_v39  ;;  %v2739_v10 = vadd.f32 %v2738_v59, %v9259_v0  ;;  %v9293_v29 = vadd.f32 %v2544_v54, %v2336_v8 }
 0x6dc   : >> { %v3119_v52 = vadd.f32 1e-20, %v3009_v7  ;;  %v2852_v13 = vmul.f32 %v11698_v15, %v2739_v10 }
 0x6de   : >> { %5672 = vrcp.f32 %v3119_v52  ;;  %v3010_v40 = vadd.f32 %v2852_v13, %v2851_v11  ;;  %2788 = vmatmul.f32.gmra.mxu3 %v11699_v21  ;;  %v11709_v52 = vld [vmem:[#allocation565_spill] sm:$0xff] }
 0x6df   : >> { %v2129_v55 = vpop.f32.mrf.mxu0 }
 0x6e0   : >> { %v3011_v46 = vrot.slane %v3010_v40, 4  ;;  %v2339_v2 = vadd.f32 %v2338_v43, %v2129_v55  ;;  %v2547_v34 = vpop.f32.mrf.mxu2  ;;  %v2341_v3 = vpop.f32.mrf.mxu1  ;;  %v11714_v55 = vld [vmem:[#allocation531_spill] sm:$0xff] }
 0x6e1   : >> { %v2741_v18 = vpop.f32.mrf.mxu3 }
 0x6e2   : >> { %v3012_v61 = vadd.f32 %v3011_v46, %v3010_v40  ;;  %v2742_v0 = vadd.f32 %v2741_v18, %v9265_v17  ;;  %v9301_v35 = vadd.f32 %v2547_v34, %v2339_v2 }
 0x6e4   : >> { %v5673_v58 = vpop.eup %5672  ;;  %v3013_v25 = vrot.slane %v3012_v61, 2  ;;  %v2853_v28 = vmul.f32 %v11703_v33, %v2742_v0 }
 0x6e5   : >> { %v9296_v21 = vmul.f32 %v5673_v58, %v2849_v38   ;;  %v9298_v12 = vmul.f32 %v5673_v58, %v2850_v44  }
 0x6e6   : >> { %v3014_v32 = vadd.f32 %v3013_v25, %v3012_v61  ;;  %2791 = vmatmul.f32.gmra.mxu3 %v11702_v30 }
 0x6e7   : >> { %11700 = vst [vmem:[#allocation652_spill] sm:$0xff] %v9296_v21 }
 0x6e8   : >> { %11701 = vst [vmem:[#allocation653_spill] sm:$0xff] %v9298_v12  ;;  %v3015_v36 = vrot.slane %v3014_v32, 1  ;;  %v2132_v12 = vpop.f32.mrf.mxu0  ;;  %v2550_v6 = vpop.f32.mrf.mxu2 }
 0x6e9   : >> { %v2744_v31 = vpop.f32.mrf.mxu3  ;;  %v2342_v60 = vadd.f32 %v2341_v3, %v2132_v12  ;;  %v2344_v63 = vpop.f32.mrf.mxu1  ;;  %v11717_v12 = vld [vmem:[#allocation535_spill] sm:$0xff] }
 0x6ea   : >> { %v3016_v45 = vadd.f32 %v3015_v36, %v3014_v32  ;;  %v2745_v17 = vadd.f32 %v2744_v31, %v9273_v62 }
 0x6eb   : >> { %v9307_v1 = vadd.f32 %v2550_v6, %v2342_v60 }
 0x6ec   : >> { %v3120_v22 = vadd.f32 1e-20, %v3016_v45  ;;  %v2854_v38 = vmul.f32 %v11704_v26, %v2745_v17  ;;  %v11715_v45 = vld [vmem:[#allocation563_spill] sm:$0xff] }
 0x6ee   : >> { %5674 = vrcp.f32 %v3120_v22  ;;  %v3017_v44 = vadd.f32 %v2854_v38, %v2853_v28  ;;  %2794 = vmatmul.f32.gmra.mxu3 %v11705_v57  ;;  %v11716_v22 = vld [vmem:[#allocation562_spill] sm:$0xff] }
 0x6f0   : >> { %v3018_v9 = vrot.slane %v3017_v44, 4  ;;  %v2135_v50 = vpop.f32.mrf.mxu0  ;;  %v2553_v39 = vpop.f32.mrf.mxu2 }
 0x6f1   : >> { %v2747_v47 = vpop.f32.mrf.mxu3  ;;  %v2345_v24 = vadd.f32 %v2344_v63, %v2135_v50  ;;  %v2347_v15 = vpop.f32.mrf.mxu1  ;;  %v11720_v50 = vld [vmem:[#allocation539_spill] sm:$0xff] }
 0x6f2   : >> { %v3019_v42 = vadd.f32 %v3018_v9, %v3017_v44  ;;  %v2748_v62 = vadd.f32 %v2747_v47, %v9279_v41 }
 0x6f3   : >> { %v9315_v5 = vadd.f32 %v2553_v39, %v2345_v24 }
 0x6f4   : >> { %v5675_v37 = vpop.eup %5674  ;;  %v3020_v20 = vrot.slane %v3019_v42, 2  ;;  %v2855_v19 = vmul.f32 %v11709_v52, %v2748_v62 }
 0x6f5   : >> { %v9310_v27 = vmul.f32 %v5675_v37, %v2851_v11   ;;  %v9312_v7 = vmul.f32 %v5675_v37, %v2852_v13  }
 0x6f6   : >> { %v3021_v4 = vadd.f32 %v3020_v20, %v3019_v42  ;;  %2797 = vmatmul.f32.gmra.mxu3 %v11708_v51 }
 0x6f7   : >> { %11706 = vst [vmem:[#allocation654_spill] sm:$0xff] %v9310_v27  ;;  %v11710_v27 = vld [vmem:[#allocation564_spill] sm:$0xff] }
 0x6f8   : >> { %11707 = vst [vmem:[#allocation655_spill] sm:$0xff] %v9312_v7  ;;  %v3022_v16 = vrot.slane %v3021_v4, 1  ;;  %v2138_v7 = vpop.f32.mrf.mxu0  ;;  %v2556_v40 = vpop.f32.mrf.mxu2 }
 0x6f9   : >> { %v2750_v49 = vpop.f32.mrf.mxu3  ;;  %v2348_v14 = vadd.f32 %v2347_v15, %v2138_v7  ;;  %v2350_v58 = vpop.f32.mrf.mxu1 }
 0x6fa   : >> { %v3023_v59 = vadd.f32 %v3022_v16, %v3021_v4  ;;  %v2751_v41 = vadd.f32 %v2750_v49, %v9287_v23 }
 0x6fb   : >> { %v2557_v8 = vadd.f32 %v2556_v40, %v2348_v14 }
 0x6fc   : >> { %v3121_v10 = vadd.f32 1e-20, %v3023_v59  ;;  %v2856_v11 = vmul.f32 %v11710_v27, %v2751_v41 }
 0x6fe   : >> { %5676 = vrcp.f32 %v3121_v10  ;;  %v3024_v13 = vadd.f32 %v2856_v11, %v2855_v19  ;;  %2800 = vmatmul.f32.gmra.mxu3 %v11711_v53 }
 0x700   : >> { %v3025_v21 = vrot.slane %v3024_v13, 4  ;;  %v2141_v0 = vpop.f32.mrf.mxu0  ;;  %v2559_v32 = vpop.f32.mrf.mxu2 }
 0x701   : >> { %v2753_v54 = vpop.f32.mrf.mxu3  ;;  %v2351_v43 = vadd.f32 %v2350_v58, %v2141_v0  ;;  %v2353_v26 = vpop.f32.mrf.mxu1 }
 0x702   : >> { %v3026_v46 = vadd.f32 %v3025_v21, %v3024_v13  ;;  %v2754_v18 = vadd.f32 %v2753_v54, %v9293_v29 }
 0x703   : >> { %v2560_v2 = vadd.f32 %v2559_v32, %v2351_v43 }
 0x704   : >> { %v5677_v23 = vpop.eup %5676  ;;  %v3027_v61 = vrot.slane %v3026_v46, 2  ;;  %v2857_v17 = vmul.f32 %v11715_v45, %v2754_v18 }
 0x705   : >> { %v9322_v59 = vmul.f32 %v5677_v23, %v2853_v28   ;;  %v9324_v10 = vmul.f32 %v5677_v23, %v2854_v38  }
 0x706   : >> { %v3028_v25 = vadd.f32 %v3027_v61, %v3026_v46  ;;  %2803 = vmatmul.f32.gmra.mxu3 %v11714_v55 }
 0x707   : >> { %11712 = vst [vmem:[#allocation656_spill] sm:$0xff] %v9322_v59  ;;  %v11721_v59 = vld [vmem:[#allocation561_spill] sm:$0xff] }
 0x708   : >> { %11713 = vst [vmem:[#allocation657_spill] sm:$0xff] %v9324_v10  ;;  %v3029_v30 = vrot.slane %v3028_v25, 1  ;;  %v2144_v28 = vpop.f32.mrf.mxu0  ;;  %v2562_v44 = vpop.f32.mrf.mxu2  ;;  %v11722_v10 = vld [vmem:[#allocation560_spill] sm:$0xff] }
 0x709   : >> { %v2756_v34 = vpop.f32.mrf.mxu3  ;;  %v2354_v3 = vadd.f32 %v2353_v26, %v2144_v28  ;;  %v2356_v37 = vpop.f32.mrf.mxu1 }
 0x70a   : >> { %v3030_v36 = vadd.f32 %v3029_v30, %v3028_v25  ;;  %v2757_v31 = vadd.f32 %v2756_v34, %v9301_v35 }
 0x70b   : >> { %v2563_v60 = vadd.f32 %v2562_v44, %v2354_v3 }
 0x70c   : >> { %v3122_v29 = vadd.f32 1e-20, %v3030_v36  ;;  %v2858_v33 = vmul.f32 %v11716_v22, %v2757_v31  ;;  %v11725_v36 = vld [vmem:[#allocation559_spill] sm:$0xff] }
 0x70e   : >> { %5678 = vrcp.f32 %v3122_v29  ;;  %v3031_v38 = vadd.f32 %v2858_v33, %v2857_v17  ;;  %2806 = vmatmul.f32.gmra.mxu3 %v11717_v12 }
 0x710   : >> { %v3032_v57 = vrot.slane %v3031_v38, 4  ;;  %v2147_v62 = vpop.f32.mrf.mxu0  ;;  %v2565_v4 = vpop.f32.mrf.mxu2 }
 0x711   : >> { %v2759_v6 = vpop.f32.mrf.mxu3  ;;  %v2357_v63 = vadd.f32 %v2356_v37, %v2147_v62  ;;  %v2359_v27 = vpop.f32.mrf.mxu1 }
 0x712   : >> { %v3033_v9 = vadd.f32 %v3032_v57, %v3031_v38  ;;  %v2760_v47 = vadd.f32 %v2759_v6, %v9307_v1 }
 0x713   : >> { %v2566_v24 = vadd.f32 %v2565_v4, %v2357_v63  ;;  %v11729_v4 = vld [vmem:[#allocation557_spill] sm:$0xff] }
 0x714   : >> { %v5679_v35 = vpop.eup %5678  ;;  %v3034_v42 = vrot.slane %v3033_v9, 2  ;;  %v2859_v41 = vmul.f32 %v11721_v59, %v2760_v47 }
 0x715   : >> { %v9332_v57 = vmul.f32 %v5679_v35, %v2855_v19   ;;  %v9334_v28 = vmul.f32 %v5679_v35, %v2856_v11  }
 0x716   : >> { %v3035_v20 = vadd.f32 %v3034_v42, %v3033_v9  ;;  %2809 = vmatmul.f32.gmra.mxu3 %v11720_v50 }
 0x717   : >> { %11718 = vst [vmem:[#allocation658_spill] sm:$0xff] %v9332_v57 }
 0x718   : >> { %11719 = vst [vmem:[#allocation659_spill] sm:$0xff] %v9334_v28  ;;  %v3036_v51 = vrot.slane %v3035_v20, 1  ;;  %v2150_v19 = vpop.f32.mrf.mxu0  ;;  %v2568_v15 = vpop.f32.mrf.mxu2 }
 0x719   : >> { %v2762_v39 = vpop.f32.mrf.mxu3  ;;  %v2360_v7 = vadd.f32 %v2359_v27, %v2150_v19  ;;  %v2362_v23 = vpop.f32.mrf.mxu1 }
 0x71a   : >> { %v3037_v16 = vadd.f32 %v3036_v51, %v3035_v20  ;;  %v2763_v49 = vadd.f32 %v2762_v39, %v9315_v5 }
 0x71b   : >> { %v2569_v53 = vadd.f32 %v2568_v15, %v2360_v7 }
 0x71c   : >> { %v3123_v1 = vadd.f32 1e-20, %v3037_v16  ;;  %v2860_v52 = vmul.f32 %v11722_v10, %v2763_v49 }
 0x71e   : >> { %5680 = vrcp.f32 %v3123_v1  ;;  %v3038_v11 = vadd.f32 %v2860_v52, %v2859_v41 }
 0x720   : >> { %v3039_v13 = vrot.slane %v3038_v11, 4  ;;  %v2153_v18 = vpop.f32.mrf.mxu0  ;;  %v2571_v58 = vpop.f32.mrf.mxu2 }
 0x721   : >> { %v2765_v14 = vpop.f32.mrf.mxu3  ;;  %v2363_v0 = vadd.f32 %v2362_v23, %v2153_v18 }
 0x722   : >> { %v3040_v40 = vadd.f32 %v3039_v13, %v3038_v11  ;;  %v2766_v21 = vadd.f32 %v2765_v14, %v2557_v8  ;;  %v11726_v8 = vld [vmem:[#allocation558_spill] sm:$0xff] }
 0x723   : >> { %v2572_v55 = vadd.f32 %v2571_v58, %v2363_v0 }
 0x724   : >> { %v5681_v54 = vpop.eup %5680  ;;  %v3041_v46 = vrot.slane %v3040_v40, 2  ;;  %v2861_v31 = vmul.f32 %v11725_v36, %v2766_v21 }
 0x725   : >> { %v9340_v50 = vmul.f32 %v5681_v54, %v2857_v17   ;;  %v9342_v5 = vmul.f32 %v5681_v54, %v2858_v33   ;;  %v2365_v17 = vpop.f32.mrf.mxu1  ;;  %v11734_v54 = vld [vmem:[#allocation554_spill] sm:$0xff] }
 0x726   : >> { %v3042_v61 = vadd.f32 %v3041_v46, %v3040_v40  ;;  %v11733_v40 = vld [vmem:[#allocation555_spill] sm:$0xff] }
 0x727   : >> { %11723 = vst [vmem:[#allocation660_spill] sm:$0xff] %v9340_v50 }
 0x728   : >> { %11724 = vst [vmem:[#allocation661_spill] sm:$0xff] %v9342_v5  ;;  %v3043_v25 = vrot.slane %v3042_v61, 1  ;;  %v2156_v45 = vpop.f32.mrf.mxu0  ;;  %v2574_v33 = vpop.f32.mrf.mxu2 }
 0x729   : >> { %v2768_v43 = vpop.f32.mrf.mxu3  ;;  %v2366_v5 = vadd.f32 %v2365_v17, %v2156_v45 }
 0x72a   : >> { %v3044_v32 = vadd.f32 %v3043_v25, %v3042_v61  ;;  %v2769_v30 = vadd.f32 %v2768_v43, %v2560_v2 }
 0x72b   : >> { %v2575_v26 = vadd.f32 %v2574_v33, %v2366_v5 }
 0x72c   : >> { %v3124_v34 = vadd.f32 1e-20, %v3044_v32  ;;  %v2862_v29 = vmul.f32 %v11726_v8, %v2769_v30 }
 0x72d   : >> { %v2368_v6 = vpop.f32.mrf.mxu1 }
 0x72e   : >> { %5682 = vrcp.f32 %v3124_v34  ;;  %v3045_v22 = vadd.f32 %v2862_v29, %v2861_v31 }
 0x730   : >> { %v3046_v28 = vrot.slane %v3045_v22, 4  ;;  %v2159_v2 = vpop.f32.mrf.mxu0  ;;  %v2577_v35 = vpop.f32.mrf.mxu2 }
 0x731   : >> { %v2771_v38 = vpop.f32.mrf.mxu3  ;;  %v2369_v47 = vadd.f32 %v2368_v6, %v2159_v2 }
 0x732   : >> { %v3047_v12 = vadd.f32 %v3046_v28, %v3045_v22  ;;  %v2772_v3 = vadd.f32 %v2771_v38, %v2563_v60  ;;  %v11730_v60 = vld [vmem:[#allocation556_spill] sm:$0xff]  ;;  %v11737_v22 = vld [vmem:[#allocation553_spill] sm:$0xff] }
 0x733   : >> { %v2578_v62 = vadd.f32 %v2577_v35, %v2369_v47 }
 0x734   : >> { %v5683_v44 = vpop.eup %5682  ;;  %v3048_v57 = vrot.slane %v3047_v12, 2  ;;  %v2863_v51 = vmul.f32 %v11729_v4, %v2772_v3 }
 0x735   : >> { %v9346_v17 = vmul.f32 %v5683_v44, %v2859_v41   ;;  %v9348_v13 = vmul.f32 %v5683_v44, %v2860_v52   ;;  %v2371_v7 = vpop.f32.mrf.mxu1 }
 0x736   : >> { %v3049_v9 = vadd.f32 %v3048_v57, %v3047_v12 }
 0x737   : >> { %11727 = vst [vmem:[#allocation662_spill] sm:$0xff] %v9346_v17 }
 0x738   : >> { %11728 = vst [vmem:[#allocation663_spill] sm:$0xff] %v9348_v13  ;;  %v3050_v42 = vrot.slane %v3049_v9, 1  ;;  %v2580_v18 = vpop.f32.mrf.mxu2 }
 0x739   : >> { %v2774_v37 = vpop.f32.mrf.mxu3 }
 0x73a   : >> { %v3051_v20 = vadd.f32 %v3050_v42, %v3049_v9  ;;  %v2775_v50 = vadd.f32 %v2774_v37, %v2566_v24  ;;  %v2162_v24 = vpop.f32.mrf.mxu0 }
 0x73b   : >> { %v2372_v57 = vadd.f32 %v2371_v7, %v2162_v24 }
 0x73c   : >> { %v3125_v63 = vadd.f32 1e-20, %v3051_v20  ;;  %v2864_v39 = vmul.f32 %v11730_v60, %v2775_v50 }
 0x73d   : >> { %v2374_v43 = vpop.f32.mrf.mxu1  ;;  %v2581_v42 = vadd.f32 %v2580_v18, %v2372_v57 }
 0x73e   : >> { %5684 = vrcp.f32 %v3125_v63  ;;  %v3052_v16 = vadd.f32 %v2864_v39, %v2863_v51 }
 0x740   : >> { %v3053_v49 = vrot.slane %v3052_v16, 4  ;;  %v2583_v36 = vpop.f32.mrf.mxu2 }
 0x741   : >> { %v2777_v1 = vpop.f32.mrf.mxu3 }
 0x742   : >> { %v3054_v59 = vadd.f32 %v3053_v49, %v3052_v16  ;;  %v2778_v41 = vadd.f32 %v2777_v1, %v2569_v53  ;;  %v2165_v25 = vpop.f32.mrf.mxu0 }
 0x743   : >> { %v2375_v9 = vadd.f32 %v2374_v43, %v2165_v25 }
 0x744   : >> { %v5685_v10 = vpop.eup %5684  ;;  %v3055_v52 = vrot.slane %v3054_v59, 2  ;;  %v2865_v21 = vmul.f32 %v11733_v40, %v2778_v41 }
 0x745   : >> { %v9352_v2 = vmul.f32 %v5685_v10, %v2861_v31   ;;  %v9354_v33 = vmul.f32 %v5685_v10, %v2862_v29   ;;  %v2377_v12 = vpop.f32.mrf.mxu1  ;;  %v2584_v20 = vadd.f32 %v2583_v36, %v2375_v9  ;;  %v11742_v10 = vld [vmem:[#allocation550_spill] sm:$0xff] }
 0x746   : >> { %v3056_v19 = vadd.f32 %v3055_v52, %v3054_v59  ;;  %v11741_v59 = vld [vmem:[#allocation551_spill] sm:$0xff] }
 0x747   : >> { %11731 = vst [vmem:[#allocation664_spill] sm:$0xff] %v9352_v2 }
 0x748   : >> { %11732 = vst [vmem:[#allocation665_spill] sm:$0xff] %v9354_v33  ;;  %v3057_v27 = vrot.slane %v3056_v19, 1  ;;  %v11738_v33 = vld [vmem:[#allocation552_spill] sm:$0xff]  ;;  %v2586_v2 = vpop.f32.mrf.mxu2 }
 0x749   : >> { %v2780_v11 = vpop.f32.mrf.mxu3 }
 0x74a   : >> { %v3058_v15 = vadd.f32 %v3057_v27, %v3056_v19  ;;  %v2781_v13 = vadd.f32 %v2780_v11, %v2572_v55  ;;  %v2168_v38 = vpop.f32.mrf.mxu0 }
 0x74b   : >> { %v2378_v24 = vadd.f32 %v2377_v12, %v2168_v38 }
 0x74c   : >> { %v3126_v14 = vadd.f32 1e-20, %v3058_v15  ;;  %v2866_v46 = vmul.f32 %v11734_v54, %v2781_v13 }
 0x74d   : >> { %v2380_v63 = vpop.f32.mrf.mxu1  ;;  %v2587_v54 = vadd.f32 %v2586_v2, %v2378_v24 }
 0x74e   : >> { %5686 = vrcp.f32 %v3126_v14  ;;  %v3059_v53 = vadd.f32 %v2866_v46, %v2865_v21 }
 0x750   : >> { %v3060_v23 = vrot.slane %v3059_v53, 4  ;;  %v2589_v49 = vpop.f32.mrf.mxu2 }
 0x751   : >> { %v2783_v61 = vpop.f32.mrf.mxu3 }
 0x752   : >> { %v3061_v0 = vadd.f32 %v3060_v23, %v3059_v53  ;;  %v2784_v58 = vadd.f32 %v2783_v61, %v2575_v26  ;;  %v2171_v50 = vpop.f32.mrf.mxu0 }
 0x753   : >> { %v2381_v14 = vadd.f32 %v2380_v63, %v2171_v50  ;;  %v11750_v63 = vld [vmem:[#allocation546_spill] sm:$0xff] }
 0x754   : >> { %v5687_v32 = vpop.eup %5686  ;;  %v3062_v30 = vrot.slane %v3061_v0, 2  ;;  %v2867_v5 = vmul.f32 %v11737_v22, %v2784_v58 }
 0x755   : >> { %v9358_v26 = vmul.f32 %v5687_v32, %v2863_v51   ;;  %v9360_v34 = vmul.f32 %v5687_v32, %v2864_v39   ;;  %v2383_v15 = vpop.f32.mrf.mxu1  ;;  %v2590_v23 = vadd.f32 %v2589_v49, %v2381_v14 }
 0x756   : >> { %v3063_v55 = vadd.f32 %v3062_v30, %v3061_v0 }
 0x757   : >> { %11735 = vst [vmem:[#allocation666_spill] sm:$0xff] %v9358_v26 }
 0x758   : >> { %11736 = vst [vmem:[#allocation667_spill] sm:$0xff] %v9360_v34  ;;  %v3064_v31 = vrot.slane %v3063_v55, 1  ;;  %v2592_v18 = vpop.f32.mrf.mxu2 }
 0x759   : >> { %v2786_v8 = vpop.f32.mrf.mxu3 }
 0x75a   : >> { %v3065_v29 = vadd.f32 %v3064_v31, %v3063_v55  ;;  %v2787_v45 = vadd.f32 %v2786_v8, %v2578_v62  ;;  %v2174_v11 = vpop.f32.mrf.mxu0  ;;  %v11745_v55 = vld [vmem:[#allocation549_spill] sm:$0xff] }
 0x75b   : >> { %v2384_v22 = vadd.f32 %v2383_v15, %v2174_v11 }
 0x75c   : >> { %v3127_v17 = vadd.f32 1e-20, %v3065_v29  ;;  %v2868_v28 = vmul.f32 %v11738_v33, %v2787_v45 }
 0x75d   : >> { %v2386_v30 = vpop.f32.mrf.mxu1 }
 0x75e   : >> { %5688 = vrcp.f32 %v3127_v17  ;;  %v3066_v3 = vadd.f32 %v2868_v28, %v2867_v5 }
 0x760   : >> { %v3067_v44 = vrot.slane %v3066_v3, 4  ;;  %v2595_v45 = vpop.f32.mrf.mxu2 }
 0x761   : >> { %v2789_v26 = vpop.f32.mrf.mxu3 }
 0x762   : >> { %v3068_v6 = vadd.f32 %v3067_v44, %v3066_v3  ;;  %v2790_v51 = vadd.f32 %v2789_v26, %v2581_v42  ;;  %v2177_v32 = vpop.f32.mrf.mxu0  ;;  %v2593_v3 = vadd.f32 %v2592_v18, %v2384_v22  ;;  %v11801_v22 = vld [vmem:[#allocation644_spill] sm:$0xff] }
 0x763   : > { %v11849_v22 = vld [vmem:[#allocation644_spill] sm:$0xff] (%p9399_p1) }
 0x764   : >> { %v5689_v47 = vpop.eup %5688  ;;  %v3069_v35 = vrot.slane %v3068_v6, 2  ;;  %v2869_v41 = vmul.f32 %v11741_v59, %v2790_v51 }
 0x765   : >> { %v9364_v31 = vmul.f32 %v5689_v47, %v2865_v21   ;;  %v9366_v62 = vmul.f32 %v5689_v47, %v2866_v46   ;;  %v2389_v57 = vpop.f32.mrf.mxu1 }
 0x766   : >> { %v3070_v37 = vadd.f32 %v3069_v35, %v3068_v6 }
 0x767   : >> { %11739 = vst [vmem:[#allocation668_spill] sm:$0xff] %v9364_v31  ;;  %v11746_v31 = vld [vmem:[#allocation548_spill] sm:$0xff] }
 0x768   : >> { %11740 = vst [vmem:[#allocation669_spill] sm:$0xff] %v9366_v62  ;;  %v3071_v4 = vrot.slane %v3070_v37, 1  ;;  %v2598_v35 = vpop.f32.mrf.mxu2 }
 0x769   : >> { %v2792_v60 = vpop.f32.mrf.mxu3 }
 0x76a   : >> { %v3072_v39 = vadd.f32 %v3071_v4, %v3070_v37  ;;  %v2793_v16 = vadd.f32 %v2792_v60, %v2584_v20  ;;  %v2180_v44 = vpop.f32.mrf.mxu0  ;;  %v11749_v20 = vld [vmem:[#allocation547_spill] sm:$0xff] }
 0x76b   : >> { %v2390_v49 = vadd.f32 %v2389_v57, %v2180_v44  ;;  %v11787_v57 = vld [vmem:[#allocation658_spill] sm:$0xff]  ;;  %v11798_v44 = vld [vmem:[#allocation647_spill] sm:$0xff] }
 0x76c   : >> { %v3128_v1 = vadd.f32 1e-20, %v3072_v39  ;;  %v2870_v52 = vmul.f32 %v11742_v10, %v2793_v16  ;;  %v11856_v57 = vld [vmem:[#allocation626_spill] sm:$0xff] (%p9399_p1) }
 0x76d   : >> { %v2392_v16 = vpop.f32.mrf.mxu1 }
 0x76e   : >> { %5690 = vrcp.f32 %v3128_v1  ;;  %v3073_v19 = vadd.f32 %v2870_v52, %v2869_v41 }
 0x770   : >> { %v3074_v27 = vrot.slane %v3073_v19, 4  ;;  %v2601_v10 = vpop.f32.mrf.mxu2 }
 0x771   : >> { %v2795_v7 = vpop.f32.mrf.mxu3 }
 0x772   : >> { %v3075_v13 = vadd.f32 %v3074_v27, %v3073_v19  ;;  %v2796_v0 = vadd.f32 %v2795_v7, %v2587_v54  ;;  %v2599_v27 = vadd.f32 %v2598_v35, %v2390_v49  ;;  %v11799_v35 = vld [vmem:[#allocation646_spill] sm:$0xff] }
 0x773   : > { %v11861_v35 = vld [vmem:[#allocation641_spill] sm:$0xff] (%p9399_p1) }
 0x774   : >> { %v5691_v40 = vpop.eup %5690  ;;  %v3076_v21 = vrot.slane %v3075_v13, 2  ;;  %v2871_v36 = vmul.f32 %v11745_v55, %v2796_v0 }
 0x775   : >> { %v9370_v19 = vmul.f32 %v5691_v40, %v2867_v5   ;;  %v9372_v46 = vmul.f32 %v5691_v40, %v2868_v28   ;;  %v2387_v28 = vadd.f32 %v2386_v30, %v2177_v32 }
 0x776   : >> { %v3077_v53 = vadd.f32 %v3076_v21, %v3075_v13 }
 0x777   : >> { %11743 = vst [vmem:[#allocation670_spill] sm:$0xff] %v9370_v19  ;;  %v2596_v2 = vadd.f32 %v2595_v45, %v2387_v28  ;;  %v11786_v28 = vld [vmem:[#allocation659_spill] sm:$0xff] }
 0x778   : >> { %11744 = vst [vmem:[#allocation671_spill] sm:$0xff] %v9372_v46  ;;  %v3078_v61 = vrot.slane %v3077_v53, 1  ;;  %v11753_v46 = vld [vmem:[#allocation545_spill] sm:$0xff]  ;;  %v11810_v45 = vld [vmem:[#allocation635_spill] sm:$0xff] }
 0x779   : >> { %v2798_v58 = vpop.f32.mrf.mxu3  ;;  %v11852_v28 = vld [vmem:[#allocation627_spill] sm:$0xff] (%p9399_p1) }
 0x77a   : >> { %v3079_v25 = vadd.f32 %v3078_v61, %v3077_v53  ;;  %v2799_v43 = vadd.f32 %v2798_v58, %v2590_v23  ;;  %v11754_v53 = vld [vmem:[#allocation544_spill] sm:$0xff] }
 0x77c   : >> { %v3129_v34 = vadd.f32 1e-20, %v3079_v25  ;;  %v2872_v8 = vmul.f32 %v11746_v31, %v2799_v43  ;;  %v11777_v31 = vld [vmem:[#allocation668_spill] sm:$0xff] }
 0x77d   : > { %v11844_v31 = vld [vmem:[#allocation629_spill] sm:$0xff] (%p9399_p1) }
 0x77e   : >> { %5692 = vrcp.f32 %v3129_v34  ;;  %v3080_v29 = vadd.f32 %v2872_v8, %v2871_v36 }
 0x780   : >> { %v3081_v17 = vrot.slane %v3080_v29, 4 }
 0x781   : >> { %v2801_v5 = vpop.f32.mrf.mxu3 }
 0x782   : >> { %v3082_v33 = vadd.f32 %v3081_v17, %v3080_v29  ;;  %v2802_v9 = vadd.f32 %v2801_v5, %v2593_v3  ;;  %v11783_v17 = vld [vmem:[#allocation662_spill] sm:$0xff]  ;;  %v11784_v5 = vld [vmem:[#allocation661_spill] sm:$0xff]  ;;  %v11821_v29 = vld [vmem:[#allocation624_spill] sm:$0xff] }
 0x783   : > { %v11846_v29 = vld [vmem:[#allocation660_spill] sm:$0xff] (%p9399_p1)  ;;  %v11850_v5 = vld [vmem:[#allocation659_spill] sm:$0xff] (%p9399_p1) }
 0x784   : >> { %v5693_v38 = vpop.eup %5692  ;;  %v3083_v12 = vrot.slane %v3082_v33, 2  ;;  %v2873_v50 = vmul.f32 %v11749_v20, %v2802_v9  ;;  %v11811_v20 = vld [vmem:[#allocation634_spill] sm:$0xff]  ;;  %v11848_v17 = vld [vmem:[#allocation628_spill] sm:$0xff] (%p9399_p1) }
 0x785   : >> { %v9376_v51 = vmul.f32 %v5693_v38, %v2869_v41   ;;  %v9378_v39 = vmul.f32 %v5693_v38, %v2870_v52   ;;  %v11802_v38 = vld [vmem:[#allocation643_spill] sm:$0xff]  ;;  %v11865_v20 = vld [vmem:[#allocation640_spill] sm:$0xff] (%p9399_p1) }
 0x786   : >> { %v3084_v26 = vadd.f32 %v3083_v12, %v3082_v33  ;;  %v11780_v33 = vld [vmem:[#allocation665_spill] sm:$0xff]  ;;  %v11853_v38 = vld [vmem:[#allocation643_spill] sm:$0xff] (%p9399_p1) }
 0x787   : >> { %11747 = vst [vmem:[#allocation672_spill] sm:$0xff] %v9376_v51  ;;  %v2183_v51 = vpop.f32.mrf.mxu0  ;;  %v11792_v12 = vld [vmem:[#allocation653_spill] sm:$0xff] }
 0x788   : >> { %11748 = vst [vmem:[#allocation673_spill] sm:$0xff] %v9378_v39  ;;  %v3085_v6 = vrot.slane %v3084_v26, 1  ;;  %v2393_v41 = vadd.f32 %v2392_v16, %v2183_v51  ;;  %v11820_v16 = vld [vmem:[#allocation625_spill] sm:$0xff]  ;;  %v11854_v12 = vld [vmem:[#allocation658_spill] sm:$0xff] (%p9399_p1) }
 0x789   : >> { %v2804_v47 = vpop.f32.mrf.mxu3  ;;  %v11869_v16 = vld [vmem:[#allocation639_spill] sm:$0xff] (%p9399_p1) }
 0x78a   : >> { %v3086_v42 = vadd.f32 %v3085_v6, %v3084_v26  ;;  %v2805_v62 = vadd.f32 %v2804_v47, %v2596_v2  ;;  %v2602_v7 = vadd.f32 %v2601_v10, %v2393_v41  ;;  %v11779_v26 = vld [vmem:[#allocation666_spill] sm:$0xff]  ;;  %v11781_v2 = vld [vmem:[#allocation664_spill] sm:$0xff]  ;;  %v11788_v10 = vld [vmem:[#allocation657_spill] sm:$0xff] }
 0x78b   : >> { %v11794_v6 = vld [vmem:[#allocation651_spill] sm:$0xff]  ;;  %v11796_v47 = vld [vmem:[#allocation649_spill] sm:$0xff]  ;;  %v11817_v41 = vld [vmem:[#allocation628_spill] sm:$0xff] }
 0x78c   : >> { %v3130_v37 = vadd.f32 1e-20, %v3086_v42  ;;  %v2874_v4 = vmul.f32 %v11750_v63, %v2805_v62  ;;  %v11776_v42 = vld [vmem:[#allocation669_spill] sm:$0xff]  ;;  %v11822_v62 = vld [vmem:[#allocation623_spill] sm:$0xff]  ;;  %v11841_v2 = vld [vmem:[#allocation646_spill] sm:$0xff] (%p9399_p1) }
 0x78d   : > { %v11857_v26 = vld [vmem:[#allocation642_spill] sm:$0xff] (%p9399_p1)  ;;  %v11858_v6 = vld [vmem:[#allocation657_spill] sm:$0xff] (%p9399_p1)  ;;  %v11862_v42 = vld [vmem:[#allocation656_spill] sm:$0xff] (%p9399_p1) }
 0x78e   : >> { %5694 = vrcp.f32 %v3130_v37  ;;  %v3087_v60 = vadd.f32 %v2874_v4, %v2873_v50  ;;  %v11773_v51 = vld [vmem:[#allocation672_spill] sm:$0xff]  ;;  %v11808_v37 = vld [vmem:[#allocation637_spill] sm:$0xff]  ;;  %v11872_v41 = vld [vmem:[#allocation622_spill] sm:$0xff] (%p9399_p1) }
 0x78f   : > { %v11860_v47 = vld [vmem:[#allocation625_spill] sm:$0xff] (%p9399_p1)  ;;  %v11863_v62 = vld [vmem:[#allocation672_spill] sm:$0xff] (%p9399_p1)  ;;  %v11868_v51 = vld [vmem:[#allocation623_spill] sm:$0xff] (%p9399_p1) }
 0x790   : >> { %v3088_v39 = vrot.slane %v3087_v60, 4  ;;  %v11864_v37 = vld [vmem:[#allocation624_spill] sm:$0xff] (%p9399_p1)  ;;  %v11873_v10 = vld [vmem:[#allocation638_spill] sm:$0xff] (%p9399_p1) }
 0x791   : >> { %v2807_v1 = vpop.f32.mrf.mxu3 }
 0x792   : >> { %v3089_v59 = vadd.f32 %v3088_v39, %v3087_v60  ;;  %v2808_v13 = vadd.f32 %v2807_v1, %v2599_v27  ;;  %v11772_v39 = vld [vmem:[#allocation673_spill] sm:$0xff]  ;;  %v11791_v27 = vld [vmem:[#allocation654_spill] sm:$0xff]  ;;  %v11806_v1 = vld [vmem:[#allocation639_spill] sm:$0xff] }
 0x793   : >> { %v11812_v60 = vld [vmem:[#allocation633_spill] sm:$0xff]  ;;  %v11840_v1 = vld [vmem:[#allocation630_spill] sm:$0xff] (%p9399_p1) }
 0x794   : >> { %v5695_v52 = vpop.eup %5694  ;;  %v3090_v19 = vrot.slane %v3089_v59, 2  ;;  %v2875_v18 = vmul.f32 %v11753_v46, %v2808_v13  ;;  %v11782_v13 = vld [vmem:[#allocation663_spill] sm:$0xff]  ;;  %v11809_v46 = vld [vmem:[#allocation636_spill] sm:$0xff]  ;;  %v11870_v39 = vld [vmem:[#allocation654_spill] sm:$0xff] (%p9399_p1) }
 0x795   : >> { %v9382_v24 = vmul.f32 %v5695_v52, %v2871_v36   ;;  %v9384_v43 = vmul.f32 %v5695_v52, %v2872_v8   ;;  %v11795_v8 = vld [vmem:[#allocation650_spill] sm:$0xff]  ;;  %v11867_v60 = vld [vmem:[#allocation671_spill] sm:$0xff] (%p9399_p1)  ;;  %v11876_v27 = vld [vmem:[#allocation621_spill] sm:$0xff] (%p9399_p1) }
 0x796   : >> { %v3091_v11 = vadd.f32 %v3090_v19, %v3089_v59  ;;  %v11775_v19 = vld [vmem:[#allocation670_spill] sm:$0xff]  ;;  %v11789_v59 = vld [vmem:[#allocation656_spill] sm:$0xff]  ;;  %v11845_v8 = vld [vmem:[#allocation645_spill] sm:$0xff] (%p9399_p1) }
 0x797   : >> { %11751 = vst [vmem:[#allocation674_spill] sm:$0xff] %v9382_v24  ;;  %v11871_v59 = vld [vmem:[#allocation670_spill] sm:$0xff] (%p9399_p1)  ;;  %v11875_v19 = vld [vmem:[#allocation669_spill] sm:$0xff] (%p9399_p1)  ;;  %v11881_v13 = vld [vmem:[#allocation636_spill] sm:$0xff] (%p9399_p1) }
 0x798   : >> { %11752 = vst [vmem:[#allocation675_spill] sm:$0xff] %v9384_v43  ;;  %v3092_v15 = vrot.slane %v3091_v11, 1  ;;  %v11885_v46 = vld [vmem:[#allocation635_spill] sm:$0xff] (%p9399_p1) }
 0x799   : >> { %v2810_v14 = vpop.f32.mrf.mxu3 }
 0x79a   : >> { %v3093_v40 = vadd.f32 %v3092_v15, %v3091_v11  ;;  %v2811_v21 = vadd.f32 %v2810_v14, %v2602_v7  ;;  %v11774_v14 = vld [vmem:[#allocation671_spill] sm:$0xff]  ;;  %v11823_v15 = vld [vmem:[#allocation622_spill] sm:$0xff] }
 0x79b   : >> { %v11790_v7 = vld [vmem:[#allocation655_spill] sm:$0xff]  ;;  %v11880_v15 = vld [vmem:[#allocation620_spill] sm:$0xff] (%p9399_p1) }
 0x79c   : >> { %v3131_v54 = vadd.f32 1e-20, %v3093_v40  ;;  %v2876_v23 = vmul.f32 %v11754_v53, %v2811_v21  ;;  %v11793_v21 = vld [vmem:[#allocation652_spill] sm:$0xff]  ;;  %v11800_v53 = vld [vmem:[#allocation645_spill] sm:$0xff]  ;;  %v11818_v11 = vld [vmem:[#allocation627_spill] sm:$0xff] }
 0x79d   : >> { %v11805_v40 = vld [vmem:[#allocation640_spill] sm:$0xff]  ;;  %v11882_v14 = vld [vmem:[#allocation651_spill] sm:$0xff] (%p9399_p1)  ;;  %v11887_v53 = vld [vmem:[#allocation666_spill] sm:$0xff] (%p9399_p1) }
 0x79e   : >> { %5696 = vrcp.f32 %v3131_v54  ;;  %v3094_v61 = vadd.f32 %v2876_v23, %v2875_v18  ;;  %v11824_v54 = vld [vmem:[#allocation621_spill] sm:$0xff]  ;;  %v11855_v44 = vld [vmem:[#allocation674_spill] sm:$0xff] (%p9399_p1)  ;;  %v11878_v11 = vld [vmem:[#allocation652_spill] sm:$0xff] (%p9399_p1) }
 0x79f   : >> { %11825 = vst [vmem:[#allocation540_spill] sm:$0xff] %v11824_v54  ;;  %v11833_v54 = vld [vmem:[#allocation616_spill] sm:$0xff]  ;;  %v11851_v33 = vld [vmem:[#allocation675_spill] sm:$0xff] (%p9399_p1) }
 0x7a0   : >> { %v3095_v0 = vrot.slane %v3094_v61, 4  ;;  %v11838_v54 = vld [vmem:[#allocation662_spill] sm:$0xff] (%p9399_p1)  ;;  %v11879_v7 = vld [vmem:[#allocation668_spill] sm:$0xff] (%p9399_p1)  ;;  %v11883_v40 = vld [vmem:[#allocation667_spill] sm:$0xff] (%p9399_p1) }
 0x7a1   : > { %v11884_v21 = vld [vmem:[#allocation619_spill] sm:$0xff] (%p9399_p1) }
 0x7a2   : >> { %v3096_v58 = vadd.f32 %v3095_v0, %v3094_v61  ;;  %v11803_v0 = vld [vmem:[#allocation642_spill] sm:$0xff] }
 0x7a3   : >> { %v11807_v61 = vld [vmem:[#allocation638_spill] sm:$0xff] }
 0x7a4   : >> { %v5697_v25 = vpop.eup %5696  ;;  %v3097_v32 = vrot.slane %v3096_v58, 2  ;;  %v11889_v61 = vld [vmem:[#allocation634_spill] sm:$0xff] (%p9399_p1) }
 0x7a5   : >> { %v9388_v52 = vmul.f32 %v5697_v25, %v2873_v50   ;;  %v9390_v9 = vmul.f32 %v5697_v25, %v2874_v4   ;;  %v11771_v4 = vld [vmem:[#allocation674_spill] sm:$0xff]  ;;  %v11785_v50 = vld [vmem:[#allocation660_spill] sm:$0xff] }
 0x7a6   : >> { %v3098_v43 = vadd.f32 %v3097_v32, %v3096_v58  ;;  %v11804_v58 = vld [vmem:[#allocation641_spill] sm:$0xff]  ;;  %v11813_v25 = vld [vmem:[#allocation632_spill] sm:$0xff]  ;;  %v11819_v32 = vld [vmem:[#allocation626_spill] sm:$0xff] }
 0x7a7   : >> { %11755 = vst [vmem:[#allocation676_spill] sm:$0xff] %v9388_v52  ;;  %v11756_v48 = vmov %v9388_v52  ;;  %v11767_v56 = vmov %v9390_v9  ;;  %v11866_v50 = vld [vmem:[#allocation655_spill] sm:$0xff] (%p9399_p1)  ;;  %v11890_v58 = vld [vmem:[#allocation649_spill] sm:$0xff] (%p9399_p1) }
 0x7a8   : >> { %11757 = vst [vmem:[#allocation677_spill] sm:$0xff] %v9390_v9  ;;  %v3099_v30 = vrot.slane %v3098_v43, 1  ;;  %v11768_v9 = vmov %v11767_v56  ;;  %v11769_v52 = vmov %v11756_v48  ;;  %v11828_v48 = vld [vmem:[#allocation619_spill] sm:$0xff]  ;;  %v11891_v25 = vld [vmem:[#allocation665_spill] sm:$0xff] (%p9399_p1) }
 0x7a9   : >> { %11829 = vst [vmem:[#allocation542_spill] sm:$0xff] %v11828_v48  ;;  %v11831_v48 = vld [vmem:[#allocation617_spill] sm:$0xff]  ;;  %v11835_v56 = vld [vmem:[#allocation663_spill] sm:$0xff] (%p9399_p1) }
 0x7aa   : >> { %v3100_v34 = vadd.f32 %v3099_v30, %v3098_v43  ;;  %v11770_v43 = vld [vmem:[#allocation675_spill] sm:$0xff]  ;;  %11832 = vst [vmem:[#allocation543_spill] sm:$0xff] %v11831_v48  ;;  %3647 = vmatpush.msra.mxu2 (%p9399_p1), %v11835_v56  ;;  %v11859_v9 = vld [vmem:[#allocation673_spill] sm:$0xff] (%p9399_p1)  ;;  %v11968_v56 = vld [vmem:[#allocation94_spill] sm:$0xff] (%p9399_p1) }
 0x7ab   : >> { %v11814_v30 = vld [vmem:[#allocation631_spill] sm:$0xff]  ;;  %v11874_v52 = vld [vmem:[#allocation653_spill] sm:$0xff] (%p9399_p1) }
 0x7ac   : >> { %v3132_v55 = vadd.f32 1e-20, %v3100_v34  ;;  %v11815_v34 = vld [vmem:[#allocation630_spill] sm:$0xff]  ;;  %v11837_v48 = vld [vmem:[#allocation647_spill] sm:$0xff] (%p9399_p1)  ;;  %3648 = vmatpush.msra.mxu2 (%p9399_p1), %v11838_v54  ;;  %v11892_v32 = vld [vmem:[#allocation617_spill] sm:$0xff] (%p9399_p1) }
 0x7ad   : > { %3438 = vmatpush.msra.mxu1 (%p9399_p1), %v11837_v48  ;;  %v11893_v43 = vld [vmem:[#allocation633_spill] sm:$0xff] (%p9399_p1)  ;;  %v11894_v30 = vld [vmem:[#allocation648_spill] sm:$0xff] (%p9399_p1) }
 0x7ae   : >> { %5698 = vrcp.f32 %v3132_v55  ;;  %v11826_v55 = vld [vmem:[#allocation620_spill] sm:$0xff] }
 0x7af   : >> { %11827 = vst [vmem:[#allocation541_spill] sm:$0xff] %v11826_v55  ;;  %v11830_v55 = vld [vmem:[#allocation618_spill] sm:$0xff]  ;;  %3439 = vmatpush.msra.mxu1 (%p9399_p1), %v11841_v2  ;;  %v11843_v4 = vld [vmem:[#allocation677_spill] sm:$0xff] (%p9399_p1)  ;;  %v11847_v45 = vld [vmem:[#allocation676_spill] sm:$0xff] (%p9399_p1) }
 0x7b0   : > { %v11895_v34 = vld [vmem:[#allocation664_spill] sm:$0xff] (%p9399_p1)  ;;  %v11897_v55 = vld [vmem:[#allocation15_spill] sm:$0xff] (%p9399_p1) }
 0x7b1   : > { %3440 = vmatpush.msra.mxu1 (%p9399_p1), %v11845_v8 }
 0x7b3   : > { %3441 = vmatpush.msra.mxu1 (%p9399_p1), %v11849_v22 }
 0x7b4   : >> { %v5699_v36 = vpop.eup %5698  ;;  %947 = sbr.rel (!%p9399_p1) target bundleno = 599 (0x257), region = 92 }
 0x7b5   : >> { %v9392_v3 = vmul.f32 %v5699_v36, %v2875_v18   ;;  %v9394_v24 = vmul.f32 %v5699_v36, %v2876_v23   ;;  %v11778_v18 = vld [vmem:[#allocation667_spill] sm:$0xff]  ;;  %v11797_v23 = vld [vmem:[#allocation648_spill] sm:$0xff]  ;;  %v11816_v36 = vld [vmem:[#allocation629_spill] sm:$0xff]  ;;  %3442 = vmatpush.msra.mxu1 (%p9399_p1), %v11853_v38 }
 0x7b6   : > { %v11886_v18 = vld [vmem:[#allocation650_spill] sm:$0xff] (%p9399_p1) }
 0x7b7   : >> { %11759 = vst [vmem:[#allocation678_spill] sm:$0xff] %v9392_v3  ;;  %v11762_v63 = vmov %v9394_v24  ;;  %v11765_v49 = vmov %v9392_v3  ;;  %3443 = vmatpush.msra.mxu1 (%p9399_p1), %v11857_v26  ;;  %v11888_v23 = vld [vmem:[#allocation618_spill] sm:$0xff] (%p9399_p1) }
 0x7b8   : >> { %11761 = vst [vmem:[#allocation679_spill] sm:$0xff] %v9394_v24  ;;  %v11764_v24 = vmov %v11762_v63  ;;  %v11766_v3 = vmov %v11765_v49  ;;  %3856 = vmatpush.msra.mxu3 (%p9399_p1), %v11762_v63  ;;  %v11836_v49 = vld [vmem:[#allocation631_spill] sm:$0xff] (%p9399_p1)  ;;  %v11896_v36 = vld [vmem:[#allocation14_spill] sm:$0xff] (%p9399_p1)  ;;  %v11898_v63 = vld [vmem:[#allocation616_spill] sm:$0xff] (%p9399_p1) }
 0x7b9   : > { %3229 = vmatpush.msra.mxu0 %v11836_v49  ;;  %v11842_v3 = vld [vmem:[#allocation661_spill] sm:$0xff]  ;;  %3444 = vmatpush.msra.mxu1 %v11861_v35 }
 0x7ba   : > { %3649 = vmatpush.msra.mxu2 %v11842_v3  ;;  %v11877_v24 = vld [vmem:[#allocation637_spill] sm:$0xff]  ;;  %v11970_v3 = vld [vmem:[#allocation35_spill] sm:$0xff] }
 0x7bb   : > { %3230 = vmatpush.msra.mxu0 %v11840_v1  ;;  %3445 = vmatpush.msra.mxu1 %v11865_v20 }
 0x7bc   : > { %3650 = vmatpush.msra.mxu2 %v11846_v29 }
 0x7bd   : > { %3231 = vmatpush.msra.mxu0 %v11844_v31  ;;  %3446 = vmatpush.msra.mxu1 %v11869_v16 }
 0x7be   : > { %v11839_v0 = vld [vmem:[#allocation678_spill] sm:$0xff]  ;;  %3651 = vmatpush.msra.mxu2 %v11850_v5  ;;  %v11977_v5 = vld [vmem:[#allocation105_spill] sm:$0xff] }
 0x7bf   : > { %3857 = vmatpush.msra.mxu3 %v11839_v0  ;;  %3232 = vmatpush.msra.mxu0 %v11848_v17  ;;  %v11899_v0 = vld [vmem:[#allocation632_spill] sm:$0xff] }
 0x7c0   : > { %3652 = vmatpush.msra.mxu2 %v11854_v12  ;;  %3447 = vmatpush.msra.mxu1 %v11873_v10  ;;  %v11985_v12 = vld [vmem:[#allocation113_spill] sm:$0xff] }
 0x7c1   : > { %3858 = vmatpush.msra.mxu3 %v11843_v4  ;;  %3233 = vmatpush.msra.mxu0 %v11852_v28  ;;  %v11900_v4 = vld [vmem:[#allocation12_spill] sm:$0xff] }
 0x7c2   : > { %3653 = vmatpush.msra.mxu2 %v11858_v6  ;;  %3448 = vmatpush.msra.mxu1 %v11877_v24  ;;  %v11993_v6 = vld [vmem:[#allocation123_spill] sm:$0xff] }
 0x7c3   : > { %3859 = vmatpush.msra.mxu3 %v11847_v45  ;;  %3234 = vmatpush.msra.mxu0 %v11856_v57  ;;  %v11901_v45 = vld [vmem:[#allocation13_spill] sm:$0xff] }
 0x7c4   : > { %3654 = vmatpush.msra.mxu2 %v11862_v42  ;;  %3449 = vmatpush.msra.mxu1 %v11881_v13  ;;  %v12005_v42 = vld [vmem:[#allocation43_spill] sm:$0xff] }
 0x7c5   : > { %3860 = vmatpush.msra.mxu3 %v11851_v33  ;;  %3235 = vmatpush.msra.mxu0 %v11860_v47  ;;  %v11902_v33 = vld [vmem:[#allocation18_spill] sm:$0xff] }
 0x7c6   : > { %3655 = vmatpush.msra.mxu2 %v11866_v50  ;;  %3450 = vmatpush.msra.mxu1 %v11885_v46 }
 0x7c7   : > { %3861 = vmatpush.msra.mxu3 %v11855_v44  ;;  %3236 = vmatpush.msra.mxu0 %v11864_v37  ;;  %v11903_v44 = vld [vmem:[#allocation19_spill] sm:$0xff] }
 0x7c8   : > { %3656 = vmatpush.msra.mxu2 %v11870_v39  ;;  %3451 = vmatpush.msra.mxu1 %v11889_v61 }
 0x7c9   : > { %3862 = vmatpush.msra.mxu3 %v11859_v9  ;;  %3237 = vmatpush.msra.mxu0 %v11868_v51  ;;  %v11904_v9 = vld [vmem:[#allocation16_spill] sm:$0xff] }
 0x7ca   : > { %3657 = vmatpush.msra.mxu2 %v11874_v52  ;;  %3452 = vmatpush.msra.mxu1 %v11893_v43 }
 0x7cb   : > { %3863 = vmatpush.msra.mxu3 %v11863_v62  ;;  %3238 = vmatpush.msra.mxu0 %v11872_v41  ;;  %v11905_v62 = vld [vmem:[#allocation17_spill] sm:$0xff] }
 0x7cc   : > { %3658 = vmatpush.msra.mxu2 %v11878_v11  ;;  %3453 = vmatpush.msra.mxu1 %v11899_v0 }
 0x7cd   : > { %3864 = vmatpush.msra.mxu3 %v11867_v60  ;;  %3239 = vmatpush.msra.mxu0 %v11876_v27  ;;  %v11906_v60 = vld [vmem:[#allocation22_spill] sm:$0xff] }
 0x7ce   : > { %3659 = vmatpush.msra.mxu2 %v11882_v14  ;;  %3454 = vmatmul.f32.vlgmr.msra.gmra.mxu1 %v11901_v45  ;;  %v11912_v45 = vld [vmem:[#allocation24_spill] sm:$0xff] }
 0x7cf   : > { %3865 = vmatpush.msra.mxu3 %v11871_v59  ;;  %3240 = vmatpush.msra.mxu0 %v11880_v15  ;;  %v11909_v59 = vld [vmem:[#allocation21_spill] sm:$0xff] }
 0x7d0   : > { %3660 = vmatpush.msra.mxu2 %v11886_v18 }
 0x7d1   : > { %3866 = vmatpush.msra.mxu3 %v11875_v19  ;;  %3241 = vmatpush.msra.mxu0 %v11884_v21  ;;  %v11910_v19 = vld [vmem:[#allocation26_spill] sm:$0xff] }
 0x7d2   : > { %3661 = vmatpush.msra.mxu2 %v11890_v58 }
 0x7d3   : > { %3867 = vmatpush.msra.mxu3 %v11879_v7  ;;  %3242 = vmatpush.msra.mxu0 %v11888_v23  ;;  %v11962_v7 = vld [vmem:[#allocation92_spill] sm:$0xff] }
 0x7d4   : > { %3662 = vmatpush.msra.mxu2 %v11894_v30 }
 0x7d5   : > { %3868 = vmatpush.msra.mxu3 %v11883_v40  ;;  %3243 = vmatpush.msra.mxu0 %v11892_v32 }
 0x7d6   : > { %3663 = vmatmul.f32.vlgmr.msra.gmra.mxu2 %v11896_v36  ;;  %3457 = vmatmul.f32.gmra.mxu1 %v11905_v62  ;;  %v11907_v36 = vld [vmem:[#allocation23_spill] sm:$0xff]  ;;  %v11916_v62 = vld [vmem:[#allocation28_spill] sm:$0xff] }
 0x7d7   : > { %3869 = vmatpush.msra.mxu3 %v11887_v53  ;;  %3244 = vmatpush.msra.mxu0 %v11898_v63 }
 0x7d8   : > { %3245 = vmatmul.f32.vlgmr.msra.gmra.mxu0 %v11900_v4  ;;  %v11911_v4 = vld [vmem:[#allocation27_spill] sm:$0xff] }
 0x7d9   : > { %3870 = vmatpush.msra.mxu3 %v11891_v25 }
 0x7db   : > { %3871 = vmatpush.msra.mxu3 %v11895_v34  ;;  %v11967_v34 = vld [vmem:[#allocation97_spill] sm:$0xff] }
 0x7dc   : > { %3872 = vmatmul.f32.vlgmr.msra.gmra.mxu3 %v11897_v55  ;;  %v11908_v55 = vld [vmem:[#allocation20_spill] sm:$0xff] }
 0x7de   : > { %3666 = vmatmul.f32.gmra.mxu2 %v11902_v33  ;;  %3460 = vmatmul.f32.gmra.mxu1 %v11909_v59  ;;  %v11913_v33 = vld [vmem:[#allocation25_spill] sm:$0xff]  ;;  %v11920_v59 = vld [vmem:[#allocation32_spill] sm:$0xff] }
 0x7e0   : > { %3248 = vmatmul.f32.gmra.mxu0 %v11904_v9  ;;  %v11915_v9 = vld [vmem:[#allocation31_spill] sm:$0xff] }
 0x7e4   : > { %3875 = vmatmul.f32.gmra.mxu3 %v11903_v44  ;;  %v11914_v44 = vld [vmem:[#allocation30_spill] sm:$0xff] }
 0x7e6   : > { %3669 = vmatmul.f32.gmra.mxu2 %v11906_v60  ;;  %3463 = vmatmul.f32.gmra.mxu1 %v11913_v33  ;;  %v11917_v60 = vld [vmem:[#allocation29_spill] sm:$0xff]  ;;  %v11924_v33 = vld [vmem:[#allocation38_spill] sm:$0xff] }
 0x7e8   : > { %3251 = vmatmul.f32.gmra.mxu0 %v11908_v55  ;;  %v11919_v55 = vld [vmem:[#allocation37_spill] sm:$0xff] }
 0x7ec   : > { %3878 = vmatmul.f32.gmra.mxu3 %v11907_v36  ;;  %v11918_v36 = vld [vmem:[#allocation34_spill] sm:$0xff] }
 0x7ee   : > { %3672 = vmatmul.f32.gmra.mxu2 %v11910_v19  ;;  %3466 = vmatmul.f32.gmra.mxu1 %v11917_v60  ;;  %v11921_v19 = vld [vmem:[#allocation33_spill] sm:$0xff]  ;;  %v11928_v60 = vld [vmem:[#allocation44_spill] sm:$0xff] }
 0x7f0   : > { %3254 = vmatmul.f32.gmra.mxu0 %v11912_v45  ;;  %v11923_v45 = vld [vmem:[#allocation41_spill] sm:$0xff] }
 0x7f4   : > { %3881 = vmatmul.f32.gmra.mxu3 %v11911_v4  ;;  %v11922_v4 = vld [vmem:[#allocation40_spill] sm:$0xff] }
 0x7f6   : > { %3675 = vmatmul.f32.gmra.mxu2 %v11914_v44  ;;  %3469 = vmatmul.f32.gmra.mxu1 %v11921_v19  ;;  %v11925_v44 = vld [vmem:[#allocation39_spill] sm:$0xff]  ;;  %v11932_v19 = vld [vmem:[#allocation48_spill] sm:$0xff] }
 0x7f8   : > { %3257 = vmatmul.f32.gmra.mxu0 %v11916_v62  ;;  %v11927_v62 = vld [vmem:[#allocation47_spill] sm:$0xff] }
 0x7fc   : > { %3884 = vmatmul.f32.gmra.mxu3 %v11915_v9  ;;  %v11926_v9 = vld [vmem:[#allocation46_spill] sm:$0xff] }
 0x7fe   : > { %3678 = vmatmul.f32.gmra.mxu2 %v11918_v36  ;;  %3472 = vmatmul.f32.gmra.mxu1 %v11925_v44  ;;  %v11929_v36 = vld [vmem:[#allocation45_spill] sm:$0xff]  ;;  %v11936_v44 = vld [vmem:[#allocation54_spill] sm:$0xff] }
 0x800   : > { %3260 = vmatmul.f32.gmra.mxu0 %v11920_v59  ;;  %v11931_v59 = vld [vmem:[#allocation53_spill] sm:$0xff] }
 0x804   : > { %3887 = vmatmul.f32.gmra.mxu3 %v11919_v55  ;;  %v11930_v55 = vld [vmem:[#allocation52_spill] sm:$0xff] }
 0x806   : > { %3681 = vmatmul.f32.gmra.mxu2 %v11922_v4  ;;  %3475 = vmatmul.f32.gmra.mxu1 %v11929_v36  ;;  %v11933_v4 = vld [vmem:[#allocation51_spill] sm:$0xff]  ;;  %v11940_v36 = vld [vmem:[#allocation58_spill] sm:$0xff] }
 0x808   : > { %3263 = vmatmul.f32.gmra.mxu0 %v11924_v33  ;;  %v11935_v33 = vld [vmem:[#allocation57_spill] sm:$0xff] }
 0x80c   : > { %3890 = vmatmul.f32.gmra.mxu3 %v11923_v45  ;;  %v11934_v45 = vld [vmem:[#allocation56_spill] sm:$0xff] }
 0x80e   : > { %3684 = vmatmul.f32.gmra.mxu2 %v11926_v9  ;;  %3478 = vmatmul.f32.gmra.mxu1 %v11933_v4  ;;  %v11937_v9 = vld [vmem:[#allocation55_spill] sm:$0xff]  ;;  %v11944_v4 = vld [vmem:[#allocation64_spill] sm:$0xff] }
 0x810   : > { %3266 = vmatmul.f32.gmra.mxu0 %v11928_v60  ;;  %v11939_v60 = vld [vmem:[#allocation63_spill] sm:$0xff] }
 0x814   : > { %3893 = vmatmul.f32.gmra.mxu3 %v11927_v62  ;;  %v11938_v62 = vld [vmem:[#allocation62_spill] sm:$0xff] }
 0x816   : > { %3687 = vmatmul.f32.gmra.mxu2 %v11930_v55  ;;  %3481 = vmatmul.f32.gmra.mxu1 %v11937_v9  ;;  %v11941_v55 = vld [vmem:[#allocation61_spill] sm:$0xff]  ;;  %v11948_v9 = vld [vmem:[#allocation70_spill] sm:$0xff] }
 0x818   : > { %3269 = vmatmul.f32.gmra.mxu0 %v11932_v19  ;;  %v11943_v19 = vld [vmem:[#allocation69_spill] sm:$0xff] }
 0x81c   : > { %3896 = vmatmul.f32.gmra.mxu3 %v11931_v59  ;;  %v11942_v59 = vld [vmem:[#allocation66_spill] sm:$0xff] }
 0x81e   : > { %3690 = vmatmul.f32.gmra.mxu2 %v11934_v45  ;;  %3484 = vmatmul.f32.gmra.mxu1 %v11941_v55  ;;  %v11945_v45 = vld [vmem:[#allocation65_spill] sm:$0xff]  ;;  %v11952_v55 = vld [vmem:[#allocation74_spill] sm:$0xff] }
 0x820   : > { %3272 = vmatmul.f32.gmra.mxu0 %v11936_v44  ;;  %v11947_v44 = vld [vmem:[#allocation73_spill] sm:$0xff] }
 0x824   : > { %3899 = vmatmul.f32.gmra.mxu3 %v11935_v33  ;;  %v11946_v33 = vld [vmem:[#allocation72_spill] sm:$0xff] }
 0x826   : > { %3693 = vmatmul.f32.gmra.mxu2 %v11938_v62  ;;  %3487 = vmatmul.f32.gmra.mxu1 %v11945_v45  ;;  %v11949_v62 = vld [vmem:[#allocation71_spill] sm:$0xff]  ;;  %v11956_v45 = vld [vmem:[#allocation80_spill] sm:$0xff] }
 0x828   : > { %3275 = vmatmul.f32.gmra.mxu0 %v11940_v36  ;;  %v11951_v36 = vld [vmem:[#allocation79_spill] sm:$0xff] }
 0x82c   : > { %3902 = vmatmul.f32.gmra.mxu3 %v11939_v60  ;;  %v11950_v60 = vld [vmem:[#allocation78_spill] sm:$0xff] }
 0x82e   : > { %3696 = vmatmul.f32.gmra.mxu2 %v11942_v59  ;;  %3490 = vmatmul.f32.gmra.mxu1 %v11949_v62  ;;  %v11953_v59 = vld [vmem:[#allocation77_spill] sm:$0xff]  ;;  %v11960_v62 = vld [vmem:[#allocation84_spill] sm:$0xff] }
 0x830   : > { %3278 = vmatmul.f32.gmra.mxu0 %v11944_v4  ;;  %v11955_v4 = vld [vmem:[#allocation83_spill] sm:$0xff] }
 0x834   : > { %3905 = vmatmul.f32.gmra.mxu3 %v11943_v19  ;;  %v11954_v19 = vld [vmem:[#allocation82_spill] sm:$0xff] }
 0x836   : > { %3699 = vmatmul.f32.gmra.mxu2 %v11946_v33  ;;  %3493 = vmatmul.f32.gmra.mxu1 %v11953_v59  ;;  %v11957_v33 = vld [vmem:[#allocation81_spill] sm:$0xff] }
 0x838   : > { %3281 = vmatmul.f32.gmra.mxu0 %v11948_v9  ;;  %v11959_v9 = vld [vmem:[#allocation89_spill] sm:$0xff] }
 0x83c   : > { %3908 = vmatmul.f32.gmra.mxu3 %v11947_v44  ;;  %v11958_v44 = vld [vmem:[#allocation88_spill] sm:$0xff] }
 0x83e   : > { %3702 = vmatmul.f32.gmra.mxu2 %v11950_v60  ;;  %3496 = vmatmul.f32.gmra.mxu1 %v11957_v33  ;;  %v11961_v60 = vld [vmem:[#allocation85_spill] sm:$0xff] }
 0x840   : > { %3284 = vmatmul.f32.gmra.mxu0 %v11952_v55 }
 0x844   : > { %3911 = vmatmul.f32.gmra.mxu3 %v11951_v36 }
 0x846   : > { %3705 = vmatmul.f32.gmra.mxu2 %v11954_v19  ;;  %3499 = vmatmul.f32.gmra.mxu1 %v11961_v60  ;;  %v11963_v19 = vld [vmem:[#allocation93_spill] sm:$0xff] }
 0x848   : > { %3287 = vmatmul.f32.gmra.mxu0 %v11956_v45  ;;  %v11965_v45 = vld [vmem:[#allocation91_spill] sm:$0xff] }
 0x84b   : > { %v3455_v55 = vpop.f32.mrf.mxu1 }
 0x84c   : > { %3914 = vmatmul.f32.gmra.mxu3 %v11955_v4  ;;  %v11964_v4 = vld [vmem:[#allocation90_spill] sm:$0xff] }
 0x84e   : > { %3708 = vmatmul.f32.gmra.mxu2 %v11958_v44  ;;  %3502 = vmatmul.f32.gmra.mxu1 %v11965_v45 }
 0x850   : > { %3290 = vmatmul.f32.gmra.mxu0 %v11960_v62  ;;  %v11966_v62 = vld [vmem:[#allocation96_spill] sm:$0xff] }
 0x853   : > { %v3458_v25 = vpop.f32.mrf.mxu1 }
 0x854   : > { %3917 = vmatmul.f32.gmra.mxu3 %v11959_v9 }
 0x855   : > { %v3246_v36 = vpop.f32.mrf.mxu0 }
 0x856   : > { %3711 = vmatmul.f32.gmra.mxu2 %v11962_v7  ;;  %v3456_v59 = vadd.f32 %v3455_v55, %v3246_v36  ;;  %v11969_v7 = vld [vmem:[#allocation95_spill] sm:$0xff] }
 0x857   : > { %3505 = vmatmul.f32.gmra.mxu1 %v11969_v7 }
 0x858   : > { %3293 = vmatmul.f32.gmra.mxu0 %v11964_v4 }
 0x859   : > { %v3664_v33 = vpop.f32.mrf.mxu2 }
 0x85a   : > { %v3665_v44 = vadd.f32 %v3664_v33, %v3456_v59 }
 0x85b   : > { %v3461_v54 = vpop.f32.mrf.mxu1 }
 0x85c   : > { %3920 = vmatmul.f32.gmra.mxu3 %v11963_v19 }
 0x85d   : > { %v3249_v9 = vpop.f32.mrf.mxu0 }
 0x85e   : > { %3714 = vmatmul.f32.gmra.mxu2 %v11966_v62  ;;  %v3459_v60 = vadd.f32 %v3458_v25, %v3249_v9  ;;  %v11973_v25 = vld [vmem:[#allocation101_spill] sm:$0xff]  ;;  %v11975_v9 = vld [vmem:[#allocation99_spill] sm:$0xff] }
 0x85f   : > { %v3873_v40 = vpop.f32.mrf.mxu3  ;;  %3508 = vmatmul.f32.gmra.mxu1 %v11975_v9 }
 0x860   : > { %v3874_v53 = vadd.f32 %v3873_v40, %v3665_v44  ;;  %3296 = vmatmul.f32.gmra.mxu0 %v11968_v56  ;;  %v11971_v40 = vld [vmem:[#allocation36_spill] sm:$0xff]  ;;  %v11974_v56 = vld [vmem:[#allocation98_spill] sm:$0xff] }
 0x861   : > { %v3667_v36 = vpop.f32.mrf.mxu2  ;;  %v11972_v44 = vld [vmem:[#allocation100_spill] sm:$0xff] }
 0x862   : > { %v3668_v19 = vadd.f32 %v3667_v36, %v3459_v60  ;;  %v4065_v59 = vmul.f32 %v3874_v53, %v11970_v3  ;;  %v11976_v53 = vld [vmem:[#allocation104_spill] sm:$0xff] }
 0x863   : > { %v3464_v29 = vpop.f32.mrf.mxu1 }
 0x864   : > { %3923 = vmatmul.f32.gmra.mxu3 %v11967_v34 }
 0x865   : > { %v3252_v45 = vpop.f32.mrf.mxu0 }
 0x866   : > { %3717 = vmatmul.f32.gmra.mxu2 %v11972_v44  ;;  %v3462_v62 = vadd.f32 %v3461_v54, %v3252_v45  ;;  %v11978_v54 = vld [vmem:[#allocation102_spill] sm:$0xff]  ;;  %v11979_v45 = vld [vmem:[#allocation103_spill] sm:$0xff] }
 0x867   : > { %v3876_v55 = vpop.f32.mrf.mxu3  ;;  %3511 = vmatmul.f32.gmra.mxu1 %v11979_v45 }
 0x868   : > { %v3877_v4 = vadd.f32 %v3876_v55, %v3668_v19  ;;  %3299 = vmatmul.f32.gmra.mxu0 %v11974_v56 }
 0x869   : > { %v3670_v7 = vpop.f32.mrf.mxu2 }
 0x86a   : > { %v4066_v33 = vmul.f32 %v3877_v4, %v11971_v40  ;;  %v3671_v36 = vadd.f32 %v3670_v7, %v3462_v62 }
 0x86b   : > { %v3467_v9 = vpop.f32.mrf.mxu1 }
 0x86c   : > { %3926 = vmatmul.f32.gmra.mxu3 %v11973_v25  ;;  %v9741_v34 = vadd.f32 %v4066_v33, %v4065_v59 }
 0x86d   : > { %v3255_v19 = vpop.f32.mrf.mxu0 }
 0x86e   : > { %3720 = vmatmul.f32.gmra.mxu2 %v11976_v53  ;;  %v3465_v4 = vadd.f32 %v3464_v29, %v3255_v19  ;;  %v11981_v29 = vld [vmem:[#allocation109_spill] sm:$0xff]  ;;  %v11982_v19 = vld [vmem:[#allocation106_spill] sm:$0xff]  ;;  %v11983_v53 = vld [vmem:[#allocation107_spill] sm:$0xff] }
 0x86f   : > { %v3879_v60 = vpop.f32.mrf.mxu3  ;;  %3514 = vmatmul.f32.gmra.mxu1 %v11983_v53 }
 0x870   : > { %v3880_v55 = vadd.f32 %v3879_v60, %v3671_v36  ;;  %3302 = vmatmul.f32.gmra.mxu0 %v11978_v54  ;;  %v11980_v60 = vld [vmem:[#allocation108_spill] sm:$0xff] }
 0x871   : > { %v3673_v59 = vpop.f32.mrf.mxu2 }
 0x872   : > { %v3674_v44 = vadd.f32 %v3673_v59, %v3465_v4  ;;  %v4067_v62 = vmul.f32 %v3880_v55, %v11970_v3  ;;  %v11984_v55 = vld [vmem:[#allocation112_spill] sm:$0xff] }
 0x874   : > { %3929 = vmatmul.f32.gmra.mxu3 %v11977_v5 }
 0x875   : > { %v3258_v56 = vpop.f32.mrf.mxu0 }
 0x876   : > { %3723 = vmatmul.f32.gmra.mxu2 %v11980_v60  ;;  %v3468_v36 = vadd.f32 %v3467_v9, %v3258_v56  ;;  %v11986_v56 = vld [vmem:[#allocation110_spill] sm:$0xff]  ;;  %v11987_v9 = vld [vmem:[#allocation111_spill] sm:$0xff] }
 0x877   : > { %v3882_v33 = vpop.f32.mrf.mxu3  ;;  %3517 = vmatmul.f32.gmra.mxu1 %v11987_v9 }
 0x878   : > { %v3883_v25 = vadd.f32 %v3882_v33, %v3674_v44  ;;  %3305 = vmatmul.f32.gmra.mxu0 %v11982_v19  ;;  %v3470_v44 = vpop.f32.mrf.mxu1 }
 0x879   : > { %v3676_v54 = vpop.f32.mrf.mxu2 }
 0x87a   : > { %v4068_v7 = vmul.f32 %v3883_v25, %v11971_v40  ;;  %v3677_v45 = vadd.f32 %v3676_v54, %v3468_v36 }
 0x87c   : > { %3932 = vmatmul.f32.gmra.mxu3 %v11981_v29  ;;  %v9753_v5 = vadd.f32 %v4068_v7, %v4067_v62 }
 0x87d   : > { %v3261_v33 = vpop.f32.mrf.mxu0 }
 0x87e   : > { %3726 = vmatmul.f32.gmra.mxu2 %v11984_v55  ;;  %v3471_v25 = vadd.f32 %v3470_v44, %v3261_v33  ;;  %v11989_v33 = vld [vmem:[#allocation119_spill] sm:$0xff]  ;;  %v11990_v44 = vld [vmem:[#allocation116_spill] sm:$0xff]  ;;  %v11991_v55 = vld [vmem:[#allocation117_spill] sm:$0xff] }
 0x87f   : > { %v3885_v4 = vpop.f32.mrf.mxu3  ;;  %3520 = vmatmul.f32.gmra.mxu1 %v11991_v55 }
 0x880   : > { %v3886_v59 = vadd.f32 %v3885_v4, %v3677_v45  ;;  %3308 = vmatmul.f32.gmra.mxu0 %v11986_v56  ;;  %v3473_v53 = vpop.f32.mrf.mxu1  ;;  %v11988_v4 = vld [vmem:[#allocation118_spill] sm:$0xff] }
 0x881   : > { %v3679_v62 = vpop.f32.mrf.mxu2 }
 0x882   : > { %v3680_v60 = vadd.f32 %v3679_v62, %v3471_v25  ;;  %v4069_v36 = vmul.f32 %v3886_v59, %v11970_v3  ;;  %v11992_v59 = vld [vmem:[#allocation122_spill] sm:$0xff] }
 0x884   : > { %3935 = vmatmul.f32.gmra.mxu3 %v11985_v12 }
 0x885   : > { %v3264_v19 = vpop.f32.mrf.mxu0 }
 0x886   : > { %3729 = vmatmul.f32.gmra.mxu2 %v11988_v4  ;;  %v3474_v45 = vadd.f32 %v3473_v53, %v3264_v19  ;;  %v11994_v19 = vld [vmem:[#allocation120_spill] sm:$0xff]  ;;  %v11995_v53 = vld [vmem:[#allocation121_spill] sm:$0xff] }
 0x887   : > { %v3888_v7 = vpop.f32.mrf.mxu3  ;;  %3523 = vmatmul.f32.gmra.mxu1 %v11995_v53 }
 0x888   : > { %v3889_v29 = vadd.f32 %v3888_v7, %v3680_v60  ;;  %3311 = vmatmul.f32.gmra.mxu0 %v11990_v44  ;;  %v3476_v60 = vpop.f32.mrf.mxu1 }
 0x889   : > { %v3682_v56 = vpop.f32.mrf.mxu2 }
 0x88a   : > { %v4070_v54 = vmul.f32 %v3889_v29, %v11971_v40  ;;  %v3683_v9 = vadd.f32 %v3682_v56, %v3474_v45 }
 0x88c   : > { %3938 = vmatmul.f32.gmra.mxu3 %v11989_v33  ;;  %v9765_v12 = vadd.f32 %v4070_v54, %v4069_v36 }
 0x88d   : > { %v3267_v7 = vpop.f32.mrf.mxu0 }
 0x88e   : > { %3732 = vmatmul.f32.gmra.mxu2 %v11992_v59  ;;  %v3477_v29 = vadd.f32 %v3476_v60, %v3267_v7  ;;  %v11997_v7 = vld [vmem:[#allocation127_spill] sm:$0xff]  ;;  %v11998_v60 = vld [vmem:[#allocation124_spill] sm:$0xff]  ;;  %v11999_v59 = vld [vmem:[#allocation125_spill] sm:$0xff] }
 0x88f   : > { %v3891_v25 = vpop.f32.mrf.mxu3  ;;  %3526 = vmatmul.f32.gmra.mxu1 %v11999_v59 }
 0x890   : > { %v3892_v62 = vadd.f32 %v3891_v25, %v3683_v9  ;;  %3314 = vmatmul.f32.gmra.mxu0 %v11994_v19  ;;  %v3479_v55 = vpop.f32.mrf.mxu1  ;;  %v11996_v25 = vld [vmem:[#allocation126_spill] sm:$0xff] }
 0x891   : > { %v3685_v36 = vpop.f32.mrf.mxu2 }
 0x892   : > { %v3686_v4 = vadd.f32 %v3685_v36, %v3477_v29  ;;  %v4071_v45 = vmul.f32 %v3892_v62, %v11970_v3 }
 0x894   : > { %3941 = vmatmul.f32.gmra.mxu3 %v11993_v6 }
 0x895   : > { %v3270_v44 = vpop.f32.mrf.mxu0 }
 0x896   : > { %3735 = vmatmul.f32.gmra.mxu2 %v11996_v25  ;;  %v3480_v9 = vadd.f32 %v3479_v55, %v3270_v44  ;;  %v12002_v44 = vld [vmem:[#allocation128_spill] sm:$0xff]  ;;  %v12003_v55 = vld [vmem:[#allocation129_spill] sm:$0xff] }
 0x897   : > { %v3894_v54 = vpop.f32.mrf.mxu3  ;;  %3529 = vmatmul.f32.gmra.mxu1 %v12003_v55  ;;  %v12008_v55 = vld [vmem:[#allocation132_spill] sm:$0xff] }
 0x898   : > { %v3895_v33 = vadd.f32 %v3894_v54, %v3686_v4  ;;  %3317 = vmatmul.f32.gmra.mxu0 %v11998_v60  ;;  %v4130_v54 = vrot.slane %v9741_v34, 4  ;;  %v3482_v62 = vpop.f32.mrf.mxu1 }
 0x899   : > { %v3688_v19 = vpop.f32.mrf.mxu2 }
 0x89a   : > { %v4072_v56 = vmul.f32 %v3895_v33, %v11971_v40  ;;  %v3689_v53 = vadd.f32 %v3688_v19, %v3480_v9  ;;  %v12000_v40 = vld [vmem:[#allocation130_spill] sm:$0xff]  ;;  %v12001_v33 = vld [vmem:[#allocation131_spill] sm:$0xff] }
 0x89c   : > { %3944 = vmatmul.f32.gmra.mxu3 %v11997_v7  ;;  %v9777_v6 = vadd.f32 %v4072_v56, %v4071_v45  ;;  %v4131_v45 = vadd.f32 %v4130_v54, %v9741_v34  ;;  %v12009_v34 = vld [vmem:[#allocation133_spill] sm:$0xff] }
 0x89d   : > { %v3273_v3 = vpop.f32.mrf.mxu0 }
 0x89e   : > { %3738 = vmatmul.f32.gmra.mxu2 %v12000_v40  ;;  %v3483_v4 = vadd.f32 %v3482_v62, %v3273_v3  ;;  %v4132_v60 = vrot.slane %v4131_v45, 2  ;;  %v12006_v3 = vld [vmem:[#allocation134_spill] sm:$0xff] }
 0x89f   : > { %v3897_v29 = vpop.f32.mrf.mxu3  ;;  %3532 = vmatmul.f32.gmra.mxu1 %v12009_v34 }
 0x8a0   : > { %v3898_v36 = vadd.f32 %v3897_v29, %v3689_v53  ;;  %3320 = vmatmul.f32.gmra.mxu0 %v12002_v44  ;;  %v3485_v19 = vpop.f32.mrf.mxu1  ;;  %v12004_v29 = vld [vmem:[#allocation42_spill] sm:$0xff]  ;;  %v4133_v54 = vadd.f32 %v4132_v60, %v4131_v45  ;;  %v12013_v45 = vld [vmem:[#allocation137_spill] sm:$0xff] }
 0x8a1   : > { %v3691_v56 = vpop.f32.mrf.mxu2 }
 0x8a2   : > { %v3692_v7 = vadd.f32 %v3691_v56, %v3483_v4  ;;  %v4073_v53 = vmul.f32 %v3898_v36, %v12004_v29  ;;  %v4134_v36 = vrot.slane %v4133_v54, 1 }
 0x8a4   : > { %3947 = vmatmul.f32.gmra.mxu3 %v12001_v33  ;;  %v12007_v33 = vld [vmem:[#allocation135_spill] sm:$0xff]  ;;  %v4135_v60 = vadd.f32 %v4134_v36, %v4133_v54  ;;  %v12014_v36 = vld [vmem:[#allocation142_spill] sm:$0xff] }
 0x8a5   : > { %v3276_v59 = vpop.f32.mrf.mxu0 }
 0x8a6   : > { %3741 = vmatmul.f32.gmra.mxu2 %v12006_v3  ;;  %v3486_v62 = vadd.f32 %v3485_v19, %v3276_v59  ;;  %v12010_v19 = vld [vmem:[#allocation138_spill] sm:$0xff]  ;;  %v4353_v11 = vmul.f32 %v4135_v60, %v11898_v63 }
 0x8a7   : > { %v3900_v25 = vpop.f32.mrf.mxu3  ;;  %3535 = vmatmul.f32.gmra.mxu1 %v12013_v45 }
 0x8a8   : > { %v3901_v9 = vadd.f32 %v3900_v25, %v3692_v7  ;;  %3323 = vmatmul.f32.gmra.mxu0 %v12008_v55  ;;  %v3488_v3 = vpop.f32.mrf.mxu1  ;;  %v12012_v55 = vld [vmem:[#allocation136_spill] sm:$0xff] }
 0x8a9   : > { %v3694_v4 = vpop.f32.mrf.mxu2 }
 0x8aa   : > { %v4074_v40 = vmul.f32 %v3901_v9, %v12005_v42  ;;  %v3695_v7 = vadd.f32 %v3694_v4, %v3486_v62  ;;  %v4137_v9 = vrot.slane %v9753_v5, 4 }
 0x8ac   : > { %3950 = vmatmul.f32.gmra.mxu3 %v12007_v33  ;;  %v4157_v44 = vadd.f32 %v4074_v40, %v4073_v53  ;;  %v12011_v40 = vld [vmem:[#allocation139_spill] sm:$0xff]  ;;  %v4138_v62 = vadd.f32 %v4137_v9, %v9753_v5 }
 0x8ad   : > { %v3279_v52 = vpop.f32.mrf.mxu0 }
 0x8ae   : > { %v4158_v25 = vrot.slane %v4157_v44, 4  ;;  %3744 = vmatmul.f32.gmra.mxu2 %v12010_v19  ;;  %v3489_v53 = vadd.f32 %v3488_v3, %v3279_v52  ;;  %v4354_v52 = vmul.f32 %v4135_v60, %v11892_v32  ;;  %v4139_v3 = vrot.slane %v4138_v62, 2 }
 0x8af   : > { %v3903_v56 = vpop.f32.mrf.mxu3 }
 0x8b0   : > { %v4159_v50 = vadd.f32 %v4158_v25, %v4157_v44  ;;  %v3904_v39 = vadd.f32 %v3903_v56, %v3695_v7  ;;  %3326 = vmatmul.f32.gmra.mxu0 %v12012_v55  ;;  %v3491_v19 = vpop.f32.mrf.mxu1  ;;  %v12016_v55 = vld [vmem:[#allocation140_spill] sm:$0xff]  ;;  %v4140_v45 = vadd.f32 %v4139_v3, %v4138_v62  ;;  %v12021_v62 = vld [vmem:[#allocation145_spill] sm:$0xff] }
 0x8b1   : > { %v3697_v44 = vpop.f32.mrf.mxu2 }
 0x8b2   : > { %v4160_v59 = vrot.slane %v4159_v50, 2  ;;  %v3698_v56 = vadd.f32 %v3697_v44, %v3489_v53  ;;  %v12015_v53 = vld [vmem:[#allocation143_spill] sm:$0xff] }
 0x8b4   : > { %3953 = vmatmul.f32.gmra.mxu3 %v12011_v40  ;;  %v4161_v33 = vadd.f32 %v4160_v59, %v4159_v50  ;;  %v4075_v50 = vmul.f32 %v3904_v39, %v12004_v29  ;;  %v12017_v39 = vld [vmem:[#allocation141_spill] sm:$0xff] }
 0x8b5   : > { %v3282_v59 = vpop.f32.mrf.mxu0  ;;  %3538 = vmatmul.f32.gmra.mxu1 %v12017_v39 }
 0x8b6   : > { %v4162_v4 = vrot.slane %v4161_v33, 1  ;;  %3747 = vmatmul.f32.gmra.mxu2 %v12014_v36  ;;  %v3492_v9 = vadd.f32 %v3491_v19, %v3282_v59  ;;  %v12019_v19 = vld [vmem:[#allocation147_spill] sm:$0xff] }
 0x8b7   : > { %v3906_v34 = vpop.f32.mrf.mxu3 }
 0x8b8   : > { %v4163_v25 = vadd.f32 %v4162_v4, %v4161_v33  ;;  %v3907_v7 = vadd.f32 %v3906_v34, %v3698_v56  ;;  %3329 = vmatmul.f32.gmra.mxu0 %v12016_v55  ;;  %v4141_v56 = vrot.slane %v4140_v45, 1 }
 0x8ba   : > { %v4361_v40 = vmul.f32 %v4163_v25, %v11864_v37  ;;  %v4362_v54 = vmul.f32 %v4163_v25, %v11860_v47  ;;  %v4076_v5 = vmul.f32 %v3907_v7, %v12005_v42  ;;  %v3700_v37 = vpop.f32.mrf.mxu2  ;;  %v4144_v25 = vrot.slane %v9765_v12, 4 }
 0x8bb   : > { %v3701_v44 = vadd.f32 %v3700_v37, %v3492_v9  ;;  %v4142_v3 = vadd.f32 %v4141_v56, %v4140_v45  ;;  %v12022_v56 = vld [vmem:[#allocation150_spill] sm:$0xff] }
 0x8bc   : > { %3956 = vmatmul.f32.gmra.mxu3 %v12015_v53  ;;  %v9807_v33 = vadd.f32 %v4361_v40, %v4353_v11  ;;  %v9809_v63 = vadd.f32 %v4362_v54, %v4354_v52  ;;  %v4164_v32 = vadd.f32 %v4076_v5, %v4075_v50  ;;  %v3494_v11 = vpop.f32.mrf.mxu1  ;;  %v12018_v52 = vld [vmem:[#allocation146_spill] sm:$0xff]  ;;  %v12020_v54 = vld [vmem:[#allocation144_spill] sm:$0xff]  ;;  %v4145_v5 = vadd.f32 %v4144_v25, %v9765_v12 }
 0x8bd   : > { %v3285_v7 = vpop.f32.mrf.mxu0  ;;  %3541 = vmatmul.f32.gmra.mxu1 %v12021_v62  ;;  %v4355_v37 = vmul.f32 %v4142_v3, %v11888_v23 }
 0x8be   : > { %v4165_v47 = vrot.slane %v4164_v32, 4  ;;  %3750 = vmatmul.f32.gmra.mxu2 %v12018_v52  ;;  %v3495_v50 = vadd.f32 %v3494_v11, %v3285_v7 }
 0x8bf   : > { %v3909_v60 = vpop.f32.mrf.mxu3 }
 0x8c0   : > { %v4166_v34 = vadd.f32 %v4165_v47, %v4164_v32  ;;  %v3910_v4 = vadd.f32 %v3909_v60, %v3701_v44  ;;  %3332 = vmatmul.f32.gmra.mxu0 %v12020_v54  ;;  %v4356_v60 = vmul.f32 %v4142_v3, %v11884_v21  ;;  %v4146_v47 = vrot.slane %v4145_v5, 2 }
 0x8c2   : > { %v4167_v59 = vrot.slane %v4166_v34, 2  ;;  %v3703_v36 = vpop.f32.mrf.mxu2  ;;  %v4077_v44 = vmul.f32 %v3910_v4, %v12004_v29  ;;  %v12025_v4 = vld [vmem:[#allocation149_spill] sm:$0xff] }
 0x8c3   : > { %v3704_v32 = vadd.f32 %v3703_v36, %v3495_v50  ;;  %v12024_v50 = vld [vmem:[#allocation148_spill] sm:$0xff] }
 0x8c4   : > { %3959 = vmatmul.f32.gmra.mxu3 %v12019_v19  ;;  %v4168_v40 = vadd.f32 %v4167_v59, %v4166_v34  ;;  %v3497_v7 = vpop.f32.mrf.mxu1  ;;  %v12023_v59 = vld [vmem:[#allocation151_spill] sm:$0xff]  ;;  %v4147_v19 = vadd.f32 %v4146_v47, %v4145_v5  ;;  %v12029_v5 = vld [vmem:[#allocation153_spill] sm:$0xff] }
 0x8c5   : > { %v3288_v34 = vpop.f32.mrf.mxu0  ;;  %3544 = vmatmul.f32.gmra.mxu1 %v12025_v4 }
 0x8c6   : > { %v4169_v53 = vrot.slane %v4168_v40, 1  ;;  %3753 = vmatmul.f32.gmra.mxu2 %v12022_v56  ;;  %v3498_v25 = vadd.f32 %v3497_v7, %v3288_v34  ;;  %v4148_v36 = vrot.slane %v4147_v19, 1  ;;  %v12028_v34 = vld [vmem:[#allocation152_spill] sm:$0xff] }
 0x8c7   : > { %v3912_v9 = vpop.f32.mrf.mxu3 }
 0x8c8   : > { %v4170_v55 = vadd.f32 %v4169_v53, %v4168_v40  ;;  %v3913_v39 = vadd.f32 %v3912_v9, %v3704_v32  ;;  %3335 = vmatmul.f32.gmra.mxu0 %v12024_v50  ;;  %v4151_v9 = vrot.slane %v9777_v6, 4  ;;  %v4149_v47 = vadd.f32 %v4148_v36, %v4147_v19 }
 0x8ca   : > { %v4363_v11 = vmul.f32 %v4170_v55, %v11856_v57  ;;  %v4364_v45 = vmul.f32 %v4170_v55, %v11852_v28  ;;  %v4078_v12 = vmul.f32 %v3913_v39, %v12005_v42  ;;  %v3706_v57 = vpop.f32.mrf.mxu2  ;;  %v12026_v39 = vld [vmem:[#allocation154_spill] sm:$0xff]  ;;  %v4152_v7 = vadd.f32 %v4151_v9, %v9777_v6  ;;  %v12031_v9 = vld [vmem:[#allocation159_spill] sm:$0xff] }
 0x8cb   : > { %v3707_v54 = vadd.f32 %v3706_v57, %v3498_v25  ;;  %v4358_v50 = vmul.f32 %v4149_v47, %v11876_v27 }
 0x8cc   : > { %3962 = vmatmul.f32.gmra.mxu3 %v12023_v59  ;;  %v9827_v52 = vadd.f32 %v4363_v11, %v4355_v37  ;;  %v9829_v23 = vadd.f32 %v4364_v45, %v4356_v60  ;;  %v4171_v21 = vadd.f32 %v4078_v12, %v4077_v44  ;;  %v3500_v32 = vpop.f32.mrf.mxu1  ;;  %v12027_v60 = vld [vmem:[#allocation155_spill] sm:$0xff]  ;;  %v4153_v4 = vrot.slane %v4152_v7, 2 }
 0x8cd   : > { %v3291_v53 = vpop.f32.mrf.mxu0  ;;  %3547 = vmatmul.f32.gmra.mxu1 %v12029_v5 }
 0x8ce   : > { %v4172_v28 = vrot.slane %v4171_v21, 4  ;;  %3756 = vmatmul.f32.gmra.mxu2 %v12026_v39  ;;  %v3501_v37 = vadd.f32 %v3500_v32, %v3291_v53  ;;  %v12032_v32 = vld [vmem:[#allocation156_spill] sm:$0xff] }
 0x8cf   : > { %v3915_v40 = vpop.f32.mrf.mxu3 }
 0x8d0   : > { %v4173_v62 = vadd.f32 %v4172_v28, %v4171_v21  ;;  %v3916_v3 = vadd.f32 %v3915_v40, %v3707_v54  ;;  %3338 = vmatmul.f32.gmra.mxu0 %v12028_v34  ;;  %v4357_v21 = vmul.f32 %v4149_v47, %v11880_v15  ;;  %v12034_v47 = vld [vmem:[#allocation162_spill] sm:$0xff] }
 0x8d2   : > { %v4174_v55 = vrot.slane %v4173_v62, 2  ;;  %v3709_v11 = vpop.f32.mrf.mxu2  ;;  %v4079_v57 = vmul.f32 %v3916_v3, %v12004_v29  ;;  %v12033_v29 = vld [vmem:[#allocation157_spill] sm:$0xff]  ;;  %v4154_v3 = vadd.f32 %v4153_v4, %v4152_v7 }
 0x8d3   : > { %v3710_v56 = vadd.f32 %v3709_v11, %v3501_v37 }
 0x8d4   : > { %3965 = vmatmul.f32.gmra.mxu3 %v12027_v60  ;;  %v4175_v44 = vadd.f32 %v4174_v55, %v4173_v62  ;;  %v3503_v28 = vpop.f32.mrf.mxu1  ;;  %v12030_v62 = vld [vmem:[#allocation158_spill] sm:$0xff]  ;;  %v4155_v60 = vrot.slane %v4154_v3, 1 }
 0x8d5   : > { %v3294_v40 = vpop.f32.mrf.mxu0  ;;  %3550 = vmatmul.f32.gmra.mxu1 %v12033_v29 }
 0x8d6   : > { %v4176_v12 = vrot.slane %v4175_v44, 1  ;;  %3759 = vmatmul.f32.gmra.mxu2 %v12030_v62  ;;  %v3504_v36 = vadd.f32 %v3503_v28, %v3294_v40  ;;  %v4156_v7 = vadd.f32 %v4155_v60, %v4154_v3  ;;  %v12040_v3 = vld [vmem:[#allocation166_spill] sm:$0xff] }
 0x8d7   : > { %v3918_v45 = vpop.f32.mrf.mxu3 }
 0x8d8   : > { %v4177_v25 = vadd.f32 %v4176_v12, %v4175_v44  ;;  %v3919_v59 = vadd.f32 %v3918_v45, %v3710_v56  ;;  %3341 = vmatmul.f32.gmra.mxu0 %v12032_v32  ;;  %v12035_v45 = vld [vmem:[#allocation163_spill] sm:$0xff]  ;;  %v12036_v56 = vld [vmem:[#allocation160_spill] sm:$0xff]  ;;  %v4359_v28 = vmul.f32 %v4156_v7, %v11872_v41  ;;  %v12039_v32 = vld [vmem:[#allocation50_spill] sm:$0xff] }
 0x8da   : > { %v4365_v54 = vmul.f32 %v4177_v25, %v11848_v17  ;;  %v4366_v19 = vmul.f32 %v4177_v25, %v11844_v31  ;;  %v4080_v6 = vmul.f32 %v3919_v59, %v12005_v42  ;;  %v3712_v17 = vpop.f32.mrf.mxu2  ;;  %v12037_v25 = vld [vmem:[#allocation161_spill] sm:$0xff] }
 0x8db   : > { %v3713_v39 = vadd.f32 %v3712_v17, %v3504_v36 }
 0x8dc   : > { %3968 = vmatmul.f32.gmra.mxu3 %v12031_v9  ;;  %v9847_v53 = vadd.f32 %v4365_v54, %v4357_v21  ;;  %v9849_v15 = vadd.f32 %v4366_v19, %v4358_v50  ;;  %v4178_v27 = vadd.f32 %v4080_v6, %v4079_v57  ;;  %v3506_v34 = vpop.f32.mrf.mxu1  ;;  %v4360_v54 = vmul.f32 %v4156_v7, %v11868_v51  ;;  %v12038_v19 = vld [vmem:[#allocation49_spill] sm:$0xff]  ;;  %v12046_v7 = vld [vmem:[#allocation168_spill] sm:$0xff] }
 0x8dd   : > { %v3297_v44 = vpop.f32.mrf.mxu0  ;;  %3553 = vmatmul.f32.gmra.mxu1 %v12037_v25 }
 0x8de   : > { %v4179_v31 = vrot.slane %v4178_v27, 4  ;;  %3762 = vmatmul.f32.gmra.mxu2 %v12034_v47  ;;  %v3507_v11 = vadd.f32 %v3506_v34, %v3297_v44 }
 0x8df   : > { %v3921_v55 = vpop.f32.mrf.mxu3 }
 0x8e0   : > { %v4180_v42 = vadd.f32 %v4179_v31, %v4178_v27  ;;  %v3922_v37 = vadd.f32 %v3921_v55, %v3713_v39  ;;  %3344 = vmatmul.f32.gmra.mxu0 %v12036_v56  ;;  %v12041_v55 = vld [vmem:[#allocation167_spill] sm:$0xff]  ;;  %v12042_v39 = vld [vmem:[#allocation164_spill] sm:$0xff] }
 0x8e1   : > { %v12045_v56 = vld [vmem:[#allocation171_spill] sm:$0xff] }
 0x8e2   : > { %v4181_v5 = vrot.slane %v4180_v42, 2  ;;  %v3715_v59 = vpop.f32.mrf.mxu2  ;;  %v4081_v6 = vmul.f32 %v3922_v37, %v12038_v19 }
 0x8e3   : > { %v3716_v4 = vadd.f32 %v3715_v59, %v3507_v11  ;;  %v12047_v59 = vld [vmem:[#allocation169_spill] sm:$0xff] }
 0x8e4   : > { %3971 = vmatmul.f32.gmra.mxu3 %v12035_v45  ;;  %v4182_v12 = vadd.f32 %v4181_v5, %v4180_v42  ;;  %v3509_v36 = vpop.f32.mrf.mxu1  ;;  %v12043_v42 = vld [vmem:[#allocation165_spill] sm:$0xff]  ;;  %v12044_v45 = vld [vmem:[#allocation170_spill] sm:$0xff] }
 0x8e5   : > { %v3300_v62 = vpop.f32.mrf.mxu0  ;;  %3556 = vmatmul.f32.gmra.mxu1 %v12043_v42  ;;  %v12050_v42 = vld [vmem:[#allocation172_spill] sm:$0xff] }
 0x8e6   : > { %v4183_v50 = vrot.slane %v4182_v12, 1  ;;  %3765 = vmatmul.f32.gmra.mxu2 %v12040_v3  ;;  %v3510_v17 = vadd.f32 %v3509_v36, %v3300_v62 }
 0x8e7   : > { %v3924_v21 = vpop.f32.mrf.mxu3 }
 0x8e8   : > { %v4184_v57 = vadd.f32 %v4183_v50, %v4182_v12  ;;  %v3925_v40 = vadd.f32 %v3924_v21, %v3716_v4  ;;  %3347 = vmatmul.f32.gmra.mxu0 %v12042_v39 }
 0x8ea   : > { %v4367_v9 = vmul.f32 %v4184_v57, %v11840_v1  ;;  %v4368_v27 = vmul.f32 %v4184_v57, %v11836_v49  ;;  %v4082_v29 = vmul.f32 %v3925_v40, %v12039_v32  ;;  %v3718_v37 = vpop.f32.mrf.mxu2 }
 0x8eb   : > { %v3719_v49 = vadd.f32 %v3718_v37, %v3510_v17  ;;  %v12049_v17 = vld [vmem:[#allocation175_spill] sm:$0xff]  ;;  %v12051_v37 = vld [vmem:[#allocation173_spill] sm:$0xff] }
 0x8ec   : > { %3974 = vmatmul.f32.gmra.mxu3 %v12041_v55  ;;  %v9865_v31 = vadd.f32 %v4367_v9, %v4359_v28  ;;  %v9867_v41 = vadd.f32 %v4368_v27, %v4360_v54  ;;  %v4185_v51 = vadd.f32 %v4082_v29, %v4081_v6  ;;  %v3512_v47 = vpop.f32.mrf.mxu1  ;;  %v12048_v29 = vld [vmem:[#allocation174_spill] sm:$0xff] }
 0x8ed   : > { %v3303_v5 = vpop.f32.mrf.mxu0  ;;  %3559 = vmatmul.f32.gmra.mxu1 %v12047_v59 }
 0x8ee   : > { %v4186_v60 = vrot.slane %v4185_v51, 4  ;;  %3768 = vmatmul.f32.gmra.mxu2 %v12044_v45  ;;  %v3513_v12 = vadd.f32 %v3512_v47, %v3303_v5  ;;  %v12053_v45 = vld [vmem:[#allocation179_spill] sm:$0xff] }
 0x8ef   : > { %v3927_v1 = vpop.f32.mrf.mxu3 }
 0x8f0   : > { %v4187_v44 = vadd.f32 %v4186_v60, %v4185_v51  ;;  %v3928_v34 = vadd.f32 %v3927_v1, %v3719_v49  ;;  %3350 = vmatmul.f32.gmra.mxu0 %v12046_v7 }
 0x8f2   : > { %v4188_v11 = vrot.slane %v4187_v44, 2  ;;  %v3721_v21 = vpop.f32.mrf.mxu2  ;;  %v4083_v54 = vmul.f32 %v3928_v34, %v12038_v19 }
 0x8f3   : > { %v3722_v57 = vadd.f32 %v3721_v21, %v3513_v12  ;;  %v12054_v12 = vld [vmem:[#allocation176_spill] sm:$0xff] }
 0x8f4   : > { %3977 = vmatmul.f32.gmra.mxu3 %v12045_v56  ;;  %v4189_v25 = vadd.f32 %v4188_v11, %v4187_v44  ;;  %v3515_v62 = vpop.f32.mrf.mxu1  ;;  %v12052_v11 = vld [vmem:[#allocation178_spill] sm:$0xff]  ;;  %v12055_v56 = vld [vmem:[#allocation177_spill] sm:$0xff] }
 0x8f5   : > { %v3306_v6 = vpop.f32.mrf.mxu0  ;;  %3562 = vmatmul.f32.gmra.mxu1 %v12051_v37 }
 0x8f6   : > { %v4190_v4 = vrot.slane %v4189_v25, 1  ;;  %3771 = vmatmul.f32.gmra.mxu2 %v12048_v29  ;;  %v3516_v3 = vadd.f32 %v3515_v62, %v3306_v6 }
 0x8f7   : > { %v3930_v50 = vpop.f32.mrf.mxu3 }
 0x8f8   : > { %v4191_v40 = vadd.f32 %v4190_v4, %v4189_v25  ;;  %v3931_v28 = vadd.f32 %v3930_v50, %v3722_v57  ;;  %3353 = vmatmul.f32.gmra.mxu0 %v12050_v42  ;;  %v12059_v42 = vld [vmem:[#allocation181_spill] sm:$0xff] }
 0x8fa   : > { %v4369_v36 = vmul.f32 %v4191_v40, %v11899_v0  ;;  %v4370_v9 = vmul.f32 %v4191_v40, %v11893_v43  ;;  %v4084_v27 = vmul.f32 %v3931_v28, %v12039_v32  ;;  %v3724_v0 = vpop.f32.mrf.mxu2 }
 0x8fb   : > { %v3725_v1 = vadd.f32 %v3724_v0, %v3516_v3 }
 0x8fc   : > { %3980 = vmatmul.f32.gmra.mxu3 %v12049_v17  ;;  %v9882_v55 = vadd.f32 %v9807_v33, %v4369_v36  ;;  %v9885_v51 = vadd.f32 %v9809_v63, %v4370_v9  ;;  %v4192_v39 = vadd.f32 %v4084_v27, %v4083_v54  ;;  %v3518_v5 = vpop.f32.mrf.mxu1  ;;  %v12056_v36 = vld [vmem:[#allocation182_spill] sm:$0xff]  ;;  %v12057_v27 = vld [vmem:[#allocation183_spill] sm:$0xff] }
 0x8fd   : > { %v3309_v34 = vpop.f32.mrf.mxu0  ;;  %3565 = vmatmul.f32.gmra.mxu1 %v12055_v56 }
 0x8fe   : > { %v4193_v43 = vrot.slane %v4192_v39, 4  ;;  %3774 = vmatmul.f32.gmra.mxu2 %v12052_v11  ;;  %v3519_v33 = vadd.f32 %v3518_v5, %v3309_v34  ;;  %v12060_v34 = vld [vmem:[#allocation186_spill] sm:$0xff]  ;;  %v12061_v5 = vld [vmem:[#allocation187_spill] sm:$0xff]  ;;  %v12063_v11 = vld [vmem:[#allocation185_spill] sm:$0xff] }
 0x8ff   : > { %v3933_v60 = vpop.f32.mrf.mxu3 }
 0x900   : > { %v4194_v49 = vadd.f32 %v4193_v43, %v4192_v39  ;;  %v3934_v44 = vadd.f32 %v3933_v60, %v3725_v1  ;;  %3356 = vmatmul.f32.gmra.mxu0 %v12054_v12  ;;  %v12058_v39 = vld [vmem:[#allocation180_spill] sm:$0xff] }
 0x902   : > { %v4195_v47 = vrot.slane %v4194_v49, 2  ;;  %v3727_v25 = vpop.f32.mrf.mxu2  ;;  %v4085_v57 = vmul.f32 %v3934_v44, %v12038_v19 }
 0x903   : > { %v3728_v59 = vadd.f32 %v3727_v25, %v3519_v33 }
 0x904   : > { %3983 = vmatmul.f32.gmra.mxu3 %v12053_v45  ;;  %v4196_v63 = vadd.f32 %v4195_v47, %v4194_v49  ;;  %v3521_v28 = vpop.f32.mrf.mxu1  ;;  %v12062_v47 = vld [vmem:[#allocation184_spill] sm:$0xff] }
 0x905   : > { %v3312_v40 = vpop.f32.mrf.mxu0  ;;  %3568 = vmatmul.f32.gmra.mxu1 %v12059_v42 }
 0x906   : > { %v4197_v7 = vrot.slane %v4196_v63, 1  ;;  %3777 = vmatmul.f32.gmra.mxu2 %v12056_v36  ;;  %v3522_v9 = vadd.f32 %v3521_v28, %v3312_v40  ;;  %v12064_v40 = vld [vmem:[#allocation190_spill] sm:$0xff]  ;;  %v12066_v36 = vld [vmem:[#allocation188_spill] sm:$0xff] }
 0x907   : > { %v3936_v21 = vpop.f32.mrf.mxu3 }
 0x908   : > { %v4198_v50 = vadd.f32 %v4197_v7, %v4196_v63  ;;  %v3937_v4 = vadd.f32 %v3936_v21, %v3728_v59  ;;  %3359 = vmatmul.f32.gmra.mxu0 %v12058_v39 }
 0x90a   : > { %v4371_v54 = vmul.f32 %v4198_v50, %v11889_v61  ;;  %v4372_v6 = vmul.f32 %v4198_v50, %v11885_v46  ;;  %v4086_v62 = vmul.f32 %v3937_v4, %v12039_v32  ;;  %v3730_v61 = vpop.f32.mrf.mxu2 }
 0x90b   : > { %v3731_v37 = vadd.f32 %v3730_v61, %v3522_v9  ;;  %v12067_v9 = vld [vmem:[#allocation189_spill] sm:$0xff] }
 0x90c   : > { %3986 = vmatmul.f32.gmra.mxu3 %v12057_v27  ;;  %v9900_v29 = vadd.f32 %v9827_v52, %v4371_v54  ;;  %v9903_v3 = vadd.f32 %v9829_v23, %v4372_v6  ;;  %v4199_v17 = vadd.f32 %v4086_v62, %v4085_v57  ;;  %v3524_v49 = vpop.f32.mrf.mxu1  ;;  %v12065_v54 = vld [vmem:[#allocation191_spill] sm:$0xff] }
 0x90d   : > { %v3315_v60 = vpop.f32.mrf.mxu0  ;;  %3571 = vmatmul.f32.gmra.mxu1 %v12063_v11 }
 0x90e   : > { %v4200_v46 = vrot.slane %v4199_v17, 4  ;;  %3780 = vmatmul.f32.gmra.mxu2 %v12060_v34  ;;  %v3525_v52 = vadd.f32 %v3524_v49, %v3315_v60 }
 0x90f   : > { %v3939_v0 = vpop.f32.mrf.mxu3 }
 0x910   : > { %v4201_v43 = vadd.f32 %v4200_v46, %v4199_v17  ;;  %v3940_v1 = vadd.f32 %v3939_v0, %v3731_v37  ;;  %3362 = vmatmul.f32.gmra.mxu0 %v12062_v47  ;;  %v12068_v37 = vld [vmem:[#allocation194_spill] sm:$0xff]  ;;  %v12069_v0 = vld [vmem:[#allocation195_spill] sm:$0xff] }
 0x912   : > { %v4202_v44 = vrot.slane %v4201_v43, 2  ;;  %v3733_v33 = vpop.f32.mrf.mxu2  ;;  %v4087_v7 = vmul.f32 %v3940_v1, %v12038_v19  ;;  %v12071_v1 = vld [vmem:[#allocation193_spill] sm:$0xff] }
 0x913   : > { %v3734_v63 = vadd.f32 %v3733_v33, %v3525_v52 }
 0x914   : > { %3989 = vmatmul.f32.gmra.mxu3 %v12061_v5  ;;  %v4203_v23 = vadd.f32 %v4202_v44, %v4201_v43  ;;  %v3527_v21 = vpop.f32.mrf.mxu1  ;;  %v12070_v43 = vld [vmem:[#allocation192_spill] sm:$0xff] }
 0x915   : > { %v3318_v59 = vpop.f32.mrf.mxu0  ;;  %3574 = vmatmul.f32.gmra.mxu1 %v12067_v9 }
 0x916   : > { %v4204_v45 = vrot.slane %v4203_v23, 1  ;;  %3783 = vmatmul.f32.gmra.mxu2 %v12064_v40  ;;  %v3528_v28 = vadd.f32 %v3527_v21, %v3318_v59  ;;  %v12075_v59 = vld [vmem:[#allocation199_spill] sm:$0xff]  ;;  %v12077_v40 = vld [vmem:[#allocation197_spill] sm:$0xff] }
 0x917   : > { %v3942_v12 = vpop.f32.mrf.mxu3 }
 0x918   : > { %v4205_v56 = vadd.f32 %v4204_v45, %v4203_v23  ;;  %v3943_v25 = vadd.f32 %v3942_v12, %v3734_v63  ;;  %3365 = vmatmul.f32.gmra.mxu0 %v12066_v36  ;;  %v12072_v23 = vld [vmem:[#allocation59_spill] sm:$0xff]  ;;  %v12073_v12 = vld [vmem:[#allocation60_spill] sm:$0xff] }
 0x91a   : > { %v4373_v50 = vmul.f32 %v4205_v56, %v11881_v13  ;;  %v4374_v4 = vmul.f32 %v4205_v56, %v11877_v24  ;;  %v4088_v57 = vmul.f32 %v3943_v25, %v12039_v32  ;;  %v3736_v13 = vpop.f32.mrf.mxu2  ;;  %v12074_v25 = vld [vmem:[#allocation198_spill] sm:$0xff] }
 0x91b   : > { %v3737_v27 = vadd.f32 %v3736_v13, %v3528_v28 }
 0x91c   : > { %3992 = vmatmul.f32.gmra.mxu3 %v12065_v54  ;;  %v9918_v6 = vadd.f32 %v9847_v53, %v4373_v50  ;;  %v9921_v62 = vadd.f32 %v9849_v15, %v4374_v4  ;;  %v4206_v19 = vadd.f32 %v4088_v57, %v4087_v7  ;;  %v3530_v61 = vpop.f32.mrf.mxu1  ;;  %v12076_v57 = vld [vmem:[#allocation196_spill] sm:$0xff] }
 0x91d   : > { %v3321_v42 = vpop.f32.mrf.mxu0  ;;  %3577 = vmatmul.f32.gmra.mxu1 %v12071_v1 }
 0x91e   : > { %v4207_v24 = vrot.slane %v4206_v19, 4  ;;  %3786 = vmatmul.f32.gmra.mxu2 %v12068_v37  ;;  %v3531_v53 = vadd.f32 %v3530_v61, %v3321_v42 }
 0x91f   : > { %v3945_v32 = vpop.f32.mrf.mxu3 }
 0x920   : > { %v4208_v17 = vadd.f32 %v4207_v24, %v4206_v19  ;;  %v3946_v39 = vadd.f32 %v3945_v32, %v3737_v27  ;;  %3368 = vmatmul.f32.gmra.mxu0 %v12070_v43  ;;  %v12078_v27 = vld [vmem:[#allocation202_spill] sm:$0xff]  ;;  %v12079_v32 = vld [vmem:[#allocation203_spill] sm:$0xff] }
 0x922   : > { %v4209_v46 = vrot.slane %v4208_v17, 2  ;;  %v3739_v60 = vpop.f32.mrf.mxu2  ;;  %v4089_v47 = vmul.f32 %v3946_v39, %v12072_v23  ;;  %v12081_v39 = vld [vmem:[#allocation201_spill] sm:$0xff] }
 0x923   : > { %v3740_v44 = vadd.f32 %v3739_v60, %v3531_v53 }
 0x924   : > { %3995 = vmatmul.f32.gmra.mxu3 %v12069_v0  ;;  %v4210_v15 = vadd.f32 %v4209_v46, %v4208_v17  ;;  %v3533_v33 = vpop.f32.mrf.mxu1  ;;  %v12080_v17 = vld [vmem:[#allocation200_spill] sm:$0xff] }
 0x925   : > { %v3324_v11 = vpop.f32.mrf.mxu0  ;;  %3580 = vmatmul.f32.gmra.mxu1 %v12077_v40 }
 0x926   : > { %v4211_v49 = vrot.slane %v4210_v15, 1  ;;  %3789 = vmatmul.f32.gmra.mxu2 %v12074_v25  ;;  %v3534_v7 = vadd.f32 %v3533_v33, %v3324_v11 }
 0x927   : > { %v3948_v34 = vpop.f32.mrf.mxu3 }
 0x928   : > { %v4212_v52 = vadd.f32 %v4211_v49, %v4210_v15  ;;  %v3949_v5 = vadd.f32 %v3948_v34, %v3740_v44  ;;  %3371 = vmatmul.f32.gmra.mxu0 %v12076_v57  ;;  %v12082_v34 = vld [vmem:[#allocation206_spill] sm:$0xff] }
 0x92a   : > { %v4375_v45 = vmul.f32 %v4212_v52, %v11873_v10  ;;  %v4376_v63 = vmul.f32 %v4212_v52, %v11869_v16  ;;  %v4090_v56 = vmul.f32 %v3949_v5, %v12073_v12  ;;  %v3742_v10 = vpop.f32.mrf.mxu2  ;;  %v12083_v5 = vld [vmem:[#allocation207_spill] sm:$0xff] }
 0x92b   : > { %v3743_v28 = vadd.f32 %v3742_v10, %v3534_v7  ;;  %v12086_v10 = vld [vmem:[#allocation210_spill] sm:$0xff] }
 0x92c   : > { %3998 = vmatmul.f32.gmra.mxu3 %v12075_v59  ;;  %v9936_v21 = vadd.f32 %v9865_v31, %v4375_v45  ;;  %v9939_v50 = vadd.f32 %v9867_v41, %v4376_v63  ;;  %v4213_v4 = vadd.f32 %v4090_v56, %v4089_v47  ;;  %v3536_v13 = vpop.f32.mrf.mxu1  ;;  %v12084_v45 = vld [vmem:[#allocation204_spill] sm:$0xff]  ;;  %v12085_v63 = vld [vmem:[#allocation205_spill] sm:$0xff] }
 0x92d   : > { %v3327_v9 = vpop.f32.mrf.mxu0  ;;  %3583 = vmatmul.f32.gmra.mxu1 %v12081_v39 }
 0x92e   : > { %v4214_v16 = vrot.slane %v4213_v4, 4  ;;  %3792 = vmatmul.f32.gmra.mxu2 %v12078_v27  ;;  %v3537_v31 = vadd.f32 %v3536_v13, %v3327_v9 }
 0x92f   : > { %v3951_v54 = vpop.f32.mrf.mxu3 }
 0x930   : > { %v4215_v19 = vadd.f32 %v4214_v16, %v4213_v4  ;;  %v3952_v36 = vadd.f32 %v3951_v54, %v3743_v28  ;;  %3374 = vmatmul.f32.gmra.mxu0 %v12080_v17  ;;  %v12087_v16 = vld [vmem:[#allocation211_spill] sm:$0xff]  ;;  %v12088_v28 = vld [vmem:[#allocation208_spill] sm:$0xff]  ;;  %v12089_v54 = vld [vmem:[#allocation209_spill] sm:$0xff] }
 0x932   : > { %v4216_v24 = vrot.slane %v4215_v19, 2  ;;  %v3745_v42 = vpop.f32.mrf.mxu2  ;;  %v4091_v15 = vmul.f32 %v3952_v36, %v12072_v23 }
 0x933   : > { %v3746_v46 = vadd.f32 %v3745_v42, %v3537_v31 }
 0x934   : > { %4001 = vmatmul.f32.gmra.mxu3 %v12079_v32  ;;  %v4217_v41 = vadd.f32 %v4216_v24, %v4215_v19  ;;  %v3539_v1 = vpop.f32.mrf.mxu1 }
 0x935   : > { %v3330_v43 = vpop.f32.mrf.mxu0  ;;  %3586 = vmatmul.f32.gmra.mxu1 %v12085_v63  ;;  %v12095_v63 = vld [vmem:[#allocation219_spill] sm:$0xff] }
 0x936   : > { %v4218_v61 = vrot.slane %v4217_v41, 1  ;;  %3795 = vmatmul.f32.gmra.mxu2 %v12082_v34  ;;  %v3540_v52 = vadd.f32 %v3539_v1, %v3330_v43  ;;  %v12092_v43 = vld [vmem:[#allocation212_spill] sm:$0xff]  ;;  %v12093_v1 = vld [vmem:[#allocation213_spill] sm:$0xff] }
 0x937   : > { %v3954_v37 = vpop.f32.mrf.mxu3 }
 0x938   : > { %v4219_v53 = vadd.f32 %v4218_v61, %v4217_v41  ;;  %v3955_v0 = vadd.f32 %v3954_v37, %v3746_v46  ;;  %3377 = vmatmul.f32.gmra.mxu0 %v12084_v45  ;;  %v12090_v61 = vld [vmem:[#allocation214_spill] sm:$0xff]  ;;  %v12091_v37 = vld [vmem:[#allocation215_spill] sm:$0xff] }
 0x939   : > { %v12094_v45 = vld [vmem:[#allocation218_spill] sm:$0xff] }
 0x93a   : > { %v4377_v60 = vmul.f32 %v4219_v53, %v11865_v20  ;;  %v4378_v49 = vmul.f32 %v4219_v53, %v11861_v35  ;;  %v4092_v44 = vmul.f32 %v3955_v0, %v12073_v12  ;;  %v3748_v20 = vpop.f32.mrf.mxu2 }
 0x93b   : > { %v3749_v56 = vadd.f32 %v3748_v20, %v3540_v52  ;;  %v12096_v20 = vld [vmem:[#allocation216_spill] sm:$0xff] }
 0x93c   : > { %4004 = vmatmul.f32.gmra.mxu3 %v12083_v5  ;;  %v9954_v47 = vadd.f32 %v9882_v55, %v4377_v60  ;;  %v9957_v11 = vadd.f32 %v9885_v51, %v4378_v49  ;;  %v4220_v33 = vadd.f32 %v4092_v44, %v4091_v15  ;;  %v3542_v57 = vpop.f32.mrf.mxu1 }
 0x93d   : > { %v3333_v4 = vpop.f32.mrf.mxu0  ;;  %3589 = vmatmul.f32.gmra.mxu1 %v12089_v54  ;;  %v12098_v54 = vld [vmem:[#allocation222_spill] sm:$0xff] }
 0x93e   : > { %v4221_v35 = vrot.slane %v4220_v33, 4  ;;  %3798 = vmatmul.f32.gmra.mxu2 %v12086_v10  ;;  %v3543_v55 = vadd.f32 %v3542_v57, %v3333_v4 }
 0x93f   : > { %v3957_v25 = vpop.f32.mrf.mxu3 }
 0x940   : > { %v4222_v7 = vadd.f32 %v4221_v35, %v4220_v33  ;;  %v3958_v59 = vadd.f32 %v3957_v25, %v3749_v56  ;;  %3380 = vmatmul.f32.gmra.mxu0 %v12088_v28  ;;  %v12097_v35 = vld [vmem:[#allocation217_spill] sm:$0xff] }
 0x942   : > { %v4223_v40 = vrot.slane %v4222_v7, 2  ;;  %v3751_v19 = vpop.f32.mrf.mxu2  ;;  %v4093_v31 = vmul.f32 %v3958_v59, %v12072_v23 }
 0x943   : > { %v3752_v9 = vadd.f32 %v3751_v19, %v3543_v55 }
 0x944   : > { %4007 = vmatmul.f32.gmra.mxu3 %v12087_v16  ;;  %v4224_v51 = vadd.f32 %v4223_v40, %v4222_v7  ;;  %v3545_v41 = vpop.f32.mrf.mxu1 }
 0x945   : > { %v3336_v32 = vpop.f32.mrf.mxu0  ;;  %3592 = vmatmul.f32.gmra.mxu1 %v12093_v1 }
 0x946   : > { %v4225_v36 = vrot.slane %v4224_v51, 1  ;;  %3801 = vmatmul.f32.gmra.mxu2 %v12090_v61  ;;  %v3546_v46 = vadd.f32 %v3545_v41, %v3336_v32  ;;  %v12102_v61 = vld [vmem:[#allocation226_spill] sm:$0xff] }
 0x947   : > { %v3960_v13 = vpop.f32.mrf.mxu3 }
 0x948   : > { %v4226_v24 = vadd.f32 %v4225_v36, %v4224_v51  ;;  %v3961_v27 = vadd.f32 %v3960_v13, %v3752_v9  ;;  %3383 = vmatmul.f32.gmra.mxu0 %v12092_v43  ;;  %v12099_v36 = vld [vmem:[#allocation223_spill] sm:$0xff] }
 0x94a   : > { %v4379_v17 = vmul.f32 %v4226_v24, %v11857_v26  ;;  %v4380_v39 = vmul.f32 %v4226_v24, %v11853_v38  ;;  %v4094_v42 = vmul.f32 %v3961_v27, %v12073_v12  ;;  %v3754_v26 = vpop.f32.mrf.mxu2  ;;  %v12100_v24 = vld [vmem:[#allocation220_spill] sm:$0xff]  ;;  %v12101_v27 = vld [vmem:[#allocation221_spill] sm:$0xff] }
 0x94b   : > { %v3755_v60 = vadd.f32 %v3754_v26, %v3546_v46  ;;  %v12103_v46 = vld [vmem:[#allocation227_spill] sm:$0xff] }
 0x94c   : > { %4010 = vmatmul.f32.gmra.mxu3 %v12091_v37  ;;  %v9972_v53 = vadd.f32 %v9900_v29, %v4379_v17  ;;  %v9975_v0 = vadd.f32 %v9903_v3, %v4380_v39  ;;  %v4227_v15 = vadd.f32 %v4094_v42, %v4093_v31  ;;  %v3548_v5 = vpop.f32.mrf.mxu1  ;;  %v12104_v37 = vld [vmem:[#allocation224_spill] sm:$0xff] }
 0x94d   : > { %v3339_v52 = vpop.f32.mrf.mxu0  ;;  %3595 = vmatmul.f32.gmra.mxu1 %v12097_v35  ;;  %v12109_v35 = vld [vmem:[#allocation231_spill] sm:$0xff] }
 0x94e   : > { %v4228_v38 = vrot.slane %v4227_v15, 4  ;;  %3804 = vmatmul.f32.gmra.mxu2 %v12094_v45  ;;  %v3549_v29 = vadd.f32 %v3548_v5, %v3339_v52 }
 0x94f   : > { %v3963_v49 = vpop.f32.mrf.mxu3 }
 0x950   : > { %v4229_v44 = vadd.f32 %v4228_v38, %v4227_v15  ;;  %v3964_v34 = vadd.f32 %v3963_v49, %v3755_v60  ;;  %3386 = vmatmul.f32.gmra.mxu0 %v12096_v20  ;;  %v12105_v15 = vld [vmem:[#allocation225_spill] sm:$0xff] }
 0x952   : > { %v4230_v33 = vrot.slane %v4229_v44, 2  ;;  %v3757_v56 = vpop.f32.mrf.mxu2  ;;  %v4095_v40 = vmul.f32 %v3964_v34, %v12072_v23 }
 0x953   : > { %v3758_v7 = vadd.f32 %v3757_v56, %v3549_v29  ;;  %v12107_v29 = vld [vmem:[#allocation68_spill] sm:$0xff] }
 0x954   : > { %4013 = vmatmul.f32.gmra.mxu3 %v12095_v63  ;;  %v4231_v3 = vadd.f32 %v4230_v33, %v4229_v44  ;;  %v3551_v55 = vpop.f32.mrf.mxu1  ;;  %v12106_v44 = vld [vmem:[#allocation67_spill] sm:$0xff] }
 0x955   : > { %v3342_v10 = vpop.f32.mrf.mxu0  ;;  %3598 = vmatmul.f32.gmra.mxu1 %v12101_v27 }
 0x956   : > { %v4232_v25 = vrot.slane %v4231_v3, 1  ;;  %3807 = vmatmul.f32.gmra.mxu2 %v12098_v54  ;;  %v3552_v19 = vadd.f32 %v3551_v55, %v3342_v10  ;;  %v12112_v54 = vld [vmem:[#allocation234_spill] sm:$0xff] }
 0x957   : > { %v3966_v59 = vpop.f32.mrf.mxu3 }
 0x958   : > { %v4233_v4 = vadd.f32 %v4232_v25, %v4231_v3  ;;  %v3967_v57 = vadd.f32 %v3966_v59, %v3758_v7  ;;  %3389 = vmatmul.f32.gmra.mxu0 %v12100_v24  ;;  %v12108_v3 = vld [vmem:[#allocation230_spill] sm:$0xff]  ;;  %v12110_v59 = vld [vmem:[#allocation228_spill] sm:$0xff] }
 0x95a   : > { %v4381_v16 = vmul.f32 %v4233_v4, %v11849_v22  ;;  %v4382_v51 = vmul.f32 %v4233_v4, %v11845_v8  ;;  %v4096_v28 = vmul.f32 %v3967_v57, %v12073_v12  ;;  %v3760_v22 = vpop.f32.mrf.mxu2  ;;  %v12111_v4 = vld [vmem:[#allocation229_spill] sm:$0xff] }
 0x95b   : > { %v3761_v31 = vadd.f32 %v3760_v22, %v3552_v19  ;;  %v12113_v19 = vld [vmem:[#allocation235_spill] sm:$0xff] }
 0x95c   : > { %4016 = vmatmul.f32.gmra.mxu3 %v12099_v36  ;;  %v9990_v9 = vadd.f32 %v9918_v6, %v4381_v16  ;;  %v9993_v13 = vadd.f32 %v9921_v62, %v4382_v51  ;;  %v4234_v23 = vadd.f32 %v4096_v28, %v4095_v40  ;;  %v3554_v39 = vpop.f32.mrf.mxu1  ;;  %v12114_v36 = vld [vmem:[#allocation232_spill] sm:$0xff] }
 0x95d   : > { %v3345_v17 = vpop.f32.mrf.mxu0  ;;  %3601 = vmatmul.f32.gmra.mxu1 %v12105_v15 }
 0x95e   : > { %v4235_v8 = vrot.slane %v4234_v23, 4  ;;  %3810 = vmatmul.f32.gmra.mxu2 %v12102_v61  ;;  %v3555_v6 = vadd.f32 %v3554_v39, %v3345_v17 }
 0x95f   : > { %v3969_v12 = vpop.f32.mrf.mxu3 }
 0x960   : > { %v4236_v32 = vadd.f32 %v4235_v8, %v4234_v23  ;;  %v3970_v41 = vadd.f32 %v3969_v12, %v3761_v31  ;;  %3392 = vmatmul.f32.gmra.mxu0 %v12104_v37  ;;  %v12115_v23 = vld [vmem:[#allocation233_spill] sm:$0xff] }
 0x962   : > { %v4237_v42 = vrot.slane %v4236_v32, 2  ;;  %v3763_v43 = vpop.f32.mrf.mxu2  ;;  %v4097_v34 = vmul.f32 %v3970_v41, %v12106_v44 }
 0x963   : > { %v3764_v26 = vadd.f32 %v3763_v43, %v3555_v6  ;;  %v12116_v6 = vld [vmem:[#allocation238_spill] sm:$0xff] }
 0x964   : > { %4019 = vmatmul.f32.gmra.mxu3 %v12103_v46  ;;  %v4238_v62 = vadd.f32 %v4237_v42, %v4236_v32  ;;  %v3557_v5 = vpop.f32.mrf.mxu1 }
 0x965   : > { %v3348_v52 = vpop.f32.mrf.mxu0  ;;  %3604 = vmatmul.f32.gmra.mxu1 %v12111_v4 }
 0x966   : > { %v4239_v1 = vrot.slane %v4238_v62, 1  ;;  %3813 = vmatmul.f32.gmra.mxu2 %v12108_v3  ;;  %v3558_v20 = vadd.f32 %v3557_v5, %v3348_v52  ;;  %v12122_v3 = vld [vmem:[#allocation240_spill] sm:$0xff] }
 0x967   : > { %v3972_v38 = vpop.f32.mrf.mxu3 }
 0x968   : > { %v4240_v60 = vadd.f32 %v4239_v1, %v4238_v62  ;;  %v3973_v49 = vadd.f32 %v3972_v38, %v3764_v26  ;;  %3395 = vmatmul.f32.gmra.mxu0 %v12110_v59  ;;  %v12117_v62 = vld [vmem:[#allocation239_spill] sm:$0xff]  ;;  %v12118_v1 = vld [vmem:[#allocation236_spill] sm:$0xff]  ;;  %v12119_v26 = vld [vmem:[#allocation237_spill] sm:$0xff] }
 0x96a   : > { %v4383_v33 = vmul.f32 %v4240_v60, %v11841_v2  ;;  %v4384_v45 = vmul.f32 %v4240_v60, %v11837_v48  ;;  %v4098_v63 = vmul.f32 %v3973_v49, %v12107_v29  ;;  %v3766_v2 = vpop.f32.mrf.mxu2 }
 0x96b   : > { %v3767_v57 = vadd.f32 %v3766_v2, %v3558_v20  ;;  %v12123_v20 = vld [vmem:[#allocation241_spill] sm:$0xff] }
 0x96c   : > { %4022 = vmatmul.f32.gmra.mxu3 %v12109_v35  ;;  %v10008_v56 = vadd.f32 %v9936_v21, %v4383_v33  ;;  %v10011_v25 = vadd.f32 %v9939_v50, %v4384_v45  ;;  %v4241_v7 = vadd.f32 %v4098_v63, %v4097_v34  ;;  %v3560_v51 = vpop.f32.mrf.mxu1  ;;  %v12120_v45 = vld [vmem:[#allocation242_spill] sm:$0xff]  ;;  %v12121_v63 = vld [vmem:[#allocation243_spill] sm:$0xff] }
 0x96d   : > { %v3351_v16 = vpop.f32.mrf.mxu0  ;;  %3607 = vmatmul.f32.gmra.mxu1 %v12115_v23  ;;  %v12126_v23 = vld [vmem:[#allocation244_spill] sm:$0xff] }
 0x96e   : > { %v4242_v48 = vrot.slane %v4241_v7, 4  ;;  %3816 = vmatmul.f32.gmra.mxu2 %v12112_v54  ;;  %v3561_v21 = vadd.f32 %v3560_v51, %v3351_v16 }
 0x96f   : > { %v3975_v40 = vpop.f32.mrf.mxu3 }
 0x970   : > { %v4243_v10 = vadd.f32 %v4242_v48, %v4241_v7  ;;  %v3976_v55 = vadd.f32 %v3975_v40, %v3767_v57  ;;  %3398 = vmatmul.f32.gmra.mxu0 %v12114_v36 }
 0x972   : > { %v4244_v28 = vrot.slane %v4243_v10, 2  ;;  %v3769_v24 = vpop.f32.mrf.mxu2  ;;  %v4099_v32 = vmul.f32 %v3976_v55, %v12106_v44 }
 0x973   : > { %v3770_v22 = vadd.f32 %v3769_v24, %v3561_v21  ;;  %v12125_v21 = vld [vmem:[#allocation247_spill] sm:$0xff]  ;;  %v12127_v24 = vld [vmem:[#allocation245_spill] sm:$0xff] }
 0x974   : > { %4025 = vmatmul.f32.gmra.mxu3 %v12113_v19  ;;  %v4245_v50 = vadd.f32 %v4244_v28, %v4243_v10  ;;  %v3563_v17 = vpop.f32.mrf.mxu1  ;;  %v12124_v28 = vld [vmem:[#allocation246_spill] sm:$0xff] }
 0x975   : > { %v3354_v41 = vpop.f32.mrf.mxu0  ;;  %3610 = vmatmul.f32.gmra.mxu1 %v12119_v26 }
 0x976   : > { %v4246_v27 = vrot.slane %v4245_v50, 1  ;;  %3819 = vmatmul.f32.gmra.mxu2 %v12116_v6  ;;  %v3564_v46 = vadd.f32 %v3563_v17, %v3354_v41  ;;  %v12128_v17 = vld [vmem:[#allocation250_spill] sm:$0xff] }
 0x977   : > { %v3978_v8 = vpop.f32.mrf.mxu3 }
 0x978   : > { %v4247_v31 = vadd.f32 %v4246_v27, %v4245_v50  ;;  %v3979_v12 = vadd.f32 %v3978_v8, %v3770_v22  ;;  %3401 = vmatmul.f32.gmra.mxu0 %v12118_v1 }
 0x97a   : > { %v4385_v39 = vmul.f32 %v4247_v31, %v11894_v30  ;;  %v4386_v42 = vmul.f32 %v4247_v31, %v11890_v58  ;;  %v4100_v61 = vmul.f32 %v3979_v12, %v12107_v29  ;;  %v3772_v30 = vpop.f32.mrf.mxu2 }
 0x97b   : > { %v3773_v38 = vadd.f32 %v3772_v30, %v3564_v46 }
 0x97c   : > { %4028 = vmatmul.f32.gmra.mxu3 %v12117_v62  ;;  %v10026_v37 = vadd.f32 %v9954_v47, %v4385_v39  ;;  %v10029_v15 = vadd.f32 %v9957_v11, %v4386_v42  ;;  %v4248_v43 = vadd.f32 %v4100_v61, %v4099_v32  ;;  %v3566_v5 = vpop.f32.mrf.mxu1  ;;  %v12129_v39 = vld [vmem:[#allocation251_spill] sm:$0xff]  ;;  %v12130_v42 = vld [vmem:[#allocation248_spill] sm:$0xff]  ;;  %v12131_v61 = vld [vmem:[#allocation249_spill] sm:$0xff] }
 0x97d   : > { %v3357_v52 = vpop.f32.mrf.mxu0  ;;  %3613 = vmatmul.f32.gmra.mxu1 %v12123_v20  ;;  %v12137_v20 = vld [vmem:[#allocation253_spill] sm:$0xff] }
 0x97e   : > { %v4249_v58 = vrot.slane %v4248_v43, 4  ;;  %3822 = vmatmul.f32.gmra.mxu2 %v12120_v45  ;;  %v3567_v47 = vadd.f32 %v3566_v5, %v3357_v52 }
 0x97f   : > { %v3981_v60 = vpop.f32.mrf.mxu3 }
 0x980   : > { %v4250_v49 = vadd.f32 %v4249_v58, %v4248_v43  ;;  %v3982_v34 = vadd.f32 %v3981_v60, %v3773_v38  ;;  %3404 = vmatmul.f32.gmra.mxu0 %v12122_v3  ;;  %v12132_v60 = vld [vmem:[#allocation652_spill] sm:$0xff] }
 0x981   : > { %v12136_v3 = vld [vmem:[#allocation252_spill] sm:$0xff] }
 0x982   : > { %v4251_v33 = vrot.slane %v4250_v49, 2  ;;  %v3775_v35 = vpop.f32.mrf.mxu2  ;;  %v4101_v57 = vmul.f32 %v3982_v34, %v12106_v44  ;;  %v12133_v34 = vld [vmem:[#allocation653_spill] sm:$0xff] }
 0x983   : > { %v3776_v59 = vadd.f32 %v3775_v35, %v3567_v47  ;;  %v12135_v47 = vld [vmem:[#allocation255_spill] sm:$0xff] }
 0x984   : > { %4031 = vmatmul.f32.gmra.mxu3 %v12121_v63  ;;  %v4252_v11 = vadd.f32 %v4251_v33, %v4250_v49  ;;  %v3569_v10 = vpop.f32.mrf.mxu1  ;;  %v12134_v33 = vld [vmem:[#allocation254_spill] sm:$0xff] }
 0x985   : > { %v3360_v40 = vpop.f32.mrf.mxu0  ;;  %3616 = vmatmul.f32.gmra.mxu1 %v12127_v24 }
 0x986   : > { %v4253_v7 = vrot.slane %v4252_v11, 1  ;;  %3825 = vmatmul.f32.gmra.mxu2 %v12124_v28  ;;  %v3570_v54 = vadd.f32 %v3569_v10, %v3360_v40  ;;  %v12138_v10 = vld [vmem:[#allocation258_spill] sm:$0xff] }
 0x987   : > { %v3984_v4 = vpop.f32.mrf.mxu3 }
 0x988   : > { %v4254_v2 = vadd.f32 %v4253_v7, %v4252_v11  ;;  %v3985_v48 = vadd.f32 %v3984_v4, %v3776_v59  ;;  %3407 = vmatmul.f32.gmra.mxu0 %v12126_v23 }
 0x98a   : > { %v4387_v55 = vmul.f32 %v4254_v2, %v11886_v18  ;;  %v4388_v16 = vmul.f32 %v4254_v2, %v11882_v14  ;;  %v4102_v51 = vmul.f32 %v3985_v48, %v12107_v29  ;;  %v3778_v18 = vpop.f32.mrf.mxu2 }
 0x98b   : > { %v3779_v27 = vadd.f32 %v3778_v18, %v3570_v54  ;;  %v12142_v18 = vld [vmem:[#allocation75_spill] sm:$0xff] }
 0x98c   : > { %4034 = vmatmul.f32.gmra.mxu3 %v12125_v21  ;;  %v10044_v19 = vadd.f32 %v9972_v53, %v4387_v55  ;;  %v10047_v50 = vadd.f32 %v9975_v0, %v4388_v16  ;;  %v4255_v36 = vadd.f32 %v4102_v51, %v4101_v57  ;;  %v3572_v32 = vpop.f32.mrf.mxu1  ;;  %v12139_v55 = vld [vmem:[#allocation259_spill] sm:$0xff]  ;;  %v12140_v16 = vld [vmem:[#allocation256_spill] sm:$0xff]  ;;  %v12141_v51 = vld [vmem:[#allocation257_spill] sm:$0xff] }
 0x98d   : > { %v3363_v12 = vpop.f32.mrf.mxu0  ;;  %3619 = vmatmul.f32.gmra.mxu1 %v12131_v61 }
 0x98e   : > { %v4256_v14 = vrot.slane %v4255_v36, 4  ;;  %3828 = vmatmul.f32.gmra.mxu2 %v12128_v17  ;;  %v3573_v53 = vadd.f32 %v3572_v32, %v3363_v12  ;;  %v12144_v12 = vld [vmem:[#allocation655_spill] sm:$0xff] }
 0x98f   : > { %v3987_v22 = vpop.f32.mrf.mxu3 }
 0x990   : > { %v4257_v8 = vadd.f32 %v4256_v14, %v4255_v36  ;;  %v3988_v31 = vadd.f32 %v3987_v22, %v3779_v27  ;;  %3410 = vmatmul.f32.gmra.mxu0 %v12130_v42 }
 0x992   : > { %v4258_v41 = vrot.slane %v4257_v8, 2  ;;  %v3781_v6 = vpop.f32.mrf.mxu2  ;;  %v4103_v30 = vmul.f32 %v3988_v31, %v12106_v44 }
 0x993   : > { %v3782_v62 = vadd.f32 %v3781_v6, %v3573_v53  ;;  %v12146_v53 = vld [vmem:[#allocation262_spill] sm:$0xff] }
 0x994   : > { %4037 = vmatmul.f32.gmra.mxu3 %v12129_v39  ;;  %v4259_v0 = vadd.f32 %v4258_v41, %v4257_v8  ;;  %v3575_v38 = vpop.f32.mrf.mxu1  ;;  %v12143_v8 = vld [vmem:[#allocation654_spill] sm:$0xff]  ;;  %v12145_v41 = vld [vmem:[#allocation76_spill] sm:$0xff] }
 0x995   : > { %v3366_v58 = vpop.f32.mrf.mxu0  ;;  %3622 = vmatmul.f32.gmra.mxu1 %v12137_v20 }
 0x996   : > { %v4260_v46 = vrot.slane %v4259_v0, 1  ;;  %3831 = vmatmul.f32.gmra.mxu2 %v12134_v33  ;;  %v3576_v45 = vadd.f32 %v3575_v38, %v3366_v58  ;;  %v12152_v33 = vld [vmem:[#allocation264_spill] sm:$0xff] }
 0x997   : > { %v3990_v43 = vpop.f32.mrf.mxu3 }
 0x998   : > { %v4261_v1 = vadd.f32 %v4260_v46, %v4259_v0  ;;  %v3991_v26 = vadd.f32 %v3990_v43, %v3782_v62  ;;  %3413 = vmatmul.f32.gmra.mxu0 %v12136_v3  ;;  %v12147_v0 = vld [vmem:[#allocation263_spill] sm:$0xff]  ;;  %v12148_v46 = vld [vmem:[#allocation260_spill] sm:$0xff]  ;;  %v12149_v62 = vld [vmem:[#allocation261_spill] sm:$0xff] }
 0x99a   : > { %v4389_v49 = vmul.f32 %v4261_v1, %v12132_v60  ;;  %v4390_v52 = vmul.f32 %v4261_v1, %v12133_v34  ;;  %v4104_v5 = vmul.f32 %v3991_v26, %v12107_v29  ;;  %v3784_v35 = vpop.f32.mrf.mxu2 }
 0x99b   : > { %v3785_v59 = vadd.f32 %v3784_v35, %v3576_v45  ;;  %v12153_v45 = vld [vmem:[#allocation265_spill] sm:$0xff] }
 0x99c   : > { %4040 = vmatmul.f32.gmra.mxu3 %v12135_v47  ;;  %v10062_v63 = vadd.f32 %v9990_v9, %v4389_v49  ;;  %v10065_v11 = vadd.f32 %v9993_v13, %v4390_v52  ;;  %v4262_v44 = vadd.f32 %v4104_v5, %v4103_v30  ;;  %v3578_v57 = vpop.f32.mrf.mxu1  ;;  %v12150_v52 = vld [vmem:[#allocation266_spill] sm:$0xff]  ;;  %v12151_v5 = vld [vmem:[#allocation267_spill] sm:$0xff] }
 0x99d   : > { %v3369_v48 = vpop.f32.mrf.mxu0  ;;  %3625 = vmatmul.f32.gmra.mxu1 %v12141_v51 }
 0x99e   : > { %v4263_v7 = vrot.slane %v4262_v44, 4  ;;  %3834 = vmatmul.f32.gmra.mxu2 %v12138_v10  ;;  %v3579_v9 = vadd.f32 %v3578_v57, %v3369_v48  ;;  %v12155_v57 = vld [vmem:[#allocation657_spill] sm:$0xff] }
 0x99f   : > { %v3993_v29 = vpop.f32.mrf.mxu3 }
 0x9a0   : > { %v4264_v4 = vadd.f32 %v4263_v7, %v4262_v44  ;;  %v3994_v2 = vadd.f32 %v3993_v29, %v3785_v59  ;;  %3416 = vmatmul.f32.gmra.mxu0 %v12140_v16 }
 0x9a2   : > { %v4265_v40 = vrot.slane %v4264_v4, 2  ;;  %v3787_v28 = vpop.f32.mrf.mxu2  ;;  %v4105_v14 = vmul.f32 %v3994_v2, %v12142_v18  ;;  %v12154_v2 = vld [vmem:[#allocation656_spill] sm:$0xff] }
 0x9a3   : > { %v3788_v21 = vadd.f32 %v3787_v28, %v3579_v9  ;;  %v12156_v9 = vld [vmem:[#allocation270_spill] sm:$0xff] }
 0x9a4   : > { %4043 = vmatmul.f32.gmra.mxu3 %v12139_v55  ;;  %v4266_v13 = vadd.f32 %v4265_v40, %v4264_v4  ;;  %v3581_v22 = vpop.f32.mrf.mxu1 }
 0x9a5   : > { %v3372_v27 = vpop.f32.mrf.mxu0  ;;  %3628 = vmatmul.f32.gmra.mxu1 %v12149_v62 }
 0x9a6   : > { %v4267_v54 = vrot.slane %v4266_v13, 1  ;;  %3837 = vmatmul.f32.gmra.mxu2 %v12146_v53  ;;  %v3582_v39 = vadd.f32 %v3581_v22, %v3372_v27  ;;  %v12162_v53 = vld [vmem:[#allocation272_spill] sm:$0xff] }
 0x9a7   : > { %v3996_v36 = vpop.f32.mrf.mxu3 }
 0x9a8   : > { %v4268_v23 = vadd.f32 %v4267_v54, %v4266_v13  ;;  %v3997_v24 = vadd.f32 %v3996_v36, %v3788_v21  ;;  %3419 = vmatmul.f32.gmra.mxu0 %v12148_v46  ;;  %v12157_v13 = vld [vmem:[#allocation271_spill] sm:$0xff]  ;;  %v12158_v54 = vld [vmem:[#allocation268_spill] sm:$0xff]  ;;  %v12159_v21 = vld [vmem:[#allocation269_spill] sm:$0xff] }
 0x9aa   : > { %v4391_v31 = vmul.f32 %v4268_v23, %v12143_v8  ;;  %v4392_v32 = vmul.f32 %v4268_v23, %v12144_v12  ;;  %v4106_v17 = vmul.f32 %v3997_v24, %v12145_v41  ;;  %v3790_v43 = vpop.f32.mrf.mxu2 }
 0x9ab   : > { %v3791_v26 = vadd.f32 %v3790_v43, %v3582_v39  ;;  %v12163_v39 = vld [vmem:[#allocation273_spill] sm:$0xff] }
 0x9ac   : > { %4046 = vmatmul.f32.gmra.mxu3 %v12147_v0  ;;  %v10080_v42 = vadd.f32 %v10008_v56, %v4391_v31  ;;  %v10083_v61 = vadd.f32 %v10011_v25, %v4392_v32  ;;  %v4269_v6 = vadd.f32 %v4106_v17, %v4105_v14  ;;  %v3584_v49 = vpop.f32.mrf.mxu1  ;;  %v12160_v32 = vld [vmem:[#allocation274_spill] sm:$0xff]  ;;  %v12161_v17 = vld [vmem:[#allocation275_spill] sm:$0xff] }
 0x9ad   : > { %v3375_v60 = vpop.f32.mrf.mxu0  ;;  %3631 = vmatmul.f32.gmra.mxu1 %v12153_v45 }
 0x9ae   : > { %v4270_v1 = vrot.slane %v4269_v6, 4  ;;  %3840 = vmatmul.f32.gmra.mxu2 %v12150_v52  ;;  %v3585_v56 = vadd.f32 %v3584_v49, %v3375_v60  ;;  %v12165_v49 = vld [vmem:[#allocation659_spill] sm:$0xff] }
 0x9af   : > { %v3999_v30 = vpop.f32.mrf.mxu3 }
 0x9b0   : > { %v4271_v58 = vadd.f32 %v4270_v1, %v4269_v6  ;;  %v4000_v38 = vadd.f32 %v3999_v30, %v3791_v26  ;;  %3422 = vmatmul.f32.gmra.mxu0 %v12152_v33 }
 0x9b2   : > { %v4272_v34 = vrot.slane %v4271_v58, 2  ;;  %v3793_v47 = vpop.f32.mrf.mxu2  ;;  %v4107_v59 = vmul.f32 %v4000_v38, %v12142_v18  ;;  %v12164_v38 = vld [vmem:[#allocation658_spill] sm:$0xff] }
 0x9b3   : > { %v3794_v3 = vadd.f32 %v3793_v47, %v3585_v56  ;;  %v12166_v56 = vld [vmem:[#allocation278_spill] sm:$0xff] }
 0x9b4   : > { %4049 = vmatmul.f32.gmra.mxu3 %v12151_v5  ;;  %v4273_v25 = vadd.f32 %v4272_v34, %v4271_v58  ;;  %v3587_v4 = vpop.f32.mrf.mxu1 }
 0x9b5   : > { %v3378_v29 = vpop.f32.mrf.mxu0  ;;  %3634 = vmatmul.f32.gmra.mxu1 %v12159_v21 }
 0x9b6   : > { %v4274_v44 = vrot.slane %v4273_v25, 1  ;;  %3843 = vmatmul.f32.gmra.mxu2 %v12156_v9  ;;  %v3588_v55 = vadd.f32 %v3587_v4, %v3378_v29  ;;  %v12172_v9 = vld [vmem:[#allocation280_spill] sm:$0xff] }
 0x9b7   : > { %v4002_v20 = vpop.f32.mrf.mxu3 }
 0x9b8   : > { %v4275_v35 = vadd.f32 %v4274_v44, %v4273_v25  ;;  %v4003_v7 = vadd.f32 %v4002_v20, %v3794_v3  ;;  %3425 = vmatmul.f32.gmra.mxu0 %v12158_v54  ;;  %v12167_v25 = vld [vmem:[#allocation279_spill] sm:$0xff]  ;;  %v12168_v44 = vld [vmem:[#allocation276_spill] sm:$0xff]  ;;  %v12169_v3 = vld [vmem:[#allocation277_spill] sm:$0xff] }
 0x9ba   : > { %v4393_v48 = vmul.f32 %v4275_v35, %v12154_v2  ;;  %v4394_v40 = vmul.f32 %v4275_v35, %v12155_v57  ;;  %v4108_v10 = vmul.f32 %v4003_v7, %v12145_v41  ;;  %v3796_v36 = vpop.f32.mrf.mxu2 }
 0x9bb   : > { %v3797_v24 = vadd.f32 %v3796_v36, %v3588_v55  ;;  %v12173_v55 = vld [vmem:[#allocation281_spill] sm:$0xff] }
 0x9bc   : > { %4052 = vmatmul.f32.gmra.mxu3 %v12157_v13  ;;  %v10098_v16 = vadd.f32 %v10026_v37, %v4393_v48  ;;  %v10101_v51 = vadd.f32 %v10029_v15, %v4394_v40  ;;  %v4276_v28 = vadd.f32 %v4108_v10, %v4107_v59  ;;  %v3590_v31 = vpop.f32.mrf.mxu1  ;;  %v12170_v40 = vld [vmem:[#allocation282_spill] sm:$0xff]  ;;  %v12171_v10 = vld [vmem:[#allocation283_spill] sm:$0xff] }
 0x9bd   : > { %v3381_v8 = vpop.f32.mrf.mxu0  ;;  %3637 = vmatmul.f32.gmra.mxu1 %v12163_v39 }
 0x9be   : > { %v4277_v23 = vrot.slane %v4276_v28, 4  ;;  %3846 = vmatmul.f32.gmra.mxu2 %v12160_v32  ;;  %v3591_v37 = vadd.f32 %v3590_v31, %v3381_v8  ;;  %v12175_v31 = vld [vmem:[#allocation661_spill] sm:$0xff] }
 0x9bf   : > { %v4005_v14 = vpop.f32.mrf.mxu3 }
 0x9c0   : > { %v4278_v27 = vadd.f32 %v4277_v23, %v4276_v28  ;;  %v4006_v22 = vadd.f32 %v4005_v14, %v3797_v24  ;;  %3428 = vmatmul.f32.gmra.mxu0 %v12162_v53 }
 0x9c2   : > { %v4279_v12 = vrot.slane %v4278_v27, 2  ;;  %v3799_v0 = vpop.f32.mrf.mxu2  ;;  %v4109_v26 = vmul.f32 %v4006_v22, %v12142_v18  ;;  %v12174_v22 = vld [vmem:[#allocation660_spill] sm:$0xff] }
 0x9c3   : > { %v3800_v46 = vadd.f32 %v3799_v0, %v3591_v37 }
 0x9c4   : > { %4055 = vmatmul.f32.gmra.mxu3 %v12161_v17  ;;  %v4280_v15 = vadd.f32 %v4279_v12, %v4278_v27  ;;  %v3593_v58 = vpop.f32.mrf.mxu1 }
 0x9c5   : > { %v3384_v30 = vpop.f32.mrf.mxu0  ;;  %3640 = vmatmul.f32.gmra.mxu1 %v12169_v3 }
 0x9c6   : > { %v4281_v6 = vrot.slane %v4280_v15, 1  ;;  %3849 = vmatmul.f32.gmra.mxu2 %v12166_v56  ;;  %v3594_v5 = vadd.f32 %v3593_v58, %v3384_v30 }
 0x9c7   : > { %v4008_v62 = vpop.f32.mrf.mxu3 }
 0x9c8   : > { %v4282_v43 = vadd.f32 %v4281_v6, %v4280_v15  ;;  %v4009_v1 = vadd.f32 %v4008_v62, %v3800_v46  ;;  %3431 = vmatmul.f32.gmra.mxu0 %v12168_v44  ;;  %v12178_v44 = vld [vmem:[#allocation663_spill] sm:$0xff] }
 0x9ca   : > { %v4395_v60 = vmul.f32 %v4282_v43, %v12164_v38  ;;  %v4396_v34 = vmul.f32 %v4282_v43, %v12165_v49  ;;  %v4110_v52 = vmul.f32 %v4009_v1, %v12145_v41  ;;  %v3802_v20 = vpop.f32.mrf.mxu2 }
 0x9cb   : > { %v3803_v7 = vadd.f32 %v3802_v20, %v3594_v5  ;;  %v12179_v20 = vld [vmem:[#allocation87_spill] sm:$0xff] }
 0x9cc   : > { %4058 = vmatmul.f32.gmra.mxu3 %v12167_v25  ;;  %v10116_v33 = vadd.f32 %v10044_v19, %v4395_v60  ;;  %v10119_v45 = vadd.f32 %v10047_v50, %v4396_v34  ;;  %v4283_v47 = vadd.f32 %v4110_v52, %v4109_v26  ;;  %v3596_v48 = vpop.f32.mrf.mxu1  ;;  %v12177_v25 = vld [vmem:[#allocation662_spill] sm:$0xff] }
 0x9cd   : > { %v3387_v2 = vpop.f32.mrf.mxu0  ;;  %3643 = vmatmul.f32.gmra.mxu1 %v12173_v55 }
 0x9ce   : > { %v4284_v35 = vrot.slane %v4283_v47, 4  ;;  %3852 = vmatmul.f32.gmra.mxu2 %v12170_v40  ;;  %v3597_v19 = vadd.f32 %v3596_v48, %v3387_v2 }
 0x9cf   : > { %v4011_v59 = vpop.f32.mrf.mxu3 }
 0x9d0   : > { %v4285_v29 = vadd.f32 %v4284_v35, %v4283_v47  ;;  %v4012_v4 = vadd.f32 %v4011_v59, %v3803_v7  ;;  %3434 = vmatmul.f32.gmra.mxu0 %v12172_v9 }
 0x9d2   : > { %v4286_v57 = vrot.slane %v4285_v29, 2  ;;  %v3805_v13 = vpop.f32.mrf.mxu2  ;;  %v4111_v24 = vmul.f32 %v4012_v4, %v12142_v18 }
 0x9d3   : > { %v3806_v54 = vadd.f32 %v3805_v13, %v3597_v19 }
 0x9d4   : > { %4061 = vmatmul.f32.gmra.mxu3 %v12171_v10  ;;  %v4287_v50 = vadd.f32 %v4286_v57, %v4285_v29  ;;  %v3599_v27 = vpop.f32.mrf.mxu1 }
 0x9d5   : > { %v3390_v14 = vpop.f32.mrf.mxu0 }
 0x9d6   : > { %v4288_v28 = vrot.slane %v4287_v50, 1  ;;  %v3600_v37 = vadd.f32 %v3599_v27, %v3390_v14 }
 0x9d7   : > { %v4014_v21 = vpop.f32.mrf.mxu3 }
 0x9d8   : > { %v4289_v36 = vadd.f32 %v4288_v28, %v4287_v50  ;;  %v4015_v23 = vadd.f32 %v4014_v21, %v3806_v54 }
 0x9da   : > { %v4397_v8 = vmul.f32 %v4289_v36, %v12174_v22  ;;  %v4398_v12 = vmul.f32 %v4289_v36, %v12175_v31  ;;  %v4112_v32 = vmul.f32 %v4015_v23, %v12145_v41  ;;  %v3808_v39 = vpop.f32.mrf.mxu2  ;;  %v12180_v22 = vld [vmem:[#allocation664_spill] sm:$0xff]  ;;  %v12181_v31 = vld [vmem:[#allocation665_spill] sm:$0xff] }
 0x9db   : > { %v3809_v6 = vadd.f32 %v3808_v39, %v3600_v37 }
 0x9dc   : > { %v10132_v17 = vadd.f32 %v10062_v63, %v4397_v8  ;;  %v10135_v15 = vadd.f32 %v10065_v11, %v4398_v12  ;;  %v4290_v53 = vadd.f32 %v4112_v32, %v4111_v24  ;;  %v3602_v1 = vpop.f32.mrf.mxu1  ;;  %v12176_v11 = vld [vmem:[#allocation86_spill] sm:$0xff] }
 0x9dd   : > { %v3393_v43 = vpop.f32.mrf.mxu0 }
 0x9de   : > { %v4291_v0 = vrot.slane %v4290_v53, 4  ;;  %v3603_v30 = vadd.f32 %v3602_v1, %v3393_v43 }
 0x9df   : > { %v4017_v18 = vpop.f32.mrf.mxu3 }
 0x9e0   : > { %v4292_v46 = vadd.f32 %v4291_v0, %v4290_v53  ;;  %v4018_v62 = vadd.f32 %v4017_v18, %v3809_v6 }
 0x9e2   : > { %v4293_v26 = vrot.slane %v4292_v46, 2  ;;  %v3811_v41 = vpop.f32.mrf.mxu2  ;;  %v4113_v52 = vmul.f32 %v4018_v62, %v12176_v11 }
 0x9e3   : > { %v3812_v60 = vadd.f32 %v3811_v41, %v3603_v30 }
 0x9e4   : > { %v4294_v58 = vadd.f32 %v4293_v26, %v4292_v46  ;;  %v3605_v5 = vpop.f32.mrf.mxu1 }
 0x9e5   : > { %v3396_v56 = vpop.f32.mrf.mxu0 }
 0x9e6   : > { %v4295_v38 = vrot.slane %v4294_v58, 1  ;;  %v3606_v7 = vadd.f32 %v3605_v5, %v3396_v56 }
 0x9e7   : > { %v4020_v63 = vpop.f32.mrf.mxu3 }
 0x9e8   : > { %v4296_v49 = vadd.f32 %v4295_v38, %v4294_v58  ;;  %v4021_v34 = vadd.f32 %v4020_v63, %v3812_v60 }
 0x9ea   : > { %v4399_v47 = vmul.f32 %v4296_v49, %v12177_v25  ;;  %v4400_v3 = vmul.f32 %v4296_v49, %v12178_v44  ;;  %v4114_v35 = vmul.f32 %v4021_v34, %v12179_v20  ;;  %v3814_v2 = vpop.f32.mrf.mxu2  ;;  %v12182_v25 = vld [vmem:[#allocation666_spill] sm:$0xff]  ;;  %v12183_v44 = vld [vmem:[#allocation667_spill] sm:$0xff] }
 0x9eb   : > { %v3815_v57 = vadd.f32 %v3814_v2, %v3606_v7 }
 0x9ec   : > { %v10142_v59 = vadd.f32 %v10080_v42, %v4399_v47  ;;  %v10145_v29 = vadd.f32 %v10083_v61, %v4400_v3  ;;  %v4297_v4 = vadd.f32 %v4114_v35, %v4113_v52  ;;  %v3608_v9 = vpop.f32.mrf.mxu1 }
 0x9ed   : > { %v3399_v50 = vpop.f32.mrf.mxu0 }
 0x9ee   : > { %v4298_v48 = vrot.slane %v4297_v4, 4  ;;  %v3609_v13 = vadd.f32 %v3608_v9, %v3399_v50 }
 0x9ef   : > { %v4023_v40 = vpop.f32.mrf.mxu3 }
 0x9f0   : > { %v4299_v19 = vadd.f32 %v4298_v48, %v4297_v4  ;;  %v4024_v10 = vadd.f32 %v4023_v40, %v3815_v57 }
 0x9f2   : > { %v4300_v55 = vrot.slane %v4299_v19, 2  ;;  %v3817_v54 = vpop.f32.mrf.mxu2  ;;  %v4115_v61 = vmul.f32 %v4024_v10, %v12176_v11 }
 0x9f3   : > { %v3818_v36 = vadd.f32 %v3817_v54, %v3609_v13 }
 0x9f4   : > { %v4301_v28 = vadd.f32 %v4300_v55, %v4299_v19  ;;  %v3611_v27 = vpop.f32.mrf.mxu1 }
 0x9f5   : > { %v3402_v14 = vpop.f32.mrf.mxu0 }
 0x9f6   : > { %v4302_v21 = vrot.slane %v4301_v28, 1  ;;  %v3612_v37 = vadd.f32 %v3611_v27, %v3402_v14  ;;  %v12184_v27 = vld [vmem:[#allocation668_spill] sm:$0xff] }
 0x9f7   : > { %v4026_v42 = vpop.f32.mrf.mxu3 }
 0x9f8   : > { %v4303_v23 = vadd.f32 %v4302_v21, %v4301_v28  ;;  %v4027_v24 = vadd.f32 %v4026_v42, %v3818_v36 }
 0x9fa   : > { %v4401_v8 = vmul.f32 %v4303_v23, %v12180_v22  ;;  %v4402_v12 = vmul.f32 %v4303_v23, %v12181_v31  ;;  %v4116_v32 = vmul.f32 %v4027_v24, %v12179_v20  ;;  %v3820_v6 = vpop.f32.mrf.mxu2 }
 0x9fb   : > { %v3821_v46 = vadd.f32 %v3820_v6, %v3612_v37 }
 0x9fc   : > { %v10152_v53 = vadd.f32 %v10098_v16, %v4401_v8  ;;  %v10155_v39 = vadd.f32 %v10101_v51, %v4402_v12  ;;  %v4304_v0 = vadd.f32 %v4116_v32, %v4115_v61  ;;  %v3614_v30 = vpop.f32.mrf.mxu1  ;;  %v12185_v8 = vld [vmem:[#allocation669_spill] sm:$0xff] }
 0x9fd   : > { %v3405_v26 = vpop.f32.mrf.mxu0 }
 0x9fe   : > { %v4305_v18 = vrot.slane %v4304_v0, 4  ;;  %v3615_v41 = vadd.f32 %v3614_v30, %v3405_v26 }
 0x9ff   : > { %v4029_v62 = vpop.f32.mrf.mxu3 }
 0xa00   : > { %v4306_v43 = vadd.f32 %v4305_v18, %v4304_v0  ;;  %v4030_v1 = vadd.f32 %v4029_v62, %v3821_v46 }
 0xa02   : > { %v4307_v58 = vrot.slane %v4306_v43, 2  ;;  %v3823_v60 = vpop.f32.mrf.mxu2  ;;  %v4117_v51 = vmul.f32 %v4030_v1, %v12176_v11 }
 0xa03   : > { %v3824_v49 = vadd.f32 %v3823_v60, %v3615_v41 }
 0xa04   : > { %v4308_v38 = vadd.f32 %v4307_v58, %v4306_v43  ;;  %v3617_v5 = vpop.f32.mrf.mxu1 }
 0xa05   : > { %v3408_v56 = vpop.f32.mrf.mxu0 }
 0xa06   : > { %v4309_v63 = vrot.slane %v4308_v38, 1  ;;  %v3618_v7 = vadd.f32 %v3617_v5, %v3408_v56  ;;  %v12187_v5 = vld [vmem:[#allocation671_spill] sm:$0xff] }
 0xa07   : > { %v4032_v16 = vpop.f32.mrf.mxu3 }
 0xa08   : > { %v4310_v34 = vadd.f32 %v4309_v63, %v4308_v38  ;;  %v4033_v52 = vadd.f32 %v4032_v16, %v3824_v49 }
 0xa0a   : > { %v4403_v47 = vmul.f32 %v4310_v34, %v12182_v25  ;;  %v4404_v3 = vmul.f32 %v4310_v34, %v12183_v44  ;;  %v4118_v35 = vmul.f32 %v4033_v52, %v12179_v20  ;;  %v3826_v57 = vpop.f32.mrf.mxu2 }
 0xa0b   : > { %v3827_v19 = vadd.f32 %v3826_v57, %v3618_v7 }
 0xa0c   : > { %v10162_v4 = vadd.f32 %v10116_v33, %v4403_v47  ;;  %v10165_v2 = vadd.f32 %v10119_v45, %v4404_v3  ;;  %v4311_v48 = vadd.f32 %v4118_v35, %v4117_v51  ;;  %v3620_v13 = vpop.f32.mrf.mxu1  ;;  %v12186_v51 = vld [vmem:[#allocation670_spill] sm:$0xff]  ;;  %v12189_v3 = vld [vmem:[#allocation115_spill] sm:$0xff] }
 0xa0d   : > { %v3411_v55 = vpop.f32.mrf.mxu0  ;;  %v12188_v47 = vld [vmem:[#allocation114_spill] sm:$0xff] }
 0xa0e   : > { %v4312_v40 = vrot.slane %v4311_v48, 4  ;;  %v3621_v54 = vadd.f32 %v3620_v13, %v3411_v55 }
 0xa0f   : > { %v4035_v10 = vpop.f32.mrf.mxu3 }
 0xa10   : > { %v4313_v50 = vadd.f32 %v4312_v40, %v4311_v48  ;;  %v4036_v9 = vadd.f32 %v4035_v10, %v3827_v19 }
 0xa12   : > { %v4314_v28 = vrot.slane %v4313_v50, 2  ;;  %v3829_v36 = vpop.f32.mrf.mxu2  ;;  %v4119_v12 = vmul.f32 %v4036_v9, %v12176_v11 }
 0xa13   : > { %v3830_v23 = vadd.f32 %v3829_v36, %v3621_v54 }
 0xa14   : > { %v4315_v21 = vadd.f32 %v4314_v28, %v4313_v50  ;;  %v3623_v14 = vpop.f32.mrf.mxu1 }
 0xa15   : > { %v3414_v45 = vpop.f32.mrf.mxu0 }
 0xa16   : > { %v4316_v42 = vrot.slane %v4315_v21, 1  ;;  %v3624_v62 = vadd.f32 %v3623_v14, %v3414_v45 }
 0xa17   : > { %v4038_v33 = vpop.f32.mrf.mxu3 }
 0xa18   : > { %v4317_v24 = vadd.f32 %v4316_v42, %v4315_v21  ;;  %v4039_v61 = vadd.f32 %v4038_v33, %v3830_v23 }
 0xa1a   : > { %v4405_v22 = vmul.f32 %v4317_v24, %v12184_v27  ;;  %v4406_v31 = vmul.f32 %v4317_v24, %v12185_v8  ;;  %v4120_v32 = vmul.f32 %v4039_v61, %v12179_v20  ;;  %v3832_v18 = vpop.f32.mrf.mxu2  ;;  %v12190_v27 = vld [vmem:[#allocation672_spill] sm:$0xff]  ;;  %v12191_v8 = vld [vmem:[#allocation673_spill] sm:$0xff] }
 0xa1b   : > { %v3833_v41 = vadd.f32 %v3832_v18, %v3624_v62 }
 0xa1c   : > { %v10172_v37 = vadd.f32 %v10132_v17, %v4405_v22  ;;  %v10175_v0 = vadd.f32 %v10135_v15, %v4406_v31  ;;  %v4318_v6 = vadd.f32 %v4120_v32, %v4119_v12  ;;  %v3626_v30 = vpop.f32.mrf.mxu1 }
 0xa1d   : > { %v3417_v26 = vpop.f32.mrf.mxu0 }
 0xa1e   : > { %v4319_v46 = vrot.slane %v4318_v6, 4  ;;  %v3627_v38 = vadd.f32 %v3626_v30, %v3417_v26 }
 0xa1f   : > { %v4041_v43 = vpop.f32.mrf.mxu3 }
 0xa20   : > { %v4320_v1 = vadd.f32 %v4319_v46, %v4318_v6  ;;  %v4042_v63 = vadd.f32 %v4041_v43, %v3833_v41 }
 0xa22   : > { %v4321_v58 = vrot.slane %v4320_v1, 2  ;;  %v3835_v60 = vpop.f32.mrf.mxu2  ;;  %v4121_v44 = vmul.f32 %v4042_v63, %v12188_v47 }
 0xa23   : > { %v3836_v17 = vadd.f32 %v3835_v60, %v3627_v38 }
 0xa24   : > { %v4322_v11 = vadd.f32 %v4321_v58, %v4320_v1  ;;  %v3629_v52 = vpop.f32.mrf.mxu1 }
 0xa25   : > { %v3420_v34 = vpop.f32.mrf.mxu0 }
 0xa26   : > { %v4323_v20 = vrot.slane %v4322_v11, 1  ;;  %v3630_v10 = vadd.f32 %v3629_v52, %v3420_v34 }
 0xa27   : > { %v4044_v49 = vpop.f32.mrf.mxu3 }
 0xa28   : > { %v4324_v16 = vadd.f32 %v4323_v20, %v4322_v11  ;;  %v4045_v15 = vadd.f32 %v4044_v49, %v3836_v17 }
 0xa2a   : > { %v4407_v56 = vmul.f32 %v4324_v16, %v12186_v51  ;;  %v4408_v25 = vmul.f32 %v4324_v16, %v12187_v5  ;;  %v4122_v35 = vmul.f32 %v4045_v15, %v12189_v3  ;;  %v3838_v40 = vpop.f32.mrf.mxu2 }
 0xa2b   : > { %v3839_v54 = vadd.f32 %v3838_v40, %v3630_v10 }
 0xa2c   : > { %v10182_v7 = vadd.f32 %v10142_v59, %v4407_v56  ;;  %v10185_v48 = vadd.f32 %v10145_v29, %v4408_v25  ;;  %v4325_v57 = vadd.f32 %v4122_v35, %v4121_v44  ;;  %v3632_v13 = vpop.f32.mrf.mxu1 }
 0xa2d   : > { %v3423_v55 = vpop.f32.mrf.mxu0 }
 0xa2e   : > { %v4326_v19 = vrot.slane %v4325_v57, 4  ;;  %v3633_v21 = vadd.f32 %v3632_v13, %v3423_v55 }
 0xa2f   : > { %v4047_v50 = vpop.f32.mrf.mxu3 }
 0xa30   : > { %v4327_v9 = vadd.f32 %v4326_v19, %v4325_v57  ;;  %v4048_v33 = vadd.f32 %v4047_v50, %v3839_v54  ;;  %v12192_v19 = vld [vmem:[#allocation674_spill] sm:$0xff]  ;;  %v12193_v50 = vld [vmem:[#allocation675_spill] sm:$0xff] }
 0xa32   : > { %v4328_v28 = vrot.slane %v4327_v9, 2  ;;  %v3841_v42 = vpop.f32.mrf.mxu2  ;;  %v4123_v12 = vmul.f32 %v4048_v33, %v12188_v47 }
 0xa33   : > { %v3842_v59 = vadd.f32 %v3841_v42, %v3633_v21 }
 0xa34   : > { %v4329_v36 = vadd.f32 %v4328_v28, %v4327_v9  ;;  %v3635_v14 = vpop.f32.mrf.mxu1 }
 0xa35   : > { %v3426_v45 = vpop.f32.mrf.mxu0 }
 0xa36   : > { %v4330_v23 = vrot.slane %v4329_v36, 1  ;;  %v3636_v62 = vadd.f32 %v3635_v14, %v3426_v45 }
 0xa37   : > { %v4050_v24 = vpop.f32.mrf.mxu3 }
 0xa38   : > { %v4331_v61 = vadd.f32 %v4330_v23, %v4329_v36  ;;  %v4051_v29 = vadd.f32 %v4050_v24, %v3842_v59 }
 0xa3a   : > { %v4409_v22 = vmul.f32 %v4331_v61, %v12190_v27  ;;  %v4410_v31 = vmul.f32 %v4331_v61, %v12191_v8  ;;  %v4124_v32 = vmul.f32 %v4051_v29, %v12189_v3  ;;  %v3844_v43 = vpop.f32.mrf.mxu2 }
 0xa3b   : > { %v3845_v38 = vadd.f32 %v3844_v43, %v3636_v62 }
 0xa3c   : > { %v10192_v6 = vadd.f32 %v10152_v53, %v4409_v22  ;;  %v10195_v18 = vadd.f32 %v10155_v39, %v4410_v31  ;;  %v4332_v46 = vadd.f32 %v4124_v32, %v4123_v12  ;;  %v3638_v60 = vpop.f32.mrf.mxu1 }
 0xa3d   : > { %v3429_v11 = vpop.f32.mrf.mxu0 }
 0xa3e   : > { %v4473_v1 = vadd.f32 %v10195_v18, %v10192_v6  ;;  %v4333_v26 = vrot.slane %v4332_v46, 4  ;;  %v3639_v53 = vadd.f32 %v3638_v60, %v3429_v11 }
 0xa3f   : > { %v4053_v30 = vpop.f32.mrf.mxu3 }
 0xa40   : > { %v4474_v58 = vrot.slane %v4473_v1, 4  ;;  %v4334_v41 = vadd.f32 %v4333_v26, %v4332_v46  ;;  %v4054_v39 = vadd.f32 %v4053_v30, %v3845_v38 }
 0xa42   : > { %v4475_v20 = vadd.f32 %v4474_v58, %v4473_v1  ;;  %v4335_v63 = vrot.slane %v4334_v41, 2  ;;  %v3847_v16 = vpop.f32.mrf.mxu2  ;;  %v4125_v44 = vmul.f32 %v4054_v39, %v12188_v47  ;;  %v12194_v39 = vld [vmem:[#allocation676_spill] sm:$0xff] }
 0xa43   : > { %v3848_v52 = vadd.f32 %v3847_v16, %v3639_v53 }
 0xa44   : > { %v4476_v17 = vrot.slane %v4475_v20, 2  ;;  %v4336_v49 = vadd.f32 %v4335_v63, %v4334_v41  ;;  %v3641_v57 = vpop.f32.mrf.mxu1 }
 0xa45   : > { %v3432_v35 = vpop.f32.mrf.mxu0 }
 0xa46   : > { %v4477_v15 = vadd.f32 %v4476_v17, %v4475_v20  ;;  %v4337_v34 = vrot.slane %v4336_v49, 1  ;;  %v3642_v42 = vadd.f32 %v3641_v57, %v3432_v35 }
 0xa47   : > { %v4056_v51 = vpop.f32.mrf.mxu3 }
 0xa48   : > { %v4478_v56 = vrot.slane %v4477_v15, 1  ;;  %v4338_v5 = vadd.f32 %v4337_v34, %v4336_v49  ;;  %v4057_v25 = vadd.f32 %v4056_v51, %v3848_v52 }
 0xa4a   : > { %v4479_v40 = vadd.f32 %v4478_v56, %v4477_v15  ;;  %v4411_v10 = vmul.f32 %v4338_v5, %v12192_v19  ;;  %v4412_v9 = vmul.f32 %v4338_v5, %v12193_v50  ;;  %v4126_v55 = vmul.f32 %v4057_v25, %v12189_v3  ;;  %v3850_v36 = vpop.f32.mrf.mxu2  ;;  %v12195_v15 = vld [vmem:[#allocation677_spill] sm:$0xff] }
 0xa4b   : > { %v3851_v14 = vadd.f32 %v3850_v36, %v3642_v42 }
 0xa4c   : > { %v4501_v13 = vadd.f32 1e-20, %v4479_v40  ;;  %v10204_v28 = vadd.f32 %v10162_v4, %v4411_v10  ;;  %v10207_v54 = vadd.f32 %v10165_v2, %v4412_v9  ;;  %v4339_v21 = vadd.f32 %v4126_v55, %v4125_v44  ;;  %v3644_v45 = vpop.f32.mrf.mxu1 }
 0xa4d   : > { %v3435_v29 = vpop.f32.mrf.mxu0 }
 0xa4e   : > { %5700 = vrcp.f32 %v4501_v13  ;;  %v4480_v33 = vadd.f32 %v10207_v54, %v10204_v28  ;;  %v4340_v59 = vrot.slane %v4339_v21, 4  ;;  %v3645_v27 = vadd.f32 %v3644_v45, %v3435_v29  ;;  %v12197_v29 = vld [vmem:[#allocation679_spill] sm:$0xff] }
 0xa4f   : > { %v4059_v23 = vpop.f32.mrf.mxu3  ;;  %v4514_v58 = vand.u32 2147483647, %v4501_v13  ;;  %v4516_v41 = vand.u32 2147483648, %v4501_v13  ;;  %vm4510_vm2 = vweird.f32 %v4501_v13 }
 0xa50   : > { %v4481_v24 = vrot.slane %v4480_v33, 4  ;;  %v4341_v61 = vadd.f32 %v4340_v59, %v4339_v21  ;;  %v4060_v46 = vadd.f32 %v4059_v23, %v3851_v14 }
 0xa51   : > { %vm4515_vm5 = vcmp.eq.f32.partialorder %v4514_v58, 8.507059e+37  ;;  %v4517_v52 = vor.u32 1.1754944e-38, %v4516_v41 }
 0xa52   : > { %v4482_v4 = vadd.f32 %v4481_v24, %v4480_v33  ;;  %v4342_v22 = vrot.slane %v4341_v61, 2  ;;  %v3853_v32 = vpop.f32.mrf.mxu2  ;;  %v4127_v63 = vmul.f32 %v4060_v46, %v12188_v47  ;;  %v12196_v24 = vld [vmem:[#allocation678_spill] sm:$0xff] }
 0xa53   : > { %v3854_v62 = vadd.f32 %v3853_v32, %v3645_v27 }
 0xa54   : > { %v5701_v8 = vpop.eup %5700  ;;  %v4483_v31 = vrot.slane %v4482_v4, 2  ;;  %v4343_v12 = vadd.f32 %v4342_v22, %v4341_v61 }
 0xa55   : > { %v4506_v2 = vmul.f32 %v5701_v8, %v4501_v13  ;;  %vm4511_vm0 = vweird.f32 %v5701_v8 }
 0xa56   : > { %v4484_v26 = vadd.f32 %v4483_v31, %v4482_v4  ;;  %v4344_v30 = vrot.slane %v4343_v12, 1  ;;  %vm4512_vm3 = vmor %vm4510_vm2, %vm4511_vm0 }
 0xa57   : > { %v4062_v43 = vpop.f32.mrf.mxu3  ;;  %v4507_v1 = vsub.f32 1.0, %v4506_v2 }
 0xa58   : > { %v4063_v38 = vadd.f32 %v4062_v43, %v3854_v62  ;;  %v4485_v60 = vrot.slane %v4484_v26, 1  ;;  %v4345_v20 = vadd.f32 %v4344_v30, %v4343_v12 }
 0xa59   : > { %v4508_v11 = vmul.f32 %v5701_v8, %v4507_v1 }
 0xa5a   : > { %v4128_v53 = vmul.f32 %v4063_v38, %v12189_v3  ;;  %v4486_v49 = vadd.f32 %v4485_v60, %v4484_v26  ;;  %v4413_v16 = vmul.f32 %v4345_v20, %v12194_v39  ;;  %v4414_v34 = vmul.f32 %v4345_v20, %v12195_v15 }
 0xa5b   : > { %v4509_v17 = vadd.f32 %v5701_v8, %v4508_v11 }
 0xa5c   : > { %v4346_v51 = vadd.f32 %v4128_v53, %v4127_v63  ;;  %v4502_v5 = vadd.f32 1e-20, %v4486_v49  ;;  %v10216_v25 = vadd.f32 %v10172_v37, %v4413_v16  ;;  %v10219_v47 = vadd.f32 %v10175_v0, %v4414_v34 }
 0xa5d   : > { %v4513_v56 = vsel %vm4512_vm3, %v5701_v8, %v4509_v17 }
 0xa5e   : > { %v4518_v3 = vsel %vm4515_vm5, %v4517_v52, %v4513_v56  ;;  %v4347_v44 = vrot.slane %v4346_v51, 4  ;;  %5702 = vrcp.f32 %v4502_v5  ;;  %v4487_v40 = vadd.f32 %v10219_v47, %v10216_v25 }
 0xa5f   : > { %v4519_v35 = vmul.f32 %v4518_v3, %v10192_v6  ;;  %v4520_v57 = vmul.f32 %v4518_v3, %v10195_v18  ;;  %v4530_v18 = vand.u32 2147483647, %v4502_v5  ;;  %v4532_v23 = vand.u32 2147483648, %v4502_v5 }
 0xa60   : > { %v4348_v19 = vadd.f32 %v4347_v44, %v4346_v51  ;;  %v4488_v10 = vrot.slane %v4487_v40, 4  ;;  %vm4526_vm7 = vweird.f32 %v4502_v5 }
 0xa61   : > { %4569 = vst [vmem:[%s7850_s18] sm:$0xff] %v4519_v35  ;;  %v4533_v8 = vor.u32 1.1754944e-38, %v4532_v23  ;;  %vm4531_vm4 = vcmp.eq.f32.partialorder %v4530_v18, 8.507059e+37 }
 0xa62   : > { %4570 = vst [vmem:[%s7850_s18 + $0x8] sm:$0xff] %v4520_v57  ;;  %v4349_v50 = vrot.slane %v4348_v19, 2  ;;  %v4489_v37 = vadd.f32 %v4488_v10, %v4487_v40 }
 0xa64   : > { %v4350_v9 = vadd.f32 %v4349_v50, %v4348_v19  ;;  %v5703_v55 = vpop.eup %5702  ;;  %v4490_v13 = vrot.slane %v4489_v37, 2 }
 0xa65   : > { %v4522_v0 = vmul.f32 %v5703_v55, %v4502_v5  ;;  %vm4527_vm6 = vweird.f32 %v5703_v55 }
 0xa66   : > { %v4351_v21 = vrot.slane %v4350_v9, 1  ;;  %v4491_v42 = vadd.f32 %v4490_v13, %v4489_v37  ;;  %vm4528_vm1 = vmor %vm4526_vm7, %vm4527_vm6 }
 0xa67   : > { %v4523_v36 = vsub.f32 1.0, %v4522_v0 }
 0xa68   : > { %v4352_v6 = vadd.f32 %v4351_v21, %v4350_v9  ;;  %v4492_v59 = vrot.slane %v4491_v42, 1 }
 0xa69   : > { %v4524_v33 = vmul.f32 %v5703_v55, %v4523_v36 }
 0xa6a   : > { %v4415_v61 = vmul.f32 %v4352_v6, %v12196_v24  ;;  %v4416_v45 = vmul.f32 %v4352_v6, %v12197_v29  ;;  %v4493_v27 = vadd.f32 %v4492_v59, %v4491_v42 }
 0xa6b   : > { %v4525_v14 = vadd.f32 %v5703_v55, %v4524_v33 }
 0xa6c   : > { %v4465_v4 = vadd.f32 %v10182_v7, %v4415_v61  ;;  %v4472_v22 = vadd.f32 %v10185_v48, %v4416_v45  ;;  %v4503_v31 = vadd.f32 1e-20, %v4493_v27 }
 0xa6d   : > { %v4529_v2 = vsel %vm4528_vm1, %v5703_v55, %v4525_v14 }
 0xa6e   : > { %v4494_v12 = vadd.f32 %v4472_v22, %v4465_v4  ;;  %v4534_v32 = vsel %vm4531_vm4, %v4533_v8, %v4529_v2  ;;  %5704 = vrcp.f32 %v4503_v31  ;;  %v4548_v38 = vand.u32 2147483648, %v4503_v31 }
 0xa6f   : > { %v4535_v46 = vmul.f32 %v4534_v32, %v10204_v28  ;;  %v4536_v62 = vmul.f32 %v4534_v32, %v10207_v54  ;;  %v4546_v60 = vand.u32 2147483647, %v4503_v31  ;;  %vm4542_vm9 = vweird.f32 %v4503_v31 }
 0xa70   : > { %v4495_v43 = vrot.slane %v4494_v12, 4  ;;  %v4549_v63 = vor.u32 1.1754944e-38, %v4548_v38 }
 0xa71   : > { %4571 = vst [vmem:[%s7850_s18 + $0x10] sm:$0xff] %v4535_v46  ;;  %vm4547_vm11 = vcmp.eq.f32.partialorder %v4546_v60, 8.507059e+37 }
 0xa72   : > { %4572 = vst [vmem:[%s7850_s18 + $0x18] sm:$0xff] %v4536_v62  ;;  %v4496_v1 = vadd.f32 %v4495_v43, %v4494_v12 }
 0xa74   : > { %v4497_v26 = vrot.slane %v4496_v1, 2  ;;  %v5705_v7 = vpop.eup %5704 }
 0xa75   : > { %v4538_v30 = vmul.f32 %v5705_v7, %v4503_v31  ;;  %vm4543_vm8 = vweird.f32 %v5705_v7 }
 0xa76   : > { %v4498_v48 = vadd.f32 %v4497_v26, %v4496_v1  ;;  %vm4544_vm10 = vmor %vm4542_vm9, %vm4543_vm8 }
 0xa77   : > { %v4539_v58 = vsub.f32 1.0, %v4538_v30 }
 0xa78   : > { %v4499_v41 = vrot.slane %v4498_v48, 1 }
 0xa79   : > { %v4540_v11 = vmul.f32 %v5705_v7, %v4539_v58 }
 0xa7a   : > { %v4500_v28 = vadd.f32 %v4499_v41, %v4498_v48 }
 0xa7b   : > { %v4541_v54 = vadd.f32 %v5705_v7, %v4540_v11 }
 0xa7c   : > { %v4504_v20 = vadd.f32 1e-20, %v4500_v28 }
 0xa7d   : > { %v4545_v53 = vsel %vm4544_vm10, %v5705_v7, %v4541_v54 }
 0xa7e   : > { %5706 = vrcp.f32 %v4504_v20  ;;  %v4550_v17 = vsel %vm4547_vm11, %v4549_v63, %v4545_v53  ;;  %v4564_v52 = vand.u32 2147483648, %v4504_v20  ;;  %v4562_v56 = vand.u32 2147483647, %v4504_v20 }
 0xa7f   : > { %v4551_v49 = vmul.f32 %v4550_v17, %v10216_v25  ;;  %v4552_v39 = vmul.f32 %v4550_v17, %v10219_v47  ;;  %vm4558_vm13 = vweird.f32 %v4504_v20 }
 0xa80   : > { %v4565_v25 = vor.u32 1.1754944e-38, %v4564_v52  ;;  %vm4563_vm15 = vcmp.eq.f32.partialorder %v4562_v56, 8.507059e+37 }
 0xa81   : > { %4573 = vst [vmem:[%s7850_s18 + $0x20] sm:$0xff] %v4551_v49 }
 0xa82   : > { %4574 = vst [vmem:[%s7850_s18 + $0x28] sm:$0xff] %v4552_v39 }
 0xa84   : > { %v5707_v16 = vpop.eup %5706 }
 0xa85   : > { %v4554_v15 = vmul.f32 %v5707_v16, %v4504_v20  ;;  %vm4559_vm12 = vweird.f32 %v5707_v16 }
 0xa86   : > { %vm4560_vm14 = vmor %vm4558_vm13, %vm4559_vm12 }
 0xa87   : > { %v4555_v34 = vsub.f32 1.0, %v4554_v15 }
 0xa89   : > { %v4556_v51 = vmul.f32 %v5707_v16, %v4555_v34 }
 0xa8b   : > { %v4557_v5 = vadd.f32 %v5707_v16, %v4556_v51 }
 0xa8d   : > { %v4561_v47 = vsel %vm4560_vm14, %v5707_v16, %v4557_v5 }
 0xa8e   : > { %v4566_v3 = vsel %vm4563_vm15, %v4565_v25, %v4561_v47 }
 0xa8f   : > { %v4567_v44 = vmul.f32 %v4566_v3, %v4465_v4  ;;  %v4568_v35 = vmul.f32 %v4566_v3, %v4472_v22 }
 0xa91   : > { %4575 = vst [vmem:[%s7850_s18 + $0x30] sm:$0xff] %v4567_v44 }
 0xa92   : > { %4576 = vst [vmem:[%s7850_s18 + $0x38] sm:$0xff] %v4568_v35 }
 0xa93   : > { %5825 = shalt.err (!%p5822_p12)
}
 0xa94   : > { %s6397_s24 = smov 128   ;;  %s6398_s18 = smov 256  }
 0xa95   : > { %s6399_s26 = smov 8  }
 0xa96   : > { %4907 = dma.vmem_to_hbm [thread:$0]  (%p6486_p3), %s4590_s17, 1024, %s4592_s20, %s4578_s16, %s6397_s24, %s6398_s18, %s6399_s26  }
 0xa97 PF: > { %s4606_s27 = sand.u32 1, %s6116_s12   ;;  %p12198_p13 = scmp.ge.s32.totalorder %s6128_s15, 2 }
 0xa98   : > { %s4607_s28 = scalar_lea.sflag [#allocation4], %s4606_s27 }
 0xa99   : > { %p4921_p0 = pnand %p12198_p13, %p6455_p6 }
 0xa9b   : > { %p4922_p5 = pneg %p4921_p0 }
 0xa9d   : > { %6111 = dma.done.wait (%p4922_p5), %s4607_s28, 1024  }
 0xa9e   : > { %6113 = vsyncadd (%p4922_p5), %s4607_s28, 4294966272  ;;  %p17_p7 = scmp.ge.s32.totalorder %s6476_s6, 4   ;;  %s12199_s12 = smov %s6120_s13 }
 0xa9f   : > { %s12200_s13 = smov %s6124_s14  ;;  %s12201_s14 = smov %s6492_s10 }
 0xaa0   : > { %s12202_s15 = smov %s6476_s6  ;;  %19 = sbr.rel (!%p17_p7) target bundleno = 6 (0x6), region = 103 }
 0xaa5   :  { %4613 = vsyncpa [#allocation3], 1 }
 0xaa6   :  { %4615 = vsyncpa [#allocation3 + $0x1], 1 }
 0xaa7   :  { %4616 = vsyncpa [#allocation6], 1 }
 0xaa8   :  { %4617 = vsyncpa [#allocation4], 1 }
 0xaa9   :  { %4619 = vsyncpa [#allocation4 + $0x1], 1 }

</bundles_post_ra>
